<compile_context>
chip_gen: v6e
topology: v6e:2x2x1
jax: 0.10.0
libtpu: 0.0.40
codegen_flags: <defaults>
</compile_context>

<pallas_src>
import numpy as np
import jax
import jax.numpy as jnp
from jax import lax
from jax.experimental import pallas as pl
from jax.experimental.pallas import tpu as pltpu


# ----------------------------------------------------------------------------
# Buffers equivalent to gen_relative_log_coords / gen_relative_position_index
# ----------------------------------------------------------------------------
def gen_relative_log_coords(win_size, mode="cr"):
    assert mode == "cr"
    rh = np.arange(-(win_size[0] - 1), win_size[0], dtype=np.float32)
    rw = np.arange(-(win_size[1] - 1), win_size[1], dtype=np.float32)
    table = np.stack(np.meshgrid(rh, rw, indexing="ij"), axis=-1)  # (2H-1, 2W-1, 2)
    table = np.sign(table) * np.log1p(np.abs(table))
    return table.astype(np.float32)


def gen_relative_position_index(q_size):
    # Relies (like timm) on np.unique's lexicographic ordering matching the
    # row-major meshgrid('ij') order of the coords table; true by construction.
    qh = np.arange(q_size[0])
    qw = np.arange(q_size[1])
    coords = np.stack(np.meshgrid(qh, qw, indexing="ij")).reshape(2, -1)   # (2, A)
    rel = coords[:, :, None] - coords[:, None, :]                          # (2, A, A)
    rel = rel.transpose(1, 2, 0).reshape(-1, 2)                            # (A*A, 2)
    _, rel_idx = np.unique(rel, return_inverse=True, axis=0)               # (A*A,)
    return rel_idx.reshape(-1).astype(np.int32)


# ----------------------------------------------------------------------------
# Kernel #1: batch-invariant bias table  (heads, A*A), run once.
# ----------------------------------------------------------------------------
def _bias_table_kernel(coords_t_ref, w1t_ref, b1_ref, w2t_ref, b2_ref, bias_ref):
    # Layer 1 (in_features == 2) as two broadcast FMAs on the VPU.
    c0 = coords_t_ref[0:1, :]                                  # (1, TA)
    c1 = coords_t_ref[1:2, :]                                  # (1, TA)
    h = w1t_ref[:, 0:1] * c0 + w1t_ref[:, 1:2] * c1 + b1_ref[...]   # (hidden, TA)
    h = jnp.maximum(h, 0.0)                                    # ReLU
    # Layer 2 on the MXU; lane dim = TA (lane-dense output, unmasked stores).
    bias_ref[...] = (
        jnp.dot(w2t_ref[...], h, preferred_element_type=jnp.float32)
        + b2_ref[...])


def _pick_lane_tile(a2, cap=1024):
    """Largest multiple-of-128 divisor of a2 that is <= cap (or a2 itself)."""
    if a2 <= cap or a2 % 128 != 0:
        return a2
    best = 128
    for t in range(128, cap + 1, 128):
        if a2 % t == 0:
            best = t
    return best


def relpos_bias_table(coords_exp_t, w1_t, b1_col, w2_t, b2_col):
    """coords_exp_t: (2, A*A) pre-gathered log coords.  Returns (heads, A*A)."""
    _, a2 = coords_exp_t.shape
    hidden = w1_t.shape[0]
    heads = w2_t.shape[0]
    ta = _pick_lane_tile(a2)
    return pl.pallas_call(
        _bias_table_kernel,
        out_shape=jax.ShapeDtypeStruct((heads, a2), jnp.float32),
        grid=(a2 // ta,),
        in_specs=[
            pl.BlockSpec((2, ta), lambda j: (0, j)),
            # Invariant (constant index map) operands: fetched once, tiny.
            pl.BlockSpec((hidden, 2), lambda j: (0, 0)),
            pl.BlockSpec((hidden, 1), lambda j: (0, 0)),
            pl.BlockSpec((heads, hidden), lambda j: (0, 0)),
            pl.BlockSpec((heads, 1), lambda j: (0, 0)),
        ],
        out_specs=pl.BlockSpec((heads, ta), lambda j: (0, j)),
        compiler_params=pltpu.CompilerParams(
            dimension_semantics=("parallel",)),
    )(coords_exp_t, w1_t, b1_col, w2_t, b2_col)


# ----------------------------------------------------------------------------
# Kernel #2: streaming broadcast-add of the bias onto the attention logits.
# ----------------------------------------------------------------------------
def _bias_add_kernel(attn_ref, bias_ref, out_ref):
    # Pure vld + vadd + vst per vreg; bias block is VMEM-resident (constant
    # index map => no refetch between grid steps).
    out_ref[...] = attn_ref[...] + bias_ref[...][None, :, :]


def relpos_bias_add(attn, bias_hn):
    """attn: (B, heads, A, A); bias_hn: (heads, A*A).  Returns attn + bias."""
    bp, heads, a, _ = attn.shape
    a2 = a * a
    attn3 = attn.reshape(bp, heads, a2)          # free reshape, no transpose
    row_bytes = heads * a2 * 4

    # Fuse batch rows per block (~<=1 MiB) but keep >=2 grid steps when
    # possible so v7x's two TensorCores both get work.
    bc = max(1, min(bp, (1 << 20) // max(row_bytes, 1)))
    if bp >= 2:
        bc = max(1, min(bc, bp // 2))
    while bp % bc:
        bc -= 1
    nb = bp // bc

    vmem_limit = min(max(6 * bc * row_bytes + 4 * heads * a2 * 4 + (2 << 20),
                         4 << 20), 32 << 20)

    out3 = pl.pallas_call(
        _bias_add_kernel,
        out_shape=jax.ShapeDtypeStruct(attn3.shape, attn3.dtype),
        grid=(nb,),
        in_specs=[
            pl.BlockSpec((bc, heads, a2), lambda i: (i, 0, 0)),
            # Invariant bias (constant index map); tiny, default buffering OK.
            pl.BlockSpec((heads, a2), lambda i: (0, 0)),
        ],
        out_specs=pl.BlockSpec((bc, heads, a2), lambda i: (i, 0, 0)),
        compiler_params=pltpu.CompilerParams(
            dimension_semantics=("parallel",),
            vmem_limit_bytes=int(vmem_limit)),
    )(attn3, bias_hn)
    return out3.reshape(bp, heads, a, a)


def relpos_mlp_forward(attn, params, buffers):
    """Equivalent of RelPosMlp.forward(attn) in eval mode (mode='cr')."""
    bias_hn = relpos_bias_table(buffers["coords_exp_t"], params["w1_t"],
                                params["b1_col"], params["w2_t"],
                                params["b2_col"])
    return relpos_bias_add(attn, bias_hn)


# ----------------------------------------------------------------------------
# Pure-JAX reference (mirrors RelPosMlp.forward in eval mode, mode='cr')
# ----------------------------------------------------------------------------
def relpos_mlp_reference(attn, coords_tab, rel_idx, w1, b1, w2, b2):
    _, heads, a, _ = attn.shape
    x = coords_tab.reshape(-1, 2)                              # (R, 2)
    h = jnp.maximum(jnp.dot(x, w1, precision=lax.Precision.HIGHEST) + b1, 0.0)
    tab = jnp.dot(h, w2, precision=lax.Precision.HIGHEST) + b2  # (R, heads)
    bias = tab[rel_idx].reshape(a, a, heads)                   # gather + view
    bias = jnp.transpose(bias, (2, 0, 1))                      # permute(2,0,1)
    return attn + bias[None]                                   # unsqueeze(0) + add


if __name__ == "__main__":
    # GlobalScaleAttention config: dilation=8 -> window (8,8), window_area A=64,
    # num_heads=8, RelPosMlp hidden_dim=512.  Small "batch" of 4 windows,
    # i.e. attn logits of shape (b*hp*wp, num_heads, A, A).
    window_size = (8, 8)
    num_heads = 8
    hidden_dim = 512
    A = window_size[0] * window_size[1]
    B = 4

    # Static buffers (equivalents of the module's registered buffers).
    coords_tab = gen_relative_log_coords(window_size, mode="cr")   # (15, 15, 2)
    rel_idx = gen_relative_position_index(window_size)             # (A*A,)
    # Fold the static gather into the coords buffer:
    #   bias[q,k,h] = MLP(coords_flat[rel_idx[q*A+k]])[h]
    coords_flat = coords_tab.reshape(-1, 2)                        # (R, 2)
    coords_exp_t = jnp.asarray(np.ascontiguousarray(coords_flat[rel_idx].T))  # (2, A*A)

    # Deterministic parameters (Mlp: Linear(2->hidden) / ReLU / Linear(hidden->heads)).
    key = jax.random.PRNGKey(0)
    k1, k2, k3, k4, k5 = jax.random.split(key, 5)
    w1 = jax.random.normal(k1, (2, hidden_dim), jnp.float32) * 0.5
    b1 = jax.random.normal(k2, (hidden_dim,), jnp.float32) * 0.1
    w2 = jax.random.normal(k3, (hidden_dim, num_heads), jnp.float32) * 0.2
    b2 = jax.random.normal(k4, (num_heads,), jnp.float32) * 0.1

    # Attention logits (B, num_heads, window_area, window_area).
    attn = jax.random.normal(k5, (B, num_heads, A, A), jnp.float32)

    params = {
        "w1_t": jnp.transpose(w1),               # (hidden, 2)
        "b1_col": b1.reshape(hidden_dim, 1),     # (hidden, 1)
        "w2_t": jnp.transpose(w2),               # (heads, hidden)
        "b2_col": b2.reshape(num_heads, 1),      # (heads, 1)
    }
    buffers = {"coords_exp_t": coords_exp_t}

    out = relpos_mlp_forward(attn, params, buffers)
    out = jax.block_until_ready(out)

    ref = relpos_mlp_reference(attn, jnp.asarray(coords_tab), jnp.asarray(rel_idx),
                               w1, b1, w2, b2)
    ref = jax.block_until_ready(ref)

    assert out.shape == (B, num_heads, A, A)
    np.testing.assert_allclose(np.asarray(out), np.asarray(ref), rtol=1e-4, atol=1e-4)
    print("KERNEL_OK")
</pallas_src>

<mosaic_0001>
module attributes {stable_mosaic.version = 11 : i64} {
  func.func @_bias_table_kernel(%arg0: i32, %arg1: memref<2x1024xf32, #tpu.memory_space<vmem>>, %arg2: memref<512x2xf32, #tpu.memory_space<vmem>>, %arg3: memref<512x1xf32, #tpu.memory_space<vmem>>, %arg4: memref<8x512xf32, #tpu.memory_space<vmem>>, %arg5: memref<8x1xf32, #tpu.memory_space<vmem>>, %arg6: memref<8x1024xf32, #tpu.memory_space<vmem>>) attributes {dimension_semantics = [#tpu.dimension_semantics<parallel>], iteration_bounds = array<i64: 4>, scalar_prefetch = 0 : i64, scratch_operands = 0 : i64, tpu.core_type = #tpu.core_type<tc>, window_params = [{transform_indices = @transform_0, window_bounds = array<i64: 2, 1024>}, {pipeline_mode = #tpu.pipeline_mode<synchronous>, transform_indices = @transform_1, window_bounds = array<i64: 512, 2>}, {pipeline_mode = #tpu.pipeline_mode<synchronous>, transform_indices = @transform_2, window_bounds = array<i64: 512, 1>}, {pipeline_mode = #tpu.pipeline_mode<synchronous>, transform_indices = @transform_3, window_bounds = array<i64: 8, 512>}, {pipeline_mode = #tpu.pipeline_mode<synchronous>, transform_indices = @transform_4, window_bounds = array<i64: 8, 1>}, {transform_indices = @transform_5, window_bounds = array<i64: 8, 1024>}]} {
    %c0 = arith.constant 0 : index
    %c0_0 = arith.constant 0 : index
    %0 = vector.load %arg1[%c0, %c0_0] : memref<2x1024xf32, #tpu.memory_space<vmem>>, vector<1x1024xf32>
    %c1 = arith.constant 1 : index
    %c0_1 = arith.constant 0 : index
    %1 = vector.load %arg1[%c1, %c0_1] : memref<2x1024xf32, #tpu.memory_space<vmem>>, vector<1x1024xf32>
    %c0_2 = arith.constant 0 : index
    %c0_3 = arith.constant 0 : index
    %2 = vector.load %arg2[%c0_2, %c0_3] : memref<512x2xf32, #tpu.memory_space<vmem>>, vector<512x1xf32>
    %3 = vector.broadcast %2 : vector<512x1xf32> to vector<512x1024xf32>
    %4 = vector.broadcast %0 : vector<1x1024xf32> to vector<512x1024xf32>
    %5 = arith.mulf %3, %4 : vector<512x1024xf32>
    %c0_4 = arith.constant 0 : index
    %c1_5 = arith.constant 1 : index
    %6 = vector.load %arg2[%c0_4, %c1_5] : memref<512x2xf32, #tpu.memory_space<vmem>>, vector<512x1xf32>
    %7 = vector.broadcast %6 : vector<512x1xf32> to vector<512x1024xf32>
    %8 = vector.broadcast %1 : vector<1x1024xf32> to vector<512x1024xf32>
    %9 = arith.mulf %7, %8 : vector<512x1024xf32>
    %10 = arith.addf %5, %9 : vector<512x1024xf32>
    %c0_6 = arith.constant 0 : index
    %c0_7 = arith.constant 0 : index
    %11 = vector.load %arg3[%c0_6, %c0_7] : memref<512x1xf32, #tpu.memory_space<vmem>>, vector<512x1xf32>
    %12 = vector.broadcast %11 : vector<512x1xf32> to vector<512x1024xf32>
    %13 = arith.addf %10, %12 : vector<512x1024xf32>
    %cst = arith.constant 0.000000e+00 : f32
    %14 = vector.broadcast %cst : f32 to vector<512x1024xf32>
    %15 = arith.maximumf %13, %14 : vector<512x1024xf32>
    %c0_8 = arith.constant 0 : index
    %c0_9 = arith.constant 0 : index
    %16 = vector.load %arg4[%c0_8, %c0_9] : memref<8x512xf32, #tpu.memory_space<vmem>>, vector<8x512xf32>
    %cst_10 = arith.constant dense<0.000000e+00> : vector<8x1024xf32>
    %17 = tpu.matmul %16, %15, %cst_10 {dimension_numbers = #tpu.dot_dimension_numbers<[1], [0], [0], [1], [0, 0, 1, 1], [], []>} : vector<8x512xf32>, vector<512x1024xf32>, vector<8x1024xf32> -> vector<8x1024xf32>
    %c0_11 = arith.constant 0 : index
    %c0_12 = arith.constant 0 : index
    %18 = vector.load %arg5[%c0_11, %c0_12] : memref<8x1xf32, #tpu.memory_space<vmem>>, vector<8x1xf32>
    %19 = vector.broadcast %18 : vector<8x1xf32> to vector<8x1024xf32>
    %20 = arith.addf %17, %19 : vector<8x1024xf32>
    %c0_13 = arith.constant 0 : index
    %c0_14 = arith.constant 0 : index
    %21 = vector.load %arg6[%c0_13, %c0_14] : memref<8x1024xf32, #tpu.memory_space<vmem>>, vector<8x1024xf32>
    tpu.vector_store %arg6[%c0_13, %c0_14], %20 {strides = array<i32>} : memref<8x1024xf32, #tpu.memory_space<vmem>>, vector<8x1024xf32>,
    return
  }
  func.func @transform_0(%arg0: i32) -> (i32, i32) {
    %c0_i32 = arith.constant 0 : i32
    %c0_i32_0 = arith.constant 0 : i32
    return %c0_i32, %arg0 : i32, i32
  }
  func.func @transform_1(%arg0: i32) -> (i32, i32) {
    %c0_i32 = arith.constant 0 : i32
    %c0_i32_0 = arith.constant 0 : i32
    %c0_i32_1 = arith.constant 0 : i32
    return %c0_i32, %c0_i32_0 : i32, i32
  }
  func.func @transform_2(%arg0: i32) -> (i32, i32) {
    %c0_i32 = arith.constant 0 : i32
    %c0_i32_0 = arith.constant 0 : i32
    %c0_i32_1 = arith.constant 0 : i32
    return %c0_i32, %c0_i32_0 : i32, i32
  }
  func.func @transform_3(%arg0: i32) -> (i32, i32) {
    %c0_i32 = arith.constant 0 : i32
    %c0_i32_0 = arith.constant 0 : i32
    %c0_i32_1 = arith.constant 0 : i32
    return %c0_i32, %c0_i32_0 : i32, i32
  }
  func.func @transform_4(%arg0: i32) -> (i32, i32) {
    %c0_i32 = arith.constant 0 : i32
    %c0_i32_0 = arith.constant 0 : i32
    %c0_i32_1 = arith.constant 0 : i32
    return %c0_i32, %c0_i32_0 : i32, i32
  }
  func.func @transform_5(%arg0: i32) -> (i32, i32) {
    %c0_i32 = arith.constant 0 : i32
    %c0_i32_0 = arith.constant 0 : i32
    return %c0_i32, %arg0 : i32, i32
  }
}

</mosaic_0001>

<bundles_post_ra>
// kernel: tpu_custom_call.1
= control target key start
LH: loop header
LB: loop body
LE: loop exit
PB: predicated region body
PF: predicated region fallthrough
CT: control target
= control target key end

     0   :  { %10 = vsyncpa [#allocation3], 0  ;;  %s12025_s0 = inlined_call_operand.vmem [shape: f32[2,4096], index: 0, kind: input, shape index: {}]   ;;  %s12026_s1 = inlined_call_operand.vmem [shape: f32[512,2], index: 1, kind: input, shape index: {}]   ;;  %s12027_s2 = inlined_call_operand.vmem [shape: f32[512,1], index: 2, kind: input, shape index: {}]   ;;  %s12028_s3 = inlined_call_operand.vmem [shape: f32[8,512], index: 3, kind: input, shape index: {}]   ;;  %s12029_s4 = inlined_call_operand.vmem [shape: f32[8,1], index: 4, kind: input, shape index: {}]   ;;  %s12030_s5 = inlined_call_operand.hbm [shape: f32[8,4096], index: 5, kind: output, shape index: {}]  }
   0x1   :  { %12 = vsyncpa [#allocation3 + $0x1], 0  ;;  %s4805_s18 = smov 0   ;;  %s4807_s19 = smov 0  }
   0x2   :  { %s4809_s20 = smov 0   ;;  %s4811_s21 = smov 0  }
   0x3 LB: > { %s4826_s22 = sadd.s32 4294967295, %s4770_s21   ;;  %s4555_s23 = sadd.s32 4294967294, %s4770_s21   ;;  %s4770_s21 = sphi %s4811_s21, %s15250_s21   ;;  %s4766_s20 = sphi %s4809_s20, %s15249_s20   ;;  %s4762_s19 = sphi %s4807_s19, %s15248_s19   ;;  %s4758_s18 = sphi %s4805_s18, %s15247_s18  }
   0x4   : > { %s4830_s24 = sadd.s32 1, %s4770_s21   ;;  %s135_s25 = sadd.s32 1, %s4766_s20 }
   0x5   : > { %s132_s26 = ssub.s32 %s4770_s21, %s4830_s24  ;;  %p145_p0 = scmp.ne.s32.totalorder %s4766_s20, %s4762_s19 }
   0x6   : > { %p133_p1 = scmp.eq.s32.totalorder %s132_s26, 0  ;;  %p146_p2 = scmp.eq.s32.totalorder %s4826_s22, 3 }
   0x7   : > { %p151_p3 = scmp.ne.s32.totalorder %s4762_s19, %s4758_s18  ;;  %p152_p4 = scmp.eq.s32.totalorder %s4555_s23, 3 }
   0x8   : > { %s4841_s27 = scalar_select %p133_p1, %s4766_s20, %s135_s25  }
   0x9   : > { %p4843_p5 = por %p146_p2, %p145_p0  ;;  %p4847_p6 = por %p152_p4, %p151_p3 }
   0xa   : > { %p4558_p7 = scmp.ge.s32.totalorder %s4770_s21, 1  ;;  %p191_p8 = scmp.lt.s32.totalorder %s4770_s21, 5 }
   0xc   : > { %p192_p9 = pnand %p4558_p7, %p191_p8 }
   0xe   : > { %195 = sbr.rel (%p192_p9) target bundleno = 1194 (0x4aa), region = 40 }
  0x13   : > { %v244_v0 = vld [vmem:[%s12026_s1 + $0x78] sm:$0xff]  ;;  %v231_v1 = vld [vmem:[%s12026_s1 + $0x10] sm:$0xff]  ;;  %v12033_v2 = vmov 1   ;;  %v12031_v3 = vmov 0   ;;  %v242_v4 = vld [vmem:[%s12026_s1 + $0x68] sm:$0xff]  ;;  %s4560_s9 = sshll.u32 %s4826_s22, 3 }
  0x14   : > { %4611 = vset.pattern.permute.xlu0 %v12033_v2  ;;  %4610 = vset.pattern.permute.xlu1 %v12031_v3  ;;  %v232_v5 = vld [vmem:[%s12026_s1 + $0x18] sm:$0xff]  ;;  %v234_v7 = vld [vmem:[%s12026_s1 + $0x28] sm:$0xff]  ;;  %v4900_v16 = vld [vmem:[%s12026_s1 + $0xe0] sm:$0xff]  ;;  %p220_p10 = scmp.lt.s32.totalorder %s4560_s9, 31  ;;  %s216_s26 = sand.u32 1, %s4762_s19  }
  0x15   : > { %1227 = vperm.xlu0 %4611, %v244_v0   ;;  %305 = vperm.xlu1 %4610, %v231_v1   ;;  %v240_v6 = vld [vmem:[%s12026_s1 + $0x58] sm:$0xff]  ;;  %v238_v8 = vld [vmem:[%s12026_s1 + $0x48] sm:$0xff]  ;;  %v4909_v18 = vld [vmem:[%s12026_s1 + $0xd0] sm:$0xff]  ;;  %s4559_s6 = sshll.u32 %s216_s26, 6  ;;  %s4482_s14 = scalar_lea.sflag [#allocation3], %s216_s26 }
  0x16   : > { %v236_v9 = vld [vmem:[%s12026_s1 + $0x38] sm:$0xff]  ;;  %v230_v10 = vld [vmem:[%s12026_s1 + $0x8] sm:$0xff]  ;;  %v4918_v20 = vld [vmem:[%s12026_s1 + $0xc0] sm:$0xff]  ;;  %s15252_s9 = smov (!%p220_p10, %s4560_s9), 31  ;;  %s11978_s8 = scalar_lea.vmem [#allocation2], %s4559_s6 }
  0x17   : > { %v246_v11 = vld [vmem:[%s12026_s1 + $0x88] sm:$0xff]  ;;  %v260_v12 = vld [vmem:[%s12026_s1 + $0xf8] sm:$0xff]  ;;  %v251_v22 = vld [vmem:[%s12026_s1 + $0xb0] sm:$0xff]  ;;  %s4561_s16 = sshll.u32 %s15252_s9, 1  ;;  %s4568_s9 = sshll.u32 %s4826_s22, 10 }
  0x18   : > { %v248_v13 = vld [vmem:[%s12026_s1 + $0x98] sm:$0xff]  ;;  %v250_v15 = vld [vmem:[%s12026_s1 + $0xa8] sm:$0xff]  ;;  %v249_v24 = vld [vmem:[%s12026_s1 + $0xa0] sm:$0xff]  ;;  %s5149_s30 = scalar_lea.vmem %s12025_s0, %s4561_s16  ;;  %s4496_s10 = sshll.u32 %s11978_s8, 4  ;;  %s4497_s10 = int_to_ptr.vmem [resolvable:$true] %s4496_s10 }
  0x19   : > { %1219 = vperm.xlu0 %4611, %v242_v4   ;;  %310 = vperm.xlu1 %4610, %v232_v5   ;;  %v292_v14 = vld [vmem:[%s12026_s1 + $0x1f8] sm:$0xff]  ;;  %v254_v19 = vld [vmem:[%s12026_s1 + $0xc8] sm:$0xff]  ;;  %v247_v25 = vld [vmem:[%s12026_s1 + $0x90] sm:$0xff]  ;;  %s4494_s13 = scalar_lea.hbm %s12030_s5, %s4568_s9  ;;  %s4710_s15 = scalar_lea.vmem %s4497_s10, 1024 }
  0x1a   : > { %v252_v17 = vld [vmem:[%s12026_s1 + $0xb8] sm:$0xff]  ;;  %v258_v23 = vld [vmem:[%s12026_s1 + $0xe8] sm:$0xff]  ;;  %v245_v27 = vld [vmem:[%s12026_s1 + $0x80] sm:$0xff]  ;;  %p4711_p11 = scmp.ne.s32.totalorder %s4497_s10, %s4710_s15  ;;  %s4774_s22 = smov [#allocation2]  }
  0x1b   : > { %v256_v21 = vld [vmem:[%s12026_s1 + $0xd8] sm:$0xff]  ;;  %v262_v26 = vld [vmem:[%s12026_s1 + $0x108] sm:$0xff]  ;;  %v229_v29 = vld [vmem:[%s12026_s1] sm:$0xff]  ;;  %s4714_s16 = sshll.u32 %s4774_s22, 4  ;;  %s4715_s16 = int_to_ptr.vmem [resolvable:$false] %s4714_s16 }
  0x1c   : > { %v264_v28 = vld [vmem:[%s12026_s1 + $0x118] sm:$0xff]  ;;  %v4952_v30 = vld [vmem:[%s12026_s1 + $0x128] sm:$0xff]  ;;  %v4963_v32 = vld [vmem:[%s12026_s1 + $0x20] sm:$0xff]  ;;  %p4712_p12 = pnand %p4711_p11, %p4843_p5  ;;  %s4716_s17 = scalar_lea.vmem %s4715_s16, 2048 }
  0x1d   : > { %1211 = vperm.xlu0 %4611, %v240_v6   ;;  %320 = vperm.xlu1 %4610, %v234_v7   ;;  %12862 = vst [vmem:[#allocation5_spill] sm:$0xff] %v4952_v30  ;;  %v4958_v31 = vld [vmem:[%s12026_s1 + $0x138] sm:$0xff]  ;;  %12864 = vst [vmem:[#allocation7_spill] sm:$0xff] %v4963_v32  ;;  %v4970_v33 = vld [vmem:[%s12026_s1 + $0x148] sm:$0xff]  ;;  %p4717_p0 = scmp.lt.s32.totalorder %s4497_s10, %s4715_s16  ;;  %p4718_p1 = scmp.lt.s32.totalorder %s4716_s17, %s4710_s15 }
  0x1e   : > { %12863 = vst [vmem:[#allocation6_spill] sm:$0xff] %v4958_v31  ;;  %v4975_v34 = vld [vmem:[%s12026_s1 + $0x30] sm:$0xff]  ;;  %v4982_v35 = vld [vmem:[%s12026_s1 + $0x158] sm:$0xff]  ;;  %v4987_v36 = vld [vmem:[%s12026_s1 + $0x40] sm:$0xff]  ;;  %p4713_p13 = pneg %p4712_p12 }
  0x1f   : > { %12865 = vst [vmem:[#allocation8_spill] sm:$0xff] %v4975_v34  ;;  %v274_v37 = vld [vmem:[%s12026_s1 + $0x168] sm:$0xff]  ;;  %v4997_v38 = vld [vmem:[%s12026_s1 + $0x50] sm:$0xff]  ;;  %v276_v39 = vld [vmem:[%s12026_s1 + $0x178] sm:$0xff]  ;;  %p4719_p2 = por %p4718_p1, %p4717_p0 }
  0x20   : > { %v241_v40 = vld [vmem:[%s12026_s1 + $0x60] sm:$0xff]  ;;  %v278_v41 = vld [vmem:[%s12026_s1 + $0x188] sm:$0xff]  ;;  %v243_v42 = vld [vmem:[%s12026_s1 + $0x70] sm:$0xff] }
  0x21   : > { %1203 = vperm.xlu0 %4611, %v238_v8   ;;  %330 = vperm.xlu1 %4610, %v236_v9   ;;  %v280_v43 = vld [vmem:[%s12026_s1 + $0x198] sm:$0xff]  ;;  %v282_v44 = vld [vmem:[%s12026_s1 + $0x1a8] sm:$0xff]  ;;  %v259_v51 = vld [vmem:[%s12026_s1 + $0xf0] sm:$0xff]  ;;  %p4720_p3 = pnand %p4719_p2, %p4713_p13 }
  0x22   : > { %v284_v45 = vld [vmem:[%s12026_s1 + $0x1b8] sm:$0xff]  ;;  %v286_v46 = vld [vmem:[%s12026_s1 + $0x1c8] sm:$0xff]  ;;  %v275_v54 = vld [vmem:[%s12026_s1 + $0x170] sm:$0xff] }
  0x23   : > { %v288_v47 = vld [vmem:[%s12026_s1 + $0x1d8] sm:$0xff]  ;;  %v290_v48 = vld [vmem:[%s12026_s1 + $0x1e8] sm:$0xff]  ;;  %v261_v55 = vld [vmem:[%s12026_s1 + $0x100] sm:$0xff] }
  0x24   : > { %v263_v58 = vld [vmem:[%s12026_s1 + $0x110] sm:$0xff]  ;;  %v5065_v61 = vld [vmem:[%s12026_s1 + $0x120] sm:$0xff] }
  0x25   : > { %1195 = vperm.xlu0 %4611, %v236_v9   ;;  %340 = vperm.xlu1 %4610, %v238_v8   ;;  %12874 = vst [vmem:[#allocation17_spill] sm:$0xff] %v5065_v61  ;;  %v273_v9 = vld [vmem:[%s12026_s1 + $0x160] sm:$0xff] }
  0x29   : > { %1187 = vperm.xlu0 %4611, %v234_v7   ;;  %350 = vperm.xlu1 %4610, %v240_v6   ;;  %v5089_v6 = vld [vmem:[%s12026_s1 + $0x140] sm:$0xff] }
  0x2d   : > { %1179 = vperm.xlu0 %4611, %v232_v5   ;;  %360 = vperm.xlu1 %4610, %v242_v4   ;;  %v2534_v5 = vld [vmem:[%s12027_s2 + $0x178] sm:$0xff] }
  0x31   : > { %370 = vperm.xlu1 %4610, %v244_v0   ;;  %1171 = vperm.xlu0 %4611, %v230_v10   ;;  %v5075_v0 = vld [vmem:[%s12026_s1 + $0x130] sm:$0xff] }
  0x32   : > { %12877 = vst [vmem:[#allocation20_spill] sm:$0xff] %v5075_v0 }
  0x35   : > { %380 = vperm.xlu1 %4610, %v246_v11   ;;  %1291 = vperm.xlu0 %4611, %v260_v12  }
  0x39   : > { %390 = vperm.xlu1 %4610, %v248_v13   ;;  %1419 = vperm.xlu0 %4611, %v292_v14   ;;  %v2500_v13 = vld [vmem:[%s12027_s2 + $0x68] sm:$0xff] }
  0x3d   : > { %400 = vperm.xlu1 %4610, %v250_v15   ;;  %1279 = vperm.xlu0 %4611, %v4900_v16  }
  0x41   : > { %410 = vperm.xlu1 %4610, %v252_v17   ;;  %1271 = vperm.xlu0 %4611, %v4909_v18  }
  0x45   : > { %420 = vperm.xlu1 %4610, %v254_v19   ;;  %1263 = vperm.xlu0 %4611, %v4918_v20  }
  0x49   : > { %430 = vperm.xlu1 %4610, %v256_v21   ;;  %1255 = vperm.xlu0 %4611, %v251_v22   ;;  %v614_v21 = vlaneseq }
  0x4d   : > { %440 = vperm.xlu1 %4610, %v258_v23   ;;  %1247 = vperm.xlu0 %4611, %v249_v24  }
  0x51   : > { %450 = vperm.xlu1 %4610, %v260_v12   ;;  %1239 = vperm.xlu0 %4611, %v247_v25  }
  0x55   : > { %460 = vperm.xlu1 %4610, %v262_v26   ;;  %1231 = vperm.xlu0 %4611, %v245_v27   ;;  %v5140_v26 = vshrl.u32 %v614_v21, 7 }
  0x57   : > { %12892 = vst [vmem:[#allocation35_spill] sm:$0xff] %v5140_v26 }
  0x59   : > { %470 = vperm.xlu1 %4610, %v264_v28   ;;  %4668 = vset.pattern.permute.xlu0 %v12031_v3 }
  0x5a   : > { %295 = vperm.xlu0 %4668, %v229_v29  }
  0x5d   : > { %480 = vperm.xlu1 %4610, %v4952_v30  }
  0x5e   : > { %300 = vperm.xlu0 %4668, %v230_v10   ;;  %v271_v10 = vld [vmem:[%s12026_s1 + $0x150] sm:$0xff] }
  0x61   : > { %490 = vperm.xlu1 %4610, %v4958_v31  }
  0x62   : > { %315 = vperm.xlu0 %4668, %v4963_v32  }
  0x65   : > { %500 = vperm.xlu1 %4610, %v4970_v33  }
  0x66   : > { %325 = vperm.xlu0 %4668, %v4975_v34  }
  0x69   : > { %510 = vperm.xlu1 %4610, %v4982_v35  }
  0x6a   : > { %335 = vperm.xlu0 %4668, %v4987_v36  }
  0x6d   : > { %520 = vperm.xlu1 %4610, %v274_v37  }
  0x6e   : > { %345 = vperm.xlu0 %4668, %v4997_v38  }
  0x71   : > { %530 = vperm.xlu1 %4610, %v276_v39  }
  0x72   : > { %355 = vperm.xlu0 %4668, %v241_v40  }
  0x75   : > { %540 = vperm.xlu1 %4610, %v278_v41   ;;  %v283_v41 = vld [vmem:[%s12026_s1 + $0x1b0] sm:$0xff] }
  0x76   : > { %365 = vperm.xlu0 %4668, %v243_v42  }
  0x79   : > { %550 = vperm.xlu1 %4610, %v280_v43   ;;  %v636_v43 = vsub.s32 5, %v5140_v26 }
  0x7a   : > { %375 = vperm.xlu0 %4668, %v245_v27   ;;  %v281_v27 = vld [vmem:[%s12026_s1 + $0x1a0] sm:$0xff] }
  0x7d   : > { %560 = vperm.xlu1 %4610, %v282_v44   ;;  %v632_v44 = vsub.s32 4, %v5140_v26 }
  0x7e   : > { %385 = vperm.xlu0 %4668, %v247_v25   ;;  %v2532_v25 = vld [vmem:[%s12027_s2 + $0x168] sm:$0xff] }
  0x81   : > { %570 = vperm.xlu1 %4610, %v284_v45  }
  0x82   : > { %395 = vperm.xlu0 %4668, %v249_v24  }
  0x85   : > { %580 = vperm.xlu1 %4610, %v286_v46  }
  0x86   : > { %405 = vperm.xlu0 %4668, %v251_v22   ;;  %v279_v22 = vld [vmem:[%s12026_s1 + $0x190] sm:$0xff] }
  0x89   : > { %590 = vperm.xlu1 %4610, %v288_v47  }
  0x8a   : > { %415 = vperm.xlu0 %4668, %v4918_v20  }
  0x8d   : > { %600 = vperm.xlu1 %4610, %v290_v48  }
  0x8e   : > { %425 = vperm.xlu0 %4668, %v4909_v18   ;;  %v277_v18 = vld [vmem:[%s12026_s1 + $0x180] sm:$0xff] }
  0x90   : > { %v5032_v49 = vpop.permute.xlu0 %1227  ;;  %v5034_v50 = vpop.permute.xlu1 %305 }
  0x91   : > { %12866 = vst [vmem:[#allocation9_spill] sm:$0xff] %v5032_v49  ;;  %12867 = vst [vmem:[#allocation10_spill] sm:$0xff] %v5034_v50  ;;  %4612 = vset.pattern.permute.xlu1 %v12033_v2 }
  0x92   : > { %1223 = vperm.xlu1 %4612, %v243_v42   ;;  %435 = vperm.xlu0 %4668, %v4900_v16   ;;  %v4562_v42 = vld [vmem:[%s5149_s30 + $0x1] ss:$2 sm:$0xff] }
  0x94   : > { %v5041_v52 = vpop.permute.xlu0 %1219  ;;  %v5043_v53 = vpop.permute.xlu1 %310 }
  0x95   : > { %12868 = vst [vmem:[#allocation11_spill] sm:$0xff] %v5041_v52  ;;  %12869 = vst [vmem:[#allocation12_spill] sm:$0xff] %v5043_v53 }
  0x96   : > { %1355 = vperm.xlu1 %4612, %v276_v39   ;;  %445 = vperm.xlu0 %4668, %v259_v51   ;;  %v628_v39 = vsub.s32 3, %v5140_v26  ;;  %v2498_v51 = vld [vmem:[%s12027_s2 + $0x58] sm:$0xff] }
  0x98   : > { %v5051_v56 = vpop.permute.xlu0 %1211  ;;  %v5053_v57 = vpop.permute.xlu1 %320 }
  0x99   : > { %12870 = vst [vmem:[#allocation13_spill] sm:$0xff] %v5051_v56  ;;  %12871 = vst [vmem:[#allocation14_spill] sm:$0xff] %v5053_v57 }
  0x9a   : > { %1351 = vperm.xlu1 %4612, %v275_v54   ;;  %455 = vperm.xlu0 %4668, %v261_v55  }
  0x9c   : > { %v5058_v59 = vpop.permute.xlu0 %1203  ;;  %v5060_v60 = vpop.permute.xlu1 %330 }
  0x9d   : > { %12872 = vst [vmem:[#allocation15_spill] sm:$0xff] %v5058_v59  ;;  %12873 = vst [vmem:[#allocation16_spill] sm:$0xff] %v5060_v60 }
  0x9e   : > { %1215 = vperm.xlu1 %4612, %v241_v40   ;;  %465 = vperm.xlu0 %4668, %v263_v58   ;;  %v624_v40 = vsub.s32 2, %v5140_v26 }
  0xa0   : > { %v5067_v62 = vpop.permute.xlu0 %1195  ;;  %v5069_v63 = vpop.permute.xlu1 %340 }
  0xa1   : > { %12875 = vst [vmem:[#allocation18_spill] sm:$0xff] %v5067_v62  ;;  %12876 = vst [vmem:[#allocation19_spill] sm:$0xff] %v5069_v63 }
  0xa2   : > { %1347 = vperm.xlu1 %4612, %v274_v37   ;;  %475 = vperm.xlu0 %4668, %v5065_v61   ;;  %v616_v37 = vsub.s32 0, %v5140_v26 }
  0xa4   : > { %v5077_v1 = vpop.permute.xlu0 %1187  ;;  %v5079_v4 = vpop.permute.xlu1 %350  ;;  %v5180_v55 = vrot.slane %v4562_v42, %v616_v37 }
  0xa5   : > { %12878 = vst [vmem:[#allocation21_spill] sm:$0xff] %v5077_v1  ;;  %12879 = vst [vmem:[#allocation22_spill] sm:$0xff] %v5079_v4 }
  0xa6   : > { %4613 = vset.pattern.permute.xlu1 %v12031_v3  ;;  %485 = vperm.xlu0 %4668, %v5075_v0   ;;  %v1519_v34 = vmul.f32 %v5180_v55, %v5067_v62 }
  0xa7   : > { %2788 = vperm.xlu1 %4613, %v2534_v5  }
  0xa8   : > { %v5091_v7 = vpop.permute.xlu0 %1179  ;;  %v5093_v8 = vpop.permute.xlu1 %360 }
  0xa9   : > { %12880 = vst [vmem:[#allocation23_spill] sm:$0xff] %v5091_v7  ;;  %12881 = vst [vmem:[#allocation24_spill] sm:$0xff] %v5093_v8 }
  0xaa   : > { %495 = vperm.xlu0 %4668, %v5089_v6  }
  0xab   : > { %4614 = vset.pattern.permute.xlu1 %v12033_v2 }
  0xac   : > { %1343 = vperm.xlu1 %4614, %v273_v9   ;;  %v5103_v11 = vpop.permute.xlu1 %370  ;;  %v5105_v12 = vpop.permute.xlu0 %1171 }
  0xad   : > { %12882 = vst [vmem:[#allocation25_spill] sm:$0xff] %v5103_v11  ;;  %12883 = vst [vmem:[#allocation26_spill] sm:$0xff] %v5105_v12 }
  0xae   : > { %505 = vperm.xlu0 %4668, %v271_v10  }
  0xb0   : > { %4615 = vset.pattern.permute.xlu1 %v12031_v3  ;;  %v5111_v14 = vpop.permute.xlu1 %380  ;;  %v5113_v15 = vpop.permute.xlu0 %1291 }
  0xb1   : > { %12884 = vst [vmem:[#allocation27_spill] sm:$0xff] %v5111_v14  ;;  %12885 = vst [vmem:[#allocation28_spill] sm:$0xff] %v5113_v15  ;;  %2618 = vperm.xlu1 %4615, %v2500_v13   ;;  %v5191_v13 = vrot.slane %v4562_v42, %v624_v40 }
  0xb2   : > { %515 = vperm.xlu0 %4668, %v273_v9   ;;  %v285_v9 = vld [vmem:[%s12026_s1 + $0x1c0] sm:$0xff] }
  0xb3   : > { %12902 = vst [vmem:[#allocation45_spill] sm:$0xff] %v5191_v13 }
  0xb4   : > { %v5116_v16 = vpop.permute.xlu1 %390  ;;  %v5118_v17 = vpop.permute.xlu0 %1419 }
  0xb5   : > { %12886 = vst [vmem:[#allocation29_spill] sm:$0xff] %v5116_v16  ;;  %12887 = vst [vmem:[#allocation30_spill] sm:$0xff] %v5118_v17  ;;  %4616 = vset.pattern.permute.xlu1 %v12033_v2 }
  0xb6   : > { %1207 = vperm.xlu1 %4616, %v4997_v38   ;;  %525 = vperm.xlu0 %4668, %v275_v54   ;;  %v226_v38 = vld [vmem:[%s5149_s30] ss:$2 sm:$0xff] }
  0xb7   : > { %v5173_v48 = vrot.slane %v226_v38, %v616_v37  ;;  %v5182_v58 = vrot.slane %v226_v38, %v628_v39  ;;  %v5184_v5 = vrot.slane %v226_v38, %v624_v40  ;;  %v5195_v21 = vrot.slane %v226_v38, %v632_v44 }
  0xb8   : > { %v5125_v19 = vpop.permute.xlu1 %400  ;;  %v5127_v20 = vpop.permute.xlu0 %1279  ;;  %v5210_v37 = vrot.slane %v4562_v42, %v636_v43 }
  0xb9   : > { %12888 = vst [vmem:[#allocation31_spill] sm:$0xff] %v5125_v19  ;;  %12889 = vst [vmem:[#allocation32_spill] sm:$0xff] %v5127_v20  ;;  %v5220_v40 = vmul.f32 %v5173_v48, %v5034_v50  ;;  %v5275_v61 = vmul.f32 %v5173_v48, %v5043_v53  ;;  %v5292_v32 = vmul.f32 %v5184_v5, %v5043_v53  ;;  %v289_v20 = vld [vmem:[%s12026_s1 + $0x1e0] sm:$0xff] }
  0xba   : > { %1339 = vperm.xlu1 %4616, %v4982_v35   ;;  %535 = vperm.xlu0 %4668, %v277_v18   ;;  %v620_v35 = vsub.s32 1, %v5140_v26  ;;  %12898 = vst [vmem:[#allocation41_spill] sm:$0xff] %v5173_v48  ;;  %12899 = vst [vmem:[#allocation42_spill] sm:$0xff] %v5182_v58  ;;  %v5193_v18 = vrot.slane %v226_v38, %v636_v43  ;;  %v5236_v43 = vmul.f32 %v5184_v5, %v5034_v50 }
  0xbb   : > { %12900 = vst [vmem:[#allocation43_spill] sm:$0xff] %v5184_v5  ;;  %12904 = vst [vmem:[#allocation47_spill] sm:$0xff] %v5195_v21  ;;  %v5342_v12 = vmul.f32 %v5182_v58, %v5053_v57  ;;  %v726_v31 = vmul.f32 %v5173_v48, %v5069_v63  ;;  %v5395_v16 = vmul.f32 %v5210_v37, %v5058_v59 }
  0xbc   : > { %v5133_v23 = vpop.permute.xlu1 %410  ;;  %v5135_v24 = vpop.permute.xlu0 %1271  ;;  %v5171_v47 = vrot.slane %v226_v38, %v620_v35  ;;  %v5178_v54 = vrot.slane %v4562_v42, %v620_v35  ;;  %12903 = vst [vmem:[#allocation46_spill] sm:$0xff] %v5193_v18  ;;  %v5208_v35 = vmul.f32 %v5180_v55, %v5032_v49  ;;  %12908 = vst [vmem:[#allocation51_spill] sm:$0xff] %v5210_v37 }
  0xbd   : > { %12890 = vst [vmem:[#allocation33_spill] sm:$0xff] %v5133_v23  ;;  %12891 = vst [vmem:[#allocation34_spill] sm:$0xff] %v5135_v24  ;;  %v5311_v24 = vmul.f32 %v5195_v21, %v5043_v53  ;;  %v5364_v23 = vmul.f32 %v5195_v21, %v5053_v57  ;;  %v729_v14 = vmul.f32 %v5182_v58, %v5069_v63 }
  0xbe   : > { %4617 = vset.pattern.permute.xlu1 %v12031_v3  ;;  %545 = vperm.xlu0 %4668, %v279_v22   ;;  %12897 = vst [vmem:[#allocation40_spill] sm:$0xff] %v5171_v47  ;;  %12907 = vst [vmem:[#allocation50_spill] sm:$0xff] %v5208_v35  ;;  %v5216_v38 = vmul.f32 %v5171_v47, %v5034_v50 }
  0xbf   : > { %2778 = vperm.xlu1 %4617, %v2532_v25   ;;  %12911 = vst [vmem:[#allocation54_spill] sm:$0xff] %v5220_v40  ;;  %12915 = vst [vmem:[#allocation58_spill] sm:$0xff] %v5236_v43  ;;  %v5259_v43 = vmul.f32 %v5193_v18, %v5034_v50 }
  0xc0   : > { %v5151_v28 = vpop.permute.xlu1 %420  ;;  %v5153_v29 = vpop.permute.xlu0 %1263  ;;  %12910 = vst [vmem:[#allocation53_spill] sm:$0xff] %v5216_v38  ;;  %v5271_v38 = vmul.f32 %v5171_v47, %v5043_v53  ;;  %12924 = vst [vmem:[#allocation66_spill] sm:$0xff] %v5292_v32 }
  0xc1   : > { %12893 = vst [vmem:[#allocation36_spill] sm:$0xff] %v5151_v28  ;;  %12894 = vst [vmem:[#allocation37_spill] sm:$0xff] %v5153_v29  ;;  %v5307_v29 = vmul.f32 %v5193_v18, %v5043_v53  ;;  %v5360_v28 = vmul.f32 %v5193_v18, %v5053_v57 }
  0xc2   : > { %555 = vperm.xlu0 %4668, %v281_v27   ;;  %v5204_v27 = vmul.f32 %v5178_v54, %v5032_v49  ;;  %12918 = vst [vmem:[#allocation61_spill] sm:$0xff] %v5259_v43  ;;  %v5288_v43 = vmul.f32 %v5182_v58, %v5043_v53  ;;  %12928 = vst [vmem:[#allocation70_spill] sm:$0xff] %v5311_v24  ;;  %v1535_v24 = vmul.f32 %v5180_v55, %v5058_v59 }
  0xc3   : > { %4618 = vset.pattern.permute.xlu1 %v12033_v2  ;;  %v5251_v2 = vmul.f32 %v5178_v54, %v5041_v52  ;;  %12927 = vst [vmem:[#allocation69_spill] sm:$0xff] %v5307_v29  ;;  %12933 = vst [vmem:[#allocation75_spill] sm:$0xff] %v5360_v28  ;;  %v711_v29 = vmul.f32 %v5171_v47, %v5060_v60  ;;  %v2502_v28 = vld [vmem:[%s12027_s2 + $0x78] sm:$0xff] }
  0xc4   : > { %1335 = vperm.xlu1 %4618, %v271_v10   ;;  %v5167_v45 = vpop.permute.xlu1 %430  ;;  %v5169_v46 = vpop.permute.xlu0 %1255  ;;  %v5189_v10 = vrot.slane %v4562_v42, %v628_v39  ;;  %v5212_v39 = vrot.slane %v4562_v42, %v632_v44  ;;  %v5232_v42 = vmul.f32 %v5182_v58, %v5034_v50  ;;  %v5240_v44 = vmul.f32 %v5210_v37, %v5032_v49 }
  0xc5   : > { %12895 = vst [vmem:[#allocation38_spill] sm:$0xff] %v5167_v45  ;;  %12896 = vst [vmem:[#allocation39_spill] sm:$0xff] %v5169_v46  ;;  %v1552_v46 = vmul.f32 %v5178_v54, %v5051_v56  ;;  %v5350_v45 = vmul.f32 %v5210_v37, %v5051_v56  ;;  %v5445_v32 = vadd.f32 %v1535_v24, %v726_v31  ;;  %v2533_v31 = vld [vmem:[%s12027_s2 + $0x170] sm:$0xff] }
  0xc6   : > { %565 = vperm.xlu0 %4668, %v283_v41   ;;  %12901 = vst [vmem:[#allocation44_spill] sm:$0xff] %v5189_v10  ;;  %12909 = vst [vmem:[#allocation52_spill] sm:$0xff] %v5212_v39  ;;  %v5224_v41 = vmul.f32 %v5189_v10, %v5032_v49  ;;  %v5279_v30 = vmul.f32 %v5189_v10, %v5041_v52  ;;  %v5330_v53 = vmul.f32 %v5189_v10, %v5051_v56 }
  0xc7   : > { %12914 = vst [vmem:[#allocation57_spill] sm:$0xff] %v5232_v42  ;;  %12916 = vst [vmem:[#allocation59_spill] sm:$0xff] %v5240_v44  ;;  %v5255_v42 = vmul.f32 %v5180_v55, %v5041_v52  ;;  %v5429_v44 = vmul.f32 %v5193_v18, %v5060_v60  ;;  %v758_v24 = vmul.f32 %v5173_v48, %v5093_v8 }
  0xc8   : > { %4619 = vset.pattern.permute.xlu1 %v12031_v3  ;;  %v5198_v22 = vpop.permute.xlu1 %440  ;;  %v5200_v25 = vpop.permute.xlu0 %1247  ;;  %12912 = vst [vmem:[#allocation55_spill] sm:$0xff] %v5224_v41  ;;  %v5228_v3 = vmul.f32 %v5191_v13, %v5032_v49  ;;  %12923 = vst [vmem:[#allocation65_spill] sm:$0xff] %v5288_v43  ;;  %v5441_v41 = vmul.f32 %v5195_v21, %v5060_v60 }
  0xc9   : > { %12905 = vst [vmem:[#allocation48_spill] sm:$0xff] %v5198_v22  ;;  %12906 = vst [vmem:[#allocation49_spill] sm:$0xff] %v5200_v25  ;;  %2608 = vperm.xlu1 %4619, %v2498_v51   ;;  %v5244_v51 = vmul.f32 %v5212_v39, %v5032_v49  ;;  %v5263_v49 = vmul.f32 %v5195_v21, %v5034_v50  ;;  %v5283_v50 = vmul.f32 %v5191_v13, %v5041_v52 }
  0xca   : > { %12913 = vst [vmem:[#allocation56_spill] sm:$0xff] %v5228_v3  ;;  %575 = vperm.xlu0 %4668, %v285_v9   ;;  %v287_v9 = vld [vmem:[%s12026_s1 + $0x1d0] sm:$0xff]  ;;  %v5300_v25 = vmul.f32 %v5212_v39, %v5041_v52  ;;  %v5346_v22 = vmul.f32 %v5184_v5, %v5053_v57  ;;  %12931 = vst [vmem:[#allocation73_spill] sm:$0xff] %v5350_v45  ;;  %v727_v45 = vmul.f32 %v5171_v47, %v5069_v63 }
  0xcb   : > { %12917 = vst [vmem:[#allocation60_spill] sm:$0xff] %v5244_v51  ;;  %12919 = vst [vmem:[#allocation62_spill] sm:$0xff] %v5263_v49  ;;  %v12922_v49 = vmov 1   ;;  %v728_v51 = vmul.f32 %v5184_v5, %v5069_v63  ;;  %v1503_v63 = vmul.f32 %v5180_v55, %v5077_v1  ;;  %v744_v3 = vmul.f32 %v5184_v5, %v5079_v4 }
  0xcc   : > { %v5265_v26 = vpop.permute.xlu1 %450  ;;  %v5267_v40 = vpop.permute.xlu0 %1239  ;;  %12926 = vst [vmem:[#allocation68_spill] sm:$0xff] %v5300_v25  ;;  %12934 = vst [vmem:[#allocation76_spill] sm:$0xff] %v5364_v23  ;;  %v712_v23 = vmul.f32 %v5184_v5, %v5060_v60  ;;  %v5399_v25 = vmul.f32 %v5212_v39, %v5058_v59 }
  0xcd   : > { %12920 = vst [vmem:[#allocation63_spill] sm:$0xff] %v5265_v26  ;;  %12921 = vst [vmem:[#allocation64_spill] sm:$0xff] %v5267_v40  ;;  %4620 = vset.pattern.permute.xlu1 %v12922_v49  ;;  %v5296_v40 = vmul.f32 %v5210_v37, %v5041_v52  ;;  %v5318_v52 = vmul.f32 %v5180_v55, %v5051_v56  ;;  %v5338_v26 = vmul.f32 %v5191_v13, %v5051_v56  ;;  %v12939_v37 = vmov 0  }
  0xce   : > { %1199 = vperm.xlu1 %4620, %v4987_v36   ;;  %585 = vperm.xlu0 %4668, %v287_v9   ;;  %v5322_v36 = vmul.f32 %v5171_v47, %v5053_v57  ;;  %v5326_v9 = vmul.f32 %v5173_v48, %v5053_v57  ;;  %v1538_v57 = vmul.f32 %v5189_v10, %v5058_v59 }
  0xcf   : > { %12925 = vst [vmem:[#allocation67_spill] sm:$0xff] %v5296_v40  ;;  %12936 = vst [vmem:[#allocation78_spill] sm:$0xff] %v5395_v16  ;;  %v2501_v16 = vld [vmem:[%s12027_s2 + $0x70] sm:$0xff] }
  0xd0   : > { %v5332_v17 = vpop.permute.xlu1 %460  ;;  %v5334_v0 = vpop.permute.xlu0 %1231  ;;  %12937 = vst [vmem:[#allocation79_spill] sm:$0xff] %v5399_v25  ;;  %v1521_v25 = vmul.f32 %v5191_v13, %v5067_v62  ;;  %12940 = vst [vmem:[#allocation81_spill] sm:$0xff] %v5429_v44 }
  0xd1   : > { %12929 = vst [vmem:[#allocation71_spill] sm:$0xff] %v5332_v17  ;;  %12930 = vst [vmem:[#allocation72_spill] sm:$0xff] %v5334_v0  ;;  %v1536_v17 = vmul.f32 %v5178_v54, %v5058_v59  ;;  %v5356_v0 = vmul.f32 %v5212_v39, %v5051_v56  ;;  %v710_v56 = vmul.f32 %v5173_v48, %v5060_v60 }
  0xd2   : > { %1331 = vperm.xlu1 %4620, %v4970_v33   ;;  %595 = vperm.xlu0 %4668, %v289_v20   ;;  %v1537_v33 = vmul.f32 %v5191_v13, %v5058_v59  ;;  %v713_v20 = vmul.f32 %v5182_v58, %v5060_v60  ;;  %v743_v59 = vmul.f32 %v5171_v47, %v5079_v4 }
  0xd3   : > { %12932 = vst [vmem:[#allocation74_spill] sm:$0xff] %v5356_v0  ;;  %v2530_v0 = vld [vmem:[%s12027_s2 + $0x158] sm:$0xff]  ;;  %v742_v39 = vmul.f32 %v5173_v48, %v5079_v4  ;;  %12944 = vst [vmem:[#allocation85_spill] sm:$0xff] %v5445_v32  ;;  %v5449_v44 = vadd.f32 %v1519_v34, %v710_v56  ;;  %v778_v60 = vmul.f32 %v5195_v21, %v5103_v11 }
  0xd4   : > { %v5384_v19 = vpop.permute.xlu1 %470 }
  0xd5   : > { %12935 = vst [vmem:[#allocation77_spill] sm:$0xff] %v5384_v19  ;;  %v5401_v40 = vpop.permute.xlu0 %295  ;;  %v1520_v19 = vmul.f32 %v5178_v54, %v5067_v62  ;;  %12946 = vst [vmem:[#allocation87_spill] sm:$0xff] %v5449_v44  ;;  %v5466_v34 = vadd.f32 %v5318_v52, %v742_v39  ;;  %v5485_v52 = vadd.f32 %v5338_v26, %v744_v3  ;;  %v2496_v3 = vld [vmem:[%s12027_s2 + $0x48] sm:$0xff]  ;;  %v2499_v39 = vld [vmem:[%s12027_s2 + $0x60] sm:$0xff] }
  0xd6   : > { %12938 = vst [vmem:[#allocation80_spill] sm:$0xff] %v5401_v40  ;;  %4621 = vset.pattern.permute.xlu1 %v12939_v37  ;;  %2628 = vperm.xlu0 %4668, %v2502_v28   ;;  %v1522_v40 = vmul.f32 %v5189_v10, %v5067_v62  ;;  %v1504_v28 = vmul.f32 %v5178_v54, %v5077_v1 }
  0xd7   : > { %2768 = vperm.xlu1 %4621, %v2530_v0   ;;  %v5433_v0 = vadd.f32 %v1536_v17, %v727_v45  ;;  %v745_v62 = vmul.f32 %v5182_v58, %v5079_v4  ;;  %v5447_v43 = vadd.f32 %v1520_v19, %v711_v29  ;;  %v5451_v17 = vadd.f32 %v1538_v57, %v729_v14 }
  0xd8   : > { %v5431_v15 = vpop.permute.xlu1 %480  ;;  %v5453_v45 = vadd.f32 %v1552_v46, %v743_v59  ;;  %v5459_v4 = vadd.f32 %v1521_v25, %v712_v23  ;;  %12952 = vst [vmem:[#allocation93_spill] sm:$0xff] %v5466_v34  ;;  %v5469_v56 = vadd.f32 %v1504_v28, %v5322_v36  ;;  %v5472_v57 = vadd.f32 %v1503_v63, %v5326_v9  ;;  %v13076_v34 = vld [vmem:[#allocation39_spill] sm:$0xff] }
  0xd9   : > { %12941 = vst [vmem:[#allocation82_spill] sm:$0xff] %v5431_v15  ;;  %12942 = vst [vmem:[#allocation83_spill] sm:$0xff] %v5433_v0  ;;  %v5443_v35 = vpop.permute.xlu0 %300  ;;  %v5455_v0 = vadd.f32 %v1537_v33, %v728_v51  ;;  %v5457_v15 = vadd.f32 %v1522_v40, %v713_v20  ;;  %v1506_v59 = vmul.f32 %v5189_v10, %v5077_v1 }
  0xda   : > { %12943 = vst [vmem:[#allocation84_spill] sm:$0xff] %v5443_v35  ;;  %12945 = vst [vmem:[#allocation86_spill] sm:$0xff] %v5447_v43  ;;  %2623 = vperm.xlu0 %4668, %v2501_v16   ;;  %v759_v16 = vmul.f32 %v5171_v47, %v5093_v8  ;;  %v5482_v19 = vadd.f32 %v5330_v53, %v745_v62  ;;  %v1505_v63 = vmul.f32 %v5191_v13, %v5077_v1  ;;  %v13017_v43 = vld [vmem:[#allocation31_spill] sm:$0xff] }
  0xdb   : > { %12947 = vst [vmem:[#allocation88_spill] sm:$0xff] %v5451_v17  ;;  %12948 = vst [vmem:[#allocation89_spill] sm:$0xff] %v5453_v45  ;;  %4622 = vset.pattern.permute.xlu1 %v12922_v49  ;;  %v1487_v29 = vmul.f32 %v5180_v55, %v5091_v7  ;;  %v761_v53 = vmul.f32 %v5182_v58, %v5093_v8  ;;  %v775_v62 = vmul.f32 %v5171_v47, %v5103_v11 }
  0xdc   : > { %12949 = vst [vmem:[#allocation90_spill] sm:$0xff] %v5455_v0  ;;  %12950 = vst [vmem:[#allocation91_spill] sm:$0xff] %v5457_v15  ;;  %1327 = vperm.xlu1 %4622, %v5089_v6   ;;  %v5477_v14 = vpop.permute.xlu1 %490  ;;  %v1488_v6 = vmul.f32 %v5178_v54, %v5091_v7  ;;  %v760_v26 = vmul.f32 %v5184_v5, %v5093_v8  ;;  %v1490_v46 = vmul.f32 %v5189_v10, %v5091_v7  ;;  %v13002_v15 = vld [vmem:[#allocation52_spill] sm:$0xff] }
  0xdd   : > { %12951 = vst [vmem:[#allocation92_spill] sm:$0xff] %v5459_v4  ;;  %12953 = vst [vmem:[#allocation94_spill] sm:$0xff] %v5469_v56  ;;  %v5489_v23 = vpop.permute.xlu0 %315  ;;  %v1489_v25 = vmul.f32 %v5191_v13, %v5091_v7  ;;  %v774_v40 = vmul.f32 %v5173_v48, %v5103_v11  ;;  %v777_v51 = vmul.f32 %v5182_v58, %v5103_v11 }
  0xde   : > { %12954 = vst [vmem:[#allocation95_spill] sm:$0xff] %v5472_v57  ;;  %12955 = vst [vmem:[#allocation96_spill] sm:$0xff] %v5477_v14  ;;  %2783 = vperm.xlu0 %4668, %v2533_v31   ;;  %v776_v36 = vmul.f32 %v5184_v5, %v5103_v11  ;;  %v5520_v9 = vadd.f32 %v1506_v59, %v5342_v12  ;;  %v5526_v20 = vadd.f32 %v5251_v2, %v759_v16 }
  0xdf   : > { %12956 = vst [vmem:[#allocation97_spill] sm:$0xff] %v5482_v19  ;;  %12957 = vst [vmem:[#allocation98_spill] sm:$0xff] %v5485_v52  ;;  %v5529_v28 = vadd.f32 %v1505_v63, %v5346_v22  ;;  %v779_v31 = vmul.f32 %v5193_v18, %v5103_v11  ;;  %v5538_v12 = vadd.f32 %v5255_v42, %v758_v24  ;;  %v12972_v42 = vld [vmem:[#allocation66_spill] sm:$0xff]  ;;  %v2494_v19 = vld [vmem:[%s12027_s2 + $0x38] sm:$0xff] }
  0xe0   : > { %12958 = vst [vmem:[#allocation99_spill] sm:$0xff] %v5489_v23  ;;  %12959 = vst [vmem:[#allocation100_spill] sm:$0xff] %v5520_v9  ;;  %4623 = vset.pattern.permute.xlu1 %v12939_v37  ;;  %v5523_v33 = vpop.permute.xlu1 %500  ;;  %v5541_v59 = vadd.f32 %v1488_v6, %v5271_v38  ;;  %v5544_v2 = vadd.f32 %v1487_v29, %v5275_v61  ;;  %v5547_v22 = vadd.f32 %v5279_v30, %v761_v53  ;;  %v2531_v61 = vld [vmem:[%s12027_s2 + $0x160] sm:$0xff]  ;;  %v12974_v38 = vld [vmem:[#allocation50_spill] sm:$0xff] }
  0xe1   : > { %12960 = vst [vmem:[#allocation101_spill] sm:$0xff] %v5523_v33  ;;  %12961 = vst [vmem:[#allocation102_spill] sm:$0xff] %v5526_v20  ;;  %2598 = vperm.xlu1 %4623, %v2496_v3   ;;  %v5535_v4 = vpop.permute.xlu0 %325  ;;  %v5550_v16 = vadd.f32 %v5204_v27, %v775_v62  ;;  %v5553_v63 = vadd.f32 %v5283_v50, %v760_v26  ;;  %v12970_v3 = vld [vmem:[#allocation65_spill] sm:$0xff]  ;;  %v5559_v24 = vadd.f32 %v1489_v25, %v12972_v42  ;;  %v12976_v6 = vld [vmem:[#allocation55_spill] sm:$0xff] }
  0xe2   : > { %12962 = vst [vmem:[#allocation103_spill] sm:$0xff] %v5529_v28  ;;  %12963 = vst [vmem:[#allocation104_spill] sm:$0xff] %v5535_v4  ;;  %2613 = vperm.xlu0 %4668, %v2499_v39   ;;  %v5556_v11 = vadd.f32 %v1490_v46, %v12970_v3  ;;  %v5565_v30 = vadd.f32 %v12974_v38, %v774_v40  ;;  %v5568_v29 = vadd.f32 %v12976_v6, %v777_v51  ;;  %v12978_v27 = vld [vmem:[#allocation56_spill] sm:$0xff]  ;;  %v12982_v25 = vld [vmem:[#allocation59_spill] sm:$0xff] }
  0xe3   : > { %12964 = vst [vmem:[#allocation105_spill] sm:$0xff] %v5538_v12  ;;  %12965 = vst [vmem:[#allocation106_spill] sm:$0xff] %v5541_v59  ;;  %v5571_v53 = vadd.f32 %v12978_v27, %v776_v36  ;;  %v763_v50 = vmul.f32 %v5193_v18, %v5093_v8  ;;  %v12981_v26 = vld [vmem:[#allocation28_spill] sm:$0xff]  ;;  %v5582_v39 = vadd.f32 %v12982_v25, %v779_v31  ;;  %v12987_v38 = vld [vmem:[#allocation27_spill] sm:$0xff] }
  0xe4   : > { %12966 = vst [vmem:[#allocation107_spill] sm:$0xff] %v5544_v2  ;;  %12967 = vst [vmem:[#allocation108_spill] sm:$0xff] %v5547_v22  ;;  %v5575_v62 = vpop.permute.xlu1 %510  ;;  %v5579_v46 = vmul.f32 %v5178_v54, %v12981_v26  ;;  %v12984_v40 = vld [vmem:[#allocation60_spill] sm:$0xff]  ;;  %v762_v51 = vmul.f32 %v5195_v21, %v5093_v8  ;;  %v5594_v42 = vmul.f32 %v5180_v55, %v12981_v26  ;;  %v12993_v8 = vld [vmem:[#allocation67_spill] sm:$0xff] }
  0xe5   : > { %12968 = vst [vmem:[#allocation109_spill] sm:$0xff] %v5550_v16  ;;  %12969 = vst [vmem:[#allocation110_spill] sm:$0xff] %v5553_v63  ;;  %v5585_v3 = vadd.f32 %v12984_v40, %v778_v60  ;;  %4624 = vset.pattern.permute.xlu1 %v12922_v49  ;;  %v5590_v36 = vpop.permute.xlu0 %335  ;;  %v5598_v6 = vmul.f32 %v5171_v47, %v12987_v38  ;;  %v5602_v31 = vmul.f32 %v5173_v48, %v12987_v38  ;;  %v12990_v27 = vld [vmem:[#allocation8_spill] sm:$0xff]  ;;  %v12996_v28 = vld [vmem:[#allocation19_spill] sm:$0xff] }
  0xe6   : > { %12971 = vst [vmem:[#allocation65_spill] sm:$0xff] %v5556_v11  ;;  %12973 = vst [vmem:[#allocation66_spill] sm:$0xff] %v5559_v24  ;;  %v5606_v60 = vmul.f32 %v5189_v10, %v12981_v26  ;;  %1191 = vperm.xlu1 %4624, %v12990_v27   ;;  %2773 = vperm.xlu0 %4668, %v2531_v61   ;;  %v5611_v25 = vmul.f32 %v5191_v13, %v12981_v26  ;;  %v12995_v61 = vld [vmem:[#allocation22_spill] sm:$0xff]  ;;  %v13081_v63 = vld [vmem:[#allocation49_spill] sm:$0xff] }
  0xe7   : > { %12975 = vst [vmem:[#allocation50_spill] sm:$0xff] %v5565_v30  ;;  %12977 = vst [vmem:[#allocation55_spill] sm:$0xff] %v5568_v29  ;;  %v5615_v40 = vmul.f32 %v5182_v58, %v12987_v38  ;;  %v5625_v24 = vadd.f32 %v12993_v8, %v763_v50  ;;  %v747_v27 = vmul.f32 %v5193_v18, %v12995_v61  ;;  %v13000_v59 = vld [vmem:[#allocation18_spill] sm:$0xff]  ;;  %v13001_v8 = vld [vmem:[#allocation51_spill] sm:$0xff] }
  0xe8   : > { %12979 = vst [vmem:[#allocation56_spill] sm:$0xff] %v5571_v53  ;;  %12980 = vst [vmem:[#allocation111_spill] sm:$0xff] %v5575_v62  ;;  %v746_v11 = vmul.f32 %v5195_v21, %v12995_v61  ;;  %v5633_v9 = vpop.permute.xlu1 %520  ;;  %v730_v2 = vmul.f32 %v5195_v21, %v12996_v28  ;;  %v1524_v50 = vmul.f32 %v13001_v8, %v13000_v59  ;;  %v13004_v61 = vld [vmem:[#allocation29_spill] sm:$0xff] }
  0xe9   : > { %12983 = vst [vmem:[#allocation59_spill] sm:$0xff] %v5582_v39  ;;  %12985 = vst [vmem:[#allocation60_spill] sm:$0xff] %v5585_v3  ;;  %v1523_v57 = vmul.f32 %v13002_v15, %v13000_v59  ;;  %v5644_v56 = vpop.permute.xlu0 %345  ;;  %v5648_v0 = vmul.f32 %v5171_v47, %v13004_v61  ;;  %v5652_v17 = vmul.f32 %v5173_v48, %v13004_v61  ;;  %v13010_v39 = vld [vmem:[#allocation73_spill] sm:$0xff] }
  0xea   : > { %12986 = vst [vmem:[#allocation112_spill] sm:$0xff] %v5590_v36  ;;  %12988 = vst [vmem:[#allocation113_spill] sm:$0xff] %v5598_v6  ;;  %v5619_v6 = vmul.f32 %v5184_v5, %v12987_v38  ;;  %v12998_v38 = vld [vmem:[#allocation68_spill] sm:$0xff]  ;;  %v1507_v59 = vmul.f32 %v13002_v15, %v5077_v1  ;;  %v1491_v3 = vmul.f32 %v13002_v15, %v5091_v7 }
  0xeb   : > { %12989 = vst [vmem:[#allocation114_spill] sm:$0xff] %v5602_v31  ;;  %12991 = vst [vmem:[#allocation8_spill] sm:$0xff] %v5615_v40  ;;  %v2497_v31 = vld [vmem:[%s12027_s2 + $0x50] sm:$0xff]  ;;  %v731_v40 = vmul.f32 %v5193_v18, %v12996_v28  ;;  %v13008_v28 = vld [vmem:[#allocation6_spill] sm:$0xff]  ;;  %v5690_v52 = vmul.f32 %v5171_v47, %v13017_v43  ;;  %v5861_v45 = vmul.f32 %v5178_v54, %v13076_v34 }
  0xec   : > { %12992 = vst [vmem:[#allocation115_spill] sm:$0xff] %v5619_v6  ;;  %12994 = vst [vmem:[#allocation67_spill] sm:$0xff] %v5625_v24  ;;  %v5636_v6 = vadd.f32 %v12998_v38, %v762_v51  ;;  %v5656_v51 = vmul.f32 %v5182_v58, %v13004_v61  ;;  %v1508_v38 = vmul.f32 %v13001_v8, %v5077_v1  ;;  %1323 = vperm.xlu1 %4624, %v13008_v28   ;;  %v13014_v1 = vld [vmem:[#allocation78_spill] sm:$0xff]  ;;  %v5683_v44 = vpop.permute.xlu1 %530 }
  0xed   : > { %12997 = vst [vmem:[#allocation116_spill] sm:$0xff] %v5633_v9  ;;  %13003 = vst [vmem:[#allocation117_spill] sm:$0xff] %v5644_v56  ;;  %2603 = vperm.xlu0 %4668, %v2497_v31   ;;  %v5675_v28 = vadd.f32 %v13010_v39, %v747_v27  ;;  %v13012_v31 = vld [vmem:[#allocation74_spill] sm:$0xff]  ;;  %v5681_v29 = vadd.f32 %v13014_v1, %v731_v40  ;;  %v13021_v39 = vld [vmem:[#allocation81_spill] sm:$0xff]  ;;  %v5701_v1 = vpop.permute.xlu0 %355  ;;  %v5705_v40 = vmul.f32 %v5173_v48, %v13017_v43 }
  0xee   : > { %12999 = vst [vmem:[#allocation68_spill] sm:$0xff] %v5636_v6  ;;  %13005 = vst [vmem:[#allocation118_spill] sm:$0xff] %v5648_v0  ;;  %v1492_v0 = vmul.f32 %v13001_v8, %v5091_v7  ;;  %v5678_v53 = vadd.f32 %v13012_v31, %v746_v11  ;;  %v2528_v7 = vld [vmem:[%s12027_s2 + $0x148] sm:$0xff]  ;;  %v5696_v27 = vadd.f32 %v1524_v50, %v13021_v39  ;;  %v13032_v39 = vld [vmem:[#allocation69_spill] sm:$0xff] }
  0xef   : > { %13006 = vst [vmem:[#allocation119_spill] sm:$0xff] %v5652_v17  ;;  %13007 = vst [vmem:[#allocation120_spill] sm:$0xff] %v5656_v51  ;;  %v2529_v17 = vld [vmem:[%s12027_s2 + $0x150] sm:$0xff]  ;;  %v5672_v51 = vmul.f32 %v5184_v5, %v13004_v61  ;;  %v5699_v11 = vadd.f32 %v1523_v57, %v5441_v41  ;;  %v5709_v31 = vmul.f32 %v5182_v58, %v13017_v43  ;;  %v13030_v41 = vld [vmem:[#allocation76_spill] sm:$0xff] }
  0xf0   : > { %13011 = vst [vmem:[#allocation73_spill] sm:$0xff] %v5675_v28  ;;  %13013 = vst [vmem:[#allocation74_spill] sm:$0xff] %v5678_v53  ;;  %4625 = vset.pattern.permute.xlu1 %v12939_v37  ;;  %v5720_v57 = vadd.f32 %v1507_v59, %v13030_v41  ;;  %v13073_v28 = vld [vmem:[#allocation37_spill] sm:$0xff]  ;;  %v5865_v30 = vmul.f32 %v5180_v55, %v13076_v34  ;;  %v5880_v22 = vmul.f32 %v5178_v54, %v13081_v63 }
  0xf1   : > { %13009 = vst [vmem:[#allocation6_spill] sm:$0xff] %v5672_v51  ;;  %13015 = vst [vmem:[#allocation78_spill] sm:$0xff] %v5681_v29  ;;  %v13019_v51 = vld [vmem:[#allocation79_spill] sm:$0xff]  ;;  %2763 = vperm.xlu0 %4668, %v2529_v17   ;;  %2758 = vperm.xlu1 %4625, %v2528_v7   ;;  %v5747_v7 = vpop.permute.xlu1 %540  ;;  %v13070_v29 = vld [vmem:[#allocation34_spill] sm:$0xff]  ;;  %v5857_v32 = vmul.f32 %v5180_v55, %v13073_v28 }
  0xf2   : > { %13016 = vst [vmem:[#allocation121_spill] sm:$0xff] %v5683_v44  ;;  %13018 = vst [vmem:[#allocation122_spill] sm:$0xff] %v5690_v52  ;;  %v5693_v61 = vadd.f32 %v13019_v51, %v730_v2  ;;  %v5713_v2 = vmul.f32 %v5184_v5, %v13017_v43  ;;  %v13028_v51 = vld [vmem:[#allocation75_spill] sm:$0xff]  ;;  %v5723_v52 = vadd.f32 %v1492_v0, %v13032_v39 }
  0xf3   : > { %13022 = vst [vmem:[#allocation81_spill] sm:$0xff] %v5696_v27  ;;  %13023 = vst [vmem:[#allocation123_spill] sm:$0xff] %v5699_v11  ;;  %v5716_v50 = vadd.f32 %v1508_v38, %v13028_v51  ;;  %v13066_v27 = vld [vmem:[#allocation32_spill] sm:$0xff]  ;;  %v5842_v53 = vmul.f32 %v5178_v54, %v13070_v29 }
  0xf4   : > { %13020 = vst [vmem:[#allocation79_spill] sm:$0xff] %v5693_v61  ;;  %13024 = vst [vmem:[#allocation124_spill] sm:$0xff] %v5701_v1  ;;  %v5832_v61 = vmul.f32 %v5178_v54, %v13066_v27 }
  0xf5   : > { %13025 = vst [vmem:[#allocation125_spill] sm:$0xff] %v5705_v40  ;;  %13026 = vst [vmem:[#allocation126_spill] sm:$0xff] %v5709_v31  ;;  %v13034_v40 = vld [vmem:[#allocation70_spill] sm:$0xff]  ;;  %v13036_v31 = vld [vmem:[#allocation33_spill] sm:$0xff]  ;;  %4626 = vset.pattern.permute.xlu1 %v12922_v49 }
  0xf6   : > { %13027 = vst [vmem:[#allocation127_spill] sm:$0xff] %v5713_v2  ;;  %13029 = vst [vmem:[#allocation75_spill] sm:$0xff] %v5716_v50  ;;  %v5726_v11 = vadd.f32 %v1491_v3, %v13034_v40  ;;  %v2495_v2 = vld [vmem:[%s12027_s2 + $0x40] sm:$0xff]  ;;  %v5733_v38 = vmul.f32 %v5171_v47, %v13036_v31  ;;  %v5737_v17 = vmul.f32 %v5173_v48, %v13036_v31  ;;  %v13042_v3 = vld [vmem:[#allocation36_spill] sm:$0xff] }
  0xf7   : > { %13031 = vst [vmem:[#allocation76_spill] sm:$0xff] %v5720_v57  ;;  %13033 = vst [vmem:[#allocation69_spill] sm:$0xff] %v5723_v52  ;;  %v5741_v0 = vmul.f32 %v5182_v58, %v13036_v31  ;;  %v5745_v59 = vmul.f32 %v5184_v5, %v13036_v31  ;;  %v5751_v40 = vmul.f32 %v5171_v47, %v13042_v3  ;;  %2593 = vperm.xlu0 %4668, %v2495_v2   ;;  %v2527_v2 = vld [vmem:[%s12027_s2 + $0x140] sm:$0xff]  ;;  %v13063_v52 = vld [vmem:[#allocation30_spill] sm:$0xff] }
  0xf8   : > { %13035 = vst [vmem:[#allocation70_spill] sm:$0xff] %v5726_v11  ;;  %13037 = vst [vmem:[#allocation128_spill] sm:$0xff] %v5733_v38  ;;  %v5755_v51 = vmul.f32 %v5173_v48, %v13042_v3  ;;  %v5759_v41 = vmul.f32 %v5182_v58, %v13042_v3  ;;  %v5763_v39 = vmul.f32 %v5184_v5, %v13042_v3  ;;  %v13053_v3 = vld [vmem:[#allocation48_spill] sm:$0xff] }
  0xf9   : > { %13038 = vst [vmem:[#allocation129_spill] sm:$0xff] %v5737_v17  ;;  %13039 = vst [vmem:[#allocation130_spill] sm:$0xff] %v5741_v0  ;;  %v5765_v0 = vpop.permute.xlu0 %365  ;;  %v5824_v57 = vmul.f32 %v5178_v54, %v13063_v52  ;;  %v5828_v50 = vmul.f32 %v5180_v55, %v13063_v52 }
  0xfa   : > { %13040 = vst [vmem:[#allocation131_spill] sm:$0xff] %v5745_v59  ;;  %13041 = vst [vmem:[#allocation132_spill] sm:$0xff] %v5747_v7  ;;  %v13048_v59 = vld [vmem:[#allocation38_spill] sm:$0xff] }
  0xfb   : > { %13043 = vst [vmem:[#allocation133_spill] sm:$0xff] %v5751_v40  ;;  %13044 = vst [vmem:[#allocation134_spill] sm:$0xff] %v5755_v51  ;;  %v5769_v43 = vmul.f32 %v5171_v47, %v13048_v59  ;;  %v5773_v17 = vmul.f32 %v5173_v48, %v13048_v59  ;;  %v5777_v31 = vmul.f32 %v5182_v58, %v13048_v59  ;;  %2753 = vperm.xlu0 %4668, %v2527_v2   ;;  %v2493_v2 = vld [vmem:[%s12027_s2 + $0x30] sm:$0xff] }
  0xfc   : > { %13045 = vst [vmem:[#allocation135_spill] sm:$0xff] %v5759_v41  ;;  %13046 = vst [vmem:[#allocation136_spill] sm:$0xff] %v5763_v39  ;;  %v5781_v38 = vmul.f32 %v5184_v5, %v13048_v59  ;;  %v5785_v39 = vmul.f32 %v5171_v47, %v13053_v3  ;;  %v5789_v41 = vmul.f32 %v5173_v48, %v13053_v3 }
  0xfd   : > { %13047 = vst [vmem:[#allocation137_spill] sm:$0xff] %v5765_v0  ;;  %13049 = vst [vmem:[#allocation138_spill] sm:$0xff] %v5769_v43  ;;  %v5793_v51 = vmul.f32 %v5182_v58, %v13053_v3  ;;  %v5797_v40 = vmul.f32 %v5184_v5, %v13053_v3 }
  0xfe   : > { %13050 = vst [vmem:[#allocation139_spill] sm:$0xff] %v5773_v17  ;;  %13051 = vst [vmem:[#allocation140_spill] sm:$0xff] %v5777_v31  ;;  %v13059_v17 = vld [vmem:[#allocation63_spill] sm:$0xff] }
  0xff   : > { %13052 = vst [vmem:[#allocation141_spill] sm:$0xff] %v5781_v38  ;;  %13054 = vst [vmem:[#allocation142_spill] sm:$0xff] %v5785_v39  ;;  %v13058_v38 = vld [vmem:[#allocation26_spill] sm:$0xff]  ;;  %v903_v43 = vmul.f32 %v5171_v47, %v13059_v17  ;;  %v5816_v39 = vpop.permute.xlu1 %550  ;;  %v905_v16 = vmul.f32 %v5182_v58, %v13059_v17  ;;  %v904_v12 = vmul.f32 %v5184_v5, %v13059_v17  ;;  %2583 = vperm.xlu0 %4668, %v2493_v2  }
 0x100   : > { %13055 = vst [vmem:[#allocation143_spill] sm:$0xff] %v5789_v41  ;;  %13056 = vst [vmem:[#allocation144_spill] sm:$0xff] %v5793_v51  ;;  %v5805_v31 = vmul.f32 %v5178_v54, %v13058_v38  ;;  %v902_v51 = vmul.f32 %v5173_v48, %v13059_v17  ;;  %v5813_v41 = vmul.f32 %v5193_v18, %v13053_v3 }
 0x101   : > { %13057 = vst [vmem:[#allocation145_spill] sm:$0xff] %v5797_v40  ;;  %v13061_v40 = vld [vmem:[#allocation20_spill] sm:$0xff]  ;;  %v5820_v11 = vmul.f32 %v5180_v55, %v13058_v38  ;;  %13064 = vst [vmem:[#allocation147_spill] sm:$0xff] %v5824_v57  ;;  %v5846_v57 = vmul.f32 %v5180_v55, %v13070_v29  ;;  %v5873_v6 = vadd.f32 %v5579_v46, %v903_v43 }
 0x102   : > { %13060 = vst [vmem:[#allocation146_spill] sm:$0xff] %v5813_v41  ;;  %1319 = vperm.xlu1 %4626, %v13061_v40   ;;  %13062 = vst [vmem:[#allocation20_spill] sm:$0xff] %v5816_v39  ;;  %v5834_v41 = vpop.permute.xlu0 %375  ;;  %v5838_v40 = vmul.f32 %v5180_v55, %v13066_v27  ;;  %v5876_v24 = vadd.f32 %v5594_v42, %v902_v51  ;;  %v13084_v43 = vld [vmem:[#allocation64_spill] sm:$0xff]  ;;  %v5901_v51 = vmul.f32 %v5193_v18, %v13059_v17 }
 0x103   : > { %13065 = vst [vmem:[#allocation148_spill] sm:$0xff] %v5828_v50  ;;  %13067 = vst [vmem:[#allocation149_spill] sm:$0xff] %v5832_v61  ;;  %v5850_v50 = vmul.f32 %v5178_v54, %v13073_v28  ;;  %v5885_v20 = vpop.permute.xlu1 %560  ;;  %v5893_v46 = vmul.f32 %v5178_v54, %v13084_v43  ;;  %v5897_v42 = vmul.f32 %v5180_v55, %v13084_v43 }
 0x104   : > { %13068 = vst [vmem:[#allocation150_spill] sm:$0xff] %v5834_v41  ;;  %13069 = vst [vmem:[#allocation151_spill] sm:$0xff] %v5838_v40  ;;  %v5889_v40 = vmul.f32 %v5180_v55, %v13081_v63 }
 0x105   : > { %13071 = vst [vmem:[#allocation152_spill] sm:$0xff] %v5842_v53  ;;  %13072 = vst [vmem:[#allocation153_spill] sm:$0xff] %v5846_v57  ;;  %v13089_v53 = vld [vmem:[#allocation72_spill] sm:$0xff] }
 0x106   : > { %13074 = vst [vmem:[#allocation154_spill] sm:$0xff] %v5850_v50  ;;  %13075 = vst [vmem:[#allocation155_spill] sm:$0xff] %v5857_v32  ;;  %4627 = vset.pattern.permute.xlu1 %v12939_v37  ;;  %v5915_v32 = vmul.f32 %v5178_v54, %v13089_v53  ;;  %v5919_v50 = vmul.f32 %v5180_v55, %v13089_v53 }
 0x107   : > { %13077 = vst [vmem:[#allocation156_spill] sm:$0xff] %v5861_v45  ;;  %13078 = vst [vmem:[#allocation157_spill] sm:$0xff] %v5865_v30  ;;  %2588 = vperm.xlu1 %4627, %v2494_v19   ;;  %v1474_v19 = vmul.f32 %v5189_v10, %v13058_v38  ;;  %v1473_v30 = vmul.f32 %v5191_v13, %v13058_v38  ;;  %v2525_v45 = vld [vmem:[%s12027_s2 + $0x130] sm:$0xff]  ;;  %v5944_v38 = vmul.f32 %v5189_v10, %v13063_v52 }
 0x108   : > { %13079 = vst [vmem:[#allocation158_spill] sm:$0xff] %v5873_v6  ;;  %13080 = vst [vmem:[#allocation159_spill] sm:$0xff] %v5876_v24  ;;  %v5903_v24 = vpop.permute.xlu0 %385  ;;  %v13086_v6 = vld [vmem:[#allocation71_spill] sm:$0xff]  ;;  %2743 = vperm.xlu0 %4668, %v2525_v45   ;;  %v6009_v45 = vmul.f32 %v5189_v10, %v13081_v63 }
 0x109   : > { %13082 = vst [vmem:[#allocation160_spill] sm:$0xff] %v5885_v20  ;;  %13083 = vst [vmem:[#allocation161_spill] sm:$0xff] %v5889_v40  ;;  %v5907_v61 = vmul.f32 %v5171_v47, %v13086_v6  ;;  %v5911_v57 = vmul.f32 %v5173_v48, %v13086_v6  ;;  %v5936_v40 = vadd.f32 %v5611_v25, %v904_v12 }
 0x10a   : > { %13085 = vst [vmem:[#allocation162_spill] sm:$0xff] %v5903_v24  ;;  %v5940_v2 = vmul.f32 %v5184_v5, %v13086_v6  ;;  %13094 = vst [vmem:[#allocation169_spill] sm:$0xff] %v5944_v38  ;;  %v5958_v12 = vmul.f32 %v5189_v10, %v13066_v27  ;;  %v5962_v25 = vmul.f32 %v5191_v13, %v13066_v27 }
 0x10b   : > { %13087 = vst [vmem:[#allocation163_spill] sm:$0xff] %v5907_v61  ;;  %13088 = vst [vmem:[#allocation164_spill] sm:$0xff] %v5911_v57  ;;  %v5926_v61 = vadd.f32 %v5606_v60, %v905_v16  ;;  %v5930_v57 = vmul.f32 %v5182_v58, %v13086_v6  ;;  %v5948_v16 = vmul.f32 %v5191_v13, %v13063_v52  ;;  %v5950_v60 = vpop.permute.xlu1 %570  ;;  %4628 = vset.pattern.permute.xlu1 %v12922_v49 }
 0x10c   : > { %13092 = vst [vmem:[#allocation167_spill] sm:$0xff] %v5936_v40  ;;  %13093 = vst [vmem:[#allocation168_spill] sm:$0xff] %v5940_v2  ;;  %v5966_v38 = vmul.f32 %v5189_v10, %v13070_v29  ;;  %v5969_v52 = vpop.permute.xlu0 %395  ;;  %v5985_v40 = vmul.f32 %v5191_v13, %v13070_v29  ;;  %v2491_v29 = vld [vmem:[%s12027_s2 + $0x20] sm:$0xff] }
 0x10d   : > { %13090 = vst [vmem:[#allocation165_spill] sm:$0xff] %v5926_v61  ;;  %13091 = vst [vmem:[#allocation166_spill] sm:$0xff] %v5930_v57  ;;  %v13097_v57 = vld [vmem:[#allocation77_spill] sm:$0xff]  ;;  %2573 = vperm.xlu0 %4668, %v2491_v29  }
 0x10e   : > { %13095 = vst [vmem:[#allocation170_spill] sm:$0xff] %v5948_v16  ;;  %13096 = vst [vmem:[#allocation171_spill] sm:$0xff] %v5950_v60  ;;  %v5954_v61 = vmul.f32 %v5171_v47, %v13097_v57  ;;  %v5973_v16 = vmul.f32 %v5173_v48, %v13097_v57  ;;  %v5977_v2 = vmul.f32 %v5182_v58, %v13097_v57 }
 0x10f   : > { %13099 = vst [vmem:[#allocation173_spill] sm:$0xff] %v5958_v12  ;;  %13100 = vst [vmem:[#allocation174_spill] sm:$0xff] %v5962_v25  ;;  %v5981_v27 = vmul.f32 %v5184_v5, %v13097_v57  ;;  %v5990_v25 = vmul.f32 %v5189_v10, %v13073_v28  ;;  %v6019_v12 = vpop.permute.xlu1 %580 }
 0x110   : > { %13098 = vst [vmem:[#allocation172_spill] sm:$0xff] %v5954_v61  ;;  %13101 = vst [vmem:[#allocation175_spill] sm:$0xff] %v5966_v38  ;;  %v13107_v61 = vld [vmem:[#allocation7_spill] sm:$0xff]  ;;  %v665_v38 = vmul.f32 %v5182_v58, %v5443_v35 }
 0x111   : > { %13102 = vst [vmem:[#allocation176_spill] sm:$0xff] %v5969_v52  ;;  %13103 = vst [vmem:[#allocation177_spill] sm:$0xff] %v5973_v16  ;;  %1183 = vperm.xlu1 %4628, %v13107_v61   ;;  %v5994_v16 = vmul.f32 %v5191_v13, %v13073_v28  ;;  %v6005_v61 = vmul.f32 %v5191_v13, %v13076_v34  ;;  %v6013_v28 = vmul.f32 %v5191_v13, %v13081_v63  ;;  %v6031_v63 = vpop.permute.xlu0 %405 }
 0x112   : > { %13104 = vst [vmem:[#allocation178_spill] sm:$0xff] %v5977_v2  ;;  %13105 = vst [vmem:[#allocation179_spill] sm:$0xff] %v5981_v27  ;;  %v5998_v2 = vmul.f32 %v5189_v10, %v13076_v34  ;;  %v6017_v27 = vmul.f32 %v5189_v10, %v13084_v43  ;;  %v662_v34 = vmul.f32 %v5173_v48, %v5443_v35 }
 0x113   : > { %13106 = vst [vmem:[#allocation180_spill] sm:$0xff] %v5985_v40  ;;  %13108 = vst [vmem:[#allocation7_spill] sm:$0xff] %v5990_v25  ;;  %v663_v40 = vmul.f32 %v5171_v47, %v5443_v35  ;;  %v13116_v25 = vld [vmem:[#allocation82_spill] sm:$0xff] }
 0x114   : > { %13109 = vst [vmem:[#allocation181_spill] sm:$0xff] %v5994_v16  ;;  %13110 = vst [vmem:[#allocation182_spill] sm:$0xff] %v5998_v2  ;;  %v6029_v16 = vmul.f32 %v5191_v13, %v13084_v43  ;;  %v664_v2 = vmul.f32 %v5184_v5, %v5443_v35  ;;  %v6050_v43 = vmul.f32 %v5173_v48, %v13116_v25 }
 0x115   : > { %13111 = vst [vmem:[#allocation183_spill] sm:$0xff] %v6005_v61  ;;  %13112 = vst [vmem:[#allocation184_spill] sm:$0xff] %v6009_v45  ;;  %v6035_v61 = vmul.f32 %v5171_v47, %v13116_v25  ;;  %v13118_v45 = vld [vmem:[#allocation5_spill] sm:$0xff]  ;;  %v6058_v35 = vmul.f32 %v5184_v5, %v13116_v25  ;;  %v6069_v29 = vmul.f32 %v5195_v21, %v13116_v25 }
 0x116   : > { %13113 = vst [vmem:[#allocation185_spill] sm:$0xff] %v6013_v28  ;;  %13114 = vst [vmem:[#allocation186_spill] sm:$0xff] %v6019_v12  ;;  %v6041_v28 = vmul.f32 %v5189_v10, %v13089_v53  ;;  %v6045_v12 = vmul.f32 %v5191_v13, %v13089_v53  ;;  %1315 = vperm.xlu1 %4628, %v13118_v45   ;;  %v2523_v53 = vld [vmem:[%s12027_s2 + $0x120] sm:$0xff]  ;;  %v6065_v45 = vmul.f32 %v5193_v18, %v13116_v25  ;;  %v2526_v13 = vld [vmem:[%s12027_s2 + $0x138] sm:$0xff]  ;;  %v6094_v10 = vpop.permute.xlu0 %415 }
 0x117   : > { %13115 = vst [vmem:[#allocation187_spill] sm:$0xff] %v6031_v63  ;;  %13117 = vst [vmem:[#allocation188_spill] sm:$0xff] %v6035_v61  ;;  %v6054_v61 = vmul.f32 %v5182_v58, %v13116_v25  ;;  %v6088_v25 = vadd.f32 %v5820_v11, %v662_v34  ;;  %v1715_v34 = vmul.f32 %v13002_v15, %v12981_v26  ;;  %2733 = vperm.xlu0 %4668, %v2523_v53  }
 0x118   : > { %13119 = vst [vmem:[#allocation5_spill] sm:$0xff] %v6050_v43  ;;  %13121 = vst [vmem:[#allocation190_spill] sm:$0xff] %v6058_v35  ;;  %v6073_v43 = vmul.f32 %v5193_v18, %v13097_v57  ;;  %v6079_v35 = vpop.permute.xlu1 %590  ;;  %v6109_v11 = vmul.f32 %v5173_v48, %v5477_v14  ;;  %v6124_v53 = vmul.f32 %v5193_v18, %v5477_v14 }
 0x119   : > { %13120 = vst [vmem:[#allocation189_spill] sm:$0xff] %v6054_v61  ;;  %13122 = vst [vmem:[#allocation191_spill] sm:$0xff] %v6065_v45  ;;  %v6077_v61 = vmul.f32 %v5195_v21, %v13097_v57  ;;  %v6085_v45 = vadd.f32 %v5805_v31, %v663_v40  ;;  %v6098_v57 = vmul.f32 %v5171_v47, %v5477_v14  ;;  %v2489_v40 = vld [vmem:[%s12027_s2 + $0x10] sm:$0xff] }
 0x11a   : > { %13123 = vst [vmem:[#allocation192_spill] sm:$0xff] %v6069_v29  ;;  %13124 = vst [vmem:[#allocation193_spill] sm:$0xff] %v6073_v43  ;;  %v6090_v29 = vadd.f32 %v1474_v19, %v665_v38  ;;  %v1716_v43 = vmul.f32 %v13001_v8, %v12981_v26  ;;  %v906_v31 = vmul.f32 %v5195_v21, %v13059_v17  ;;  %4629 = vset.pattern.permute.xlu1 %v12939_v37 }
 0x11b   : > { %13125 = vst [vmem:[#allocation194_spill] sm:$0xff] %v6077_v61  ;;  %13126 = vst [vmem:[#allocation195_spill] sm:$0xff] %v6079_v35  ;;  %v6100_v61 = vadd.f32 %v1473_v30, %v664_v2  ;;  %v6113_v38 = vmul.f32 %v5182_v58, %v5477_v14  ;;  %v6117_v30 = vmul.f32 %v5184_v5, %v5477_v14  ;;  %2748 = vperm.xlu1 %4629, %v2526_v13  }
 0x11c   : > { %13127 = vst [vmem:[#allocation196_spill] sm:$0xff] %v6085_v45  ;;  %13128 = vst [vmem:[#allocation197_spill] sm:$0xff] %v6088_v25  ;;  %v6128_v19 = vmul.f32 %v5195_v21, %v5477_v14  ;;  %v6132_v2 = vmul.f32 %v5193_v18, %v13086_v6  ;;  %v6136_v26 = vmul.f32 %v5195_v21, %v13086_v6  ;;  %v6138_v13 = vpop.permute.xlu1 %600  ;;  %2563 = vperm.xlu0 %4668, %v2489_v40   ;;  %v13158_v45 = vld [vmem:[#allocation17_spill] sm:$0xff] }
 0x11d   : > { %13129 = vst [vmem:[#allocation198_spill] sm:$0xff] %v6090_v29  ;;  %13130 = vst [vmem:[#allocation199_spill] sm:$0xff] %v6094_v10  ;;  %v6142_v17 = vmul.f32 %v5171_v47, %v5523_v33  ;;  %v6150_v14 = vmul.f32 %v5182_v58, %v5523_v33  ;;  %v6155_v29 = vpop.permute.xlu0 %425  ;;  %v6159_v6 = vmul.f32 %v5184_v5, %v5523_v33 }
 0x11e   : > { %13131 = vst [vmem:[#allocation200_spill] sm:$0xff] %v6098_v57  ;;  %13132 = vst [vmem:[#allocation201_spill] sm:$0xff] %v6100_v61  ;;  %v6146_v61 = vmul.f32 %v5173_v48, %v5523_v33  ;;  %v6185_v25 = vmul.f32 %v5173_v48, %v5535_v4  ;;  %v6197_v40 = vmul.f32 %v5173_v48, %v5590_v36 }
 0x11f   : > { %13133 = vst [vmem:[#allocation202_spill] sm:$0xff] %v6109_v11  ;;  %13134 = vst [vmem:[#allocation203_spill] sm:$0xff] %v6113_v38  ;;  %4630 = vset.pattern.permute.xlu1 %v12922_v49  ;;  %v6222_v38 = vmul.f32 %v5195_v21, %v5575_v62 }
 0x120   : > { %13135 = vst [vmem:[#allocation204_spill] sm:$0xff] %v6117_v30  ;;  %13136 = vst [vmem:[#allocation205_spill] sm:$0xff] %v6124_v53  ;;  %v6169_v53 = vadd.f32 %v1715_v34, %v906_v31  ;;  %v2521_v31 = vld [vmem:[%s12027_s2 + $0x110] sm:$0xff]  ;;  %v6193_v34 = vmul.f32 %v5171_v47, %v5590_v36  ;;  %1311 = vperm.xlu1 %4630, %v13158_v45   ;;  %v6218_v30 = vmul.f32 %v5193_v18, %v5575_v62  ;;  %v6224_v11 = vpop.permute.xlu1 %1223 }
 0x121   : > { %13137 = vst [vmem:[#allocation206_spill] sm:$0xff] %v6128_v19  ;;  %13138 = vst [vmem:[#allocation207_spill] sm:$0xff] %v6132_v2  ;;  %v6153_v2 = vadd.f32 %v1716_v43, %v5901_v51  ;;  %v6167_v19 = vmul.f32 %v5195_v21, %v5523_v33  ;;  %v6173_v43 = vmul.f32 %v5171_v47, %v5575_v62  ;;  %v6226_v57 = vpop.permute.xlu0 %435  ;;  %2723 = vperm.xlu0 %4668, %v2521_v31   ;;  %v6266_v31 = vld [vmem:[%s12026_s1 + $0x1f0] sm:$0xff] }
 0x122   : > { %13139 = vst [vmem:[#allocation208_spill] sm:$0xff] %v6136_v26  ;;  %13140 = vst [vmem:[#allocation209_spill] sm:$0xff] %v6138_v13  ;;  %v6163_v26 = vmul.f32 %v5193_v18, %v5523_v33  ;;  %v6177_v51 = vmul.f32 %v5173_v48, %v5575_v62  ;;  %v6201_v33 = vmul.f32 %v5182_v58, %v5575_v62 }
 0x123   : > { %13141 = vst [vmem:[#allocation210_spill] sm:$0xff] %v6142_v17  ;;  %13142 = vst [vmem:[#allocation211_spill] sm:$0xff] %v6146_v61  ;;  %v6230_v45 = vmul.f32 %v5171_v47, %v5633_v9  ;;  %v6282_v61 = vmul.f32 %v5195_v21, %v5633_v9  ;;  %v6287_v17 = vmul.f32 %v5171_v47, %v5683_v44 }
 0x124   : > { %13143 = vst [vmem:[#allocation212_spill] sm:$0xff] %v6150_v14  ;;  %13144 = vst [vmem:[#allocation213_spill] sm:$0xff] %v6153_v2  ;;  %v6181_v2 = vmul.f32 %v5171_v47, %v5535_v4  ;;  %v6238_v14 = vmul.f32 %v5182_v58, %v5633_v9  ;;  %4631 = vset.pattern.permute.xlu1 %v12939_v37 }
 0x125   : > { %13145 = vst [vmem:[#allocation214_spill] sm:$0xff] %v6155_v29  ;;  %13146 = vst [vmem:[#allocation215_spill] sm:$0xff] %v6159_v6  ;;  %v6234_v6 = vmul.f32 %v5173_v48, %v5633_v9  ;;  %605 = vperm.xlu0 %4668, %v6266_v31  }
 0x126   : > { %13147 = vst [vmem:[#allocation216_spill] sm:$0xff] %v6163_v26  ;;  %13148 = vst [vmem:[#allocation217_spill] sm:$0xff] %v6167_v19  ;;  %v6210_v19 = vmul.f32 %v5182_v58, %v5590_v36  ;;  %v6214_v26 = vmul.f32 %v5184_v5, %v5590_v36 }
 0x127   : > { %13149 = vst [vmem:[#allocation218_spill] sm:$0xff] %v6169_v53  ;;  %13150 = vst [vmem:[#allocation219_spill] sm:$0xff] %v6173_v43  ;;  %v6205_v53 = vmul.f32 %v5184_v5, %v5575_v62  ;;  %v6242_v62 = vmul.f32 %v5184_v5, %v5633_v9  ;;  %v6332_v43 = vmul.f32 %v5193_v18, %v5683_v44 }
 0x128   : > { %13151 = vst [vmem:[#allocation220_spill] sm:$0xff] %v6177_v51  ;;  %13152 = vst [vmem:[#allocation221_spill] sm:$0xff] %v6181_v2  ;;  %v6257_v2 = vmul.f32 %v5182_v58, %v5644_v56  ;;  %v6311_v51 = vmul.f32 %v5173_v48, %v5701_v1 }
 0x129   : > { %13153 = vst [vmem:[#allocation222_spill] sm:$0xff] %v6185_v25  ;;  %13154 = vst [vmem:[#allocation223_spill] sm:$0xff] %v6193_v34  ;;  %v6253_v25 = vmul.f32 %v5173_v48, %v5644_v56  ;;  %v6278_v34 = vmul.f32 %v5193_v18, %v5633_v9  ;;  %v6301_v9 = vpop.permute.xlu1 %1355 }
 0x12a   : > { %13155 = vst [vmem:[#allocation224_spill] sm:$0xff] %v6197_v40  ;;  %13156 = vst [vmem:[#allocation225_spill] sm:$0xff] %v6201_v33  ;;  %v6274_v40 = vmul.f32 %v5184_v5, %v5535_v4  ;;  %v6307_v33 = vmul.f32 %v5171_v47, %v5701_v1 }
 0x12b   : > { %13157 = vst [vmem:[#allocation226_spill] sm:$0xff] %v6205_v53  ;;  %13159 = vst [vmem:[#allocation17_spill] sm:$0xff] %v6210_v19  ;;  %v6249_v19 = vmul.f32 %v5171_v47, %v5644_v56  ;;  %v6303_v53 = vpop.permute.xlu0 %445 }
 0x12c   : > { %13160 = vst [vmem:[#allocation227_spill] sm:$0xff] %v6214_v26  ;;  %13161 = vst [vmem:[#allocation228_spill] sm:$0xff] %v6218_v30  ;;  %v2492_v26 = vld [vmem:[%s12027_s2 + $0x28] sm:$0xff]  ;;  %v6270_v30 = vmul.f32 %v5182_v58, %v5535_v4  ;;  %v6299_v4 = vmul.f32 %v5195_v21, %v5644_v56 }
 0x12d   : > { %13162 = vst [vmem:[#allocation229_spill] sm:$0xff] %v6222_v38  ;;  %13163 = vst [vmem:[#allocation230_spill] sm:$0xff] %v6224_v11  ;;  %v6261_v38 = vmul.f32 %v5184_v5, %v5644_v56  ;;  %2578 = vperm.xlu1 %4631, %v2492_v26   ;;  %v6324_v26 = vmul.f32 %v5182_v58, %v5701_v1 }
 0x12e   : > { %13164 = vst [vmem:[#allocation231_spill] sm:$0xff] %v6226_v57  ;;  %13165 = vst [vmem:[#allocation232_spill] sm:$0xff] %v6230_v45  ;;  %v6399_v45 = vmul.f32 %v5193_v18, %v5765_v0 }
 0x12f   : > { %13166 = vst [vmem:[#allocation233_spill] sm:$0xff] %v6234_v6  ;;  %13167 = vst [vmem:[#allocation234_spill] sm:$0xff] %v6238_v14  ;;  %v785_v14 = vmul.f32 %v5182_v58, %v5834_v41  ;;  %v6395_v6 = vmul.f32 %v5184_v5, %v5765_v0 }
 0x130   : > { %13168 = vst [vmem:[#allocation235_spill] sm:$0xff] %v6242_v62  ;;  %13169 = vst [vmem:[#allocation236_spill] sm:$0xff] %v6249_v19  ;;  %v6351_v19 = vmul.f32 %v5193_v18, %v5701_v1  ;;  %v783_v62 = vmul.f32 %v5171_v47, %v5834_v41 }
 0x131   : > { %13170 = vst [vmem:[#allocation237_spill] sm:$0xff] %v6253_v25  ;;  %13171 = vst [vmem:[#allocation238_spill] sm:$0xff] %v6257_v2  ;;  %v6343_v2 = vmul.f32 %v5171_v47, %v5747_v7  ;;  %v6347_v25 = vmul.f32 %v5173_v48, %v5747_v7  ;;  %4632 = vset.pattern.permute.xlu1 %v12922_v49 }
 0x132   : > { %13172 = vst [vmem:[#allocation239_spill] sm:$0xff] %v6261_v38  ;;  %13173 = vst [vmem:[#allocation240_spill] sm:$0xff] %v6266_v31  ;;  %v6336_v38 = vmul.f32 %v5195_v21, %v5683_v44  ;;  %v2518_v31 = vld [vmem:[%s12027_s2 + $0xf8] sm:$0xff] }
 0x133   : > { %13174 = vst [vmem:[#allocation241_spill] sm:$0xff] %v6270_v30  ;;  %13175 = vst [vmem:[#allocation242_spill] sm:$0xff] %v6274_v40  ;;  %v6291_v30 = vmul.f32 %v5173_v48, %v5683_v44  ;;  %v6295_v40 = vmul.f32 %v5193_v18, %v5644_v56  ;;  %v6319_v56 = vmul.f32 %v5184_v5, %v5683_v44  ;;  %2708 = vperm.xlu0 %4668, %v2518_v31  }
 0x134   : > { %13176 = vst [vmem:[#allocation243_spill] sm:$0xff] %v6278_v34  ;;  %13177 = vst [vmem:[#allocation244_spill] sm:$0xff] %v6282_v61  ;;  %v6359_v61 = vmul.f32 %v5171_v47, %v5765_v0  ;;  %v6363_v34 = vmul.f32 %v5173_v48, %v5765_v0  ;;  %v6410_v31 = vmul.f32 %v5173_v48, %v5816_v39 }
 0x135   : > { %13178 = vst [vmem:[#allocation245_spill] sm:$0xff] %v6295_v40  ;;  %13179 = vst [vmem:[#allocation246_spill] sm:$0xff] %v6299_v4  ;;  %v6315_v40 = vmul.f32 %v5182_v58, %v5683_v44  ;;  %v6328_v4 = vmul.f32 %v5184_v5, %v5701_v1  ;;  %v6355_v44 = vmul.f32 %v5195_v21, %v5701_v1  ;;  %v6374_v1 = vpop.permute.xlu1 %1351 }
 0x136   : > { %13180 = vst [vmem:[#allocation247_spill] sm:$0xff] %v6301_v9  ;;  %13181 = vst [vmem:[#allocation248_spill] sm:$0xff] %v6303_v53 }
 0x137   : > { %13182 = vst [vmem:[#allocation249_spill] sm:$0xff] %v6307_v33  ;;  %13183 = vst [vmem:[#allocation250_spill] sm:$0xff] %v6311_v51  ;;  %v6424_v51 = vmul.f32 %v5182_v58, %v5816_v39 }
 0x138   : > { %13184 = vst [vmem:[#allocation251_spill] sm:$0xff] %v6324_v26  ;;  %13185 = vst [vmem:[#allocation252_spill] sm:$0xff] %v6328_v4  ;;  %v6418_v4 = vmul.f32 %v5195_v21, %v13053_v3  ;;  %v799_v26 = vmul.f32 %v5171_v47, %v5903_v24  ;;  %v6439_v3 = vadd.f32 %v5915_v32, %v783_v62 }
 0x139   : > { %13186 = vst [vmem:[#allocation253_spill] sm:$0xff] %v6336_v38  ;;  %13187 = vst [vmem:[#allocation254_spill] sm:$0xff] %v6343_v2  ;;  %v6367_v2 = vmul.f32 %v5182_v58, %v5747_v7  ;;  %v6414_v38 = vmul.f32 %v5195_v21, %v5765_v0  ;;  %v801_v32 = vmul.f32 %v5182_v58, %v5903_v24 }
 0x13a   : > { %13188 = vst [vmem:[#allocation255_spill] sm:$0xff] %v6347_v25  ;;  %13189 = vst [vmem:[#allocation256_spill] sm:$0xff] %v6351_v19  ;;  %v6371_v25 = vmul.f32 %v5184_v5, %v5747_v7  ;;  %v782_v19 = vmul.f32 %v5173_v48, %v5834_v41  ;;  %v6391_v7 = vmul.f32 %v5182_v58, %v5765_v0  ;;  %v6434_v0 = vpop.permute.xlu1 %1215 }
 0x13b   : > { %13190 = vst [vmem:[#allocation257_spill] sm:$0xff] %v6355_v44  ;;  %13191 = vst [vmem:[#allocation258_spill] sm:$0xff] %v6367_v2  ;;  %v6376_v44 = vpop.permute.xlu0 %455  ;;  %v784_v2 = vmul.f32 %v5184_v5, %v5834_v41  ;;  %v2550_v41 = vld [vmem:[%s12027_s2 + $0x1f8] sm:$0xff]  ;;  %v800_v62 = vmul.f32 %v5184_v5, %v5903_v24 }
 0x13c   : > { %13192 = vst [vmem:[#allocation259_spill] sm:$0xff] %v6371_v25  ;;  %13193 = vst [vmem:[#allocation260_spill] sm:$0xff] %v6374_v1  ;;  %v4673_v25 = vld [vmem:[%s12026_s1 + $0x10] sm:$0xff]  ;;  %2868 = vperm.xlu0 %4668, %v2550_v41   ;;  %v6472_v41 = vmul.f32 %v5182_v58, %v5885_v20 }
 0x13d   : > { %13194 = vst [vmem:[#allocation261_spill] sm:$0xff] %v6376_v44  ;;  %1175 = vperm.xlu1 %4632, %v4673_v25   ;;  %v6406_v25 = vmul.f32 %v5171_v47, %v5816_v39  ;;  %13196 = vst [vmem:[#allocation263_spill] sm:$0xff] %v6410_v31  ;;  %v6432_v31 = vmul.f32 %v5193_v18, %v13048_v59 }
 0x13e   : > { %13197 = vst [vmem:[#allocation264_spill] sm:$0xff] %v6418_v4  ;;  %13198 = vst [vmem:[#allocation265_spill] sm:$0xff] %v6424_v51  ;;  %v6442_v4 = vadd.f32 %v5919_v50, %v782_v19  ;;  %v6445_v51 = vadd.f32 %v6041_v28, %v785_v14  ;;  %v2516_v14 = vld [vmem:[%s12027_s2 + $0xe8] sm:$0xff]  ;;  %v6464_v28 = vmul.f32 %v5171_v47, %v5885_v20 }
 0x13f   : > { %13195 = vst [vmem:[#allocation262_spill] sm:$0xff] %v6406_v25  ;;  %v6428_v25 = vmul.f32 %v5184_v5, %v5816_v39  ;;  %13200 = vst [vmem:[#allocation267_spill] sm:$0xff] %v6432_v31  ;;  %v6436_v33 = vpop.permute.xlu0 %465  ;;  %v6448_v39 = vadd.f32 %v6045_v12, %v784_v2  ;;  %v798_v31 = vmul.f32 %v5173_v48, %v5903_v24  ;;  %v2524_v19 = vld [vmem:[%s12027_s2 + $0x128] sm:$0xff] }
 0x140   : > { %13201 = vst [vmem:[#allocation268_spill] sm:$0xff] %v6434_v0  ;;  %13202 = vst [vmem:[#allocation269_spill] sm:$0xff] %v6436_v33  ;;  %v6468_v50 = vmul.f32 %v5173_v48, %v5885_v20  ;;  %v6476_v12 = vmul.f32 %v5184_v5, %v5885_v20  ;;  %v6483_v2 = vmul.f32 %v5171_v47, %v5489_v23  ;;  %2698 = vperm.xlu0 %4668, %v2516_v14   ;;  %v2548_v24 = vld [vmem:[%s12027_s2 + $0x1e8] sm:$0xff] }
 0x141   : > { %13199 = vst [vmem:[#allocation266_spill] sm:$0xff] %v6428_v25  ;;  %13203 = vst [vmem:[#allocation270_spill] sm:$0xff] %v6439_v3  ;;  %v4674_v25 = vld [vmem:[%s12026_s1 + $0x118] sm:$0xff]  ;;  %v6521_v20 = vmul.f32 %v5171_v47, %v5950_v60  ;;  %v6525_v14 = vmul.f32 %v5173_v48, %v5950_v60 }
 0x142   : > { %13204 = vst [vmem:[#allocation271_spill] sm:$0xff] %v6442_v4  ;;  %13205 = vst [vmem:[#allocation272_spill] sm:$0xff] %v6445_v51  ;;  %1307 = vperm.xlu1 %4632, %v4674_v25   ;;  %v6487_v25 = vmul.f32 %v5173_v48, %v5489_v23  ;;  %v6492_v51 = vadd.f32 %v5893_v46, %v799_v26  ;;  %v6494_v4 = vpop.permute.xlu1 %1347  ;;  %v6508_v46 = vadd.f32 %v5897_v42, %v798_v31 }
 0x143   : > { %13206 = vst [vmem:[#allocation273_spill] sm:$0xff] %v6448_v39  ;;  %13207 = vst [vmem:[#allocation274_spill] sm:$0xff] %v6464_v28  ;;  %v815_v39 = vmul.f32 %v5171_v47, %v5969_v52  ;;  %v6496_v3 = vpop.permute.xlu0 %475  ;;  %v817_v28 = vmul.f32 %v5182_v58, %v5969_v52  ;;  %v6511_v26 = vadd.f32 %v6017_v27, %v801_v32 }
 0x144   : > { %13208 = vst [vmem:[#allocation275_spill] sm:$0xff] %v6468_v50  ;;  %13209 = vst [vmem:[#allocation276_spill] sm:$0xff] %v6472_v41  ;;  %v1839_v41 = vmul.f32 %v5180_v55, %v6301_v9  ;;  %v814_v50 = vmul.f32 %v5173_v48, %v5969_v52  ;;  %v6529_v27 = vmul.f32 %v5182_v58, %v5950_v60  ;;  %2858 = vperm.xlu0 %4668, %v2548_v24   ;;  %v2514_v24 = vld [vmem:[%s12027_s2 + $0xd8] sm:$0xff] }
 0x145   : > { %13210 = vst [vmem:[#allocation277_spill] sm:$0xff] %v6476_v12  ;;  %13211 = vst [vmem:[#allocation278_spill] sm:$0xff] %v6483_v2  ;;  %v1840_v12 = vmul.f32 %v5178_v54, %v6301_v9  ;;  %v6533_v42 = vmul.f32 %v5184_v5, %v5950_v60  ;;  %v816_v31 = vmul.f32 %v5184_v5, %v5969_v52 }
 0x146   : > { %13212 = vst [vmem:[#allocation279_spill] sm:$0xff] %v6487_v25  ;;  %13213 = vst [vmem:[#allocation280_spill] sm:$0xff] %v6492_v51  ;;  %4633 = vset.pattern.permute.xlu1 %v12939_v37  ;;  %v6514_v51 = vadd.f32 %v6029_v16, %v800_v62  ;;  %v6536_v16 = vadd.f32 %v5880_v22, %v815_v39  ;;  %v6542_v32 = vmul.f32 %v5193_v18, %v5590_v36  ;;  %v13229_v39 = vld [vmem:[#allocation184_spill] sm:$0xff] }
 0x147   : > { %13214 = vst [vmem:[#allocation281_spill] sm:$0xff] %v6494_v4  ;;  %13215 = vst [vmem:[#allocation282_spill] sm:$0xff] %v6496_v3  ;;  %2738 = vperm.xlu1 %4633, %v2524_v19   ;;  %v6546_v62 = vmul.f32 %v5195_v21, %v5590_v36  ;;  %v6548_v19 = vpop.permute.xlu0 %485  ;;  %v846_v60 = vmul.f32 %v5173_v48, %v6094_v10  ;;  %v6925_v25 = vmul.f32 %v5171_v47, %v6496_v3 }
 0x148   : > { %13216 = vst [vmem:[#allocation283_spill] sm:$0xff] %v6508_v46  ;;  %13217 = vst [vmem:[#allocation284_spill] sm:$0xff] %v6511_v26  ;;  %v2351_v26 = vadd.f32 %v1839_v41, %v6291_v30  ;;  %v13227_v46 = vld [vmem:[#allocation161_spill] sm:$0xff]  ;;  %v830_v30 = vmul.f32 %v5173_v48, %v6031_v63  ;;  %v6580_v41 = vmul.f32 %v5182_v58, %v5489_v23  ;;  %2688 = vperm.xlu0 %4668, %v2514_v24   ;;  %v2546_v24 = vld [vmem:[%s12027_s2 + $0x1d8] sm:$0xff] }
 0x149   : > { %13218 = vst [vmem:[#allocation285_spill] sm:$0xff] %v6514_v51  ;;  %13219 = vst [vmem:[#allocation286_spill] sm:$0xff] %v6521_v20  ;;  %v2352_v51 = vadd.f32 %v1840_v12, %v6287_v17  ;;  %v6553_v22 = vadd.f32 %v13227_v46, %v814_v50  ;;  %v831_v17 = vmul.f32 %v5171_v47, %v6031_v63  ;;  %v4675_v46 = vld [vmem:[%s12026_s1 + $0x110] sm:$0xff] }
 0x14a   : > { %13220 = vst [vmem:[#allocation287_spill] sm:$0xff] %v6525_v14  ;;  %13221 = vst [vmem:[#allocation288_spill] sm:$0xff] %v6529_v27  ;;  %v13232_v27 = vld [vmem:[#allocation186_spill] sm:$0xff]  ;;  %v6584_v12 = vmul.f32 %v5184_v5, %v5489_v23 }
 0x14b   : > { %13222 = vst [vmem:[#allocation289_spill] sm:$0xff] %v6533_v42  ;;  %13223 = vst [vmem:[#allocation290_spill] sm:$0xff] %v6536_v16  ;;  %v6556_v16 = vadd.f32 %v13229_v39, %v817_v28  ;;  %v6558_v42 = vpop.permute.xlu1 %2788  ;;  %v6562_v52 = vmul.f32 %v5171_v47, %v13232_v27  ;;  %v6566_v36 = vmul.f32 %v5173_v48, %v13232_v27  ;;  %4634 = vset.pattern.permute.xlu1 %v12922_v49 }
 0x14c   : > { %13224 = vst [vmem:[#allocation291_spill] sm:$0xff] %v6542_v32  ;;  %13225 = vst [vmem:[#allocation292_spill] sm:$0xff] %v6546_v62  ;;  %v3248_v28 = vadd.f32 %v6558_v42, %v2352_v51  ;;  %v3247_v50 = vadd.f32 %v6558_v42, %v2351_v26  ;;  %1303 = vperm.xlu1 %4634, %v4675_v46   ;;  %v6591_v39 = vmul.f32 %v5182_v58, %v13232_v27 }
 0x14d   : > { %13226 = vst [vmem:[#allocation293_spill] sm:$0xff] %v6548_v19  ;;  %13228 = vst [vmem:[#allocation161_spill] sm:$0xff] %v6553_v22  ;;  %v6595_v51 = vmul.f32 %v5184_v5, %v13232_v27  ;;  %v833_v26 = vmul.f32 %v5182_v58, %v6031_v63  ;;  %v6601_v22 = vpop.permute.xlu0 %495  ;;  %v847_v46 = vmul.f32 %v5171_v47, %v6094_v10  ;;  %2848 = vperm.xlu0 %4668, %v2546_v24  }
 0x14e   : > { %13230 = vst [vmem:[#allocation184_spill] sm:$0xff] %v6556_v16  ;;  %13231 = vst [vmem:[#allocation294_spill] sm:$0xff] %v6558_v42  ;;  %v832_v16 = vmul.f32 %v5184_v5, %v6031_v63  ;;  %v3760_v14 = vmax.f32 %v3248_v28, 0.0  ;;  %v3759_v20 = vmax.f32 %v3247_v50, 0.0  ;;  %v849_v28 = vmul.f32 %v5182_v58, %v6094_v10  ;;  %v13244_v50 = vld [vmem:[#allocation185_spill] sm:$0xff] }
 0x14f   : > { %13233 = vst [vmem:[#allocation295_spill] sm:$0xff] %v6562_v52  ;;  %13234 = vst [vmem:[#allocation296_spill] sm:$0xff] %v6566_v36  ;;  %v13242_v36 = vld [vmem:[#allocation157_spill] sm:$0xff]  ;;  %v6619_v52 = vadd.f32 %v13244_v50, %v816_v31  ;;  %v6621_v59 = vpop.permute.xlu1 %1343  ;;  %v6640_v31 = vmul.f32 %v5184_v5, %v6079_v35  ;;  %v13251_v50 = vld [vmem:[#allocation182_spill] sm:$0xff]  ;;  %v6683_v24 = vmul.f32 %v5182_v58, %v6138_v13 }
 0x150   : > { %13235 = vst [vmem:[#allocation297_spill] sm:$0xff] %v6580_v41  ;;  %13236 = vst [vmem:[#allocation298_spill] sm:$0xff] %v6584_v12  ;;  %v6614_v63 = vadd.f32 %v13242_v36, %v830_v30  ;;  %3976 = vmatprep.subr.mxu1 %v3760_v14  ;;  %v6632_v36 = vmul.f32 %v5173_v48, %v6079_v35  ;;  %v6636_v30 = vmul.f32 %v5182_v58, %v6079_v35 }
 0x151   : > { %13237 = vst [vmem:[#allocation299_spill] sm:$0xff] %v6591_v39  ;;  %13238 = vst [vmem:[#allocation300_spill] sm:$0xff] %v6595_v51  ;;  %v2490_v51 = vld [vmem:[%s12027_s2 + $0x18] sm:$0xff]  ;;  %4635 = vset.pattern.permute.xlu1 %v12939_v37  ;;  %3977 = vmatpush1.msra.mxu1 %v3759_v20  ;;  %v863_v14 = vmul.f32 %v5171_v47, %v6155_v29 }
 0x152   : > { %13239 = vst [vmem:[#allocation301_spill] sm:$0xff] %v6601_v22  ;;  %v13240_v39 = vld [vmem:[#allocation156_spill] sm:$0xff]  ;;  %13243 = vst [vmem:[#allocation157_spill] sm:$0xff] %v6614_v63  ;;  %2568 = vperm.xlu1 %4635, %v2490_v51   ;;  %v6650_v63 = vpop.permute.xlu0 %505  ;;  %v6669_v51 = vmul.f32 %v5173_v48, %v6138_v13 }
 0x153   : > { %v6611_v27 = vadd.f32 %v13240_v39, %v831_v17  ;;  %13245 = vst [vmem:[#allocation185_spill] sm:$0xff] %v6619_v52  ;;  %13246 = vst [vmem:[#allocation302_spill] sm:$0xff] %v6621_v59  ;;  %v6628_v17 = vmul.f32 %v5171_v47, %v6079_v35  ;;  %v848_v39 = vmul.f32 %v5184_v5, %v6094_v10  ;;  %v13254_v35 = vld [vmem:[#allocation154_spill] sm:$0xff] }
 0x154   : > { %13248 = vst [vmem:[#allocation304_spill] sm:$0xff] %v6632_v36  ;;  %13249 = vst [vmem:[#allocation305_spill] sm:$0xff] %v6636_v30  ;;  %v6648_v52 = vadd.f32 %v13251_v50, %v833_v26  ;;  %v13256_v30 = vld [vmem:[#allocation155_spill] sm:$0xff]  ;;  %v6665_v26 = vmul.f32 %v5171_v47, %v6138_v13  ;;  %v865_v50 = vmul.f32 %v5182_v58, %v6155_v29 }
 0x155   : > { %13241 = vst [vmem:[#allocation156_spill] sm:$0xff] %v6611_v27  ;;  %13247 = vst [vmem:[#allocation303_spill] sm:$0xff] %v6628_v17  ;;  %v862_v27 = vmul.f32 %v5173_v48, %v6155_v29  ;;  %v6658_v20 = vadd.f32 %v13256_v30, %v846_v60  ;;  %v13258_v36 = vld [vmem:[#allocation183_spill] sm:$0xff]  ;;  %v2512_v60 = vld [vmem:[%s12027_s2 + $0xc8] sm:$0xff]  ;;  %v864_v30 = vmul.f32 %v5184_v5, %v6155_v29 }
 0x156   : > { %13250 = vst [vmem:[#allocation306_spill] sm:$0xff] %v6640_v31  ;;  %13252 = vst [vmem:[#allocation182_spill] sm:$0xff] %v6648_v52  ;;  %v6655_v31 = vadd.f32 %v13254_v35, %v847_v46  ;;  %v6661_v17 = vadd.f32 %v13258_v36, %v832_v16  ;;  %v13262_v35 = vld [vmem:[#allocation7_spill] sm:$0xff]  ;;  %v1576_v16 = vmul.f32 %v5178_v54, %v6224_v11  ;;  %v13267_v52 = vld [vmem:[#allocation152_spill] sm:$0xff]  ;;  %4636 = vset.pattern.permute.xlu1 %v12922_v49  ;;  %v6704_v10 = vpop.permute.xlu0 %515 }
 0x157   : > { %13253 = vst [vmem:[#allocation307_spill] sm:$0xff] %v6650_v63  ;;  %13257 = vst [vmem:[#allocation155_spill] sm:$0xff] %v6658_v20  ;;  %v6674_v46 = vadd.f32 %v13262_v35, %v849_v28  ;;  %v6687_v36 = vmul.f32 %v5184_v5, %v6138_v13  ;;  %v6691_v28 = vpop.permute.xlu1 %2618  ;;  %v1575_v35 = vmul.f32 %v5180_v55, %v6224_v11  ;;  %v13269_v20 = vld [vmem:[#allocation181_spill] sm:$0xff]  ;;  %2678 = vperm.xlu0 %4668, %v2512_v60  }
 0x158   : > { %13255 = vst [vmem:[#allocation154_spill] sm:$0xff] %v6655_v31  ;;  %13259 = vst [vmem:[#allocation183_spill] sm:$0xff] %v6661_v17  ;;  %v879_v17 = vmul.f32 %v5171_v47, %v6226_v57  ;;  %v6701_v31 = vadd.f32 %v13269_v20, %v848_v39  ;;  %v878_v29 = vmul.f32 %v5173_v48, %v6226_v57  ;;  %v13272_v13 = vld [vmem:[#allocation153_spill] sm:$0xff] }
 0x159   : > { %13260 = vst [vmem:[#allocation308_spill] sm:$0xff] %v6665_v26  ;;  %13261 = vst [vmem:[#allocation309_spill] sm:$0xff] %v6669_v51  ;;  %v13275_v26 = vld [vmem:[#allocation45_spill] sm:$0xff]  ;;  %v881_v39 = vmul.f32 %v5182_v58, %v6226_v57  ;;  %v880_v20 = vmul.f32 %v5184_v5, %v6226_v57  ;;  %v6729_v60 = vadd.f32 %v1576_v16, %v6359_v61 }
 0x15a   : > { %13263 = vst [vmem:[#allocation7_spill] sm:$0xff] %v6674_v46  ;;  %13264 = vst [vmem:[#allocation310_spill] sm:$0xff] %v6683_v24  ;;  %v6698_v46 = vadd.f32 %v13267_v52, %v863_v14  ;;  %v13274_v24 = vld [vmem:[#allocation44_spill] sm:$0xff]  ;;  %v1577_v52 = vmul.f32 %v13275_v26, %v6224_v11  ;;  %v4676_v14 = vld [vmem:[%s12026_s1] sm:$0xff]  ;;  %v6739_v57 = vadd.f32 %v1575_v35, %v6363_v34  ;;  %v6754_v12 = vpop.permute.xlu0 %525 }
 0x15b   : > { %13265 = vst [vmem:[#allocation311_spill] sm:$0xff] %v6687_v36  ;;  %13266 = vst [vmem:[#allocation312_spill] sm:$0xff] %v6691_v28  ;;  %v6709_v36 = vadd.f32 %v13272_v13, %v862_v27  ;;  %v1578_v51 = vmul.f32 %v13274_v24, %v6224_v11  ;;  %1167 = vperm.xlu1 %4636, %v4676_v14   ;;  %v13276_v13 = vld [vmem:[#allocation175_spill] sm:$0xff]  ;;  %v1841_v14 = vmul.f32 %v13275_v26, %v6301_v9  ;;  %v13283_v16 = vld [vmem:[#allocation149_spill] sm:$0xff]  ;;  %v6752_v62 = vpop.permute.xlu1 %1207 }
 0x15c   : > { %13268 = vst [vmem:[#allocation152_spill] sm:$0xff] %v6698_v46  ;;  %13270 = vst [vmem:[#allocation181_spill] sm:$0xff] %v6701_v31  ;;  %v6723_v27 = vadd.f32 %v13276_v13, %v865_v50  ;;  %v2544_v31 = vld [vmem:[%s12027_s2 + $0x1c8] sm:$0xff]  ;;  %v13278_v46 = vld [vmem:[#allocation180_spill] sm:$0xff]  ;;  %v1007_v32 = vmul.f32 %v5171_v47, %v6704_v10 }
 0x15d   : > { %13271 = vst [vmem:[#allocation313_spill] sm:$0xff] %v6704_v10  ;;  %13273 = vst [vmem:[#allocation153_spill] sm:$0xff] %v6709_v36  ;;  %v1842_v36 = vmul.f32 %v13274_v24, %v6301_v9  ;;  %v6736_v23 = vadd.f32 %v13278_v46, %v864_v30  ;;  %v13280_v50 = vld [vmem:[#allocation80_spill] sm:$0xff]  ;;  %v6758_v46 = vmul.f32 %v5171_v47, %v6303_v53  ;;  %v13288_v34 = vld [vmem:[#allocation151_spill] sm:$0xff]  ;;  %2838 = vperm.xlu0 %4668, %v2544_v31  }
 0x15e   : > { %13277 = vst [vmem:[#allocation44_spill] sm:$0xff] %v6723_v27  ;;  %v6743_v13 = vmul.f32 %v5171_v47, %v13280_v50  ;;  %v6747_v61 = vmul.f32 %v5173_v48, %v13280_v50  ;;  %v6750_v27 = vadd.f32 %v13283_v16, %v879_v17  ;;  %13285 = vst [vmem:[#allocation314_spill] sm:$0xff] %v6752_v62  ;;  %v4677_v17 = vld [vmem:[%s12026_s1 + $0x108] sm:$0xff] }
 0x15f   : > { %13279 = vst [vmem:[#allocation45_spill] sm:$0xff] %v6736_v23  ;;  %13286 = vst [vmem:[#allocation315_spill] sm:$0xff] %v6754_v12  ;;  %v6761_v30 = vadd.f32 %v13288_v34, %v878_v29  ;;  %v6764_v35 = vadd.f32 %v1578_v51, %v6391_v7  ;;  %v6767_v23 = vadd.f32 %v1577_v52, %v6395_v6  ;;  %1299 = vperm.xlu1 %4636, %v4677_v17   ;;  %v13295_v29 = vld [vmem:[#allocation174_spill] sm:$0xff]  ;;  %v2510_v6 = vld [vmem:[%s12027_s2 + $0xb8] sm:$0xff] }
 0x160   : > { %13281 = vst [vmem:[#allocation175_spill] sm:$0xff] %v6743_v13  ;;  %13282 = vst [vmem:[#allocation180_spill] sm:$0xff] %v6747_v61  ;;  %v6774_v16 = vmul.f32 %v5173_v48, %v6303_v53  ;;  %v6780_v34 = vadd.f32 %v13295_v29, %v880_v20  ;;  %v2354_v7 = vadd.f32 %v1842_v36, %v6315_v40 }
 0x161   : > { %13284 = vst [vmem:[#allocation149_spill] sm:$0xff] %v6750_v27  ;;  %13287 = vst [vmem:[#allocation316_spill] sm:$0xff] %v6758_v46  ;;  %v13293_v27 = vld [vmem:[#allocation173_spill] sm:$0xff]  ;;  %v6787_v31 = vadd.f32 %v1841_v14, %v6319_v56  ;;  %v1580_v51 = vmul.f32 %v13001_v8, %v6224_v11  ;;  %v1579_v52 = vmul.f32 %v13002_v15, %v6224_v11  ;;  %v6810_v14 = vpop.permute.xlu0 %535  ;;  %2668 = vperm.xlu0 %4668, %v2510_v6  }
 0x162   : > { %13289 = vst [vmem:[#allocation151_spill] sm:$0xff] %v6761_v30  ;;  %13290 = vst [vmem:[#allocation317_spill] sm:$0xff] %v6764_v35  ;;  %v6777_v46 = vadd.f32 %v13293_v27, %v881_v39  ;;  %v2522_v39 = vld [vmem:[%s12027_s2 + $0x118] sm:$0xff]  ;;  %v6798_v20 = vmul.f32 %v5178_v54, %v6374_v1  ;;  %v6802_v40 = vmul.f32 %v5180_v55, %v6374_v1  ;;  %v6808_v27 = vpop.permute.xlu1 %1339 }
 0x163   : > { %13291 = vst [vmem:[#allocation318_spill] sm:$0xff] %v6767_v23  ;;  %13292 = vst [vmem:[#allocation319_spill] sm:$0xff] %v6774_v16  ;;  %v1844_v56 = vmul.f32 %v13001_v8, %v6301_v9  ;;  %v1843_v36 = vmul.f32 %v13002_v15, %v6301_v9  ;;  %v6814_v17 = vmul.f32 %v5171_v47, %v6376_v44  ;;  %4637 = vset.pattern.permute.xlu1 %v12939_v37  ;;  %v2542_v16 = vld [vmem:[%s12027_s2 + $0x1b8] sm:$0xff] }
 0x164   : > { %13294 = vst [vmem:[#allocation173_spill] sm:$0xff] %v6777_v46  ;;  %13296 = vst [vmem:[#allocation174_spill] sm:$0xff] %v6780_v34  ;;  %v6818_v29 = vmul.f32 %v5173_v48, %v6376_v44  ;;  %v6822_v11 = vmul.f32 %v13274_v24, %v6374_v1  ;;  %v6826_v34 = vmul.f32 %v13275_v26, %v6374_v1  ;;  %2728 = vperm.xlu1 %4637, %v2522_v39   ;;  %v13360_v35 = vld [vmem:[#allocation108_spill] sm:$0xff] }
 0x165   : > { %13297 = vst [vmem:[#allocation320_spill] sm:$0xff] %v6808_v27  ;;  %13298 = vst [vmem:[#allocation321_spill] sm:$0xff] %v6810_v14  ;;  %v1560_v9 = vmul.f32 %v5178_v54, %v6434_v0  ;;  %v6833_v46 = vmul.f32 %v5182_v58, %v13280_v50  ;;  %v6837_v30 = vmul.f32 %v5184_v5, %v13280_v50  ;;  %v6867_v61 = vpop.permute.xlu0 %545  ;;  %2828 = vperm.xlu0 %4668, %v2542_v16  }
 0x166   : > { %13299 = vst [vmem:[#allocation322_spill] sm:$0xff] %v6814_v17  ;;  %13300 = vst [vmem:[#allocation323_spill] sm:$0xff] %v6818_v29  ;;  %v1559_v6 = vmul.f32 %v5180_v55, %v6434_v0  ;;  %v6846_v29 = vmul.f32 %v5182_v58, %v6303_v53  ;;  %v6850_v17 = vmul.f32 %v5182_v58, %v6376_v44 }
 0x167   : > { %13301 = vst [vmem:[#allocation324_spill] sm:$0xff] %v6833_v46  ;;  %13302 = vst [vmem:[#allocation325_spill] sm:$0xff] %v6837_v30  ;;  %v6854_v50 = vmul.f32 %v5184_v5, %v6303_v53  ;;  %v1562_v39 = vmul.f32 %v13274_v24, %v6434_v0  ;;  %v1561_v30 = vmul.f32 %v13275_v26, %v6434_v0 }
 0x168   : > { %13303 = vst [vmem:[#allocation326_spill] sm:$0xff] %v6846_v29  ;;  %13304 = vst [vmem:[#allocation327_spill] sm:$0xff] %v6850_v17  ;;  %v6862_v46 = vmul.f32 %v5184_v5, %v6376_v44  ;;  %v6865_v29 = vadd.f32 %v1580_v51, %v6399_v45  ;;  %v6871_v17 = vmul.f32 %v5171_v47, %v6436_v33  ;;  %v6881_v44 = vpop.permute.xlu1 %2778  ;;  %4638 = vset.pattern.permute.xlu1 %v12922_v49 }
 0x169   : > { %13305 = vst [vmem:[#allocation328_spill] sm:$0xff] %v6854_v50  ;;  %13308 = vst [vmem:[#allocation331_spill] sm:$0xff] %v6867_v61  ;;  %v6875_v53 = vmul.f32 %v5173_v48, %v6436_v33  ;;  %v6878_v50 = vadd.f32 %v1579_v52, %v6414_v38  ;;  %v2356_v13 = vadd.f32 %v1844_v56, %v6332_v43  ;;  %v2508_v38 = vld [vmem:[%s12027_s2 + $0xa8] sm:$0xff]  ;;  %v4678_v56 = vld [vmem:[%s12026_s1 + $0x100] sm:$0xff] }
 0x16a   : > { %13306 = vst [vmem:[#allocation329_spill] sm:$0xff] %v6862_v46  ;;  %13307 = vst [vmem:[#allocation330_spill] sm:$0xff] %v6865_v29  ;;  %v1824_v45 = vmul.f32 %v5178_v54, %v6494_v4  ;;  %v1823_v51 = vmul.f32 %v5180_v55, %v6494_v4  ;;  %v13313_v46 = vld [vmem:[#allocation249_spill] sm:$0xff]  ;;  %v13315_v43 = vld [vmem:[#allocation250_spill] sm:$0xff]  ;;  %v1826_v52 = vmul.f32 %v13274_v24, %v6494_v4  ;;  %1295 = vperm.xlu1 %4638, %v4678_v56  }
 0x16b   : > { %13309 = vst [vmem:[#allocation332_spill] sm:$0xff] %v6871_v17  ;;  %13310 = vst [vmem:[#allocation333_spill] sm:$0xff] %v6875_v53  ;;  %v6888_v17 = vadd.f32 %v1560_v9, %v13313_v46  ;;  %v6892_v53 = vmul.f32 %v5182_v58, %v6436_v33  ;;  %v6899_v16 = vadd.f32 %v1559_v6, %v13315_v43  ;;  %v13319_v6 = vld [vmem:[#allocation252_spill] sm:$0xff]  ;;  %v13321_v29 = vld [vmem:[#allocation253_spill] sm:$0xff]  ;;  %2658 = vperm.xlu0 %4668, %v2508_v38  }
 0x16c   : > { %13311 = vst [vmem:[#allocation334_spill] sm:$0xff] %v6878_v50  ;;  %13312 = vst [vmem:[#allocation335_spill] sm:$0xff] %v6881_v44  ;;  %v6905_v9 = vmul.f32 %v5184_v5, %v6436_v33  ;;  %v1564_v46 = vmul.f32 %v13001_v8, %v6434_v0  ;;  %v6916_v43 = vadd.f32 %v1561_v30, %v13319_v6  ;;  %v13327_v6 = vld [vmem:[#allocation233_spill] sm:$0xff]  ;;  %v6953_v2 = vpop.permute.xlu1 %1335  ;;  %v2540_v38 = vld [vmem:[%s12027_s2 + $0x1a8] sm:$0xff] }
 0x16d   : > { %13314 = vst [vmem:[#allocation249_spill] sm:$0xff] %v6892_v53  ;;  %v13317_v53 = vld [vmem:[#allocation251_spill] sm:$0xff]  ;;  %v1825_v50 = vmul.f32 %v13275_v26, %v6494_v4  ;;  %v2355_v33 = vadd.f32 %v1843_v36, %v13321_v29  ;;  %13323 = vst [vmem:[#allocation336_spill] sm:$0xff] %v6925_v25  ;;  %v6929_v56 = vmul.f32 %v5173_v48, %v6496_v3  ;;  %v2488_v36 = vld [vmem:[%s12027_s2 + $0x8] sm:$0xff] }
 0x16e   : > { %13316 = vst [vmem:[#allocation250_spill] sm:$0xff] %v6905_v9  ;;  %v6913_v41 = vadd.f32 %v1562_v39, %v13317_v53  ;;  %13320 = vst [vmem:[#allocation252_spill] sm:$0xff] %v6916_v43  ;;  %v6921_v9 = vpop.permute.xlu0 %555  ;;  %v6933_v53 = vmul.f32 %v5182_v58, %v6496_v3  ;;  %v6937_v30 = vmul.f32 %v13001_v8, %v6374_v1  ;;  %v13326_v29 = vld [vmem:[#allocation232_spill] sm:$0xff]  ;;  %4639 = vset.pattern.permute.xlu1 %v12939_v37 }
 0x16f   : > { %13322 = vst [vmem:[#allocation253_spill] sm:$0xff] %v6921_v9  ;;  %13324 = vst [vmem:[#allocation337_spill] sm:$0xff] %v6929_v56  ;;  %v6943_v39 = vadd.f32 %v1824_v45, %v13326_v29  ;;  %v6946_v25 = vadd.f32 %v1823_v51, %v13327_v6  ;;  %v6949_v56 = vadd.f32 %v6558_v42, %v2354_v7  ;;  %v13331_v45 = vld [vmem:[#allocation234_spill] sm:$0xff]  ;;  %v13333_v51 = vld [vmem:[#allocation256_spill] sm:$0xff]  ;;  %2558 = vperm.xlu1 %4639, %v2488_v36  }
 0x170   : > { %13318 = vst [vmem:[#allocation251_spill] sm:$0xff] %v6913_v41  ;;  %13325 = vst [vmem:[#allocation338_spill] sm:$0xff] %v6933_v53  ;;  %v1563_v53 = vmul.f32 %v13002_v15, %v6434_v0  ;;  %v6960_v43 = vadd.f32 %v6558_v42, %v6787_v31  ;;  %v6963_v29 = vadd.f32 %v1826_v52, %v13331_v45  ;;  %v13335_v0 = vld [vmem:[#allocation235_spill] sm:$0xff]  ;;  %2818 = vperm.xlu0 %4668, %v2540_v38  }
 0x171   : > { %13328 = vst [vmem:[#allocation232_spill] sm:$0xff] %v6949_v56  ;;  %13329 = vst [vmem:[#allocation233_spill] sm:$0xff] %v6953_v2  ;;  %v6967_v7 = vmul.f32 %v5184_v5, %v6496_v3  ;;  %v6970_v6 = vadd.f32 %v1564_v46, %v13333_v51  ;;  %v6974_v41 = vadd.f32 %v1825_v50, %v13335_v0  ;;  %v13343_v3 = vld [vmem:[#allocation257_spill] sm:$0xff]  ;;  %v4679_v51 = vld [vmem:[%s12026_s1 + $0x1f8] sm:$0xff] }
 0x172   : > { %13330 = vst [vmem:[#allocation339_spill] sm:$0xff] %v6960_v43  ;;  %v6977_v23 = vadd.f32 %v6558_v42, %v2356_v13  ;;  %v6981_v31 = vmul.f32 %v13002_v15, %v6374_v1  ;;  %v1828_v52 = vmul.f32 %v13001_v8, %v6494_v4  ;;  %v6985_v45 = vpop.permute.xlu0 %565  ;;  %v6989_v46 = vmul.f32 %v5171_v47, %v6548_v19 }
 0x173   : > { %13332 = vst [vmem:[#allocation234_spill] sm:$0xff] %v6967_v7  ;;  %13334 = vst [vmem:[#allocation256_spill] sm:$0xff] %v6970_v6  ;;  %v6993_v0 = vmul.f32 %v5173_v48, %v6548_v19  ;;  %v6997_v50 = vmul.f32 %v5182_v58, %v6548_v19  ;;  %v1827_v13 = vmul.f32 %v13002_v15, %v6494_v4  ;;  %610 = vperm.xlu1 %4639, %v4679_v51  }
 0x174   : > { %13336 = vst [vmem:[#allocation235_spill] sm:$0xff] %v6977_v23  ;;  %13337 = vst [vmem:[#allocation340_spill] sm:$0xff] %v6985_v45  ;;  %v7004_v36 = vmul.f32 %v5184_v5, %v6548_v19  ;;  %v7007_v1 = vadd.f32 %v6558_v42, %v2355_v33  ;;  %v7010_v7 = vadd.f32 %v1563_v53, %v13343_v3  ;;  %v7028_v3 = vpop.permute.xlu1 %2608  ;;  %v13350_v19 = vld [vmem:[#allocation243_spill] sm:$0xff]  ;;  %v13352_v42 = vld [vmem:[#allocation244_spill] sm:$0xff] }
 0x175   : > { %13338 = vst [vmem:[#allocation341_spill] sm:$0xff] %v6989_v46  ;;  %13339 = vst [vmem:[#allocation342_spill] sm:$0xff] %v6993_v0  ;;  %v7017_v4 = vmul.f32 %v5171_v47, %v6601_v22  ;;  %v7021_v38 = vmul.f32 %v5173_v48, %v6601_v22  ;;  %v7026_v33 = vmul.f32 %v5182_v58, %v6601_v22  ;;  %v13359_v0 = vld [vmem:[#allocation105_spill] sm:$0xff] }
 0x176   : > { %13340 = vst [vmem:[#allocation343_spill] sm:$0xff] %v6997_v50  ;;  %13341 = vst [vmem:[#allocation344_spill] sm:$0xff] %v7004_v36  ;;  %v2506_v50 = vld [vmem:[%s12027_s2 + $0x98] sm:$0xff]  ;;  %v1816_v53 = vmul.f32 %v5178_v54, %v6621_v59  ;;  %v7034_v56 = vmul.f32 %v5184_v5, %v6601_v22  ;;  %v7040_v36 = vpop.permute.xlu0 %575  ;;  %v1815_v43 = vmul.f32 %v5180_v55, %v6621_v59 }
 0x177   : > { %13342 = vst [vmem:[#allocation345_spill] sm:$0xff] %v7007_v1  ;;  %13344 = vst [vmem:[#allocation257_spill] sm:$0xff] %v7010_v7  ;;  %v7038_v7 = vadd.f32 %v1828_v52, %v13350_v19  ;;  %v1818_v6 = vmul.f32 %v13274_v24, %v6621_v59  ;;  %v7054_v19 = vadd.f32 %v1827_v13, %v13352_v42  ;;  %2648 = vperm.xlu0 %4668, %v2506_v50   ;;  %v2538_v42 = vld [vmem:[%s12027_s2 + $0x198] sm:$0xff]  ;;  %v13358_v50 = vld [vmem:[#allocation102_spill] sm:$0xff] }
 0x178   : > { %13345 = vst [vmem:[#allocation346_spill] sm:$0xff] %v7017_v4  ;;  %13346 = vst [vmem:[#allocation347_spill] sm:$0xff] %v7021_v38  ;;  %v7058_v52 = vmul.f32 %v5171_v47, %v6650_v63  ;;  %v7062_v51 = vmul.f32 %v5173_v48, %v6650_v63  ;;  %v7066_v23 = vmul.f32 %v13001_v8, %v6621_v59  ;;  %v7101_v4 = vpop.permute.xlu1 %1199  ;;  %4640 = vset.pattern.permute.xlu1 %v12922_v49  ;;  %v2487_v1 = vld [vmem:[%s12027_s2] sm:$0xff] }
 0x179   : > { %13347 = vst [vmem:[#allocation348_spill] sm:$0xff] %v7026_v33  ;;  %13348 = vst [vmem:[#allocation349_spill] sm:$0xff] %v7028_v3  ;;  %v7070_v33 = vmul.f32 %v13002_v15, %v6621_v59  ;;  %v7077_v13 = vadd.f32 %v6691_v28, %v13358_v50  ;;  %v7081_v46 = vadd.f32 %v6691_v28, %v13359_v0  ;;  %v13388_v15 = vld [vmem:[#allocation236_spill] sm:$0xff] }
 0x17a   : > { %13349 = vst [vmem:[#allocation350_spill] sm:$0xff] %v7034_v56  ;;  %13351 = vst [vmem:[#allocation243_spill] sm:$0xff] %v7040_v36  ;;  %v7051_v56 = vmul.f32 %v13275_v26, %v6621_v59  ;;  %v7087_v36 = vadd.f32 %v6691_v28, %v13360_v35  ;;  %v1006_v59 = vmul.f32 %v5173_v48, %v6704_v10 }
 0x17b   : > { %13353 = vst [vmem:[#allocation244_spill] sm:$0xff] %v7054_v19  ;;  %13354 = vst [vmem:[#allocation351_spill] sm:$0xff] %v7058_v52  ;;  %v1009_v38 = vmul.f32 %v5182_v58, %v6704_v10  ;;  %v7095_v50 = vmul.f32 %v5182_v58, %v6650_v63  ;;  %v7099_v0 = vmul.f32 %v5184_v5, %v6650_v63  ;;  %2808 = vperm.xlu0 %4668, %v2538_v42   ;;  %v2537_v42 = vld [vmem:[%s12027_s2 + $0x190] sm:$0xff] }
 0x17c   : > { %13355 = vst [vmem:[#allocation352_spill] sm:$0xff] %v7062_v51  ;;  %13356 = vst [vmem:[#allocation353_spill] sm:$0xff] %v7066_v23  ;;  %v7108_v35 = vmul.f32 %v5193_v18, %v6650_v63  ;;  %v7112_v45 = vmul.f32 %v5195_v21, %v6650_v63  ;;  %v1543_v63 = vmul.f32 %v5180_v55, %v6752_v62 }
 0x17d   : > { %13357 = vst [vmem:[#allocation354_spill] sm:$0xff] %v7070_v33  ;;  %13361 = vst [vmem:[#allocation102_spill] sm:$0xff] %v7087_v36  ;;  %v7103_v33 = vpop.permute.xlu0 %585  ;;  %v1008_v36 = vmul.f32 %v5184_v5, %v6704_v10 }
 0x17e   : > { %13362 = vst [vmem:[#allocation105_spill] sm:$0xff] %v7095_v50  ;;  %13363 = vst [vmem:[#allocation108_spill] sm:$0xff] %v7099_v0  ;;  %v7116_v50 = vmul.f32 %v5193_v18, %v6601_v22  ;;  %v7120_v0 = vmul.f32 %v5195_v21, %v6601_v22 }
 0x17f   : > { %13364 = vst [vmem:[#allocation355_spill] sm:$0xff] %v7101_v4  ;;  %13365 = vst [vmem:[#allocation356_spill] sm:$0xff] %v7103_v33  ;;  %v4680_v33 = vld [vmem:[%s12026_s1 + $0xf0] sm:$0xff]  ;;  %v13370_v4 = vld [vmem:[#allocation110_spill] sm:$0xff]  ;;  %2803 = vperm.xlu0 %4668, %v2537_v42   ;;  %v1545_v42 = vmul.f32 %v13275_v26, %v6752_v62 }
 0x180   : > { %13366 = vst [vmem:[#allocation357_spill] sm:$0xff] %v7108_v35  ;;  %13367 = vst [vmem:[#allocation358_spill] sm:$0xff] %v7112_v45  ;;  %1287 = vperm.xlu1 %4640, %v4680_v33   ;;  %v7127_v35 = vadd.f32 %v6691_v28, %v13370_v4  ;;  %v13372_v45 = vld [vmem:[#allocation84_spill] sm:$0xff]  ;;  %v7143_v4 = vadd.f32 %v1816_v53, %v1007_v32  ;;  %v7157_v33 = vpop.permute.xlu1 %1331  ;;  %v1544_v53 = vmul.f32 %v5178_v54, %v6752_v62 }
 0x181   : > { %13368 = vst [vmem:[#allocation359_spill] sm:$0xff] %v7116_v50  ;;  %13369 = vst [vmem:[#allocation360_spill] sm:$0xff] %v7120_v0  ;;  %v7132_v51 = vmul.f32 %v5193_v18, %v13372_v45  ;;  %v13374_v50 = vld [vmem:[#allocation26_spill] sm:$0xff]  ;;  %v1022_v45 = vmul.f32 %v5173_v48, %v6754_v12  ;;  %v7159_v32 = vpop.permute.xlu0 %595  ;;  %v1025_v0 = vmul.f32 %v5182_v58, %v6754_v12 }
 0x182   : > { %13371 = vst [vmem:[#allocation110_spill] sm:$0xff] %v7127_v35  ;;  %v7136_v22 = vmul.f32 %v13001_v8, %v13374_v50  ;;  %13376 = vst [vmem:[#allocation363_spill] sm:$0xff] %v7143_v4  ;;  %v1023_v50 = vmul.f32 %v5171_v47, %v6754_v12  ;;  %v7190_v35 = vmul.f32 %v5193_v18, %v6704_v10 }
 0x183   : > { %13373 = vst [vmem:[#allocation361_spill] sm:$0xff] %v7132_v51  ;;  %v7155_v51 = vadd.f32 %v1818_v6, %v1009_v38  ;;  %13379 = vst [vmem:[#allocation366_spill] sm:$0xff] %v7157_v33  ;;  %v1546_v6 = vmul.f32 %v13274_v24, %v6752_v62  ;;  %v13381_v38 = vld [vmem:[#allocation67_spill] sm:$0xff]  ;;  %v13383_v33 = vld [vmem:[#allocation68_spill] sm:$0xff]  ;;  %v7208_v23 = vadd.f32 %v1544_v53, %v13388_v15 }
 0x184   : > { %13375 = vst [vmem:[#allocation362_spill] sm:$0xff] %v7136_v22  ;;  %v7153_v22 = vadd.f32 %v1815_v43, %v1006_v59  ;;  %13380 = vst [vmem:[#allocation367_spill] sm:$0xff] %v7159_v32  ;;  %4641 = vset.pattern.permute.xlu1 %v12939_v37  ;;  %v1024_v43 = vmul.f32 %v5184_v5, %v6754_v12  ;;  %v2536_v32 = vld [vmem:[%s12027_s2 + $0x188] sm:$0xff]  ;;  %v7186_v59 = vadd.f32 %v6691_v28, %v13383_v33 }
 0x185   : > { %13378 = vst [vmem:[#allocation365_spill] sm:$0xff] %v7155_v51  ;;  %v7177_v51 = vadd.f32 %v6691_v28, %v13381_v38  ;;  %2553 = vperm.xlu1 %4641, %v2487_v1   ;;  %13385 = vst [vmem:[#allocation368_spill] sm:$0xff] %v7190_v35  ;;  %v7194_v38 = vmul.f32 %v5195_v21, %v6704_v10  ;;  %v2520_v1 = vld [vmem:[%s12027_s2 + $0x108] sm:$0xff]  ;;  %v2344_v52 = vadd.f32 %v6798_v20, %v1023_v50  ;;  %v7205_v4 = vpop.permute.xlu0 %2628  ;;  %v13389_v10 = vld [vmem:[#allocation237_spill] sm:$0xff] }
 0x186   : > { %13377 = vst [vmem:[#allocation364_spill] sm:$0xff] %v7153_v22  ;;  %13384 = vst [vmem:[#allocation68_spill] sm:$0xff] %v7186_v59  ;;  %v2343_v22 = vadd.f32 %v6802_v40, %v1022_v45  ;;  %v1808_v33 = vmul.f32 %v5178_v54, %v6808_v27  ;;  %v1807_v28 = vmul.f32 %v5180_v55, %v6808_v27  ;;  %v7218_v40 = vpop.permute.xlu1 %2768  ;;  %2798 = vperm.xlu0 %4668, %v2536_v32   ;;  %v13392_v45 = vld [vmem:[#allocation109_spill] sm:$0xff]  ;;  %v13393_v37 = vld [vmem:[#allocation50_spill] sm:$0xff] }
 0x187   : > { %13382 = vst [vmem:[#allocation67_spill] sm:$0xff] %v7177_v51  ;;  %13386 = vst [vmem:[#allocation369_spill] sm:$0xff] %v7194_v38  ;;  %v7211_v38 = vadd.f32 %v1543_v63, %v13389_v10  ;;  %v7214_v35 = vadd.f32 %v6822_v11, %v1025_v0  ;;  %v1810_v20 = vmul.f32 %v13274_v24, %v6808_v27  ;;  %v13395_v10 = vld [vmem:[#allocation238_spill] sm:$0xff]  ;;  %v3899_v11 = vld [vmem:[%s12029_s4] sm:$0xff] }
 0x188   : > { %13387 = vst [vmem:[#allocation370_spill] sm:$0xff] %v7205_v4  ;;  %13391 = vst [vmem:[#allocation237_spill] sm:$0xff] %v7218_v40  ;;  %v2992_v50 = vadd.f32 %v7205_v4, %v13392_v45  ;;  %v2991_v19 = vadd.f32 %v7205_v4, %v13393_v37  ;;  %v7225_v15 = vadd.f32 %v6826_v34, %v1024_v43  ;;  %v13399_v37 = vld [vmem:[#allocation239_spill] sm:$0xff] }
 0x189   : > { %13390 = vst [vmem:[#allocation236_spill] sm:$0xff] %v7214_v35  ;;  %v7228_v63 = vadd.f32 %v1546_v6, %v13395_v10  ;;  %2718 = vperm.xlu1 %4641, %v2520_v1   ;;  %v7235_v0 = vmul.f32 %v5171_v47, %v6810_v14  ;;  %v7239_v32 = vmul.f32 %v5173_v48, %v6810_v14  ;;  %v13400_v1 = vld [vmem:[#allocation219_spill] sm:$0xff]  ;;  %v13401_v10 = vld [vmem:[#allocation220_spill] sm:$0xff] }
 0x18a   : > { %13394 = vst [vmem:[#allocation109_spill] sm:$0xff] %v7225_v15  ;;  %v7242_v53 = vadd.f32 %v1545_v42, %v13399_v37  ;;  %v7245_v34 = vadd.f32 %v7051_v56, %v1008_v36  ;;  %v3504_v43 = vmax.f32 %v2992_v50, 0.0  ;;  %v3503_v6 = vmax.f32 %v2991_v19, 0.0  ;;  %v7253_v15 = vpop.permute.xlu0 %2623  ;;  %3902 = vperm.xlu0 %4668, %v3899_v11   ;;  %v7275_v50 = vpop.permute.xlu1 %1327  ;;  %v4681_v37 = vld [vmem:[%s12026_s1 + $0xe8] sm:$0xff] }
 0x18b   : > { %13396 = vst [vmem:[#allocation50_spill] sm:$0xff] %v7228_v63  ;;  %13397 = vst [vmem:[#allocation238_spill] sm:$0xff] %v7235_v0  ;;  %v7248_v45 = vadd.f32 %v1808_v33, %v13400_v1  ;;  %v7251_v63 = vadd.f32 %v1807_v28, %v13401_v10  ;;  %v13403_v0 = vld [vmem:[#allocation225_spill] sm:$0xff]  ;;  %v1809_v42 = vmul.f32 %v13275_v26, %v6808_v27  ;;  %v13412_v10 = vld [vmem:[#allocation226_spill] sm:$0xff] }
 0x18c   : > { %13398 = vst [vmem:[#allocation371_spill] sm:$0xff] %v7239_v32  ;;  %13402 = vst [vmem:[#allocation239_spill] sm:$0xff] %v7253_v15  ;;  %v7256_v35 = vadd.f32 %v1810_v20, %v13403_v0  ;;  %v7262_v56 = vmul.f32 %v5182_v58, %v6810_v14  ;;  %v7266_v36 = vmul.f32 %v5184_v5, %v6810_v14  ;;  %3905 = vmatprep.subr.mxu0 %v3504_v43  ;;  %v13432_v32 = vld [vmem:[#allocation245_spill] sm:$0xff] }
 0x18d   : > { %v2984_v28 = vadd.f32 %v7253_v15, %v6729_v60  ;;  %v2983_v19 = vadd.f32 %v7253_v15, %v6739_v57  ;;  %v1027_v20 = vmul.f32 %v5193_v18, %v6754_v12  ;;  %13406 = vst [vmem:[#allocation225_spill] sm:$0xff] %v7275_v50  ;;  %4642 = vset.pattern.permute.xlu1 %v12922_v49 }
 0x18e   : > { %13404 = vst [vmem:[#allocation219_spill] sm:$0xff] %v7262_v56  ;;  %13405 = vst [vmem:[#allocation220_spill] sm:$0xff] %v7266_v36  ;;  %3906 = vmatpush1.msra.mxu0 %v3503_v6  ;;  %v3232_v11 = vadd.f32 %v6881_v44, %v6943_v39  ;;  %v3231_v0 = vadd.f32 %v6881_v44, %v6946_v25  ;;  %v7284_v60 = vadd.f32 %v6881_v44, %v6963_v29  ;;  %v7298_v39 = vpop.permute.xlu0 %2783 }
 0x18f   : > { %1283 = vperm.xlu1 %4642, %v4681_v37   ;;  %v3496_v43 = vmax.f32 %v2984_v28, 0.0  ;;  %v3495_v1 = vmax.f32 %v2983_v19, 0.0  ;;  %v7292_v6 = vmul.f32 %v5171_v47, %v6867_v61  ;;  %v7296_v25 = vadd.f32 %v6881_v44, %v6974_v41  ;;  %13410 = vst [vmem:[#allocation375_spill] sm:$0xff] %v7298_v39 }
 0x190   : > { %13407 = vst [vmem:[#allocation372_spill] sm:$0xff] %v7284_v60  ;;  %v7302_v29 = vmul.f32 %v5173_v48, %v6867_v61  ;;  %v7305_v57 = vadd.f32 %v1809_v42, %v13412_v10  ;;  %v7309_v28 = vmul.f32 %v5182_v58, %v6867_v61  ;;  %v7313_v19 = vmul.f32 %v5184_v5, %v6867_v61 }
 0x191   : > { %13408 = vst [vmem:[#allocation373_spill] sm:$0xff] %v7292_v6  ;;  %13409 = vst [vmem:[#allocation374_spill] sm:$0xff] %v7296_v25  ;;  %3907 = vmatprep.subr.mxu0 %v3496_v43  ;;  %v3240_v41 = vadd.f32 %v7298_v39, %v2344_v52  ;;  %v3239_v37 = vadd.f32 %v7298_v39, %v2343_v22  ;;  %v7318_v33 = vadd.f32 %v6937_v30, %v1027_v20  ;;  %v7327_v43 = vpop.permute.xlu1 %2598  ;;  %v13417_v52 = vld [vmem:[#allocation240_spill] sm:$0xff]  ;;  %v13426_v25 = vld [vmem:[#allocation93_spill] sm:$0xff] }
 0x192   : > { %13411 = vst [vmem:[#allocation376_spill] sm:$0xff] %v7302_v29  ;;  %13413 = vst [vmem:[#allocation226_spill] sm:$0xff] %v7309_v28  ;;  %v1026_v42 = vmul.f32 %v5195_v21, %v6754_v12  ;;  %3908 = vmatpush1.msra.mxu0 %v3495_v1  ;;  %v3744_v10 = vmax.f32 %v3232_v11, 0.0  ;;  %v3743_v59 = vmax.f32 %v3231_v0, 0.0  ;;  %v7325_v14 = vadd.f32 %v6881_v44, %v7038_v7  ;;  %v7337_v0 = vpop.permute.xlu0 %2613  ;;  %v13437_v28 = vld [vmem:[#allocation52_spill] sm:$0xff] }
 0x193   : > { %13414 = vst [vmem:[#allocation377_spill] sm:$0xff] %v7313_v19  ;;  %13416 = vst [vmem:[#allocation379_spill] sm:$0xff] %v7327_v43  ;;  %1415 = vperm.xlu1 %4642, %v13417_v52   ;;  %v13418_v22 = vmax.f32 %v7077_v13, 0.0  ;;  %v3752_v30 = vmax.f32 %v3240_v41, 0.0  ;;  %v3751_v20 = vmax.f32 %v3239_v37, 0.0  ;;  %v7334_v1 = vmul.f32 %v5171_v47, %v6921_v9  ;;  %v13439_v6 = vld [vmem:[#allocation364_spill] sm:$0xff] }
 0x194   : > { %13415 = vst [vmem:[#allocation378_spill] sm:$0xff] %v7325_v14  ;;  %13420 = vst [vmem:[#allocation380_spill] sm:$0xff] %v7337_v0  ;;  %v13421_v7 = vmax.f32 %v7081_v46, 0.0  ;;  %v7343_v51 = vmul.f32 %v5173_v48, %v6921_v9  ;;  %v7347_v13 = vmul.f32 %v5182_v58, %v6921_v9  ;;  %v7351_v41 = vmul.f32 %v5184_v5, %v6921_v9  ;;  %v2519_v46 = vld [vmem:[%s12027_s2 + $0x100] sm:$0xff] }
 0x195   : > { %3909 = vmatprep.subr.mxu0 %v13418_v22  ;;  %13419 = vst [vmem:[#allocation240_spill] sm:$0xff] %v7334_v1  ;;  %v1548_v37 = vmul.f32 %v13001_v8, %v6752_v62  ;;  %3978 = vmatprep.subr.mxu1 %v3752_v30  ;;  %v2968_v52 = vadd.f32 %v7337_v0, %v6888_v17  ;;  %v13427_v17 = vld [vmem:[#allocation244_spill] sm:$0xff] }
 0x196   : > { %3910 = vmatpush1.msra.mxu0 %v13421_v7  ;;  %13422 = vst [vmem:[#allocation381_spill] sm:$0xff] %v7343_v51  ;;  %13423 = vst [vmem:[#allocation382_spill] sm:$0xff] %v7347_v13  ;;  %v2967_v22 = vadd.f32 %v7337_v0, %v6899_v16  ;;  %v13425_v7 = vld [vmem:[#allocation89_spill] sm:$0xff]  ;;  %v7365_v61 = vadd.f32 %v6981_v31, %v1026_v42  ;;  %3979 = vmatpush1.msra.mxu1 %v3751_v20  ;;  %v13429_v16 = vmov 0   ;;  %v7382_v20 = vpop.permute.xlu1 %1191  ;;  %v7384_v9 = vpop.permute.xlu0 %2773  ;;  %v13438_v13 = vld [vmem:[#allocation363_spill] sm:$0xff] }
 0x197   : > { %13424 = vst [vmem:[#allocation383_spill] sm:$0xff] %v7351_v41  ;;  %v2960_v11 = vadd.f32 %v7028_v3, %v13425_v7  ;;  %v2959_v30 = vadd.f32 %v7028_v3, %v13426_v25  ;;  %v1800_v36 = vmul.f32 %v5178_v54, %v6953_v2  ;;  %v1799_v56 = vmul.f32 %v5180_v55, %v6953_v2  ;;  %v13449_v51 = vld [vmem:[#allocation83_spill] sm:$0xff] }
 0x198   : > { %v7375_v60 = vadd.f32 %v6881_v44, %v13427_v17  ;;  %4643 = vset.pattern.permute.xlu1 %v13429_v16  ;;  %3980 = vmatprep.subr.mxu1 %v3744_v10  ;;  %v3480_v7 = vmax.f32 %v2968_v52, 0.0  ;;  %v3479_v31 = vmax.f32 %v2967_v22, 0.0  ;;  %v1802_v42 = vmul.f32 %v13274_v24, %v6953_v2  ;;  %13430 = vst [vmem:[#allocation93_spill] sm:$0xff] %v7382_v20  ;;  %v13434_v10 = vld [vmem:[#allocation368_spill] sm:$0xff]  ;;  %v13435_v52 = vld [vmem:[#allocation353_spill] sm:$0xff] }
 0x199   : > { %v1801_v25 = vmul.f32 %v13275_v26, %v6953_v2  ;;  %13431 = vst [vmem:[#allocation244_spill] sm:$0xff] %v7384_v9  ;;  %2713 = vperm.xlu1 %4643, %v2519_v46   ;;  %3981 = vmatpush1.msra.mxu1 %v3743_v59  ;;  %v7388_v19 = vadd.f32 %v1548_v37, %v13432_v32  ;;  %v3472_v41 = vmax.f32 %v2960_v11, 0.0  ;;  %v3471_v32 = vmax.f32 %v2959_v30, 0.0  ;;  %v13441_v17 = vld [vmem:[#allocation352_spill] sm:$0xff] }
 0x19a   : > { %13428 = vst [vmem:[#allocation89_spill] sm:$0xff] %v7375_v60  ;;  %v7392_v22 = vadd.f32 %v13435_v52, %v13434_v10  ;;  %v1547_v44 = vmul.f32 %v13437_v28, %v6752_v62  ;;  %3911 = vmatprep.subr.mxu0 %v3480_v7  ;;  %v3224_v29 = vadd.f32 %v7384_v9, %v13438_v13  ;;  %v13440_v10 = vld [vmem:[#allocation351_spill] sm:$0xff]  ;;  %v13442_v62 = vld [vmem:[#allocation340_spill] sm:$0xff]  ;;  %v7416_v30 = vpop.permute.xlu0 %2603 }
 0x19b   : > { %13433 = vst [vmem:[#allocation245_spill] sm:$0xff] %v7388_v19  ;;  %v3223_v59 = vadd.f32 %v7384_v9, %v13439_v6  ;;  %v3216_v46 = vadd.f32 %v7218_v40, %v7248_v45  ;;  %3912 = vmatpush1.msra.mxu0 %v3479_v31  ;;  %v3215_v37 = vadd.f32 %v7218_v40, %v7251_v63  ;;  %v7414_v45 = vpop.permute.xlu1 %1323  ;;  %13446 = vst [vmem:[#allocation351_spill] sm:$0xff] %v7416_v30  ;;  %v13447_v63 = vld [vmem:[#allocation366_spill] sm:$0xff]  ;;  %v13451_v60 = vld [vmem:[#allocation108_spill] sm:$0xff] }
 0x19c   : > { %13436 = vst [vmem:[#allocation368_spill] sm:$0xff] %v7392_v22  ;;  %v2312_v52 = vadd.f32 %v1800_v36, %v13440_v10  ;;  %v2311_v14 = vadd.f32 %v1799_v56, %v13441_v17  ;;  %3913 = vmatprep.subr.mxu0 %v3472_v41  ;;  %v3736_v11 = vmax.f32 %v3224_v29, 0.0  ;;  %v7408_v13 = vmul.f32 %v5171_v47, %v13442_v62  ;;  %v13448_v29 = vld [vmem:[#allocation105_spill] sm:$0xff]  ;;  %v4682_v17 = vld [vmem:[%s12026_s1 + $0x1e8] sm:$0xff] }
 0x19d   : > { %v3735_v7 = vmax.f32 %v3223_v59, 0.0  ;;  %v7412_v6 = vmul.f32 %v5173_v48, %v13442_v62  ;;  %13445 = vst [vmem:[#allocation364_spill] sm:$0xff] %v7414_v45  ;;  %4644 = vset.pattern.permute.xlu1 %v12922_v49  ;;  %3914 = vmatpush1.msra.mxu0 %v3471_v32  ;;  %v1792_v56 = vmul.f32 %v5178_v54, %v13447_v63  ;;  %v3728_v59 = vmax.f32 %v3216_v46, 0.0 }
 0x19e   : > { %13443 = vst [vmem:[#allocation353_spill] sm:$0xff] %v7408_v13  ;;  %v1791_v36 = vmul.f32 %v5180_v55, %v13447_v63  ;;  %v7424_v41 = vadd.f32 %v1802_v42, %v13448_v29  ;;  %1411 = vperm.xlu1 %4644, %v4682_v17   ;;  %3982 = vmatprep.subr.mxu1 %v3736_v11  ;;  %v3727_v42 = vmax.f32 %v3215_v37, 0.0  ;;  %v13450_v29 = vld [vmem:[#allocation85_spill] sm:$0xff]  ;;  %v7452_v17 = vpop.permute.xlu0 %2763 }
 0x19f   : > { %13444 = vst [vmem:[#allocation363_spill] sm:$0xff] %v7412_v6  ;;  %v2952_v32 = vadd.f32 %v7416_v30, %v7208_v23  ;;  %v2951_v10 = vadd.f32 %v7416_v30, %v7211_v38  ;;  %v2944_v1 = vadd.f32 %v7327_v43, %v13449_v51  ;;  %3983 = vmatpush1.msra.mxu1 %v3735_v7  ;;  %v2517_v38 = vld [vmem:[%s12027_s2 + $0xf0] sm:$0xff]  ;;  %13454 = vst [vmem:[#allocation105_spill] sm:$0xff] %v7452_v17 }
 0x1a0   : > { %v2943_v31 = vadd.f32 %v7327_v43, %v13450_v29  ;;  %v7439_v12 = vadd.f32 %v1801_v25, %v13451_v60  ;;  %v7443_v46 = vmul.f32 %v5182_v58, %v13442_v62  ;;  %3984 = vmatprep.subr.mxu1 %v3728_v59  ;;  %v13453_v51 = vld [vmem:[#allocation355_spill] sm:$0xff]  ;;  %v13455_v60 = vld [vmem:[#allocation210_spill] sm:$0xff]  ;;  %v7458_v59 = vmul.f32 %v5184_v5, %v13442_v62  ;;  %v13462_v62 = vld [vmem:[#allocation224_spill] sm:$0xff] }
 0x1a1   : > { %v3464_v23 = vmax.f32 %v2952_v32, 0.0  ;;  %v3463_v11 = vmax.f32 %v2951_v10, 0.0  ;;  %v1528_v37 = vmul.f32 %v5178_v54, %v13453_v51  ;;  %v1527_v7 = vmul.f32 %v5180_v55, %v13453_v51  ;;  %3985 = vmatpush1.msra.mxu1 %v3727_v42  ;;  %v13456_v29 = vld [vmem:[#allocation211_spill] sm:$0xff]  ;;  %v13458_v32 = vld [vmem:[#allocation246_spill] sm:$0xff]  ;;  %v7463_v10 = vpop.permute.xlu1 %2758 }
 0x1a2   : > { %13452 = vst [vmem:[#allocation352_spill] sm:$0xff] %v7443_v46  ;;  %v2304_v25 = vadd.f32 %v1792_v56, %v13455_v60  ;;  %v2303_v46 = vadd.f32 %v1791_v36, %v13456_v29  ;;  %13457 = vst [vmem:[#allocation83_spill] sm:$0xff] %v7458_v59  ;;  %v7461_v6 = vadd.f32 %v1547_v44, %v13458_v32  ;;  %4645 = vset.pattern.permute.xlu1 %v13429_v16  ;;  %v13461_v32 = vld [vmem:[#allocation223_spill] sm:$0xff]  ;;  %v7476_v59 = vpop.permute.xlu0 %2593 }
 0x1a3   : > { %13460 = vst [vmem:[#allocation108_spill] sm:$0xff] %v7463_v10  ;;  %3915 = vmatprep.subr.mxu0 %v3464_v23  ;;  %v3456_v13 = vmax.f32 %v2944_v1, 0.0  ;;  %v3208_v22 = vadd.f32 %v7452_v17, %v2312_v52  ;;  %v3207_v42 = vadd.f32 %v7452_v17, %v2311_v14  ;;  %v1784_v56 = vmul.f32 %v5178_v54, %v7275_v50 }
 0x1a4   : > { %13459 = vst [vmem:[#allocation85_spill] sm:$0xff] %v7461_v6  ;;  %2703 = vperm.xlu1 %4645, %v2517_v38   ;;  %3916 = vmatpush1.msra.mxu0 %v3463_v11  ;;  %v3455_v36 = vmax.f32 %v2943_v31, 0.0  ;;  %v3200_v60 = vadd.f32 %v7463_v10, %v2304_v25  ;;  %v3199_v44 = vadd.f32 %v7463_v10, %v2303_v46  ;;  %13463 = vst [vmem:[#allocation210_spill] sm:$0xff] %v7476_v59  ;;  %v13464_v11 = vld [vmem:[#allocation97_spill] sm:$0xff]  ;;  %v13467_v46 = vld [vmem:[#allocation354_spill] sm:$0xff] }
 0x1a5   : > { %v1783_v29 = vmul.f32 %v5180_v55, %v7275_v50  ;;  %3917 = vmatprep.subr.mxu0 %v3456_v13  ;;  %v3720_v23 = vmax.f32 %v3208_v22, 0.0  ;;  %v3719_v1 = vmax.f32 %v3207_v42, 0.0  ;;  %v2040_v52 = vadd.f32 %v1528_v37, %v13461_v32  ;;  %v13466_v25 = vld [vmem:[#allocation369_spill] sm:$0xff]  ;;  %v13469_v37 = vld [vmem:[#allocation98_spill] sm:$0xff] }
 0x1a6   : > { %v2039_v14 = vadd.f32 %v1527_v7, %v13462_v62  ;;  %3918 = vmatpush1.msra.mxu0 %v3455_v36  ;;  %v3712_v38 = vmax.f32 %v3200_v60, 0.0  ;;  %v7480_v31 = vadd.f32 %v7028_v3, %v13464_v11  ;;  %v7484_v6 = vadd.f32 %v13467_v46, %v13466_v25  ;;  %v7496_v36 = vpop.permute.xlu1 %1319  ;;  %v13472_v32 = vld [vmem:[#allocation346_spill] sm:$0xff]  ;;  %v4683_v46 = vld [vmem:[%s12026_s1 + $0xd8] sm:$0xff] }
 0x1a7   : > { %v1812_v22 = vmul.f32 %v13001_v8, %v6808_v27  ;;  %3986 = vmatprep.subr.mxu1 %v3720_v23  ;;  %v2936_v13 = vadd.f32 %v7476_v59, %v2040_v52  ;;  %v7492_v7 = vadd.f32 %v7028_v3, %v13469_v37  ;;  %v1811_v42 = vmul.f32 %v13437_v28, %v6808_v27  ;;  %v13473_v23 = vld [vmem:[#allocation347_spill] sm:$0xff] }
 0x1a8   : > { %13465 = vst [vmem:[#allocation211_spill] sm:$0xff] %v7480_v31  ;;  %13468 = vst [vmem:[#allocation246_spill] sm:$0xff] %v7484_v6  ;;  %v2935_v62 = vadd.f32 %v7476_v59, %v2039_v14  ;;  %4646 = vset.pattern.permute.xlu1 %v12922_v49  ;;  %3987 = vmatpush1.msra.mxu1 %v3719_v1  ;;  %v3711_v60 = vmax.f32 %v3199_v44, 0.0  ;;  %v2296_v11 = vadd.f32 %v1784_v56, %v13472_v32  ;;  %v13474_v52 = vld [vmem:[#allocation243_spill] sm:$0xff]  ;;  %v7512_v44 = vpop.permute.xlu0 %2753  ;;  %v13482_v32 = vld [vmem:[#allocation74_spill] sm:$0xff] }
 0x1a9   : > { %13470 = vst [vmem:[#allocation223_spill] sm:$0xff] %v7492_v7  ;;  %13471 = vst [vmem:[#allocation224_spill] sm:$0xff] %v7496_v36  ;;  %v2295_v25 = vadd.f32 %v1783_v29, %v13473_v23  ;;  %v7503_v14 = vmul.f32 %v5171_v47, %v13474_v52  ;;  %1275 = vperm.xlu1 %4646, %v4683_v46   ;;  %3988 = vmatprep.subr.mxu1 %v3712_v38  ;;  %v3448_v37 = vmax.f32 %v2936_v13, 0.0  ;;  %v13480_v46 = vld [vmem:[#allocation73_spill] sm:$0xff]  ;;  %v13496_v6 = vld [vmem:[#allocation356_spill] sm:$0xff] }
 0x1aa   : > { %v3447_v27 = vmax.f32 %v2935_v62, 0.0  ;;  %v1512_v1 = vmul.f32 %v5178_v54, %v7382_v20  ;;  %v1511_v56 = vmul.f32 %v5180_v55, %v7382_v20  ;;  %13476 = vst [vmem:[#allocation369_spill] sm:$0xff] %v7512_v44  ;;  %3989 = vmatpush1.msra.mxu1 %v3711_v60  ;;  %v7516_v29 = vmul.f32 %v5173_v48, %v13474_v52 }
 0x1ab   : > { %13475 = vst [vmem:[#allocation97_spill] sm:$0xff] %v7503_v14  ;;  %v7521_v38 = vmul.f32 %v5182_v58, %v13474_v52  ;;  %v7525_v13 = vmul.f32 %v5184_v5, %v13474_v52  ;;  %3919 = vmatprep.subr.mxu0 %v3448_v37  ;;  %v3192_v62 = vadd.f32 %v7512_v44, %v2296_v11  ;;  %v13486_v52 = vld [vmem:[#allocation229_spill] sm:$0xff] }
 0x1ac   : > { %13477 = vst [vmem:[#allocation354_spill] sm:$0xff] %v7516_v29  ;;  %v3191_v23 = vadd.f32 %v7512_v44, %v2295_v25  ;;  %v7532_v29 = vadd.f32 %v7028_v3, %v13480_v46  ;;  %3920 = vmatpush1.msra.mxu0 %v3447_v27  ;;  %v7536_v31 = vadd.f32 %v7028_v3, %v13482_v32  ;;  %v7546_v25 = vpop.permute.xlu1 %2588  ;;  %v4684_v46 = vld [vmem:[%s12026_s1 + $0x1e0] sm:$0xff]  ;;  %v13490_v3 = vld [vmem:[#allocation222_spill] sm:$0xff] }
 0x1ad   : > { %13478 = vst [vmem:[#allocation98_spill] sm:$0xff] %v7521_v38  ;;  %13479 = vst [vmem:[#allocation346_spill] sm:$0xff] %v7525_v13  ;;  %v13484_v38 = vld [vmem:[#allocation228_spill] sm:$0xff]  ;;  %v7542_v37 = vadd.f32 %v1811_v42, %v13486_v52  ;;  %v1804_v11 = vmul.f32 %v13001_v8, %v6953_v2  ;;  %1407 = vperm.xlu1 %4646, %v4684_v46   ;;  %v3704_v27 = vmax.f32 %v3192_v62, 0.0  ;;  %v13489_v32 = vld [vmem:[#allocation221_spill] sm:$0xff] }
 0x1ae   : > { %13481 = vst [vmem:[#allocation347_spill] sm:$0xff] %v7532_v29  ;;  %13483 = vst [vmem:[#allocation73_spill] sm:$0xff] %v7536_v31  ;;  %v7539_v14 = vadd.f32 %v1812_v22, %v13484_v38  ;;  %v3703_v60 = vmax.f32 %v3191_v23, 0.0  ;;  %v2024_v7 = vadd.f32 %v1512_v1, %v13489_v32  ;;  %v2023_v22 = vadd.f32 %v1511_v56, %v13490_v3  ;;  %v7553_v38 = vpop.permute.xlu0 %2583  ;;  %v13492_v42 = vld [vmem:[#allocation86_spill] sm:$0xff]  ;;  %v13493_v13 = vld [vmem:[#allocation87_spill] sm:$0xff] }
 0x1af   : > { %13487 = vst [vmem:[#allocation228_spill] sm:$0xff] %v7542_v37  ;;  %13488 = vst [vmem:[#allocation229_spill] sm:$0xff] %v7546_v25  ;;  %v2928_v52 = vadd.f32 %v7546_v25, %v13492_v42  ;;  %v2927_v37 = vadd.f32 %v7546_v25, %v13493_v13  ;;  %v1529_v46 = vmul.f32 %v13275_v26, %v13453_v51  ;;  %3990 = vmatprep.subr.mxu1 %v3704_v27  ;;  %v2549_v1 = vld [vmem:[%s12027_s2 + $0x1f0] sm:$0xff]  ;;  %v13494_v23 = vld [vmem:[#allocation104_spill] sm:$0xff] }
 0x1b0   : > { %13485 = vst [vmem:[#allocation74_spill] sm:$0xff] %v7539_v14  ;;  %13491 = vst [vmem:[#allocation221_spill] sm:$0xff] %v7553_v38  ;;  %v1530_v14 = vmul.f32 %v13274_v24, %v13453_v51  ;;  %v2920_v3 = vadd.f32 %v7553_v38, %v2024_v7  ;;  %v2919_v56 = vadd.f32 %v7553_v38, %v2023_v22  ;;  %3991 = vmatpush1.msra.mxu1 %v3703_v60  ;;  %v13511_v31 = vld [vmem:[#allocation56_spill] sm:$0xff] }
 0x1b1   : > { %v1803_v62 = vmul.f32 %v13437_v28, %v6953_v2  ;;  %v7572_v13 = vmul.f32 %v5193_v18, %v13494_v23  ;;  %v3440_v32 = vmax.f32 %v2928_v52, 0.0  ;;  %v3439_v42 = vmax.f32 %v2927_v37, 0.0  ;;  %4647 = vset.pattern.permute.xlu1 %v13429_v16  ;;  %v7592_v52 = vpop.permute.xlu1 %1183  ;;  %v13502_v2 = vld [vmem:[#allocation17_spill] sm:$0xff] }
 0x1b2   : > { %v7576_v27 = vmul.f32 %v5171_v47, %v13496_v6  ;;  %v7580_v19 = vmul.f32 %v5195_v21, %v13494_v23  ;;  %v3432_v7 = vmax.f32 %v2920_v3, 0.0  ;;  %v7585_v22 = vmul.f32 %v5173_v48, %v13496_v6  ;;  %13501 = vst [vmem:[#allocation386_spill] sm:$0xff] %v7592_v52  ;;  %2863 = vperm.xlu1 %4647, %v2549_v1  }
 0x1b3   : > { %13495 = vst [vmem:[#allocation222_spill] sm:$0xff] %v7572_v13  ;;  %v7589_v60 = vmul.f32 %v5182_v58, %v13496_v6  ;;  %3921 = vmatprep.subr.mxu0 %v3440_v32  ;;  %v7595_v23 = vadd.f32 %v1530_v14, %v13502_v2  ;;  %v7602_v3 = vmul.f32 %v5184_v5, %v13496_v6  ;;  %v13505_v32 = vld [vmem:[#allocation357_spill] sm:$0xff]  ;;  %v13506_v14 = vld [vmem:[#allocation367_spill] sm:$0xff]  ;;  %v4685_v6 = vld [vmem:[%s12026_s1 + $0x1d8] sm:$0xff] }
 0x1b4   : > { %13497 = vst [vmem:[#allocation86_spill] sm:$0xff] %v7576_v27  ;;  %13498 = vst [vmem:[#allocation87_spill] sm:$0xff] %v7580_v19  ;;  %v13503_v27 = vld [vmem:[#allocation227_spill] sm:$0xff]  ;;  %3922 = vmatpush1.msra.mxu0 %v3439_v42  ;;  %v1794_v37 = vmul.f32 %v13274_v24, %v13447_v63  ;;  %v1532_v1 = vmul.f32 %v13001_v8, %v13453_v51  ;;  %v7610_v2 = vadd.f32 %v1804_v11, %v13505_v32 }
 0x1b5   : > { %13499 = vst [vmem:[#allocation384_spill] sm:$0xff] %v7585_v22  ;;  %13500 = vst [vmem:[#allocation385_spill] sm:$0xff] %v7589_v60  ;;  %v7598_v21 = vadd.f32 %v1529_v46, %v13503_v27  ;;  %v3431_v60 = vmax.f32 %v2919_v56, 0.0  ;;  %3923 = vmatprep.subr.mxu0 %v3432_v7  ;;  %v7614_v46 = vmul.f32 %v5171_v47, %v13506_v14  ;;  %v13509_v42 = vld [vmem:[#allocation55_spill] sm:$0xff]  ;;  %v7642_v29 = vpop.permute.xlu1 %1315  ;;  %v13567_v47 = vld [vmem:[#allocation94_spill] sm:$0xff] }
 0x1b6   : > { %13504 = vst [vmem:[#allocation17_spill] sm:$0xff] %v7602_v3  ;;  %v7618_v27 = vmul.f32 %v5173_v48, %v13506_v14  ;;  %v7622_v56 = vadd.f32 %v7205_v4, %v13509_v42  ;;  %v1793_v22 = vmul.f32 %v13275_v26, %v13447_v63  ;;  %v7628_v11 = vadd.f32 %v7205_v4, %v13511_v31  ;;  %v13521_v19 = vld [vmem:[#allocation291_spill] sm:$0xff]  ;;  %v13524_v63 = vld [vmem:[#allocation358_spill] sm:$0xff] }
 0x1b7   : > { %13507 = vst [vmem:[#allocation227_spill] sm:$0xff] %v7614_v46  ;;  %3924 = vmatpush1.msra.mxu0 %v3431_v60  ;;  %v7632_v7 = vadd.f32 %v7218_v40, %v7256_v35  ;;  %v7636_v32 = vadd.f32 %v7218_v40, %v7305_v57  ;;  %v7640_v42 = vmul.f32 %v5182_v58, %v13506_v14  ;;  %13516 = vst [vmem:[#allocation390_spill] sm:$0xff] %v7642_v29  ;;  %v13520_v46 = vld [vmem:[#allocation212_spill] sm:$0xff]  ;;  %v13532_v58 = vld [vmem:[#allocation59_spill] sm:$0xff] }
 0x1b8   : > { %13508 = vst [vmem:[#allocation357_spill] sm:$0xff] %v7618_v27  ;;  %13510 = vst [vmem:[#allocation55_spill] sm:$0xff] %v7622_v56  ;;  %4648 = vset.pattern.permute.xlu1 %v12922_v49  ;;  %v1776_v31 = vmul.f32 %v5178_v54, %v7414_v45  ;;  %v1775_v60 = vmul.f32 %v5180_v55, %v7414_v45  ;;  %v1768_v35 = vmul.f32 %v5178_v54, %v7496_v36  ;;  %v13531_v56 = vld [vmem:[#allocation341_spill] sm:$0xff] }
 0x1b9   : > { %13512 = vst [vmem:[#allocation56_spill] sm:$0xff] %v7628_v11  ;;  %13513 = vst [vmem:[#allocation387_spill] sm:$0xff] %v7632_v7  ;;  %v7653_v57 = vmul.f32 %v5184_v5, %v13506_v14  ;;  %1403 = vperm.xlu1 %4648, %v4685_v6   ;;  %v1767_v3 = vmul.f32 %v5180_v55, %v7496_v36  ;;  %v7665_v18 = vadd.f32 %v1794_v37, %v13520_v46  ;;  %v2515_v37 = vld [vmem:[%s12027_s2 + $0xe0] sm:$0xff]  ;;  %v13529_v14 = vld [vmem:[#allocation200_spill] sm:$0xff]  ;;  %v7700_v48 = vpop.permute.xlu1 %2748 }
 0x1ba   : > { %13514 = vst [vmem:[#allocation388_spill] sm:$0xff] %v7636_v32  ;;  %13515 = vst [vmem:[#allocation389_spill] sm:$0xff] %v7640_v42  ;;  %v13518_v42 = vld [vmem:[#allocation317_spill] sm:$0xff]  ;;  %v7668_v13 = vadd.f32 %v1532_v1, %v13521_v19  ;;  %v7676_v6 = vmul.f32 %v13437_v28, %v13453_v51  ;;  %v7679_v5 = vadd.f32 %v1803_v62, %v13524_v63  ;;  %v13527_v1 = vld [vmem:[#allocation318_spill] sm:$0xff] }
 0x1bb   : > { %13517 = vst [vmem:[#allocation391_spill] sm:$0xff] %v7653_v57  ;;  %v7662_v27 = vadd.f32 %v7253_v15, %v13518_v42  ;;  %v13522_v57 = vld [vmem:[#allocation215_spill] sm:$0xff]  ;;  %v7681_v42 = vpop.permute.xlu0 %2743  ;;  %v7689_v46 = vadd.f32 %v7253_v15, %v13527_v1  ;;  %v2288_v51 = vadd.f32 %v1776_v31, %v13529_v14  ;;  %v13530_v63 = vld [vmem:[#allocation202_spill] sm:$0xff]  ;;  %v2280_v28 = vadd.f32 %v1768_v35, %v13531_v56  ;;  %v13536_v14 = vld [vmem:[#allocation60_spill] sm:$0xff] }
 0x1bc   : > { %v7672_v8 = vadd.f32 %v1793_v22, %v13522_v57  ;;  %13523 = vst [vmem:[#allocation212_spill] sm:$0xff] %v7676_v6  ;;  %13525 = vst [vmem:[#allocation291_spill] sm:$0xff] %v7679_v5  ;;  %v2287_v62 = vadd.f32 %v1775_v60, %v13530_v63  ;;  %v7698_v5 = vadd.f32 %v7205_v4, %v13532_v58  ;;  %v13535_v1 = vld [vmem:[#allocation342_spill] sm:$0xff]  ;;  %v13544_v63 = vld [vmem:[#allocation252_spill] sm:$0xff] }
 0x1bd   : > { %13519 = vst [vmem:[#allocation317_spill] sm:$0xff] %v7662_v27  ;;  %13526 = vst [vmem:[#allocation215_spill] sm:$0xff] %v7681_v42  ;;  %4649 = vset.pattern.permute.xlu1 %v13429_v16  ;;  %v2279_v19 = vadd.f32 %v1767_v3, %v13535_v1  ;;  %v1786_v57 = vmul.f32 %v13274_v24, %v7275_v50  ;;  %v7709_v31 = vadd.f32 %v7205_v4, %v13536_v14  ;;  %v13538_v1 = vld [vmem:[#allocation236_spill] sm:$0xff]  ;;  %v13540_v14 = vld [vmem:[#allocation109_spill] sm:$0xff]  ;;  %v7745_v27 = vpop.permute.xlu1 %1311 }
 0x1be   : > { %13528 = vst [vmem:[#allocation358_spill] sm:$0xff] %v7689_v46  ;;  %13533 = vst [vmem:[#allocation318_spill] sm:$0xff] %v7698_v5  ;;  %2693 = vperm.xlu1 %4649, %v2515_v37   ;;  %v3184_v56 = vadd.f32 %v7700_v48, %v2288_v51  ;;  %v3183_v58 = vadd.f32 %v7700_v48, %v2287_v62  ;;  %v3176_v60 = vadd.f32 %v7681_v42, %v2280_v28  ;;  %v13542_v62 = vld [vmem:[#allocation251_spill] sm:$0xff]  ;;  %v13546_v46 = vld [vmem:[#allocation88_spill] sm:$0xff] }
 0x1bf   : > { %13534 = vst [vmem:[#allocation200_spill] sm:$0xff] %v7700_v48  ;;  %13537 = vst [vmem:[#allocation202_spill] sm:$0xff] %v7709_v31  ;;  %v1785_v35 = vmul.f32 %v13275_v26, %v7275_v50  ;;  %v3175_v3 = vadd.f32 %v7681_v42, %v2279_v19  ;;  %v7720_v22 = vadd.f32 %v7298_v39, %v13538_v1  ;;  %v13550_v11 = vld [vmem:[#allocation90_spill] sm:$0xff]  ;;  %v2547_v6 = vld [vmem:[%s12027_s2 + $0x1e0] sm:$0xff] }
 0x1c0   : > { %v7724_v37 = vadd.f32 %v7298_v39, %v13540_v14  ;;  %v3696_v51 = vmax.f32 %v3184_v56, 0.0  ;;  %v3695_v32 = vmax.f32 %v3183_v58, 0.0  ;;  %v1496_v28 = vmul.f32 %v5178_v54, %v7592_v52  ;;  %v13548_v56 = vld [vmem:[#allocation348_spill] sm:$0xff]  ;;  %13549 = vst [vmem:[#allocation109_spill] sm:$0xff] %v7745_v27  ;;  %v13552_v50 = vld [vmem:[#allocation350_spill] sm:$0xff] }
 0x1c1   : > { %13539 = vst [vmem:[#allocation341_spill] sm:$0xff] %v7720_v22  ;;  %v7730_v7 = vadd.f32 %v7337_v0, %v13542_v62  ;;  %v1495_v19 = vmul.f32 %v5180_v55, %v7592_v52  ;;  %v7736_v1 = vadd.f32 %v7337_v0, %v13544_v63  ;;  %v7740_v14 = vadd.f32 %v7327_v43, %v13546_v46  ;;  %v4686_v46 = vld [vmem:[%s12026_s1 + $0xc8] sm:$0xff] }
 0x1c2   : > { %13541 = vst [vmem:[#allocation59_spill] sm:$0xff] %v7724_v37  ;;  %v7743_v58 = vadd.f32 %v1786_v57, %v13548_v56  ;;  %4650 = vset.pattern.permute.xlu1 %v12922_v49  ;;  %3992 = vmatprep.subr.mxu1 %v3696_v51  ;;  %v3688_v62 = vmax.f32 %v3176_v60, 0.0  ;;  %v7750_v4 = vadd.f32 %v7327_v43, %v13550_v11  ;;  %v3687_v57 = vmax.f32 %v3175_v3, 0.0  ;;  %v13553_v56 = vld [vmem:[#allocation365_spill] sm:$0xff]  ;;  %v13556_v60 = vld [vmem:[#allocation278_spill] sm:$0xff]  ;;  %v7772_v3 = vpop.permute.xlu0 %2573 }
 0x1c3   : > { %13543 = vst [vmem:[#allocation342_spill] sm:$0xff] %v7730_v7  ;;  %13545 = vst [vmem:[#allocation60_spill] sm:$0xff] %v7736_v1  ;;  %v7753_v63 = vadd.f32 %v1785_v35, %v13552_v50  ;;  %1267 = vperm.xlu1 %4650, %v4686_v46   ;;  %3993 = vmatpush1.msra.mxu1 %v3695_v32  ;;  %v7761_v51 = vadd.f32 %v7384_v9, %v13553_v56  ;;  %v13558_v46 = vld [vmem:[#allocation279_spill] sm:$0xff]  ;;  %v13559_v50 = vld [vmem:[#allocation330_spill] sm:$0xff] }
 0x1c4   : > { %13547 = vst [vmem:[#allocation236_spill] sm:$0xff] %v7740_v14  ;;  %13551 = vst [vmem:[#allocation251_spill] sm:$0xff] %v7750_v4  ;;  %v7765_v11 = vadd.f32 %v7384_v9, %v7245_v34  ;;  %3994 = vmatprep.subr.mxu1 %v3688_v62  ;;  %v2008_v35 = vadd.f32 %v1496_v28, %v13556_v60  ;;  %v2007_v56 = vadd.f32 %v1495_v19, %v13558_v46  ;;  %v13561_v5 = vld [vmem:[#allocation334_spill] sm:$0xff]  ;;  %v7790_v19 = vpop.permute.xlu1 %2578  ;;  %v4687_v46 = vld [vmem:[%s12026_s1 + $0x1d0] sm:$0xff] }
 0x1c5   : > { %13554 = vst [vmem:[#allocation252_spill] sm:$0xff] %v7761_v51  ;;  %13557 = vst [vmem:[#allocation348_spill] sm:$0xff] %v7772_v3  ;;  %3995 = vmatpush1.msra.mxu1 %v3687_v57  ;;  %v1514_v62 = vmul.f32 %v13274_v24, %v7382_v20  ;;  %v1513_v60 = vmul.f32 %v13275_v26, %v7382_v20  ;;  %v7784_v32 = vadd.f32 %v7253_v15, %v13559_v50  ;;  %v13564_v34 = vld [vmem:[#allocation50_spill] sm:$0xff]  ;;  %v13568_v4 = vld [vmem:[#allocation95_spill] sm:$0xff] }
 0x1c6   : > { %13555 = vst [vmem:[#allocation88_spill] sm:$0xff] %v7765_v11  ;;  %v7788_v57 = vadd.f32 %v7253_v15, %v13561_v5  ;;  %13563 = vst [vmem:[#allocation365_spill] sm:$0xff] %v7790_v19  ;;  %v7797_v28 = vadd.f32 %v7416_v30, %v13564_v34  ;;  %v7802_v50 = vadd.f32 %v7416_v30, %v7242_v53  ;;  %v13596_v15 = vld [vmem:[#allocation5_spill] sm:$0xff] }
 0x1c7   : > { %13560 = vst [vmem:[#allocation90_spill] sm:$0xff] %v7784_v32  ;;  %1399 = vperm.xlu1 %4650, %v4687_v46   ;;  %v2912_v31 = vadd.f32 %v7790_v19, %v13567_v47  ;;  %v2911_v14 = vadd.f32 %v7790_v19, %v13568_v4  ;;  %v2904_v46 = vadd.f32 %v7772_v3, %v2008_v35  ;;  %v13571_v4 = vld [vmem:[#allocation241_spill] sm:$0xff] }
 0x1c8   : > { %13562 = vst [vmem:[#allocation350_spill] sm:$0xff] %v7788_v57  ;;  %13565 = vst [vmem:[#allocation278_spill] sm:$0xff] %v7797_v28  ;;  %v1778_v34 = vmul.f32 %v13274_v24, %v7414_v45  ;;  %v2903_v53 = vadd.f32 %v7772_v3, %v2007_v56  ;;  %v7818_v5 = vadd.f32 %v7452_v17, %v7424_v41  ;;  %v13574_v56 = vld [vmem:[#allocation242_spill] sm:$0xff]  ;;  %v13586_v57 = vld [vmem:[#allocation336_spill] sm:$0xff] }
 0x1c9   : > { %13566 = vst [vmem:[#allocation279_spill] sm:$0xff] %v7802_v50  ;;  %v7822_v47 = vadd.f32 %v7452_v17, %v7439_v12  ;;  %v2026_v11 = vadd.f32 %v1514_v62, %v13571_v4  ;;  %v3424_v35 = vmax.f32 %v2912_v31, 0.0  ;;  %v3423_v51 = vmax.f32 %v2911_v14, 0.0  ;;  %v7841_v14 = vpop.permute.xlu1 %1175  ;;  %v13577_v4 = vld [vmem:[#allocation203_spill] sm:$0xff]  ;;  %v13595_v28 = vld [vmem:[#allocation188_spill] sm:$0xff] }
 0x1ca   : > { %13569 = vst [vmem:[#allocation330_spill] sm:$0xff] %v7818_v5  ;;  %v7827_v37 = vadd.f32 %v7463_v10, %v7665_v18  ;;  %v7831_v1 = vadd.f32 %v7463_v10, %v7672_v8  ;;  %v7836_v22 = vadd.f32 %v1513_v60, %v13574_v56  ;;  %v1777_v12 = vmul.f32 %v13275_v26, %v7414_v45  ;;  %v13583_v31 = vld [vmem:[#allocation91_spill] sm:$0xff] }
 0x1cb   : > { %13570 = vst [vmem:[#allocation334_spill] sm:$0xff] %v7822_v47  ;;  %4651 = vset.pattern.permute.xlu1 %v13429_v16  ;;  %13575 = vst [vmem:[#allocation95_spill] sm:$0xff] %v7841_v14  ;;  %3925 = vmatprep.subr.mxu0 %v3424_v35  ;;  %v3416_v18 = vmax.f32 %v2904_v46, 0.0  ;;  %v7846_v62 = vadd.f32 %v7476_v59, %v7595_v23  ;;  %v7849_v41 = vadd.f32 %v1778_v34, %v13577_v4  ;;  %v4688_v23 = vld [vmem:[%s12026_s1 + $0x1c8] sm:$0xff]  ;;  %v13587_v47 = vld [vmem:[#allocation92_spill] sm:$0xff] }
 0x1cc   : > { %13572 = vst [vmem:[#allocation50_spill] sm:$0xff] %v7827_v37  ;;  %13573 = vst [vmem:[#allocation94_spill] sm:$0xff] %v7831_v1  ;;  %2853 = vperm.xlu1 %4651, %v2547_v6   ;;  %3926 = vmatpush1.msra.mxu0 %v3423_v51  ;;  %v3415_v60 = vmax.f32 %v2903_v53, 0.0  ;;  %v1752_v6 = vmul.f32 %v5178_v54, %v7745_v27  ;;  %v7858_v46 = vadd.f32 %v7476_v59, %v7598_v21  ;;  %v13579_v53 = vld [vmem:[#allocation204_spill] sm:$0xff]  ;;  %v2513_v5 = vld [vmem:[%s12027_s2 + $0xd0] sm:$0xff] }
 0x1cd   : > { %13576 = vst [vmem:[#allocation241_spill] sm:$0xff] %v7846_v62  ;;  %3927 = vmatprep.subr.mxu0 %v3416_v18  ;;  %v1751_v51 = vmul.f32 %v5180_v55, %v7745_v27  ;;  %v7865_v35 = vadd.f32 %v1777_v12, %v13579_v53  ;;  %v1770_v18 = vmul.f32 %v13274_v24, %v7496_v36  ;;  %v7871_v32 = vpop.permute.xlu1 %1307  ;;  %v13581_v12 = vld [vmem:[#allocation256_spill] sm:$0xff]  ;;  %v13591_v62 = vld [vmem:[#allocation337_spill] sm:$0xff] }
 0x1ce   : > { %13578 = vst [vmem:[#allocation242_spill] sm:$0xff] %v7858_v46  ;;  %3928 = vmatpush1.msra.mxu0 %v3415_v60  ;;  %v1769_v4 = vmul.f32 %v13275_v26, %v7496_v36  ;;  %13580 = vst [vmem:[#allocation203_spill] sm:$0xff] %v7871_v32  ;;  %v1760_v21 = vmul.f32 %v5178_v54, %v7642_v29  ;;  %v1759_v60 = vmul.f32 %v5180_v55, %v7642_v29  ;;  %v13594_v46 = vld [vmem:[#allocation344_spill] sm:$0xff] }
 0x1cf   : > { %v7881_v53 = vadd.f32 %v7337_v0, %v13581_v12  ;;  %v7888_v56 = vadd.f32 %v7546_v25, %v13583_v31  ;;  %v7892_v8 = vadd.f32 %v7512_v44, %v7743_v58  ;;  %v1498_v34 = vmul.f32 %v13274_v24, %v7592_v52  ;;  %v7908_v58 = vpop.permute.xlu0 %2733 }
 0x1d0   : > { %4652 = vset.pattern.permute.xlu1 %v12922_v49  ;;  %v1497_v12 = vmul.f32 %v13275_v26, %v7592_v52  ;;  %v2264_v1 = vadd.f32 %v1752_v6, %v13586_v57  ;;  %v7906_v31 = vadd.f32 %v7512_v44, %v7753_v63  ;;  %13590 = vst [vmem:[#allocation392_spill] sm:$0xff] %v7908_v58  ;;  %v13593_v6 = vld [vmem:[#allocation343_spill] sm:$0xff] }
 0x1d1   : > { %13582 = vst [vmem:[#allocation204_spill] sm:$0xff] %v7881_v53  ;;  %1395 = vperm.xlu1 %4652, %v4688_v23   ;;  %13584 = vst [vmem:[#allocation256_spill] sm:$0xff] %v7888_v56  ;;  %v7902_v23 = vadd.f32 %v7546_v25, %v13587_v47  ;;  %v2263_v50 = vadd.f32 %v1751_v51, %v13591_v62  ;;  %v7915_v57 = vadd.f32 %v7553_v38, %v2026_v11  ;;  %v7926_v45 = vpop.permute.xlu1 %2738  ;;  %v13599_v51 = vld [vmem:[#allocation297_spill] sm:$0xff]  ;;  %v13624_v53 = vld [vmem:[#allocation107_spill] sm:$0xff] }
 0x1d2   : > { %13585 = vst [vmem:[#allocation91_spill] sm:$0xff] %v7892_v8  ;;  %13589 = vst [vmem:[#allocation92_spill] sm:$0xff] %v7906_v31  ;;  %v2282_v37 = vadd.f32 %v1770_v18, %v13593_v6  ;;  %v2281_v47 = vadd.f32 %v1769_v4, %v13594_v46  ;;  %v2272_v7 = vadd.f32 %v1760_v21, %v13595_v28  ;;  %v13600_v18 = vld [vmem:[#allocation298_spill] sm:$0xff]  ;;  %v13613_v21 = vld [vmem:[#allocation53_spill] sm:$0xff] }
 0x1d3   : > { %13588 = vst [vmem:[#allocation336_spill] sm:$0xff] %v7902_v23  ;;  %13592 = vst [vmem:[#allocation337_spill] sm:$0xff] %v7915_v57  ;;  %v2271_v63 = vadd.f32 %v1759_v60, %v13596_v15  ;;  %v7924_v52 = vadd.f32 %v7298_v39, %v7318_v33  ;;  %v2010_v46 = vadd.f32 %v1498_v34, %v13599_v51  ;;  %v13625_v11 = vld [vmem:[#allocation85_spill] sm:$0xff] }
 0x1d4   : > { %13598 = vst [vmem:[#allocation344_spill] sm:$0xff] %v7926_v45  ;;  %v2009_v28 = vadd.f32 %v1497_v12, %v13600_v18  ;;  %v3168_v15 = vadd.f32 %v7926_v45, %v2272_v7  ;;  %v3160_v33 = vadd.f32 %v7908_v58, %v2264_v1  ;;  %v3159_v60 = vadd.f32 %v7908_v58, %v2263_v50  ;;  %v13662_v23 = vld [vmem:[#allocation177_spill] sm:$0xff] }
 0x1d5   : > { %13597 = vst [vmem:[#allocation343_spill] sm:$0xff] %v7924_v52  ;;  %4653 = vset.pattern.permute.xlu1 %v13429_v16  ;;  %v3167_v4 = vadd.f32 %v7926_v45, %v2271_v63  ;;  %v7941_v36 = vadd.f32 %v7553_v38, %v7836_v22  ;;  %v7944_v34 = vadd.f32 %v7681_v42, %v2282_v37  ;;  %v7951_v63 = vpop.permute.xlu0 %2563  ;;  %v7963_v18 = vpop.permute.xlu1 %1303  ;;  %v13615_v52 = vld [vmem:[#allocation189_spill] sm:$0xff] }
 0x1d6   : > { %2683 = vperm.xlu1 %4653, %v2513_v5   ;;  %v3680_v5 = vmax.f32 %v3168_v15, 0.0  ;;  %v1480_v7 = vmul.f32 %v5178_v54, %v7841_v14  ;;  %v7949_v1 = vadd.f32 %v7681_v42, %v2281_v47  ;;  %13604 = vst [vmem:[#allocation298_spill] sm:$0xff] %v7951_v63  ;;  %v1479_v50 = vmul.f32 %v5180_v55, %v7841_v14  ;;  %v13611_v15 = vld [vmem:[#allocation245_spill] sm:$0xff] }
 0x1d7   : > { %13601 = vst [vmem:[#allocation188_spill] sm:$0xff] %v7941_v36  ;;  %13602 = vst [vmem:[#allocation5_spill] sm:$0xff] %v7944_v34  ;;  %v3679_v12 = vmax.f32 %v3167_v4, 0.0  ;;  %v7956_v51 = vadd.f32 %v7772_v3, %v2010_v46  ;;  %v7959_v22 = vadd.f32 %v7772_v3, %v2009_v28  ;;  %v1762_v37 = vmul.f32 %v13274_v24, %v7642_v29  ;;  %v13608_v4 = vld [vmem:[#allocation257_spill] sm:$0xff]  ;;  %v4689_v28 = vld [vmem:[%s12026_s1 + $0xb8] sm:$0xff] }
 0x1d8   : > { %13603 = vst [vmem:[#allocation297_spill] sm:$0xff] %v7949_v1  ;;  %13607 = vst [vmem:[#allocation395_spill] sm:$0xff] %v7963_v18  ;;  %3996 = vmatprep.subr.mxu1 %v3680_v5  ;;  %v3672_v47 = vmax.f32 %v3160_v33, 0.0  ;;  %v7969_v62 = vadd.f32 %v7337_v0, %v13608_v4  ;;  %v7973_v46 = vadd.f32 %v7298_v39, %v7365_v61  ;;  %v3671_v6 = vmax.f32 %v3159_v60, 0.0  ;;  %v13614_v60 = vld [vmem:[#allocation54_spill] sm:$0xff]  ;;  %v13661_v36 = vld [vmem:[#allocation172_spill] sm:$0xff] }
 0x1d9   : > { %13605 = vst [vmem:[#allocation393_spill] sm:$0xff] %v7956_v51  ;;  %13606 = vst [vmem:[#allocation394_spill] sm:$0xff] %v7959_v22  ;;  %3997 = vmatpush1.msra.mxu1 %v3679_v12  ;;  %v1761_v33 = vmul.f32 %v13275_v26, %v7642_v29  ;;  %v7983_v4 = vadd.f32 %v7416_v30, %v13611_v15  ;;  %v1992_v61 = vadd.f32 %v1480_v7, %v13613_v21  ;;  %v13617_v15 = vld [vmem:[#allocation368_spill] sm:$0xff] }
 0x1da   : > { %4654 = vset.pattern.permute.xlu1 %v12922_v49  ;;  %13609 = vst [vmem:[#allocation257_spill] sm:$0xff] %v7969_v62  ;;  %13610 = vst [vmem:[#allocation396_spill] sm:$0xff] %v7973_v46  ;;  %3998 = vmatprep.subr.mxu1 %v3672_v47  ;;  %v1991_v12 = vadd.f32 %v1479_v50, %v13614_v60  ;;  %v7993_v8 = vadd.f32 %v1762_v37, %v13615_v52  ;;  %v8005_v50 = vpop.permute.xlu0 %2723  ;;  %v8007_v60 = vpop.permute.xlu1 %2568  ;;  %v4690_v52 = vld [vmem:[%s12026_s1 + $0x1c0] sm:$0xff]  ;;  %v13622_v37 = vld [vmem:[#allocation190_spill] sm:$0xff] }
 0x1db   : > { %1259 = vperm.xlu1 %4654, %v4689_v28   ;;  %13612 = vst [vmem:[#allocation245_spill] sm:$0xff] %v7983_v4  ;;  %3999 = vmatpush1.msra.mxu1 %v3671_v6  ;;  %v7997_v47 = vadd.f32 %v7700_v48, %v7849_v41  ;;  %v8003_v6 = vadd.f32 %v7384_v9, %v13617_v15  ;;  %13619 = vst [vmem:[#allocation189_spill] sm:$0xff] %v8005_v50  ;;  %v13623_v28 = vld [vmem:[#allocation106_spill] sm:$0xff]  ;;  %v13635_v22 = vld [vmem:[#allocation228_spill] sm:$0xff] }
 0x1dc   : > { %13620 = vst [vmem:[#allocation368_spill] sm:$0xff] %v8007_v60  ;;  %v8014_v41 = vadd.f32 %v7700_v48, %v7865_v35  ;;  %v8017_v21 = vadd.f32 %v1761_v33, %v13622_v37  ;;  %v1754_v15 = vmul.f32 %v13274_v24, %v7745_v27  ;;  %v2896_v5 = vadd.f32 %v8007_v60, %v13623_v28  ;;  %v2545_v33 = vld [vmem:[%s12027_s2 + $0x1d0] sm:$0xff]  ;;  %v13627_v46 = vld [vmem:[#allocation246_spill] sm:$0xff] }
 0x1dd   : > { %13616 = vst [vmem:[#allocation53_spill] sm:$0xff] %v7997_v47  ;;  %13618 = vst [vmem:[#allocation54_spill] sm:$0xff] %v8003_v6  ;;  %v2895_v31 = vadd.f32 %v8007_v60, %v13624_v53  ;;  %v8029_v35 = vadd.f32 %v7416_v30, %v13625_v11  ;;  %v2887_v37 = vadd.f32 %v7951_v63, %v1991_v12  ;;  %v13629_v28 = vld [vmem:[#allocation78_spill] sm:$0xff]  ;;  %v13633_v30 = vld [vmem:[#allocation79_spill] sm:$0xff] }
 0x1de   : > { %13621 = vst [vmem:[#allocation397_spill] sm:$0xff] %v8014_v41  ;;  %v8037_v7 = vadd.f32 %v7384_v9, %v13627_v46  ;;  %v8041_v4 = vadd.f32 %v7327_v43, %v13629_v28  ;;  %v13631_v53 = vld [vmem:[#allocation74_spill] sm:$0xff]  ;;  %v3408_v11 = vmax.f32 %v2896_v5, 0.0  ;;  %v8049_v1 = vadd.f32 %v7327_v43, %v13633_v30  ;;  %v8069_v46 = vpop.permute.xlu0 %605  ;;  %v13652_v6 = vld [vmem:[#allocation332_spill] sm:$0xff]  ;;  %v13657_v41 = vld [vmem:[#allocation291_spill] sm:$0xff] }
 0x1df   : > { %1391 = vperm.xlu1 %4654, %v4690_v52   ;;  %v2888_v52 = vadd.f32 %v7951_v63, %v1992_v61  ;;  %13626 = vst [vmem:[#allocation190_spill] sm:$0xff] %v8029_v35  ;;  %v8045_v61 = vadd.f32 %v7218_v40, %v13631_v53  ;;  %v3407_v62 = vmax.f32 %v2895_v31, 0.0  ;;  %v8053_v12 = vadd.f32 %v7218_v40, %v13635_v22  ;;  %v13637_v9 = vld [vmem:[#allocation338_spill] sm:$0xff]  ;;  %v8060_v31 = vpop.permute.xlu1 %1167  ;;  %v13669_v47 = vld [vmem:[#allocation43_spill] sm:$0xff] }
 0x1e0   : > { %13628 = vst [vmem:[#allocation106_spill] sm:$0xff] %v8037_v7  ;;  %13630 = vst [vmem:[#allocation107_spill] sm:$0xff] %v8041_v4  ;;  %v2266_v34 = vadd.f32 %v1754_v15, %v13637_v9  ;;  %3929 = vmatprep.subr.mxu0 %v3408_v11  ;;  %v1753_v5 = vmul.f32 %v13275_v26, %v7745_v27  ;;  %v8067_v40 = vadd.f32 %v7476_v59, %v7668_v13  ;;  %v13648_v22 = vld [vmem:[#allocation234_spill] sm:$0xff]  ;;  %v13650_v4 = vld [vmem:[#allocation292_spill] sm:$0xff] }
 0x1e1   : > { %13632 = vst [vmem:[#allocation85_spill] sm:$0xff] %v8045_v61  ;;  %13634 = vst [vmem:[#allocation246_spill] sm:$0xff] %v8049_v1  ;;  %v3400_v30 = vmax.f32 %v2888_v52, 0.0  ;;  %3930 = vmatpush1.msra.mxu0 %v3407_v62  ;;  %v3399_v9 = vmax.f32 %v2887_v37, 0.0  ;;  %v1736_v52 = vmul.f32 %v5178_v54, %v7963_v18  ;;  %v1735_v62 = vmul.f32 %v5180_v55, %v7963_v18  ;;  %v13642_v37 = vld [vmem:[#allocation100_spill] sm:$0xff] }
 0x1e2   : > { %13636 = vst [vmem:[#allocation78_spill] sm:$0xff] %v8053_v12  ;;  %13638 = vst [vmem:[#allocation74_spill] sm:$0xff] %v8060_v31  ;;  %v8083_v15 = vadd.f32 %v7790_v19, %v13642_v37  ;;  %v8090_v11 = vadd.f32 %v7908_v58, %v2266_v34  ;;  %v1743_v13 = vmul.f32 %v5180_v55, %v7871_v32  ;;  %v4691_v34 = vld [vmem:[%s12026_s1 + $0x1b8] sm:$0xff] }
 0x1e3   : > { %4655 = vset.pattern.permute.xlu1 %v13429_v16  ;;  %13639 = vst [vmem:[#allocation79_spill] sm:$0xff] %v8067_v40  ;;  %13640 = vst [vmem:[#allocation228_spill] sm:$0xff] %v8069_v46  ;;  %3931 = vmatprep.subr.mxu0 %v3400_v30  ;;  %v8093_v28 = vpop.permute.xlu1 %1299  ;;  %v1482_v37 = vmul.f32 %v13274_v24, %v7841_v14  ;;  %v2265_v12 = vadd.f32 %v1753_v5, %v13648_v22  ;;  %v13651_v7 = vld [vmem:[#allocation212_spill] sm:$0xff]  ;;  %v8127_v40 = vpop.permute.xlu0 %2708 }
 0x1e4   : > { %2843 = vperm.xlu1 %4655, %v2545_v33   ;;  %3932 = vmatpush1.msra.mxu0 %v3399_v9  ;;  %13643 = vst [vmem:[#allocation338_spill] sm:$0xff] %v8083_v15  ;;  %v13644_v33 = vld [vmem:[#allocation103_spill] sm:$0xff]  ;;  %13647 = vst [vmem:[#allocation398_spill] sm:$0xff] %v8093_v28  ;;  %v1744_v9 = vmul.f32 %v5178_v54, %v7871_v32  ;;  %v8110_v61 = vadd.f32 %v7452_v17, %v7610_v2  ;;  %v13653_v5 = vld [vmem:[#allocation40_spill] sm:$0xff] }
 0x1e5   : > { %v8087_v30 = vadd.f32 %v7790_v19, %v13644_v33  ;;  %13646 = vst [vmem:[#allocation103_spill] sm:$0xff] %v8090_v11  ;;  %v1481_v33 = vmul.f32 %v13275_v26, %v7841_v14  ;;  %v2043_v35 = vadd.f32 %v13651_v7, %v13650_v4  ;;  %v2248_v43 = vadd.f32 %v1736_v52, %v13652_v6  ;;  %v2511_v2 = vld [vmem:[%s12027_s2 + $0xc0] sm:$0xff]  ;;  %v13667_v6 = vld [vmem:[#allocation42_spill] sm:$0xff] }
 0x1e6   : > { %13649 = vst [vmem:[#allocation234_spill] sm:$0xff] %v8110_v61  ;;  %v8117_v22 = vmul.f32 %v13653_v5, %v8069_v46  ;;  %v8125_v1 = vadd.f32 %v7452_v17, %v13657_v41  ;;  %13659 = vst [vmem:[#allocation40_spill] sm:$0xff] %v8127_v40  ;;  %v13660_v4 = vld [vmem:[#allocation333_spill] sm:$0xff]  ;;  %v2256_v57 = vadd.f32 %v1744_v9, %v13661_v36 }
 0x1e7   : > { %13645 = vst [vmem:[#allocation100_spill] sm:$0xff] %v8087_v30  ;;  %v2247_v7 = vadd.f32 %v1735_v62, %v13660_v4  ;;  %v2255_v56 = vadd.f32 %v1743_v13, %v13662_v23  ;;  %v13663_v41 = vld [vmem:[#allocation57_spill] sm:$0xff]  ;;  %v8140_v0 = vadd.f32 %v7908_v58, %v2265_v12  ;;  %v8143_v39 = vpop.permute.xlu1 %2728  ;;  %v13666_v62 = vld [vmem:[#allocation58_spill] sm:$0xff]  ;;  %v8148_v52 = vmul.f32 %v13667_v6, %v8069_v46 }
 0x1e8   : > { %4656 = vset.pattern.permute.xlu1 %v12922_v49  ;;  %13654 = vst [vmem:[#allocation292_spill] sm:$0xff] %v8117_v22  ;;  %13658 = vst [vmem:[#allocation332_spill] sm:$0xff] %v8125_v1  ;;  %v1994_v17 = vadd.f32 %v1482_v37, %v13663_v41  ;;  %v1993_v4 = vadd.f32 %v1481_v33, %v13666_v62  ;;  %v8152_v36 = vmul.f32 %v13669_v47, %v8069_v46  ;;  %v13671_v37 = vld [vmem:[#allocation158_spill] sm:$0xff]  ;;  %v13672_v62 = vld [vmem:[#allocation159_spill] sm:$0xff] }
 0x1e9   : > { %1387 = vperm.xlu1 %4656, %v4691_v34   ;;  %v13655_v34 = vld [vmem:[#allocation41_spill] sm:$0xff]  ;;  %13665 = vst [vmem:[#allocation291_spill] sm:$0xff] %v8143_v39  ;;  %13668 = vst [vmem:[#allocation333_spill] sm:$0xff] %v8148_v52  ;;  %v3152_v12 = vadd.f32 %v8143_v39, %v2256_v57  ;;  %v3151_v13 = vadd.f32 %v8143_v39, %v2255_v56  ;;  %v3144_v9 = vadd.f32 %v8005_v50, %v2248_v43 }
 0x1ea   : > { %v8121_v51 = vmul.f32 %v13655_v34, %v8069_v46  ;;  %13664 = vst [vmem:[#allocation41_spill] sm:$0xff] %v8140_v0  ;;  %13670 = vst [vmem:[#allocation172_spill] sm:$0xff] %v8152_v36  ;;  %v8160_v33 = vadd.f32 %v8127_v40, %v13671_v37  ;;  %v3143_v41 = vadd.f32 %v8005_v50, %v2247_v7  ;;  %v13675_v43 = vld [vmem:[#allocation165_spill] sm:$0xff] }
 0x1eb   : > { %v8165_v11 = vadd.f32 %v8127_v40, %v13672_v62  ;;  %v8168_v30 = vadd.f32 %v7476_v59, %v2043_v35  ;;  %v3664_v57 = vmax.f32 %v3152_v12, 0.0  ;;  %v3663_v23 = vmax.f32 %v3151_v13, 0.0  ;;  %v13678_v61 = vld [vmem:[#allocation81_spill] sm:$0xff]  ;;  %v4692_v59 = vld [vmem:[%s12026_s1 + $0xa8] sm:$0xff] }
 0x1ec   : > { %13656 = vst [vmem:[#allocation212_spill] sm:$0xff] %v8121_v51  ;;  %v8172_v56 = vadd.f32 %v7951_v63, %v1994_v17  ;;  %v8176_v37 = vadd.f32 %v8127_v40, %v13675_v43  ;;  %v8179_v7 = vadd.f32 %v7951_v63, %v1993_v4  ;;  %v1746_v62 = vmul.f32 %v13274_v24, %v7871_v32  ;;  %v8190_v17 = vpop.permute.xlu1 %1295  ;;  %v13685_v43 = vld [vmem:[#allocation52_spill] sm:$0xff] }
 0x1ed   : > { %4657 = vset.pattern.permute.xlu1 %v13429_v16  ;;  %13673 = vst [vmem:[#allocation177_spill] sm:$0xff] %v8168_v30  ;;  %v1745_v35 = vmul.f32 %v13275_v26, %v7871_v32  ;;  %v8187_v12 = vadd.f32 %v7546_v25, %v13678_v61  ;;  %13680 = vst [vmem:[#allocation158_spill] sm:$0xff] %v8190_v17  ;;  %4000 = vmatprep.subr.mxu1 %v3664_v57  ;;  %v3656_v13 = vmax.f32 %v3144_v9, 0.0  ;;  %v13683_v57 = vld [vmem:[#allocation366_spill] sm:$0xff]  ;;  %v13684_v9 = vld [vmem:[#allocation51_spill] sm:$0xff] }
 0x1ee   : > { %2673 = vperm.xlu1 %4657, %v2511_v2   ;;  %13674 = vst [vmem:[#allocation57_spill] sm:$0xff] %v8172_v56  ;;  %13676 = vst [vmem:[#allocation58_spill] sm:$0xff] %v8176_v37  ;;  %v13681_v2 = vld [vmem:[#allocation167_spill] sm:$0xff]  ;;  %4001 = vmatpush1.msra.mxu1 %v3663_v23  ;;  %v3655_v61 = vmax.f32 %v3143_v41, 0.0  ;;  %v1738_v15 = vmul.f32 %v13274_v24, %v7963_v18  ;;  %v1796_v46 = vmul.f32 %v13684_v9, %v13683_v57  ;;  %v13686_v41 = vld [vmem:[#allocation178_spill] sm:$0xff] }
 0x1ef   : > { %13677 = vst [vmem:[#allocation42_spill] sm:$0xff] %v8179_v7  ;;  %13679 = vst [vmem:[#allocation43_spill] sm:$0xff] %v8187_v12  ;;  %v8196_v1 = vadd.f32 %v8127_v40, %v13681_v2  ;;  %v1795_v4 = vmul.f32 %v13685_v43, %v13683_v57  ;;  %4002 = vmatprep.subr.mxu1 %v3656_v13  ;;  %v8214_v52 = vadd.f32 %v1746_v62, %v13686_v41  ;;  %v13687_v40 = vld [vmem:[#allocation179_spill] sm:$0xff]  ;;  %v13692_v2 = vld [vmem:[#allocation216_spill] sm:$0xff] }
 0x1f0   : > { %4003 = vmatpush1.msra.mxu1 %v3655_v61  ;;  %v8217_v51 = vadd.f32 %v1745_v35, %v13687_v40  ;;  %v1737_v13 = vmul.f32 %v13275_v26, %v7963_v18  ;;  %v8223_v0 = vadd.f32 %v7926_v45, %v7993_v8  ;;  %v8227_v36 = vadd.f32 %v7926_v45, %v8017_v21  ;;  %v4693_v40 = vld [vmem:[%s12026_s1 + $0x1b0] sm:$0xff]  ;;  %v8234_v62 = vpop.permute.xlu1 %2558  ;;  %v13691_v35 = vld [vmem:[#allocation249_spill] sm:$0xff]  ;;  %v13695_v56 = vld [vmem:[#allocation196_spill] sm:$0xff] }
 0x1f1   : > { %13682 = vst [vmem:[#allocation159_spill] sm:$0xff] %v8196_v1  ;;  %13690 = vst [vmem:[#allocation167_spill] sm:$0xff] %v8234_v62  ;;  %v2250_v41 = vadd.f32 %v1738_v15, %v13691_v35  ;;  %v2308_v8 = vadd.f32 %v1796_v46, %v13692_v2  ;;  %v13693_v57 = vld [vmem:[#allocation217_spill] sm:$0xff]  ;;  %v2880_v61 = vadd.f32 %v8234_v62, %v13695_v56  ;;  %v13697_v1 = vld [vmem:[#allocation222_spill] sm:$0xff] }
 0x1f2   : > { %4658 = vset.pattern.permute.xlu1 %v12922_v49  ;;  %13688 = vst [vmem:[#allocation165_spill] sm:$0xff] %v8223_v0  ;;  %13689 = vst [vmem:[#allocation81_spill] sm:$0xff] %v8227_v36  ;;  %v2307_v37 = vadd.f32 %v1795_v4, %v13693_v57  ;;  %v13694_v7 = vld [vmem:[#allocation225_spill] sm:$0xff]  ;;  %v13698_v15 = vld [vmem:[#allocation250_spill] sm:$0xff] }
 0x1f3   : > { %1251 = vperm.xlu1 %4658, %v4692_v59   ;;  %v1516_v59 = vmul.f32 %v13684_v9, %v7382_v20  ;;  %v1788_v21 = vmul.f32 %v13684_v9, %v13694_v7  ;;  %v13696_v23 = vld [vmem:[#allocation197_spill] sm:$0xff]  ;;  %v2249_v4 = vadd.f32 %v1737_v13, %v13698_v15  ;;  %v8254_v2 = vadd.f32 %v7463_v10, %v2308_v8  ;;  %v13700_v56 = vld [vmem:[#allocation123_spill] sm:$0xff]  ;;  %v13707_v57 = vld [vmem:[#allocation66_spill] sm:$0xff] }
 0x1f4   : > { %v2879_v30 = vadd.f32 %v8234_v62, %v13696_v23  ;;  %v2543_v46 = vld [vmem:[%s12027_s2 + $0x1c0] sm:$0xff]  ;;  %v8258_v35 = vadd.f32 %v7546_v25, %v13700_v56  ;;  %v3392_v23 = vmax.f32 %v2880_v61, 0.0  ;;  %v8267_v13 = vpop.permute.xlu1 %610  ;;  %v8275_v56 = vadd.f32 %v8007_v60, %v13707_v57 }
 0x1f5   : > { %v2028_v22 = vadd.f32 %v1516_v59, %v13697_v1  ;;  %13699 = vst [vmem:[#allocation51_spill] sm:$0xff] %v8254_v2  ;;  %v8261_v59 = vadd.f32 %v7463_v10, %v2307_v37  ;;  %13704 = vst [vmem:[#allocation216_spill] sm:$0xff] %v8267_v13  ;;  %v13705_v15 = vld [vmem:[#allocation65_spill] sm:$0xff]  ;;  %v13710_v37 = vld [vmem:[#allocation359_spill] sm:$0xff]  ;;  %v8287_v57 = vadd.f32 %v8005_v50, %v2249_v4 }
 0x1f6   : > { %13701 = vst [vmem:[#allocation178_spill] sm:$0xff] %v8258_v35  ;;  %v3391_v1 = vmax.f32 %v2879_v30, 0.0  ;;  %v8271_v8 = vadd.f32 %v8007_v60, %v13705_v15  ;;  %13708 = vst [vmem:[#allocation196_spill] sm:$0xff] %v8275_v56  ;;  %v8278_v30 = vadd.f32 %v8005_v50, %v2250_v41  ;;  %v2300_v61 = vadd.f32 %v1788_v21, %v13710_v37  ;;  %v13711_v10 = vld [vmem:[#allocation87_spill] sm:$0xff]  ;;  %v13715_v41 = vld [vmem:[#allocation364_spill] sm:$0xff] }
 0x1f7   : > { %1383 = vperm.xlu1 %4658, %v4693_v40   ;;  %v1515_v40 = vmul.f32 %v13685_v43, %v7382_v20  ;;  %13702 = vst [vmem:[#allocation179_spill] sm:$0xff] %v8261_v59  ;;  %v8264_v20 = vadd.f32 %v7553_v38, %v2028_v22  ;;  %3933 = vmatprep.subr.mxu0 %v3392_v23  ;;  %13712 = vst [vmem:[#allocation222_spill] sm:$0xff] %v8287_v57  ;;  %v13718_v22 = vld [vmem:[#allocation75_spill] sm:$0xff]  ;;  %v4694_v37 = vld [vmem:[%s12026_s1 + $0x1a8] sm:$0xff] }
 0x1f8   : > { %13706 = vst [vmem:[#allocation217_spill] sm:$0xff] %v8271_v8  ;;  %13709 = vst [vmem:[#allocation197_spill] sm:$0xff] %v8278_v30  ;;  %v1787_v15 = vmul.f32 %v13685_v43, %v13694_v7  ;;  %3934 = vmatpush1.msra.mxu0 %v3391_v1  ;;  %v8291_v18 = vadd.f32 %v7512_v44, %v2300_v61  ;;  %v1780_v61 = vmul.f32 %v13684_v9, %v13715_v41  ;;  %v2509_v2 = vld [vmem:[%s12027_s2 + $0xb0] sm:$0xff]  ;;  %v13723_v59 = vld [vmem:[#allocation205_spill] sm:$0xff] }
 0x1f9   : > { %13703 = vst [vmem:[#allocation249_spill] sm:$0xff] %v8264_v20  ;;  %v2027_v25 = vadd.f32 %v1515_v40, %v13711_v10  ;;  %v1464_v23 = vmul.f32 %v5178_v54, %v8060_v31  ;;  %v13717_v10 = vld [vmem:[#allocation360_spill] sm:$0xff]  ;;  %v8315_v4 = vadd.f32 %v7790_v19, %v13718_v22  ;;  %v1466_v1 = vmul.f32 %v13274_v24, %v8060_v31  ;;  %v13732_v56 = vld [vmem:[#allocation325_spill] sm:$0xff]  ;;  %v13735_v30 = vld [vmem:[#allocation206_spill] sm:$0xff] }
 0x1fa   : > { %13713 = vst [vmem:[#allocation250_spill] sm:$0xff] %v8291_v18  ;;  %v1465_v21 = vmul.f32 %v13275_v26, %v8060_v31  ;;  %v1728_v20 = vmul.f32 %v5178_v54, %v8093_v28  ;;  %v2292_v18 = vadd.f32 %v1780_v61, %v13723_v59  ;;  %v13728_v7 = vld [vmem:[#allocation180_spill] sm:$0xff]  ;;  %v13736_v8 = vld [vmem:[#allocation293_spill] sm:$0xff] }
 0x1fb   : > { %4659 = vset.pattern.permute.xlu1 %v13429_v16  ;;  %v8298_v40 = vadd.f32 %v7553_v38, %v2027_v25  ;;  %v8306_v12 = vpop.permute.xlu1 %1287  ;;  %v1463_v25 = vmul.f32 %v5180_v55, %v8060_v31  ;;  %13719 = vst [vmem:[#allocation66_spill] sm:$0xff] %v8315_v4  ;;  %v13730_v59 = vld [vmem:[#allocation324_spill] sm:$0xff] }
 0x1fc   : > { %2833 = vperm.xlu1 %4659, %v2543_v46   ;;  %13716 = vst [vmem:[#allocation65_spill] sm:$0xff] %v8306_v12  ;;  %v2299_v46 = vadd.f32 %v1787_v15, %v13717_v10  ;;  %v13721_v10 = vld [vmem:[#allocation76_spill] sm:$0xff]  ;;  %v13724_v15 = vld [vmem:[#allocation99_spill] sm:$0xff]  ;;  %v8355_v61 = vadd.f32 %v1466_v1, %v13730_v59  ;;  %v8358_v0 = vadd.f32 %v1465_v21, %v13732_v56 }
 0x1fd   : > { %13714 = vst [vmem:[#allocation123_spill] sm:$0xff] %v8298_v40  ;;  %v8332_v35 = vadd.f32 %v7790_v19, %v13721_v10  ;;  %v13725_v40 = vld [vmem:[#allocation46_spill] sm:$0xff]  ;;  %v13727_v10 = vld [vmem:[#allocation175_spill] sm:$0xff]  ;;  %v1975_v57 = vadd.f32 %v1463_v25, %v13728_v7  ;;  %v8363_v7 = vadd.f32 %v7700_v48, %v2292_v18 }
 0x1fe   : > { %v8328_v22 = vadd.f32 %v7512_v44, %v2299_v46  ;;  %v691_v46 = vmul.f32 %v13725_v40, %v13724_v15  ;;  %v13726_v44 = vld [vmem:[#allocation386_spill] sm:$0xff]  ;;  %v1976_v19 = vadd.f32 %v1464_v23, %v13727_v10  ;;  %13731 = vst [vmem:[#allocation75_spill] sm:$0xff] %v8355_v61  ;;  %13733 = vst [vmem:[#allocation76_spill] sm:$0xff] %v8358_v0  ;;  %v13737_v59 = vld [vmem:[#allocation163_spill] sm:$0xff] }
 0x1ff   : > { %13722 = vst [vmem:[#allocation87_spill] sm:$0xff] %v8332_v35  ;;  %v1500_v38 = vmul.f32 %v13684_v9, %v13726_v44  ;;  %v1730_v23 = vmul.f32 %v13274_v24, %v8093_v28  ;;  %13734 = vst [vmem:[#allocation205_spill] sm:$0xff] %v8363_v7  ;;  %v963_v1 = vmul.f32 %v13725_v40, %v13736_v8  ;;  %v13738_v21 = vld [vmem:[#allocation47_spill] sm:$0xff]  ;;  %v13739_v0 = vld [vmem:[#allocation164_spill] sm:$0xff] }
 0x200   : > { %4660 = vset.pattern.permute.xlu1 %v12922_v49  ;;  %13720 = vst [vmem:[#allocation359_spill] sm:$0xff] %v8328_v22  ;;  %v8352_v36 = vpop.permute.xlu1 %2553  ;;  %v2240_v53 = vadd.f32 %v1728_v20, %v13737_v59  ;;  %v690_v50 = vmul.f32 %v13738_v21, %v13724_v15  ;;  %v1499_v18 = vmul.f32 %v13685_v43, %v13726_v44  ;;  %v13740_v61 = vld [vmem:[#allocation224_spill] sm:$0xff]  ;;  %v13817_v15 = vld [vmem:[#allocation309_spill] sm:$0xff] }
 0x201   : > { %1379 = vperm.xlu1 %4660, %v4694_v37   ;;  %v1779_v37 = vmul.f32 %v13685_v43, %v13715_v41  ;;  %v1727_v41 = vmul.f32 %v5180_v55, %v8093_v28  ;;  %13729 = vst [vmem:[#allocation360_spill] sm:$0xff] %v8352_v36  ;;  %v2872_v25 = vadd.f32 %v8352_v36, %v1976_v19 }
 0x202   : > { %v2871_v10 = vadd.f32 %v8352_v36, %v1975_v57  ;;  %v2012_v56 = vadd.f32 %v1500_v38, %v691_v46  ;;  %v1772_v57 = vmul.f32 %v13684_v9, %v13740_v61  ;;  %v1729_v20 = vmul.f32 %v13275_v26, %v8093_v28 }
 0x203   : > { %v2291_v4 = vadd.f32 %v1779_v37, %v13735_v30  ;;  %v3384_v31 = vmax.f32 %v2872_v25, 0.0  ;;  %v2239_v19 = vadd.f32 %v1727_v41, %v13739_v0  ;;  %v8382_v37 = vadd.f32 %v8143_v39, %v8214_v52 }
 0x204   : > { %v8378_v30 = vpop.permute.xlu1 %2718  ;;  %v962_v46 = vmul.f32 %v13738_v21, %v13736_v8  ;;  %v8396_v52 = vadd.f32 %v8143_v39, %v8217_v51  ;;  %v1771_v59 = vmul.f32 %v13685_v43, %v13740_v61  ;;  %v13746_v51 = vmax.f32 %v8160_v33, 0.0  ;;  %v13765_v8 = vld [vmem:[#allocation148_spill] sm:$0xff] }
 0x205   : > { %4661 = vset.pattern.permute.xlu1 %v13429_v16  ;;  %13741 = vst [vmem:[#allocation175_spill] sm:$0xff] %v8378_v30  ;;  %13742 = vst [vmem:[#allocation180_spill] sm:$0xff] %v8382_v37  ;;  %v8387_v38 = vadd.f32 %v7700_v48, %v2291_v4  ;;  %3935 = vmatprep.subr.mxu0 %v3384_v31  ;;  %v3136_v0 = vadd.f32 %v8378_v30, %v2240_v53  ;;  %v4695_v4 = vld [vmem:[%s12026_s1 + $0x98] sm:$0xff] }
 0x206   : > { %2663 = vperm.xlu1 %4661, %v2509_v2   ;;  %v3383_v2 = vmax.f32 %v2871_v10, 0.0  ;;  %v3135_v41 = vadd.f32 %v8378_v30, %v2239_v19  ;;  %13744 = vst [vmem:[#allocation325_spill] sm:$0xff] %v8396_v52  ;;  %v8404_v31 = vadd.f32 %v7772_v3, %v2012_v56  ;;  %v2011_v53 = vadd.f32 %v1499_v18, %v690_v50  ;;  %v13749_v56 = vld [vmem:[#allocation168_spill] sm:$0xff]  ;;  %v13750_v18 = vld [vmem:[#allocation69_spill] sm:$0xff] }
 0x207   : > { %13743 = vst [vmem:[#allocation324_spill] sm:$0xff] %v8387_v38  ;;  %v3648_v19 = vmax.f32 %v3136_v0, 0.0  ;;  %v2284_v48 = vadd.f32 %v1772_v57, %v963_v1  ;;  %v8417_v22 = vadd.f32 %v1729_v20, %v13749_v56  ;;  %v8422_v33 = vadd.f32 %v8007_v60, %v13750_v18  ;;  %v4696_v20 = vld [vmem:[%s12026_s1 + $0x1a0] sm:$0xff]  ;;  %v13821_v52 = vld [vmem:[#allocation212_spill] sm:$0xff] }
 0x208   : > { %3936 = vmatpush1.msra.mxu0 %v3383_v2  ;;  %13745 = vst [vmem:[#allocation206_spill] sm:$0xff] %v8404_v31  ;;  %v3647_v25 = vmax.f32 %v3135_v41, 0.0  ;;  %v13748_v2 = vld [vmem:[#allocation166_spill] sm:$0xff]  ;;  %v1719_v56 = vmul.f32 %v5180_v55, %v8190_v17  ;;  %v1159_v18 = vmul.f32 %v13653_v5, %v8267_v13  ;;  %v1756_v41 = vmul.f32 %v13684_v9, %v7745_v27  ;;  %v13766_v31 = vld [vmem:[#allocation327_spill] sm:$0xff]  ;;  %v13767_v38 = vld [vmem:[#allocation61_spill] sm:$0xff] }
 0x209   : > { %3937 = vmatprep.subr.mxu0 %v13746_v51  ;;  %v8414_v10 = vadd.f32 %v1730_v23, %v13748_v2  ;;  %13751 = vst [vmem:[#allocation163_spill] sm:$0xff] %v8422_v33  ;;  %4004 = vmatprep.subr.mxu1 %v3648_v19  ;;  %v8429_v57 = vadd.f32 %v7681_v42, %v2284_v48 }
 0x20a   : > { %4662 = vset.pattern.permute.xlu1 %v12922_v49  ;;  %v8424_v0 = vpop.permute.xlu1 %1283  ;;  %v1764_v23 = vmul.f32 %v13684_v9, %v7642_v29  ;;  %4005 = vmatpush1.msra.mxu1 %v3647_v25  ;;  %v8438_v51 = vadd.f32 %v7772_v3, %v2011_v53  ;;  %v2283_v19 = vadd.f32 %v1771_v59, %v962_v46  ;;  %v2541_v46 = vld [vmem:[%s12027_s2 + $0x1b0] sm:$0xff]  ;;  %v13761_v3 = vld [vmem:[#allocation322_spill] sm:$0xff] }
 0x20b   : > { %1243 = vperm.xlu1 %4662, %v4695_v4   ;;  %v13747_v4 = vmax.f32 %v8165_v11, 0.0  ;;  %13752 = vst [vmem:[#allocation164_spill] sm:$0xff] %v8424_v0  ;;  %13753 = vst [vmem:[#allocation166_spill] sm:$0xff] %v8429_v57  ;;  %v1720_v48 = vmul.f32 %v5178_v54, %v8190_v17  ;;  %v1722_v25 = vmul.f32 %v13274_v24, %v8190_v17  ;;  %v13760_v11 = vld [vmem:[#allocation191_spill] sm:$0xff] }
 0x20c   : > { %13754 = vst [vmem:[#allocation168_spill] sm:$0xff] %v8438_v51  ;;  %v1158_v53 = vmul.f32 %v13655_v34, %v8267_v13  ;;  %v1484_v59 = vmul.f32 %v13684_v9, %v7841_v14  ;;  %v1721_v50 = vmul.f32 %v13275_v26, %v8190_v17  ;;  %v8468_v35 = vadd.f32 %v7681_v42, %v2283_v19  ;;  %v13762_v42 = vld [vmem:[#allocation323_spill] sm:$0xff]  ;;  %v13768_v51 = vld [vmem:[#allocation329_spill] sm:$0xff] }
 0x20d   : > { %3938 = vmatpush2.msra.mxu0 %v13747_v4  ;;  %v13755_v4 = vld [vmem:[#allocation70_spill] sm:$0xff]  ;;  %v2276_v1 = vadd.f32 %v1764_v23, %v13760_v11  ;;  %v1763_v34 = vmul.f32 %v13685_v43, %v7642_v29  ;;  %v1483_v7 = vmul.f32 %v13685_v43, %v7841_v14  ;;  %v2232_v19 = vadd.f32 %v1720_v48, %v13761_v3  ;;  %v13763_v11 = vld [vmem:[#allocation147_spill] sm:$0xff]  ;;  %v13769_v48 = vld [vmem:[#allocation192_spill] sm:$0xff] }
 0x20e   : > { %v8442_v2 = vadd.f32 %v8007_v60, %v13755_v4  ;;  %v8463_v5 = vpop.permute.xlu1 %1415  ;;  %13759 = vst [vmem:[#allocation399_spill] sm:$0xff] %v8468_v35  ;;  %v2231_v61 = vadd.f32 %v1719_v56, %v13762_v42  ;;  %v2480_v23 = vadd.f32 %v13763_v11, %v1159_v18  ;;  %v2479_v44 = vadd.f32 %v13765_v8, %v1158_v53  ;;  %v8496_v18 = vpop.permute.xlu0 %2868  ;;  %v13772_v8 = vld [vmem:[#allocation198_spill] sm:$0xff]  ;;  %v13800_v35 = vld [vmem:[#allocation76_spill] sm:$0xff] }
 0x20f   : > { %1375 = vperm.xlu1 %4662, %v4696_v20   ;;  %v13757_v20 = vld [vmem:[#allocation282_spill] sm:$0xff]  ;;  %13758 = vst [vmem:[#allocation70_spill] sm:$0xff] %v8463_v5  ;;  %v8483_v29 = vadd.f32 %v7926_v45, %v2276_v1  ;;  %v8487_v57 = vadd.f32 %v1722_v25, %v13766_v31  ;;  %v1996_v60 = vadd.f32 %v1484_v59, %v13767_v38  ;;  %13770 = vst [vmem:[#allocation322_spill] sm:$0xff] %v8496_v18  ;;  %v13774_v25 = vld [vmem:[#allocation201_spill] sm:$0xff] }
 0x210   : > { %13756 = vst [vmem:[#allocation69_spill] sm:$0xff] %v8442_v2  ;;  %v947_v4 = vmul.f32 %v13725_v40, %v13757_v20  ;;  %v8491_v14 = vadd.f32 %v1721_v50, %v13768_v51  ;;  %v2275_v56 = vadd.f32 %v1763_v34, %v13769_v48  ;;  %v8502_v31 = vadd.f32 %v8234_v62, %v13772_v8  ;;  %v4697_v34 = vld [vmem:[%s12026_s1 + $0x198] sm:$0xff]  ;;  %v13784_v3 = vld [vmem:[#allocation170_spill] sm:$0xff] }
 0x211   : > { %13764 = vst [vmem:[#allocation191_spill] sm:$0xff] %v8483_v29  ;;  %v8506_v38 = vadd.f32 %v8234_v62, %v13774_v25  ;;  %v1161_v50 = vmul.f32 %v13667_v6, %v8267_v13  ;;  %v3376_v59 = vadd.f32 %v8496_v18, %v2480_v23  ;;  %v3375_v11 = vadd.f32 %v8496_v18, %v2479_v44  ;;  %v2507_v44 = vld [vmem:[%s12027_s2 + $0xa0] sm:$0xff]  ;;  %v13790_v2 = vld [vmem:[#allocation362_spill] sm:$0xff] }
 0x212   : > { %v2268_v33 = vadd.f32 %v1756_v41, %v947_v4  ;;  %13773 = vst [vmem:[#allocation147_spill] sm:$0xff] %v8502_v31  ;;  %v13776_v41 = vld [vmem:[#allocation62_spill] sm:$0xff]  ;;  %v8521_v6 = vadd.f32 %v7926_v45, %v2275_v56  ;;  %v1696_v48 = vmul.f32 %v5178_v54, %v8424_v0  ;;  %v1160_v8 = vmul.f32 %v13669_v47, %v8267_v13  ;;  %v13780_v25 = vld [vmem:[#allocation169_spill] sm:$0xff]  ;;  %v8573_v42 = vpop.permute.xlu0 %2698  ;;  %v13917_v31 = vld [vmem:[#allocation384_spill] sm:$0xff] }
 0x213   : > { %4663 = vset.pattern.permute.xlu1 %v13429_v16  ;;  %13775 = vst [vmem:[#allocation148_spill] sm:$0xff] %v8506_v38  ;;  %v1995_v51 = vadd.f32 %v1483_v7, %v13776_v41  ;;  %v8524_v7 = vadd.f32 %v7951_v63, %v1996_v60  ;;  %v1695_v56 = vmul.f32 %v5180_v55, %v8424_v0  ;;  %v3887_v4 = vmax.f32 %v3375_v11, 0.0  ;;  %v13785_v11 = vld [vmem:[#allocation143_spill] sm:$0xff] }
 0x214   : > { %2823 = vperm.xlu1 %4663, %v2541_v46   ;;  %v8498_v1 = vpop.permute.xlu1 %2713  ;;  %13777 = vst [vmem:[#allocation327_spill] sm:$0xff] %v8521_v6  ;;  %v1704_v47 = vmul.f32 %v5178_v54, %v8306_v12  ;;  %v2481_v60 = vadd.f32 %v13784_v3, %v1160_v8  ;;  %v1706_v3 = vmul.f32 %v13274_v24, %v8306_v12  ;;  %v13789_v8 = vld [vmem:[#allocation361_spill] sm:$0xff]  ;;  %13791 = vst [vmem:[#allocation62_spill] sm:$0xff] %v8573_v42  ;;  %v13793_v6 = vld [vmem:[#allocation84_spill] sm:$0xff] }
 0x215   : > { %13771 = vst [vmem:[#allocation323_spill] sm:$0xff] %v8498_v1  ;;  %v3128_v46 = vadd.f32 %v8498_v1, %v2232_v19  ;;  %v3127_v53 = vadd.f32 %v8498_v1, %v2231_v61  ;;  %13778 = vst [vmem:[#allocation61_spill] sm:$0xff] %v8524_v7  ;;  %v8527_v19 = vadd.f32 %v7908_v58, %v2268_v33 }
 0x216   : > { %v2482_v33 = vadd.f32 %v13780_v25, %v1161_v50  ;;  %v8541_v41 = vadd.f32 %v7951_v63, %v1995_v51  ;;  %v946_v51 = vmul.f32 %v13738_v21, %v13757_v20  ;;  %v13815_v20 = vld [vmem:[#allocation308_spill] sm:$0xff] }
 0x217   : > { %13779 = vst [vmem:[#allocation329_spill] sm:$0xff] %v8527_v19  ;;  %v3640_v61 = vmax.f32 %v3128_v46, 0.0  ;;  %v3639_v23 = vmax.f32 %v3127_v53, 0.0  ;;  %v3888_v53 = vmax.f32 %v3376_v59, 0.0  ;;  %v1755_v59 = vmul.f32 %v13685_v43, %v7745_v27 }
 0x218   : > { %4664 = vset.pattern.permute.xlu1 %v12922_v49  ;;  %13781 = vst [vmem:[#allocation192_spill] sm:$0xff] %v8541_v41  ;;  %v8562_v50 = vadd.f32 %v8496_v18, %v2482_v33  ;;  %v1705_v33 = vmul.f32 %v13275_v26, %v8306_v12  ;;  %v666_v41 = vmul.f32 %v13738_v21, %v13793_v6 }
 0x219   : > { %1371 = vperm.xlu1 %4664, %v4697_v34   ;;  %v8543_v46 = vpop.permute.xlu1 %1411  ;;  %4006 = vmatprep.subr.mxu1 %v3640_v61  ;;  %v1703_v34 = vmul.f32 %v5180_v55, %v8306_v12  ;;  %v13783_v61 = vld [vmem:[#allocation142_spill] sm:$0xff] }
 0x21a   : > { %13782 = vst [vmem:[#allocation198_spill] sm:$0xff] %v8543_v46  ;;  %4007 = vmatpush1.msra.mxu1 %v3639_v23  ;;  %v2208_v25 = vadd.f32 %v1696_v48, %v13783_v61  ;;  %v2207_v23 = vadd.f32 %v1695_v56, %v13785_v11  ;;  %13786 = vst [vmem:[#allocation201_spill] sm:$0xff] %v8562_v50  ;;  %v13788_v48 = vld [vmem:[#allocation319_spill] sm:$0xff]  ;;  %v2267_v11 = vadd.f32 %v1755_v59, %v946_v51  ;;  %v4698_v51 = vld [vmem:[%s12026_s1 + $0x88] sm:$0xff] }
 0x21b   : > { %4008 = vmatprep.subr.mxu1 %v3888_v53  ;;  %v13787_v53 = vld [vmem:[#allocation316_spill] sm:$0xff]  ;;  %v2215_v61 = vadd.f32 %v1703_v34, %v13788_v48 }
 0x21c   : > { %4009 = vmatpush2.msra.mxu1 %v3887_v4  ;;  %v2216_v63 = vadd.f32 %v1704_v47, %v13787_v53  ;;  %v1988_v4 = vadd.f32 %v13790_v2, %v13789_v8  ;;  %v13794_v47 = vld [vmem:[#allocation26_spill] sm:$0xff]  ;;  %v3104_v48 = vadd.f32 %v8573_v42, %v2208_v25  ;;  %v8588_v8 = vadd.f32 %v8496_v18, %v2481_v60  ;;  %v13798_v25 = vld [vmem:[#allocation75_spill] sm:$0xff]  ;;  %v13818_v50 = vld [vmem:[#allocation144_spill] sm:$0xff] }
 0x21d   : > { %4665 = vset.pattern.permute.xlu1 %v13429_v16  ;;  %v1475_v34 = vmul.f32 %v13685_v43, %v13794_v47  ;;  %v3103_v59 = vadd.f32 %v8573_v42, %v2207_v23  ;;  %v8601_v60 = vadd.f32 %v8352_v36, %v13798_v25  ;;  %v8605_v47 = vadd.f32 %v8352_v36, %v13800_v35  ;;  %v13803_v23 = vld [vmem:[#allocation328_spill] sm:$0xff] }
 0x21e   : > { %2653 = vperm.xlu1 %4665, %v2507_v44   ;;  %v1748_v44 = vmul.f32 %v13684_v9, %v7871_v32  ;;  %13795 = vst [vmem:[#allocation142_spill] sm:$0xff] %v8588_v8  ;;  %v8596_v7 = vadd.f32 %v8234_v62, %v1988_v4  ;;  %v8611_v19 = vadd.f32 %v1705_v33, %v13803_v23  ;;  %v13809_v23 = vld [vmem:[#allocation74_spill] sm:$0xff] }
 0x21f   : > { %v8575_v56 = vpop.permute.xlu1 %2703  ;;  %13799 = vst [vmem:[#allocation143_spill] sm:$0xff] %v8601_v60  ;;  %13801 = vst [vmem:[#allocation316_spill] sm:$0xff] %v8605_v47  ;;  %v8614_v4 = vadd.f32 %v7908_v58, %v2267_v11  ;;  %v1747_v35 = vmul.f32 %v13685_v43, %v7871_v32  ;;  %v3615_v33 = vmax.f32 %v3103_v59, 0.0  ;;  %v2539_v59 = vld [vmem:[%s12027_s2 + $0x1a0] sm:$0xff]  ;;  %v8660_v58 = vadd.f32 %v8378_v30, %v8414_v10  ;;  %v13814_v32 = vld [vmem:[#allocation395_spill] sm:$0xff] }
 0x220   : > { %13792 = vst [vmem:[#allocation169_spill] sm:$0xff] %v8575_v56  ;;  %v3112_v53 = vadd.f32 %v8575_v56, %v2216_v63  ;;  %v3111_v2 = vadd.f32 %v8575_v56, %v2215_v61  ;;  %13796 = vst [vmem:[#allocation170_spill] sm:$0xff] %v8596_v7  ;;  %v13797_v63 = vld [vmem:[#allocation193_spill] sm:$0xff]  ;;  %v13811_v7 = vld [vmem:[#allocation194_spill] sm:$0xff]  ;;  %v1740_v27 = vmul.f32 %v13684_v9, %v13814_v32 }
 0x221   : > { %v2260_v29 = vadd.f32 %v1748_v44, %v13797_v63  ;;  %13804 = vst [vmem:[#allocation319_spill] sm:$0xff] %v8614_v4  ;;  %v1987_v44 = vadd.f32 %v1475_v34, %v666_v41  ;;  %v13808_v34 = vld [vmem:[#allocation80_spill] sm:$0xff]  ;;  %13812 = vst [vmem:[#allocation76_spill] sm:$0xff] %v8660_v58  ;;  %v8664_v41 = vadd.f32 %v8378_v30, %v8417_v22  ;;  %v13819_v47 = vld [vmem:[#allocation145_spill] sm:$0xff] }
 0x222   : > { %4666 = vset.pattern.permute.xlu1 %v12922_v49  ;;  %v3624_v61 = vmax.f32 %v3112_v53, 0.0  ;;  %v3623_v45 = vmax.f32 %v3111_v2, 0.0  ;;  %v3616_v2 = vmax.f32 %v3104_v48, 0.0  ;;  %v659_v48 = vmul.f32 %v13725_v40, %v13808_v34 }
 0x223   : > { %1235 = vperm.xlu1 %4666, %v4698_v51   ;;  %v13802_v51 = vld [vmem:[#allocation326_spill] sm:$0xff]  ;;  %v8620_v25 = vadd.f32 %v8143_v39, %v2260_v29  ;;  %v8629_v11 = vadd.f32 %v8234_v62, %v1987_v44  ;;  %v1952_v29 = vmul.f32 %v5178_v54, %v8543_v46  ;;  %v1951_v44 = vmul.f32 %v5180_v55, %v8543_v46 }
 0x224   : > { %v8608_v6 = vadd.f32 %v1706_v3, %v13802_v51  ;;  %v8616_v53 = vpop.permute.xlu1 %1275  ;;  %3939 = vmatprep.subr.mxu0 %v3624_v61  ;;  %v4699_v3 = vld [vmem:[%s12026_s1 + $0x190] sm:$0xff]  ;;  %v1959_v51 = vmul.f32 %v5180_v55, %v8463_v5  ;;  %v2259_v62 = vadd.f32 %v1747_v35, %v13811_v7  ;;  %13813 = vst [vmem:[#allocation326_spill] sm:$0xff] %v8664_v41  ;;  %v13816_v7 = vld [vmem:[#allocation269_spill] sm:$0xff] }
 0x225   : > { %13805 = vst [vmem:[#allocation361_spill] sm:$0xff] %v8616_v53  ;;  %13806 = vst [vmem:[#allocation362_spill] sm:$0xff] %v8620_v25  ;;  %3940 = vmatpush2.msra.mxu0 %v3623_v45  ;;  %v1468_v45 = vmul.f32 %v13684_v9, %v13809_v23  ;;  %v2464_v61 = vadd.f32 %v1952_v29, %v13815_v20  ;;  %v931_v35 = vmul.f32 %v13725_v40, %v13816_v7 }
 0x226   : > { %13807 = vst [vmem:[#allocation193_spill] sm:$0xff] %v8629_v11  ;;  %3941 = vmatprep.subr.mxu0 %v3616_v2  ;;  %v1698_v2 = vmul.f32 %v13274_v24, %v8424_v0  ;;  %v1739_v10 = vmul.f32 %v13685_v43, %v13814_v32  ;;  %v2463_v8 = vadd.f32 %v1951_v44, %v13817_v15  ;;  %v13820_v11 = vld [vmem:[#allocation292_spill] sm:$0xff] }
 0x227   : > { %1367 = vperm.xlu1 %4666, %v4699_v3   ;;  %3942 = vmatpush2.msra.mxu0 %v3615_v33  ;;  %v1697_v3 = vmul.f32 %v13275_v26, %v8424_v0  ;;  %v1960_v33 = vmul.f32 %v5178_v54, %v8463_v5  ;;  %v1980_v25 = vadd.f32 %v1468_v45, %v659_v48  ;;  %v8686_v45 = vpop.permute.xlu0 %2858 }
 0x228   : > { %v8649_v63 = vpop.permute.xlu1 %1407  ;;  %v2210_v22 = vadd.f32 %v1698_v2, %v13818_v50  ;;  %v1467_v4 = vmul.f32 %v13685_v43, %v13809_v23  ;;  %v2471_v20 = vadd.f32 %v1959_v51, %v13821_v52  ;;  %v8682_v48 = vadd.f32 %v8143_v39, %v2259_v62  ;;  %13823 = vst [vmem:[#allocation194_spill] sm:$0xff] %v8686_v45 }
 0x229   : > { %13810 = vst [vmem:[#allocation75_spill] sm:$0xff] %v8649_v63  ;;  %v2209_v60 = vadd.f32 %v1697_v3, %v13819_v47  ;;  %v930_v29 = vmul.f32 %v13738_v21, %v13816_v7  ;;  %v8692_v47 = vadd.f32 %v8352_v36, %v1980_v25  ;;  %v2252_v44 = vadd.f32 %v1740_v27, %v931_v35  ;;  %v4700_v3 = vld [vmem:[%s12026_s1 + $0x188] sm:$0xff] }
 0x22a   : > { %13822 = vst [vmem:[#allocation328_spill] sm:$0xff] %v8682_v48  ;;  %v3360_v51 = vadd.f32 %v8686_v45, %v2464_v61  ;;  %v3359_v25 = vadd.f32 %v8686_v45, %v2463_v8  ;;  %v8705_v27 = vadd.f32 %v8573_v42, %v2210_v22  ;;  %v1680_v61 = vmul.f32 %v5178_v54, %v8616_v53 }
 0x22b   : > { %4667 = vset.pattern.permute.xlu1 %v13429_v16  ;;  %13825 = vst [vmem:[#allocation309_spill] sm:$0xff] %v8692_v47  ;;  %v2251_v2 = vadd.f32 %v1739_v10, %v930_v29  ;;  %v1962_v10 = vmul.f32 %v13274_v24, %v8463_v5  ;;  %v1679_v8 = vmul.f32 %v5180_v55, %v8616_v53 }
 0x22c   : > { %2813 = vperm.xlu1 %4667, %v2539_v59   ;;  %v2472_v59 = vadd.f32 %v1960_v33, %v13820_v11  ;;  %v658_v11 = vmul.f32 %v13738_v21, %v13808_v34  ;;  %13826 = vst [vmem:[#allocation144_spill] sm:$0xff] %v8705_v27  ;;  %v8708_v33 = vadd.f32 %v8573_v42, %v2209_v60  ;;  %v3871_v22 = vmax.f32 %v3359_v25, 0.0  ;;  %v13834_v34 = vld [vmem:[#allocation40_spill] sm:$0xff]  ;;  %v13838_v25 = vld [vmem:[#allocation139_spill] sm:$0xff] }
 0x22d   : > { %v8688_v15 = vpop.permute.xlu1 %2863  ;;  %v1961_v60 = vmul.f32 %v13275_v26, %v8463_v5  ;;  %v2191_v39 = vadd.f32 %v1679_v8, %v13838_v25  ;;  %v8816_v23 = vadd.f32 %v8575_v56, %v8608_v6  ;;  %v2503_v6 = vld [vmem:[%s12027_s2 + $0x80] sm:$0xff] }
 0x22e   : > { %13824 = vst [vmem:[#allocation308_spill] sm:$0xff] %v8688_v15  ;;  %v3368_v62 = vadd.f32 %v8688_v15, %v2472_v59  ;;  %v3367_v52 = vadd.f32 %v8688_v15, %v2471_v20  ;;  %13827 = vst [vmem:[#allocation145_spill] sm:$0xff] %v8708_v33  ;;  %v1979_v35 = vadd.f32 %v1467_v4, %v658_v11  ;;  %v2505_v20 = vld [vmem:[%s12027_s2 + $0x90] sm:$0xff]  ;;  %v3872_v11 = vmax.f32 %v3360_v51, 0.0  ;;  %v13833_v4 = vld [vmem:[#allocation213_spill] sm:$0xff] }
 0x22f   : > { %v8738_v48 = vadd.f32 %v13834_v34, %v13833_v4  ;;  %v13836_v51 = vld [vmem:[#allocation138_spill] sm:$0xff]  ;;  %v8751_v4 = vadd.f32 %v8498_v1, %v8487_v57 }
 0x230   : > { %4669 = vset.pattern.permute.xlu1 %v12922_v49  ;;  %v3880_v59 = vmax.f32 %v3368_v62, 0.0  ;;  %v3879_v50 = vmax.f32 %v3367_v52, 0.0  ;;  %v13829_v62 = vld [vmem:[#allocation189_spill] sm:$0xff] }
 0x231   : > { %1363 = vperm.xlu1 %4669, %v4700_v3   ;;  %v8726_v52 = vadd.f32 %v13829_v62, %v2252_v44  ;;  %v8729_v3 = vadd.f32 %v8352_v36, %v1979_v35  ;;  %v8732_v7 = vadd.f32 %v13829_v62, %v2251_v2  ;;  %13835 = vst [vmem:[#allocation213_spill] sm:$0xff] %v8738_v48  ;;  %v13837_v62 = vld [vmem:[#allocation333_spill] sm:$0xff]  ;;  %13839 = vst [vmem:[#allocation138_spill] sm:$0xff] %v8751_v4  ;;  %v13840_v36 = vld [vmem:[#allocation172_spill] sm:$0xff] }
 0x232   : > { %4010 = vmatprep.subr.mxu1 %v3880_v59  ;;  %v1732_v44 = vmul.f32 %v13684_v9, %v8093_v28  ;;  %v2192_v35 = vadd.f32 %v1680_v61, %v13836_v51  ;;  %v8754_v47 = vadd.f32 %v1961_v60, %v13840_v36  ;;  %v1954_v61 = vmul.f32 %v13274_v24, %v8543_v46  ;;  %v13844_v60 = vld [vmem:[#allocation207_spill] sm:$0xff]  ;;  %v13845_v51 = vld [vmem:[#allocation218_spill] sm:$0xff] }
 0x233   : > { %13830 = vst [vmem:[#allocation212_spill] sm:$0xff] %v8726_v52  ;;  %13831 = vst [vmem:[#allocation400_spill] sm:$0xff] %v8729_v3  ;;  %4011 = vmatpush2.msra.mxu1 %v3879_v50  ;;  %v8746_v50 = vadd.f32 %v1962_v10, %v13837_v62  ;;  %v8773_v25 = vadd.f32 %v13834_v34, %v13845_v51  ;;  %v13848_v10 = vld [vmem:[#allocation151_spill] sm:$0xff]  ;;  %v13849_v36 = vld [vmem:[#allocation310_spill] sm:$0xff] }
 0x234   : > { %v8723_v29 = vpop.permute.xlu1 %1403  ;;  %13832 = vst [vmem:[#allocation401_spill] sm:$0xff] %v8732_v7  ;;  %4012 = vmatprep.subr.mxu1 %v3872_v11  ;;  %v8765_v11 = vpop.permute.xlu0 %2688  ;;  %v2244_v62 = vadd.f32 %v1732_v44, %v13844_v60  ;;  %v1953_v44 = vmul.f32 %v13275_v26, %v8543_v46  ;;  %v4701_v60 = vld [vmem:[%s12026_s1 + $0x180] sm:$0xff]  ;;  %v2466_v34 = vadd.f32 %v1954_v61, %v13849_v36  ;;  %v13851_v7 = vld [vmem:[#allocation248_spill] sm:$0xff]  ;;  %13856 = vst [vmem:[#allocation151_spill] sm:$0xff] %v8816_v23 }
 0x235   : > { %13828 = vst [vmem:[#allocation292_spill] sm:$0xff] %v8723_v29  ;;  %4670 = vset.pattern.permute.xlu1 %v13429_v16  ;;  %4013 = vmatpush2.msra.mxu1 %v3871_v22  ;;  %13842 = vst [vmem:[#allocation139_spill] sm:$0xff] %v8765_v11  ;;  %v13847_v22 = vld [vmem:[#allocation149_spill] sm:$0xff]  ;;  %v3088_v2 = vadd.f32 %v8765_v11, %v2192_v35  ;;  %v3087_v51 = vadd.f32 %v8765_v11, %v2191_v39  ;;  %v13854_v35 = vld [vmem:[#allocation311_spill] sm:$0xff] }
 0x236   : > { %2643 = vperm.xlu1 %4670, %v2505_v20   ;;  %v8760_v20 = vadd.f32 %v8498_v1, %v8491_v14  ;;  %13846 = vst [vmem:[#allocation207_spill] sm:$0xff] %v8773_v25  ;;  %v1731_v14 = vmul.f32 %v13685_v43, %v8093_v28  ;;  %v8795_v48 = vadd.f32 %v8378_v30, %v2244_v62  ;;  %v13852_v61 = vld [vmem:[#allocation261_spill] sm:$0xff]  ;;  %v13855_v52 = vld [vmem:[#allocation208_spill] sm:$0xff]  ;;  %v13914_v23 = vld [vmem:[#allocation295_spill] sm:$0xff] }
 0x237   : > { %v915_v36 = vmul.f32 %v13725_v40, %v13852_v61  ;;  %v3600_v62 = vmax.f32 %v3088_v2, 0.0  ;;  %v2465_v3 = vadd.f32 %v1953_v44, %v13854_v35  ;;  %v898_v39 = vmul.f32 %v13738_v21, %v13851_v7 }
 0x238   : > { %13841 = vst [vmem:[#allocation333_spill] sm:$0xff] %v8760_v20  ;;  %13850 = vst [vmem:[#allocation218_spill] sm:$0xff] %v8795_v48  ;;  %v2243_v32 = vadd.f32 %v1731_v14, %v13855_v52  ;;  %v3599_v25 = vmax.f32 %v3087_v51, 0.0  ;;  %v8819_v33 = vadd.f32 %v8686_v45, %v2466_v34  ;;  %v1936_v52 = vmul.f32 %v5178_v54, %v8723_v29 }
 0x239   : > { %v8767_v57 = vpop.permute.xlu1 %2693  ;;  %v8825_v2 = vadd.f32 %v8575_v56, %v8611_v19  ;;  %v1935_v34 = vmul.f32 %v5180_v55, %v8723_v29  ;;  %v1682_v14 = vmul.f32 %v13274_v24, %v8616_v53  ;;  %v1681_v19 = vmul.f32 %v13275_v26, %v8616_v53 }
 0x23a   : > { %13843 = vst [vmem:[#allocation172_spill] sm:$0xff] %v8767_v57  ;;  %4671 = vset.pattern.permute.xlu1 %v12922_v49  ;;  %v3096_v8 = vadd.f32 %v8767_v57, %v13847_v22  ;;  %v3095_v59 = vadd.f32 %v8767_v57, %v13848_v10  ;;  %v1708_v22 = vmul.f32 %v13684_v9, %v8306_v12  ;;  %13857 = vst [vmem:[#allocation310_spill] sm:$0xff] %v8819_v33 }
 0x23b   : > { %1359 = vperm.xlu1 %4671, %v4701_v60   ;;  %v2504_v60 = vld [vmem:[%s12027_s2 + $0x88] sm:$0xff]  ;;  %v899_v49 = vmul.f32 %v13725_v40, %v13851_v7  ;;  %13858 = vst [vmem:[#allocation311_spill] sm:$0xff] %v8825_v2  ;;  %v8840_v44 = vadd.f32 %v8378_v30, %v2243_v32  ;;  %v1723_v32 = vmul.f32 %v13685_v43, %v8190_v17  ;;  %v13863_v7 = vld [vmem:[#allocation303_spill] sm:$0xff] }
 0x23c   : > { %v3608_v10 = vmax.f32 %v3096_v8, 0.0  ;;  %v3607_v28 = vmax.f32 %v3095_v59, 0.0  ;;  %v1724_v59 = vmul.f32 %v13684_v9, %v8190_v17  ;;  %v2448_v30 = vadd.f32 %v1936_v52, %v13863_v7  ;;  %v13866_v17 = vld [vmem:[#allocation141_spill] sm:$0xff]  ;;  %v13867_v52 = vld [vmem:[#allocation227_spill] sm:$0xff]  ;;  %v13913_v2 = vld [vmem:[#allocation34_spill] sm:$0xff] }
 0x23d   : > { %13859 = vst [vmem:[#allocation208_spill] sm:$0xff] %v8840_v44  ;;  %v2193_v7 = vadd.f32 %v1681_v19, %v13866_v17  ;;  %v1676_v4 = vmul.f32 %v13684_v9, %v13913_v2 }
 0x23e   : > { %v8807_v8 = vpop.permute.xlu1 %1267  ;;  %3943 = vmatprep.subr.mxu0 %v3608_v10  ;;  %v2220_v10 = vadd.f32 %v1708_v22, %v899_v49  ;;  %v1943_v49 = vmul.f32 %v5180_v55, %v8649_v63  ;;  %v8849_v22 = vadd.f32 %v8686_v45, %v2465_v3  ;;  %v2236_v35 = vadd.f32 %v1724_v59, %v915_v36  ;;  %v2535_v36 = vld [vmem:[%s12027_s2 + $0x180] sm:$0xff]  ;;  %v13864_v59 = vld [vmem:[#allocation304_spill] sm:$0xff] }
 0x23f   : > { %13853 = vst [vmem:[#allocation149_spill] sm:$0xff] %v8807_v8  ;;  %4672 = vset.pattern.permute.xlu1 %v13429_v16  ;;  %3944 = vmatpush2.msra.mxu0 %v3607_v28  ;;  %v1707_v28 = vmul.f32 %v13685_v43, %v8306_v12  ;;  %v1700_v3 = vmul.f32 %v13684_v9, %v8424_v0  ;;  %v13868_v12 = vld [vmem:[#allocation357_spill] sm:$0xff] }
 0x240   : > { %2638 = vperm.xlu1 %4672, %v2504_v60   ;;  %3945 = vmatprep.subr.mxu0 %v3600_v62  ;;  %13861 = vst [vmem:[#allocation403_spill] sm:$0xff] %v8849_v22  ;;  %v8854_v16 = vadd.f32 %v8575_v56, %v2220_v10  ;;  %v2447_v62 = vadd.f32 %v1935_v34, %v13864_v59  ;;  %v3896_v10 = vld [vmem:[%s12028_s3 + $0x8] sm:$0xff]  ;;  %v13865_v60 = vld [vmem:[#allocation140_spill] sm:$0xff]  ;;  %v8877_v59 = vpop.permute.xlu0 %2848 }
 0x241   : > { %3946 = vmatpush2.msra.mxu0 %v3599_v25  ;;  %v1944_v25 = vmul.f32 %v5178_v54, %v8649_v63  ;;  %v2219_v48 = vadd.f32 %v1707_v28, %v898_v39  ;;  %v914_v39 = vmul.f32 %v13738_v21, %v13852_v61  ;;  %v2455_v33 = vadd.f32 %v1943_v49, %v13868_v12  ;;  %v13895_v22 = vld [vmem:[#allocation306_spill] sm:$0xff] }
 0x242   : > { %v8842_v51 = vpop.permute.xlu1 %1399  ;;  %13862 = vst [vmem:[#allocation404_spill] sm:$0xff] %v8854_v16  ;;  %3969 = vmatprep.mubr.f32.mxu0 %v3896_v10  ;;  %13869 = vst [vmem:[#allocation303_spill] sm:$0xff] %v8877_v59  ;;  %v8883_v17 = vadd.f32 %v8498_v1, %v2236_v35  ;;  %v13873_v10 = vld [vmem:[#allocation146_spill] sm:$0xff]  ;;  %v3343_v34 = vadd.f32 %v8877_v59, %v2447_v62  ;;  %v3898_v35 = vld [vmem:[%s12028_s3 + $0x18] sm:$0xff]  ;;  %v1946_v62 = vmul.f32 %v13274_v24, %v8649_v63 }
 0x243   : > { %13860 = vst [vmem:[#allocation402_spill] sm:$0xff] %v8842_v51  ;;  %v2456_v28 = vadd.f32 %v1944_v25, %v13867_v52  ;;  %v8886_v19 = vadd.f32 %v8575_v56, %v2219_v48  ;;  %v2235_v25 = vadd.f32 %v1723_v32, %v914_v39  ;;  %v2212_v52 = vadd.f32 %v1700_v3, %v13873_v10  ;;  %v13876_v39 = vld [vmem:[#allocation30_spill] sm:$0xff]  ;;  %v13890_v10 = vld [vmem:[#allocation152_spill] sm:$0xff]  ;;  %v13893_v16 = vld [vmem:[#allocation305_spill] sm:$0xff] }
 0x244   : > { %2633 = vperm.xlu1 %4672, %v2503_v6   ;;  %v2194_v6 = vadd.f32 %v1682_v14, %v13865_v60  ;;  %13871 = vst [vmem:[#allocation140_spill] sm:$0xff] %v8883_v17  ;;  %v3344_v60 = vadd.f32 %v8877_v59, %v2448_v30  ;;  %v8900_v48 = vadd.f32 %v8765_v11, %v2193_v7  ;;  %v3855_v56 = vmax.f32 %v3343_v34, 0.0  ;;  %v13883_v34 = vld [vmem:[#allocation134_spill] sm:$0xff] }
 0x245   : > { %13872 = vst [vmem:[#allocation141_spill] sm:$0xff] %v8886_v19  ;;  %v1163_v32 = vmul.f32 %v13725_v40, %v8267_v13  ;;  %v1664_v30 = vmul.f32 %v5178_v54, %v8807_v8  ;;  %4040 = vmatprep.mubr.f32.mxu1 %v3898_v35  ;;  %v1663_v3 = vmul.f32 %v5180_v55, %v8807_v8 }
 0x246   : > { %v8897_v14 = vadd.f32 %v8765_v11, %v2194_v6  ;;  %13875 = vst [vmem:[#allocation357_spill] sm:$0xff] %v8900_v48  ;;  %v1945_v6 = vmul.f32 %v13275_v26, %v8649_v63  ;;  %v8919_v35 = vadd.f32 %v8498_v1, %v2235_v25  ;;  %v8922_v27 = vadd.f32 %v8573_v42, %v2212_v52  ;;  %v13882_v1 = vld [vmem:[#allocation389_spill] sm:$0xff] }
 0x247   : > { %v8879_v20 = vpop.permute.xlu1 %2853  ;;  %v8926_v7 = vadd.f32 %v8688_v15, %v8746_v50  ;;  %v1162_v17 = vmul.f32 %v13738_v21, %v8267_v13  ;;  %v8934_v52 = vadd.f32 %v1946_v62, %v13882_v1  ;;  %v8939_v50 = vadd.f32 %v8688_v15, %v8754_v47  ;;  %v13891_v1 = vld [vmem:[#allocation153_spill] sm:$0xff] }
 0x248   : > { %13870 = vst [vmem:[#allocation304_spill] sm:$0xff] %v8879_v20  ;;  %2793 = vperm.xlu1 %4672, %v2535_v36   ;;  %v3352_v12 = vadd.f32 %v8879_v20, %v2456_v28  ;;  %v3351_v49 = vadd.f32 %v8879_v20, %v2455_v33  ;;  %13874 = vst [vmem:[#allocation227_spill] sm:$0xff] %v8897_v14  ;;  %v1972_v28 = vmul.f32 %v13684_v9, %v13876_v39  ;;  %v13910_v14 = vld [vmem:[#allocation135_spill] sm:$0xff] }
 0x249   : > { %13878 = vst [vmem:[#allocation405_spill] sm:$0xff] %v8919_v35  ;;  %13879 = vst [vmem:[#allocation406_spill] sm:$0xff] %v8922_v27  ;;  %v13892_v27 = vld [vmem:[#allocation32_spill] sm:$0xff] }
 0x24a   : > { %v3864_v33 = vmax.f32 %v3352_v12, 0.0  ;;  %v3863_v36 = vmax.f32 %v3351_v49, 0.0  ;;  %v3856_v49 = vmax.f32 %v3344_v60, 0.0  ;;  %13880 = vst [vmem:[#allocation407_spill] sm:$0xff] %v8926_v7  ;;  %v2484_v61 = vadd.f32 %v1972_v28, %v1163_v32  ;;  %v13881_v60 = vld [vmem:[#allocation133_spill] sm:$0xff]  ;;  %v13885_v32 = vld [vmem:[#allocation391_spill] sm:$0xff] }
 0x24b   : > { %13884 = vst [vmem:[#allocation133_spill] sm:$0xff] %v8939_v50  ;;  %v8942_v28 = vadd.f32 %v1945_v6, %v13885_v32  ;;  %v1692_v35 = vmul.f32 %v13684_v9, %v13892_v27 }
 0x24c   : > { %v8915_v12 = vpop.permute.xlu1 %1395  ;;  %4014 = vmatprep.subr.mxu1 %v3864_v33  ;;  %v2176_v33 = vadd.f32 %v1664_v30, %v13881_v60  ;;  %v1971_v30 = vmul.f32 %v13685_v43, %v13876_v39  ;;  %v8960_v32 = vadd.f32 %v8496_v18, %v2484_v61 }
 0x24d   : > { %13877 = vst [vmem:[#allocation146_spill] sm:$0xff] %v8915_v12  ;;  %4015 = vmatpush2.msra.mxu1 %v3863_v36  ;;  %v2175_v36 = vadd.f32 %v1663_v3, %v13883_v34  ;;  %v8952_v3 = vpop.permute.xlu0 %2678  ;;  %v1937_v34 = vmul.f32 %v13275_v26, %v8723_v29 }
 0x24e   : > { %4016 = vmatprep.subr.mxu1 %v3856_v49  ;;  %v1938_v49 = vmul.f32 %v13274_v24, %v8723_v29  ;;  %13887 = vst [vmem:[#allocation389_spill] sm:$0xff] %v8952_v3  ;;  %13889 = vst [vmem:[#allocation391_spill] sm:$0xff] %v8960_v32  ;;  %v2483_v25 = vadd.f32 %v1971_v30, %v1162_v17  ;;  %v3072_v13 = vadd.f32 %v8952_v3, %v2176_v33  ;;  %v14049_v29 = vld [vmem:[#allocation275_spill] sm:$0xff] }
 0x24f   : > { %4017 = vmatpush2.msra.mxu1 %v3855_v56  ;;  %v13886_v56 = vld [vmem:[#allocation231_spill] sm:$0xff]  ;;  %v3071_v6 = vadd.f32 %v8952_v3, %v2175_v36  ;;  %v1691_v17 = vmul.f32 %v13685_v43, %v13892_v27  ;;  %v2449_v48 = vadd.f32 %v1937_v34, %v13895_v22  ;;  %v1699_v22 = vmul.f32 %v13685_v43, %v8424_v0 }
 0x250   : > { %v883_v62 = vmul.f32 %v13725_v40, %v13886_v56  ;;  %v882_v61 = vmul.f32 %v13738_v21, %v13886_v56  ;;  %v2450_v44 = vadd.f32 %v1938_v49, %v13893_v16  ;;  %v8982_v36 = vadd.f32 %v8496_v18, %v2483_v25  ;;  %v13897_v56 = vld [vmem:[#allocation209_spill] sm:$0xff] }
 0x251   : > { %v8954_v47 = vpop.permute.xlu1 %2683  ;;  %v8990_v27 = vmul.f32 %v13725_v40, %v13897_v56  ;;  %v3584_v16 = vmax.f32 %v3072_v13, 0.0  ;;  %v3583_v25 = vmax.f32 %v3071_v6, 0.0  ;;  %v1666_v34 = vmul.f32 %v13274_v24, %v8807_v8 }
 0x252   : > { %13888 = vst [vmem:[#allocation134_spill] sm:$0xff] %v8954_v47  ;;  %v3080_v60 = vadd.f32 %v8954_v47, %v13890_v10  ;;  %v3079_v39 = vadd.f32 %v8954_v47, %v13891_v1  ;;  %v13894_v1 = vld [vmem:[#allocation228_spill] sm:$0xff]  ;;  %13896 = vst [vmem:[#allocation152_spill] sm:$0xff] %v8982_v36  ;;  %v9003_v18 = vadd.f32 %v1691_v17, %v882_v61 }
 0x253   : > { %v8978_v33 = vmul.f32 %v13725_v40, %v13894_v1  ;;  %v8986_v19 = vmul.f32 %v13738_v21, %v13894_v1  ;;  %v1665_v1 = vmul.f32 %v13275_v26, %v8807_v8  ;;  %v1920_v13 = vmul.f32 %v5178_v54, %v8915_v12  ;;  %v13911_v36 = vld [vmem:[#allocation136_spill] sm:$0xff] }
 0x254   : > { %v3592_v30 = vmax.f32 %v3080_v60, 0.0  ;;  %v3591_v10 = vmax.f32 %v3079_v39, 0.0  ;;  %v8997_v60 = vadd.f32 %v1692_v35, %v883_v62  ;;  %v13901_v35 = vld [vmem:[#allocation174_spill] sm:$0xff]  ;;  %v9016_v6 = vadd.f32 %v8877_v59, %v2450_v44 }
 0x255   : > { %v9013_v62 = vadd.f32 %v8767_v57, %v13901_v35  ;;  %v1919_v61 = vmul.f32 %v5180_v55, %v8915_v12  ;;  %v9021_v17 = vadd.f32 %v8877_v59, %v2449_v48  ;;  %v1928_v35 = vmul.f32 %v5178_v54, %v8842_v51  ;;  %v13954_v59 = vld [vmem:[#allocation171_spill] sm:$0xff] }
 0x256   : > { %v8992_v39 = vpop.permute.xlu1 %1259  ;;  %3947 = vmatprep.subr.mxu0 %v3592_v30  ;;  %v13899_v30 = vld [vmem:[#allocation173_spill] sm:$0xff]  ;;  %v1927_v44 = vmul.f32 %v5180_v55, %v8842_v51  ;;  %v9037_v48 = vmul.f32 %v13738_v21, %v13897_v56  ;;  %v2177_v50 = vadd.f32 %v1665_v1, %v13911_v36  ;;  %v2432_v41 = vadd.f32 %v1920_v13, %v13914_v23  ;;  %v13915_v56 = vld [vmem:[#allocation296_spill] sm:$0xff] }
 0x257   : > { %13898 = vst [vmem:[#allocation153_spill] sm:$0xff] %v8992_v39  ;;  %3948 = vmatpush2.msra.mxu0 %v3591_v10  ;;  %v9009_v49 = vadd.f32 %v8767_v57, %v13899_v30  ;;  %13902 = vst [vmem:[#allocation306_spill] sm:$0xff] %v9013_v62  ;;  %v2178_v10 = vadd.f32 %v1666_v34, %v13910_v14  ;;  %v2431_v38 = vadd.f32 %v1919_v61, %v13915_v56  ;;  %v13916_v34 = vld [vmem:[#allocation86_spill] sm:$0xff]  ;;  %v9064_v56 = vpop.permute.xlu0 %2838 }
 0x258   : > { %3949 = vmatprep.subr.mxu0 %v3584_v16  ;;  %13903 = vst [vmem:[#allocation173_spill] sm:$0xff] %v9016_v6  ;;  %13904 = vst [vmem:[#allocation174_spill] sm:$0xff] %v9021_v17  ;;  %v13905_v16 = vld [vmem:[#allocation38_spill] sm:$0xff]  ;;  %v1675_v36 = vmul.f32 %v13685_v43, %v13913_v2  ;;  %v2440_v37 = vadd.f32 %v1928_v35, %v13916_v34  ;;  %v2439_v23 = vadd.f32 %v1927_v44, %v13917_v31  ;;  %v13926_v31 = vld [vmem:[#allocation195_spill] sm:$0xff] }
 0x259   : > { %13900 = vst [vmem:[#allocation305_spill] sm:$0xff] %v9009_v49  ;;  %3950 = vmatpush2.msra.mxu0 %v3583_v25  ;;  %v9026_v30 = vmul.f32 %v13738_v21, %v13905_v16  ;;  %v13908_v25 = vld [vmem:[#allocation264_spill] sm:$0xff]  ;;  %v13912_v16 = vld [vmem:[#allocation214_spill] sm:$0xff]  ;;  %13921 = vst [vmem:[#allocation295_spill] sm:$0xff] %v9064_v56  ;;  %v9069_v14 = vadd.f32 %v8952_v3, %v2178_v10  ;;  %v9072_v58 = vadd.f32 %v8952_v3, %v2177_v50 }
 0x25a   : > { %v9028_v0 = vpop.permute.xlu1 %1391  ;;  %v2211_v32 = vadd.f32 %v1699_v22, %v13908_v25  ;;  %13909 = vst [vmem:[#allocation264_spill] sm:$0xff] %v9037_v48  ;;  %v867_v7 = vmul.f32 %v13725_v40, %v13912_v16  ;;  %v866_v1 = vmul.f32 %v13738_v21, %v13912_v16  ;;  %v13919_v22 = vld [vmem:[#allocation36_spill] sm:$0xff]  ;;  %v3328_v2 = vadd.f32 %v9064_v56, %v2432_v41  ;;  %v13984_v3 = vld [vmem:[#allocation130_spill] sm:$0xff] }
 0x25b   : > { %13906 = vst [vmem:[#allocation408_spill] sm:$0xff] %v9026_v30  ;;  %13907 = vst [vmem:[#allocation409_spill] sm:$0xff] %v9028_v0  ;;  %v9062_v25 = vmul.f32 %v13725_v40, %v13919_v22  ;;  %v1930_v16 = vmul.f32 %v13274_v24, %v8842_v51  ;;  %v3327_v10 = vadd.f32 %v9064_v56, %v2431_v38  ;;  %v14052_v30 = vld [vmem:[#allocation363_spill] sm:$0xff] }
 0x25c   : > { %v9058_v13 = vadd.f32 %v8573_v42, %v2211_v32  ;;  %13923 = vst [vmem:[#allocation86_spill] sm:$0xff] %v9069_v14  ;;  %13924 = vst [vmem:[#allocation384_spill] sm:$0xff] %v9072_v58  ;;  %v9074_v35 = vadd.f32 %v1676_v4, %v867_v7  ;;  %v9078_v32 = vmul.f32 %v13725_v40, %v13926_v31  ;;  %v13932_v14 = vld [vmem:[#allocation17_spill] sm:$0xff] }
 0x25d   : > { %13920 = vst [vmem:[#allocation136_spill] sm:$0xff] %v9062_v25  ;;  %v1929_v50 = vmul.f32 %v13275_v26, %v8842_v51  ;;  %v1964_v4 = vmul.f32 %v13684_v9, %v8463_v5  ;;  %v9090_v7 = vadd.f32 %v1675_v36, %v866_v1  ;;  %v1963_v6 = vmul.f32 %v13685_v43, %v8463_v5  ;;  %v13949_v58 = vld [vmem:[#allocation37_spill] sm:$0xff] }
 0x25e   : > { %13918 = vst [vmem:[#allocation135_spill] sm:$0xff] %v9058_v13  ;;  %13925 = vst [vmem:[#allocation410_spill] sm:$0xff] %v9074_v35  ;;  %v9102_v62 = vmul.f32 %v13738_v21, %v13919_v22  ;;  %v3840_v36 = vmax.f32 %v3328_v2, 0.0  ;;  %v1922_v13 = vmul.f32 %v13274_v24, %v8915_v12  ;;  %v3839_v38 = vmax.f32 %v3327_v10, 0.0  ;;  %v13936_v10 = vld [vmem:[#allocation33_spill] sm:$0xff]  ;;  %v14015_v35 = vld [vmem:[#allocation346_spill] sm:$0xff] }
 0x25f   : > { %v9066_v61 = vpop.permute.xlu1 %2843  ;;  %13927 = vst [vmem:[#allocation411_spill] sm:$0xff] %v9078_v32  ;;  %13928 = vst [vmem:[#allocation412_spill] sm:$0xff] %v9090_v7  ;;  %v9113_v5 = vadd.f32 %v1929_v50, %v13932_v14  ;;  %v1921_v22 = vmul.f32 %v13275_v26, %v8915_v12  ;;  %v9118_v49 = vadd.f32 %v1964_v4, %v8978_v33  ;;  %v13938_v50 = vld [vmem:[#allocation129_spill] sm:$0xff]  ;;  %v13986_v32 = vld [vmem:[#allocation35_spill] sm:$0xff] }
 0x260   : > { %13922 = vst [vmem:[#allocation296_spill] sm:$0xff] %v9066_v61  ;;  %v3336_v44 = vadd.f32 %v9066_v61, %v2440_v37  ;;  %v3335_v34 = vadd.f32 %v9066_v61, %v2439_v23  ;;  %v1648_v37 = vmul.f32 %v5178_v54, %v8992_v39  ;;  %v1647_v23 = vmul.f32 %v5180_v55, %v8992_v39  ;;  %v13992_v7 = vld [vmem:[#allocation132_spill] sm:$0xff] }
 0x261   : > { %13929 = vst [vmem:[#allocation413_spill] sm:$0xff] %v9102_v62  ;;  %v9131_v14 = vmul.f32 %v13725_v40, %v13936_v10  ;;  %v9136_v33 = vadd.f32 %v8879_v20, %v8942_v28  ;;  %v9139_v4 = vadd.f32 %v1963_v6, %v8986_v19  ;;  %v13948_v6 = vld [vmem:[#allocation300_spill] sm:$0xff]  ;;  %v13985_v62 = vld [vmem:[#allocation131_spill] sm:$0xff] }
 0x262   : > { %v3848_v42 = vmax.f32 %v3336_v44, 0.0  ;;  %v3847_v17 = vmax.f32 %v3335_v34, 0.0  ;;  %v13931_v34 = vld [vmem:[#allocation385_spill] sm:$0xff]  ;;  %v13943_v44 = vld [vmem:[#allocation199_spill] sm:$0xff] }
 0x263   : > { %v9108_v41 = vadd.f32 %v1930_v16, %v13931_v34  ;;  %v9123_v16 = vadd.f32 %v8879_v20, %v8934_v52  ;;  %v2159_v34 = vadd.f32 %v1647_v23, %v13938_v50  ;;  %13939 = vst [vmem:[#allocation129_spill] sm:$0xff] %v9136_v33  ;;  %v13940_v52 = vld [vmem:[#allocation186_spill] sm:$0xff]  ;;  %v9156_v23 = vpop.permute.xlu0 %2668  ;;  %v2433_v50 = vadd.f32 %v1921_v22, %v13948_v6 }
 0x264   : > { %v9104_v1 = vpop.permute.xlu1 %1387  ;;  %4018 = vmatprep.subr.mxu1 %v3848_v42  ;;  %v13933_v42 = vld [vmem:[#allocation128_spill] sm:$0xff]  ;;  %v9154_v28 = vmul.f32 %v13738_v21, %v13940_v52  ;;  %13946 = vst [vmem:[#allocation417_spill] sm:$0xff] %v9156_v23  ;;  %v9199_v33 = vmul.f32 %v13738_v21, %v13954_v59 }
 0x265   : > { %13930 = vst [vmem:[#allocation414_spill] sm:$0xff] %v9104_v1  ;;  %4019 = vmatpush2.msra.mxu1 %v3847_v17  ;;  %v2160_v2 = vadd.f32 %v1648_v37, %v13933_v42  ;;  %13934 = vst [vmem:[#allocation385_spill] sm:$0xff] %v9123_v16  ;;  %v9127_v17 = vmul.f32 %v13738_v21, %v13926_v31  ;;  %v9143_v37 = vmul.f32 %v13725_v40, %v13940_v52  ;;  %v13951_v52 = vld [vmem:[#allocation155_spill] sm:$0xff] }
 0x266   : > { %4020 = vmatprep.subr.mxu1 %v3840_v36  ;;  %13937 = vst [vmem:[#allocation128_spill] sm:$0xff] %v9131_v14  ;;  %v13942_v36 = vld [vmem:[#allocation299_spill] sm:$0xff]  ;;  %v851_v31 = vmul.f32 %v13725_v40, %v13943_v44  ;;  %13945 = vst [vmem:[#allocation416_spill] sm:$0xff] %v9154_v28  ;;  %v3055_v22 = vadd.f32 %v9156_v23, %v2159_v34  ;;  %v9191_v34 = vadd.f32 %v9064_v56, %v2433_v50 }
 0x267   : > { %13935 = vst [vmem:[#allocation17_spill] sm:$0xff] %v9127_v17  ;;  %4021 = vmatpush2.msra.mxu1 %v3839_v38  ;;  %13941 = vst [vmem:[#allocation415_spill] sm:$0xff] %v9143_v37  ;;  %v2434_v42 = vadd.f32 %v1922_v13, %v13942_v36  ;;  %v9150_v38 = vmul.f32 %v13738_v21, %v13936_v10  ;;  %v1660_v13 = vmul.f32 %v13684_v9, %v13949_v58  ;;  %v13952_v17 = vld [vmem:[#allocation31_spill] sm:$0xff] }
 0x268   : > { %v850_v36 = vmul.f32 %v13738_v21, %v13943_v44  ;;  %v1659_v10 = vmul.f32 %v13685_v43, %v13949_v58  ;;  %v3056_v14 = vadd.f32 %v9156_v23, %v2160_v2  ;;  %v9177_v44 = vmul.f32 %v13725_v40, %v13952_v17  ;;  %13958 = vst [vmem:[#allocation420_spill] sm:$0xff] %v9191_v34 }
 0x269   : > { %13944 = vst [vmem:[#allocation299_spill] sm:$0xff] %v9150_v38  ;;  %v9158_v19 = vpop.permute.xlu1 %2673  ;;  %v13950_v38 = vld [vmem:[#allocation154_spill] sm:$0xff]  ;;  %v9181_v58 = vmul.f32 %v13725_v40, %v13954_v59  ;;  %v9188_v2 = vmul.f32 %v13738_v21, %v13952_v17  ;;  %v9193_v6 = vadd.f32 %v1660_v13, %v851_v31  ;;  %13961 = vst [vmem:[#allocation423_spill] sm:$0xff] %v9199_v33  ;;  %v13965_v17 = vld [vmem:[#allocation160_spill] sm:$0xff] }
 0x26a   : > { %13947 = vst [vmem:[#allocation418_spill] sm:$0xff] %v9158_v19  ;;  %v3064_v37 = vadd.f32 %v9158_v19, %v13950_v38  ;;  %v3063_v28 = vadd.f32 %v9158_v19, %v13951_v52  ;;  %13953 = vst [vmem:[#allocation300_spill] sm:$0xff] %v9177_v44  ;;  %v9184_v52 = vadd.f32 %v9064_v56, %v2434_v42  ;;  %v3568_v42 = vmax.f32 %v3056_v14, 0.0  ;;  %v13968_v13 = vld [vmem:[#allocation44_spill] sm:$0xff]  ;;  %v13980_v44 = vld [vmem:[#allocation286_spill] sm:$0xff] }
 0x26b   : > { %13955 = vst [vmem:[#allocation154_spill] sm:$0xff] %v9181_v58  ;;  %13957 = vst [vmem:[#allocation419_spill] sm:$0xff] %v9188_v2  ;;  %v9195_v12 = vadd.f32 %v1659_v10, %v850_v36  ;;  %v9209_v50 = vmul.f32 %v13725_v40, %v13965_v17  ;;  %v3567_v10 = vmax.f32 %v3055_v22, 0.0  ;;  %v9217_v36 = vadd.f32 %v8954_v47, %v13968_v13  ;;  %v13975_v13 = vld [vmem:[#allocation20_spill] sm:$0xff] }
 0x26c   : > { %v3576_v38 = vmax.f32 %v3064_v37, 0.0  ;;  %v3575_v51 = vmax.f32 %v3063_v28, 0.0  ;;  %13956 = vst [vmem:[#allocation155_spill] sm:$0xff] %v9184_v52  ;;  %13959 = vst [vmem:[#allocation421_spill] sm:$0xff] %v9193_v6  ;;  %v13963_v28 = vld [vmem:[#allocation29_spill] sm:$0xff]  ;;  %v9221_v14 = vmul.f32 %v13738_v21, %v13965_v17  ;;  %v1903_v17 = vmul.f32 %v5180_v55, %v9104_v1  ;;  %v13978_v52 = vld [vmem:[#allocation187_spill] sm:$0xff] }
 0x26d   : > { %13960 = vst [vmem:[#allocation422_spill] sm:$0xff] %v9195_v12  ;;  %v9205_v16 = vmul.f32 %v13725_v40, %v13963_v28  ;;  %13966 = vst [vmem:[#allocation426_spill] sm:$0xff] %v9209_v50  ;;  %v9213_v31 = vmul.f32 %v13738_v21, %v13963_v28  ;;  %v1904_v50 = vmul.f32 %v5178_v54, %v9104_v1  ;;  %v13973_v28 = vld [vmem:[#allocation45_spill] sm:$0xff] }
 0x26e   : > { %v9201_v37 = vpop.permute.xlu1 %1251  ;;  %3951 = vmatprep.subr.mxu0 %v3576_v38  ;;  %13969 = vst [vmem:[#allocation44_spill] sm:$0xff] %v9217_v36  ;;  %13970 = vst [vmem:[#allocation428_spill] sm:$0xff] %v9221_v14  ;;  %v13971_v38 = vld [vmem:[#allocation27_spill] sm:$0xff]  ;;  %v1912_v22 = vmul.f32 %v5178_v54, %v9028_v0  ;;  %v1684_v14 = vmul.f32 %v13684_v9, %v8616_v53  ;;  %v834_v34 = vmul.f32 %v13738_v21, %v13978_v52  ;;  %v13989_v12 = vld [vmem:[#allocation97_spill] sm:$0xff] }
 0x26f   : > { %13962 = vst [vmem:[#allocation424_spill] sm:$0xff] %v9201_v37  ;;  %13964 = vst [vmem:[#allocation425_spill] sm:$0xff] %v9205_v16  ;;  %3952 = vmatpush2.msra.mxu0 %v3575_v51  ;;  %v9225_v59 = vmul.f32 %v13725_v40, %v13971_v38  ;;  %v9231_v51 = vadd.f32 %v8954_v47, %v13973_v28  ;;  %v13979_v16 = vld [vmem:[#allocation39_spill] sm:$0xff]  ;;  %v2416_v56 = vadd.f32 %v1904_v50, %v13980_v44 }
 0x270   : > { %13967 = vst [vmem:[#allocation427_spill] sm:$0xff] %v9213_v31  ;;  %3953 = vmatprep.subr.mxu0 %v3568_v42  ;;  %v9236_v31 = vmul.f32 %v13725_v40, %v13975_v13  ;;  %v1650_v42 = vmul.f32 %v13274_v24, %v8992_v39  ;;  %v1644_v33 = vmul.f32 %v13684_v9, %v13979_v16  ;;  %v13983_v36 = vld [vmem:[#allocation287_spill] sm:$0xff]  ;;  %v13987_v44 = vsub.s32 7, %v13986_v32 }
 0x271   : > { %13972 = vst [vmem:[#allocation429_spill] sm:$0xff] %v9225_v59  ;;  %13974 = vst [vmem:[#allocation45_spill] sm:$0xff] %v9231_v51  ;;  %3954 = vmatpush2.msra.mxu0 %v3567_v10  ;;  %v1649_v59 = vmul.f32 %v13275_v26, %v8992_v39  ;;  %v1911_v10 = vmul.f32 %v5180_v55, %v9028_v0  ;;  %v1643_v58 = vmul.f32 %v13685_v43, %v13979_v16  ;;  %v4702_v16 = vld [vmem:[%s5149_s30] ss:$2 sm:$0xff] }
 0x272   : > { %13976 = vst [vmem:[#allocation430_spill] sm:$0xff] %v9236_v31  ;;  %v9245_v28 = vpop.permute.xlu1 %1383  ;;  %v835_v31 = vmul.f32 %v13725_v40, %v13978_v52  ;;  %v9266_v6 = vmul.f32 %v13738_v21, %v13971_v38  ;;  %v9270_v2 = vmul.f32 %v13738_v21, %v13975_v13  ;;  %v2415_v39 = vadd.f32 %v1903_v17, %v13983_v36  ;;  %v13990_v38 = vld [vmem:[#allocation354_spill] sm:$0xff]  ;;  %v9288_v17 = vpop.permute.xlu0 %2828 }
 0x273   : > { %13977 = vst [vmem:[#allocation431_spill] sm:$0xff] %v9245_v28  ;;  %v2162_v52 = vadd.f32 %v1650_v42, %v13984_v3  ;;  %v2161_v20 = vadd.f32 %v1649_v59, %v13985_v62  ;;  %v9278_v50 = vrot.slane %v4702_v16, %v13987_v44  ;;  %v2424_v51 = vadd.f32 %v1912_v22, %v13989_v12  ;;  %v13996_v59 = vld [vmem:[#allocation267_spill] sm:$0xff]  ;;  %v13998_v42 = vld [vmem:[#allocation25_spill] sm:$0xff] }
 0x274   : > { %13981 = vst [vmem:[#allocation286_spill] sm:$0xff] %v9266_v6  ;;  %13982 = vst [vmem:[#allocation432_spill] sm:$0xff] %v9270_v2  ;;  %v2423_v6 = vadd.f32 %v1911_v10, %v13990_v38  ;;  %v9282_v25 = vadd.f32 %v1644_v33, %v835_v31  ;;  %v9286_v13 = vmul.f32 %v13725_v40, %v13992_v7  ;;  %v4703_v12 = vld [vmem:[%s5149_s30 + $0x1] ss:$2 sm:$0xff]  ;;  %v13999_v33 = vsub.s32 7, %v13986_v32 }
 0x275   : > { %13988 = vst [vmem:[#allocation287_spill] sm:$0xff] %v9278_v50  ;;  %13994 = vst [vmem:[#allocation35_spill] sm:$0xff] %v9288_v17  ;;  %v2196_v62 = vadd.f32 %v1684_v14, %v13996_v59  ;;  %v9293_v36 = vadd.f32 %v1643_v58, %v834_v34  ;;  %v9297_v44 = vmul.f32 %v9278_v50, %v13998_v42 }
 0x276   : > { %13991 = vst [vmem:[#allocation130_spill] sm:$0xff] %v9282_v25  ;;  %13993 = vst [vmem:[#allocation131_spill] sm:$0xff] %v9286_v13  ;;  %v9302_v31 = vrot.slane %v4703_v12, %v13999_v33  ;;  %v3312_v10 = vadd.f32 %v9288_v17, %v2416_v56  ;;  %v9309_v14 = vmul.f32 %v13738_v21, %v13992_v7  ;;  %v14006_v7 = vld [vmem:[#allocation176_spill] sm:$0xff] }
 0x277   : > { %v9290_v3 = vpop.permute.xlu1 %2833  ;;  %13997 = vst [vmem:[#allocation354_spill] sm:$0xff] %v9293_v36  ;;  %v3311_v58 = vadd.f32 %v9288_v17, %v2415_v39  ;;  %v9313_v34 = vadd.f32 %v9156_v23, %v2162_v52  ;;  %v9316_v59 = vadd.f32 %v9156_v23, %v2161_v20  ;;  %v1914_v33 = vmul.f32 %v13274_v24, %v9028_v0 }
 0x278   : > { %13995 = vst [vmem:[#allocation97_spill] sm:$0xff] %v9290_v3  ;;  %14000 = vst [vmem:[#allocation267_spill] sm:$0xff] %v9302_v31  ;;  %v3320_v38 = vadd.f32 %v9290_v3, %v2424_v51  ;;  %v3319_v22 = vadd.f32 %v9290_v3, %v2423_v6  ;;  %v1632_v56 = vmul.f32 %v5178_v54, %v9201_v37 }
 0x279   : > { %14001 = vst [vmem:[#allocation25_spill] sm:$0xff] %v9309_v14  ;;  %14002 = vst [vmem:[#allocation433_spill] sm:$0xff] %v9313_v34  ;;  %v1913_v6 = vmul.f32 %v13275_v26, %v9028_v0  ;;  %v1631_v39 = vmul.f32 %v5180_v55, %v9201_v37  ;;  %v9328_v52 = vadd.f32 %v8688_v15, %v9118_v49  ;;  %v3824_v14 = vmax.f32 %v3312_v10, 0.0  ;;  %v14010_v49 = vld [vmem:[#allocation49_spill] sm:$0xff]  ;;  %v14023_v34 = vld [vmem:[#allocation156_spill] sm:$0xff] }
 0x27a   : > { %14003 = vst [vmem:[#allocation434_spill] sm:$0xff] %v9316_v59  ;;  %v3832_v51 = vmax.f32 %v3320_v38, 0.0  ;;  %v3831_v13 = vmax.f32 %v3319_v22, 0.0  ;;  %v9331_v20 = vadd.f32 %v8765_v11, %v2196_v62  ;;  %v819_v38 = vmul.f32 %v13725_v40, %v14006_v7  ;;  %v14027_v59 = vld [vmem:[#allocation289_spill] sm:$0xff] }
 0x27b   : > { %14004 = vst [vmem:[#allocation435_spill] sm:$0xff] %v9328_v52  ;;  %v9339_v2 = vadd.f32 %v9066_v61, %v9108_v41  ;;  %v9343_v36 = vadd.f32 %v9066_v61, %v9113_v5  ;;  %v1628_v23 = vmul.f32 %v13684_v9, %v14010_v49  ;;  %v3823_v62 = vmax.f32 %v3311_v58, 0.0  ;;  %v14013_v41 = vld [vmem:[#allocation122_spill] sm:$0xff]  ;;  %v14016_v58 = vld [vmem:[#allocation125_spill] sm:$0xff] }
 0x27c   : > { %14005 = vst [vmem:[#allocation436_spill] sm:$0xff] %v9331_v20  ;;  %v9335_v22 = vpop.permute.xlu1 %1379  ;;  %4022 = vmatprep.subr.mxu1 %v3832_v51  ;;  %v1906_v0 = vmul.f32 %v13274_v24, %v9104_v1  ;;  %v14011_v10 = vsub.s32 6, %v13986_v32  ;;  %v2144_v11 = vadd.f32 %v1632_v56, %v14013_v41  ;;  %v14014_v61 = vld [vmem:[#allocation98_spill] sm:$0xff]  ;;  %v2143_v25 = vadd.f32 %v1631_v39, %v14016_v58  ;;  %v14021_v39 = vld [vmem:[#allocation288_spill] sm:$0xff] }
 0x27d   : > { %14007 = vst [vmem:[#allocation437_spill] sm:$0xff] %v9335_v22  ;;  %14008 = vst [vmem:[#allocation438_spill] sm:$0xff] %v9339_v2  ;;  %4023 = vmatpush2.msra.mxu1 %v3831_v13  ;;  %v9357_v47 = vadd.f32 %v1914_v33, %v14014_v61  ;;  %v9360_v13 = vadd.f32 %v1913_v6, %v14015_v35  ;;  %v1905_v61 = vmul.f32 %v13275_v26, %v9104_v1  ;;  %v9375_v33 = vpop.permute.xlu0 %2658  ;;  %v14022_v58 = vld [vmem:[#allocation162_spill] sm:$0xff]  ;;  %v14025_v56 = vld [vmem:[#allocation64_spill] sm:$0xff] }
 0x27e   : > { %14009 = vst [vmem:[#allocation439_spill] sm:$0xff] %v9343_v36  ;;  %v9352_v51 = vrot.slane %v4702_v16, %v14011_v10  ;;  %4024 = vmatprep.subr.mxu1 %v3824_v14  ;;  %v9366_v16 = vadd.f32 %v8688_v15, %v9139_v4  ;;  %v9373_v35 = vadd.f32 %v1628_v23, %v819_v38  ;;  %14019 = vst [vmem:[#allocation346_spill] sm:$0xff] %v9375_v33  ;;  %v14024_v23 = vld [vmem:[#allocation157_spill] sm:$0xff] }
 0x27f   : > { %4025 = vmatpush2.msra.mxu1 %v3823_v62  ;;  %v2418_v62 = vadd.f32 %v1906_v0, %v14021_v39  ;;  %v818_v4 = vmul.f32 %v13738_v21, %v14006_v7  ;;  %v1627_v41 = vmul.f32 %v13685_v43, %v14010_v49  ;;  %v803_v14 = vmul.f32 %v13725_v40, %v14022_v58  ;;  %v14026_v15 = vld [vmem:[#allocation9_spill] sm:$0xff] }
 0x280   : > { %14012 = vst [vmem:[#allocation440_spill] sm:$0xff] %v9352_v51  ;;  %14017 = vst [vmem:[#allocation122_spill] sm:$0xff] %v9366_v16  ;;  %v3040_v10 = vadd.f32 %v9375_v33, %v2144_v11  ;;  %v1612_v0 = vmul.f32 %v13684_v9, %v14025_v56  ;;  %v3039_v39 = vadd.f32 %v9375_v33, %v2143_v25  ;;  %v14032_v7 = vld [vmem:[#allocation137_spill] sm:$0xff] }
 0x281   : > { %14018 = vst [vmem:[#allocation98_spill] sm:$0xff] %v9373_v35  ;;  %v9377_v6 = vpop.permute.xlu1 %2663  ;;  %v1590_v49 = vmul.f32 %v9302_v31, %v14026_v15  ;;  %v780_v20 = vmul.f32 %v9352_v51, %v13998_v42  ;;  %v2417_v36 = vadd.f32 %v1905_v61, %v14027_v59  ;;  %v9405_v2 = vadd.f32 %v9288_v17, %v2418_v62  ;;  %v14033_v35 = vld [vmem:[#allocation230_spill] sm:$0xff] }
 0x282   : > { %14020 = vst [vmem:[#allocation125_spill] sm:$0xff] %v9377_v6  ;;  %v3048_v5 = vadd.f32 %v9377_v6, %v14023_v34  ;;  %v3047_v38 = vadd.f32 %v9377_v6, %v14024_v23  ;;  %v14028_v23 = vsub.s32 6, %v13986_v32  ;;  %v9407_v25 = vadd.f32 %v1627_v41, %v818_v4 }
 0x283   : > { %14030 = vst [vmem:[#allocation156_spill] sm:$0xff] %v9405_v2  ;;  %v9411_v16 = vmul.f32 %v9278_v50, %v14032_v7  ;;  %v1582_v42 = vmul.f32 %v9302_v31, %v14033_v35  ;;  %v3552_v59 = vmax.f32 %v3040_v10, 0.0  ;;  %v9417_v61 = vadd.f32 %v1612_v0, %v803_v14  ;;  %v14036_v10 = vld [vmem:[#allocation7_spill] sm:$0xff]  ;;  %v14046_v2 = vld [vmem:[#allocation72_spill] sm:$0xff] }
 0x284   : > { %v3560_v52 = vmax.f32 %v3048_v5, 0.0  ;;  %v3559_v34 = vmax.f32 %v3047_v38, 0.0  ;;  %v9402_v11 = vrot.slane %v4703_v12, %v14028_v23  ;;  %14031 = vst [vmem:[#allocation157_spill] sm:$0xff] %v9407_v25  ;;  %v802_v32 = vmul.f32 %v13738_v21, %v14022_v58 }
 0x285   : > { %14035 = vst [vmem:[#allocation289_spill] sm:$0xff] %v9417_v61  ;;  %v1611_v12 = vmul.f32 %v13685_v43, %v14025_v56  ;;  %v3551_v62 = vmax.f32 %v3039_v39, 0.0  ;;  %v1634_v4 = vmul.f32 %v13274_v24, %v9201_v37  ;;  %v9426_v41 = vadd.f32 %v1590_v49, %v9297_v44  ;;  %v14039_v49 = vld [vmem:[#allocation181_spill] sm:$0xff] }
 0x286   : > { %14029 = vst [vmem:[#allocation288_spill] sm:$0xff] %v9402_v11  ;;  %v9415_v5 = vpop.permute.xlu1 %1243  ;;  %3955 = vmatprep.subr.mxu0 %v3560_v52  ;;  %v1589_v52 = vmul.f32 %v9402_v11, %v14026_v15  ;;  %v1888_v14 = vmul.f32 %v5178_v54, %v9335_v22  ;;  %v9434_v38 = vadd.f32 %v9158_v19, %v14036_v10 }
 0x287   : > { %14034 = vst [vmem:[#allocation9_spill] sm:$0xff] %v9415_v5  ;;  %3956 = vmatpush2.msra.mxu0 %v3559_v34  ;;  %v1633_v0 = vmul.f32 %v13275_v26, %v9201_v37  ;;  %v9439_v39 = vadd.f32 %v9288_v17, %v2417_v36  ;;  %v1887_v44 = vmul.f32 %v5180_v55, %v9335_v22  ;;  %v14045_v34 = vld [vmem:[#allocation126_spill] sm:$0xff]  ;;  %v9485_v37 = vpop.permute.xlu0 %2818 }
 0x288   : > { %3957 = vmatprep.subr.mxu0 %v3552_v59  ;;  %14037 = vst [vmem:[#allocation137_spill] sm:$0xff] %v9434_v38  ;;  %v9445_v15 = vadd.f32 %v9158_v19, %v14039_v49  ;;  %v9450_v23 = vadd.f32 %v8767_v57, %v8997_v60  ;;  %v1896_v36 = vmul.f32 %v5178_v54, %v9245_v28  ;;  %v14044_v49 = vld [vmem:[#allocation150_spill] sm:$0xff] }
 0x289   : > { %14038 = vst [vmem:[#allocation230_spill] sm:$0xff] %v9439_v39  ;;  %3958 = vmatpush2.msra.mxu0 %v3551_v62  ;;  %v1895_v62 = vmul.f32 %v5180_v55, %v9245_v28  ;;  %v9460_v10 = vadd.f32 %v8767_v57, %v9003_v18  ;;  %v787_v56 = vmul.f32 %v13725_v40, %v14044_v49  ;;  %v14047_v17 = vld [vmem:[#allocation274_spill] sm:$0xff]  ;;  %v14048_v18 = vld [vmem:[#allocation127_spill] sm:$0xff] }
 0x28a   : > { %14040 = vst [vmem:[#allocation7_spill] sm:$0xff] %v9445_v15  ;;  %14041 = vst [vmem:[#allocation181_spill] sm:$0xff] %v9450_v23  ;;  %v9452_v59 = vpop.permute.xlu1 %1375  ;;  %v2146_v58 = vadd.f32 %v1634_v4, %v14045_v34  ;;  %v1596_v60 = vmul.f32 %v13684_v9, %v14046_v2  ;;  %v786_v61 = vmul.f32 %v13738_v21, %v14044_v49  ;;  %v14051_v49 = vld [vmem:[#allocation353_spill] sm:$0xff]  ;;  %v14065_v23 = vld [vmem:[#allocation352_spill] sm:$0xff] }
 0x28b   : > { %14042 = vst [vmem:[#allocation441_spill] sm:$0xff] %v9452_v59  ;;  %14043 = vst [vmem:[#allocation442_spill] sm:$0xff] %v9460_v10  ;;  %v1595_v25 = vmul.f32 %v13685_v43, %v14046_v2  ;;  %v2400_v1 = vadd.f32 %v1888_v14, %v14047_v17  ;;  %v2145_v57 = vadd.f32 %v1633_v0, %v14048_v18  ;;  %v14064_v10 = vld [vmem:[#allocation121_spill] sm:$0xff] }
 0x28c   : > { %v2399_v48 = vadd.f32 %v1887_v44, %v14049_v29  ;;  %v9477_v34 = vadd.f32 %v1611_v12, %v802_v32  ;;  %v9479_v8 = vadd.f32 %v1589_v52, %v780_v20  ;;  %v2408_v63 = vadd.f32 %v1896_v36, %v14051_v49  ;;  %14053 = vst [vmem:[#allocation274_spill] sm:$0xff] %v9485_v37  ;;  %v14058_v20 = vld [vmem:[#allocation24_spill] sm:$0xff]  ;;  %v14106_v43 = vld [vmem:[#allocation381_spill] sm:$0xff] }
 0x28d   : > { %v2407_v2 = vadd.f32 %v1895_v62, %v14052_v30  ;;  %v9490_v29 = vadd.f32 %v9375_v33, %v2146_v58  ;;  %v9492_v44 = vadd.f32 %v1596_v60, %v787_v56  ;;  %v9494_v32 = vadd.f32 %v1595_v25, %v786_v61  ;;  %v14060_v25 = vld [vmem:[#allocation11_spill] sm:$0xff] }
 0x28e   : > { %14050 = vst [vmem:[#allocation126_spill] sm:$0xff] %v9477_v34  ;;  %v765_v12 = vmul.f32 %v9278_v50, %v14058_v20  ;;  %v3296_v36 = vadd.f32 %v9485_v37, %v2400_v1  ;;  %v9502_v62 = vadd.f32 %v9375_v33, %v2145_v57  ;;  %v3295_v49 = vadd.f32 %v9485_v37, %v2399_v48  ;;  %v14061_v1 = vld [vmem:[#allocation247_spill] sm:$0xff] }
 0x28f   : > { %v9487_v0 = vpop.permute.xlu1 %2823  ;;  %14055 = vst [vmem:[#allocation275_spill] sm:$0xff] %v9490_v29  ;;  %14056 = vst [vmem:[#allocation353_spill] sm:$0xff] %v9492_v44  ;;  %v1898_v56 = vmul.f32 %v13274_v24, %v9245_v28  ;;  %v1897_v58 = vmul.f32 %v13275_v26, %v9245_v28  ;;  %v1574_v61 = vmul.f32 %v9302_v31, %v14060_v25  ;;  %v14068_v29 = vld [vmem:[#allocation119_spill] sm:$0xff]  ;;  %v14083_v28 = vld [vmem:[#allocation260_spill] sm:$0xff] }
 0x290   : > { %14054 = vst [vmem:[#allocation127_spill] sm:$0xff] %v9487_v0  ;;  %14057 = vst [vmem:[#allocation363_spill] sm:$0xff] %v9494_v32  ;;  %v3304_v30 = vadd.f32 %v9487_v0, %v2408_v63  ;;  %v3303_v52 = vadd.f32 %v9487_v0, %v2407_v2  ;;  %v1616_v2 = vmul.f32 %v5178_v54, %v9415_v5 }
 0x291   : > { %14059 = vst [vmem:[#allocation24_spill] sm:$0xff] %v9502_v62  ;;  %v1846_v57 = vmul.f32 %v9302_v31, %v14061_v1  ;;  %v1615_v48 = vmul.f32 %v5180_v55, %v9415_v5  ;;  %v9518_v18 = vadd.f32 %v1582_v42, %v9411_v16  ;;  %v772_v14 = vmul.f32 %v9352_v51, %v14032_v7  ;;  %v14079_v7 = vld [vmem:[#allocation268_spill] sm:$0xff] }
 0x292   : > { %v3816_v60 = vmax.f32 %v3304_v30, 0.0  ;;  %v3815_v63 = vmax.f32 %v3303_v52, 0.0  ;;  %v1581_v17 = vmul.f32 %v9402_v11, %v14033_v35  ;;  %v3808_v52 = vmax.f32 %v3296_v36, 0.0  ;;  %v14066_v35 = vld [vmem:[#allocation83_spill] sm:$0xff]  ;;  %v14067_v36 = vld [vmem:[#allocation118_spill] sm:$0xff] }
 0x293   : > { %v9528_v19 = vadd.f32 %v9290_v3, %v9357_v47  ;;  %v1037_v16 = vmul.f32 %v9278_v50, %v14064_v10  ;;  %v3807_v42 = vmax.f32 %v3295_v49, 0.0  ;;  %v9535_v39 = vadd.f32 %v1898_v56, %v14065_v23 }
 0x294   : > { %v9524_v30 = vpop.permute.xlu1 %1371  ;;  %4026 = vmatprep.subr.mxu1 %v3816_v60  ;;  %v9538_v32 = vadd.f32 %v1897_v58, %v14066_v35  ;;  %v2128_v60 = vadd.f32 %v1616_v2, %v14067_v36  ;;  %v2086_v47 = vadd.f32 %v1574_v61, %v765_v12  ;;  %v764_v4 = vmul.f32 %v9352_v51, %v14058_v20  ;;  %v9559_v20 = vpop.permute.xlu0 %2648  ;;  %v14080_v58 = vld [vmem:[#allocation276_spill] sm:$0xff] }
 0x295   : > { %14062 = vst [vmem:[#allocation11_spill] sm:$0xff] %v9524_v30  ;;  %14063 = vst [vmem:[#allocation247_spill] sm:$0xff] %v9528_v19  ;;  %4027 = vmatpush2.msra.mxu1 %v3815_v63  ;;  %v2358_v15 = vadd.f32 %v1846_v57, %v1037_v16  ;;  %v2127_v63 = vadd.f32 %v1615_v48, %v14068_v29  ;;  %v1890_v49 = vmul.f32 %v13274_v24, %v9335_v22  ;;  %v14072_v57 = vld [vmem:[#allocation312_spill] sm:$0xff]  ;;  %v14081_v19 = vld [vmem:[#allocation277_spill] sm:$0xff] }
 0x296   : > { %4028 = vmatprep.subr.mxu1 %v3808_v52  ;;  %v1889_v23 = vmul.f32 %v13275_v26, %v9335_v22  ;;  %v1573_v56 = vmul.f32 %v9402_v11, %v14060_v25  ;;  %v9553_v12 = vadd.f32 %v9290_v3, %v9360_v13  ;;  %v9555_v61 = vadd.f32 %v1581_v17, %v772_v14  ;;  %v14074_v52 = vld [vmem:[#allocation294_spill] sm:$0xff]  ;;  %v14076_v13 = vld [vmem:[#allocation124_spill] sm:$0xff] }
 0x297   : > { %4029 = vmatpush2.msra.mxu1 %v3807_v42  ;;  %v1845_v29 = vmul.f32 %v9402_v11, %v14061_v1  ;;  %14070 = vst [vmem:[#allocation352_spill] sm:$0xff] %v9559_v20  ;;  %v9564_v48 = vadd.f32 %v14072_v57, %v2086_v47  ;;  %v9567_v25 = vadd.f32 %v14074_v52, %v2358_v15  ;;  %v14077_v14 = vld [vmem:[#allocation290_spill] sm:$0xff]  ;;  %v14078_v1 = vld [vmem:[#allocation161_spill] sm:$0xff] }
 0x298   : > { %14069 = vst [vmem:[#allocation121_spill] sm:$0xff] %v9553_v12  ;;  %v1036_v16 = vmul.f32 %v9352_v51, %v14064_v10  ;;  %v757_v17 = vmul.f32 %v9278_v50, %v14076_v13  ;;  %v3024_v36 = vadd.f32 %v9559_v20, %v2128_v60  ;;  %v1566_v47 = vmul.f32 %v9302_v31, %v14079_v7 }
 0x299   : > { %v9561_v2 = vpop.permute.xlu1 %2653  ;;  %14073 = vst [vmem:[#allocation118_spill] sm:$0xff] %v9564_v48  ;;  %14075 = vst [vmem:[#allocation119_spill] sm:$0xff] %v9567_v25  ;;  %v3023_v15 = vadd.f32 %v9559_v20, %v2127_v63  ;;  %v2402_v62 = vadd.f32 %v1890_v49, %v14080_v58  ;;  %v2401_v10 = vadd.f32 %v1889_v23, %v14081_v19  ;;  %v14087_v58 = vld [vmem:[#allocation182_spill] sm:$0xff] }
 0x29a   : > { %14071 = vst [vmem:[#allocation83_spill] sm:$0xff] %v9561_v2  ;;  %v3032_v42 = vadd.f32 %v9561_v2, %v14077_v14  ;;  %v3031_v35 = vadd.f32 %v9561_v2, %v14078_v1  ;;  %v2085_v38 = vadd.f32 %v1573_v56, %v764_v4  ;;  %v2357_v14 = vadd.f32 %v1845_v29, %v1036_v16  ;;  %v14098_v1 = vld [vmem:[#allocation367_spill] sm:$0xff]  ;;  %v14100_v25 = vld [vmem:[#allocation262_spill] sm:$0xff] }
 0x29b   : > { %v1838_v63 = vmul.f32 %v9302_v31, %v14083_v28  ;;  %v3536_v19 = vmax.f32 %v3024_v36, 0.0  ;;  %v9596_v49 = vadd.f32 %v1566_v47, %v757_v17  ;;  %v756_v23 = vmul.f32 %v9352_v51, %v14076_v13 }
 0x29c   : > { %v3544_v44 = vmax.f32 %v3032_v42, 0.0  ;;  %v3543_v34 = vmax.f32 %v3031_v35, 0.0  ;;  %v9587_v60 = vadd.f32 %v14072_v57, %v2085_v38  ;;  %v9594_v4 = vadd.f32 %v14074_v52, %v2357_v14  ;;  %v14091_v52 = vld [vmem:[#allocation183_spill] sm:$0xff] }
 0x29d   : > { %14086 = vst [vmem:[#allocation290_spill] sm:$0xff] %v9596_v49  ;;  %v3535_v56 = vmax.f32 %v3023_v15, 0.0  ;;  %v9602_v38 = vadd.f32 %v9377_v6, %v14087_v58  ;;  %v9605_v29 = vadd.f32 %v9485_v37, %v2402_v62  ;;  %v1872_v57 = vmul.f32 %v5178_v54, %v9524_v30  ;;  %v9638_v58 = vpop.permute.xlu0 %2808  ;;  %v14104_v49 = vld [vmem:[#allocation6_spill] sm:$0xff] }
 0x29e   : > { %14082 = vst [vmem:[#allocation312_spill] sm:$0xff] %v9587_v60  ;;  %v9591_v3 = vpop.permute.xlu1 %1235  ;;  %3959 = vmatprep.subr.mxu0 %v3544_v44  ;;  %14085 = vst [vmem:[#allocation124_spill] sm:$0xff] %v9594_v4  ;;  %v9608_v44 = vadd.f32 %v9485_v37, %v2401_v10  ;;  %v9614_v16 = vadd.f32 %v9377_v6, %v14091_v52  ;;  %v1565_v17 = vmul.f32 %v9402_v11, %v14079_v7  ;;  %v14095_v10 = vld [vmem:[#allocation22_spill] sm:$0xff]  ;;  %v14102_v6 = vld [vmem:[#allocation263_spill] sm:$0xff] }
 0x29f   : > { %14084 = vst [vmem:[#allocation294_spill] sm:$0xff] %v9591_v3  ;;  %3960 = vmatpush2.msra.mxu0 %v3543_v34  ;;  %14088 = vst [vmem:[#allocation161_spill] sm:$0xff] %v9602_v38  ;;  %v14093_v34 = vld [vmem:[#allocation315_spill] sm:$0xff]  ;;  %v1871_v62 = vmul.f32 %v5180_v55, %v9524_v30  ;;  %v1618_v42 = vmul.f32 %v13274_v24, %v9415_v5  ;;  %v1617_v35 = vmul.f32 %v13275_v26, %v9415_v5 }
 0x2a0   : > { %14089 = vst [vmem:[#allocation268_spill] sm:$0xff] %v9605_v29  ;;  %14090 = vst [vmem:[#allocation276_spill] sm:$0xff] %v9608_v44  ;;  %3961 = vmatprep.subr.mxu0 %v3536_v19  ;;  %v1029_v13 = vmul.f32 %v9278_v50, %v14093_v34  ;;  %v1028_v36 = vmul.f32 %v9352_v51, %v14093_v34  ;;  %v1880_v15 = vmul.f32 %v5178_v54, %v9452_v59  ;;  %v14096_v19 = vld [vmem:[#allocation13_spill] sm:$0xff]  ;;  %v14105_v29 = vld [vmem:[#allocation240_spill] sm:$0xff] }
 0x2a1   : > { %14092 = vst [vmem:[#allocation277_spill] sm:$0xff] %v9614_v16  ;;  %3962 = vmatpush2.msra.mxu0 %v3535_v56  ;;  %v1879_v7 = vmul.f32 %v5180_v55, %v9452_v59  ;;  %v749_v14 = vmul.f32 %v9278_v50, %v14095_v10  ;;  %v1558_v56 = vmul.f32 %v9302_v31, %v14096_v19  ;;  %14097 = vst [vmem:[#allocation182_spill] sm:$0xff] %v9638_v58  ;;  %v14103_v16 = vld [vmem:[#allocation120_spill] sm:$0xff] }
 0x2a2   : > { %v9628_v47 = vpop.permute.xlu1 %1367  ;;  %v9646_v22 = vmul.f32 %v13725_v40, %v14098_v1  ;;  %v1837_v33 = vmul.f32 %v9402_v11, %v14083_v28  ;;  %v2384_v48 = vadd.f32 %v1872_v57, %v14100_v25  ;;  %v9653_v12 = vmul.f32 %v13738_v21, %v14098_v1  ;;  %v14107_v57 = vld [vmem:[#allocation373_spill] sm:$0xff] }
 0x2a3   : > { %14094 = vst [vmem:[#allocation260_spill] sm:$0xff] %v9628_v47  ;;  %v1864_v52 = vmul.f32 %v5178_v54, %v9628_v47  ;;  %v1863_v34 = vmul.f32 %v5180_v55, %v9628_v47  ;;  %v9655_v37 = vadd.f32 %v1838_v63, %v1029_v13  ;;  %v9657_v5 = vadd.f32 %v1565_v17, %v756_v23  ;;  %v14109_v23 = vld [vmem:[#allocation376_spill] sm:$0xff] }
 0x2a4   : > { %14099 = vst [vmem:[#allocation183_spill] sm:$0xff] %v9646_v22  ;;  %14101 = vst [vmem:[#allocation315_spill] sm:$0xff] %v9653_v12  ;;  %v2383_v4 = vadd.f32 %v1871_v62, %v14102_v6  ;;  %v2130_v38 = vadd.f32 %v1618_v42, %v14103_v16  ;;  %v2129_v44 = vadd.f32 %v1617_v35, %v14104_v49  ;;  %v9683_v42 = vpop.permute.xlu0 %2803 }
 0x2a5   : > { %v9662_v22 = vadd.f32 %v1837_v33, %v1028_v36  ;;  %v2392_v28 = vadd.f32 %v1880_v15, %v14105_v29  ;;  %v2391_v25 = vadd.f32 %v1879_v7, %v14106_v43  ;;  %v2376_v53 = vadd.f32 %v1864_v52, %v14107_v57  ;;  %v14110_v33 = vld [vmem:[#allocation281_spill] sm:$0xff]  ;;  %14111 = vst [vmem:[#allocation13_spill] sm:$0xff] %v9683_v42  ;;  %v14113_v15 = vld [vmem:[#allocation116_spill] sm:$0xff] }
 0x2a6   : > { %v9667_v1 = vadd.f32 %v1558_v56, %v749_v14  ;;  %v2375_v13 = vadd.f32 %v1863_v34, %v14109_v23  ;;  %v1882_v6 = vmul.f32 %v13274_v24, %v9452_v59  ;;  %v1881_v49 = vmul.f32 %v13275_v26, %v9452_v59 }
 0x2a7   : > { %v9669_v63 = vpop.permute.xlu1 %2813  ;;  %v1830_v16 = vmul.f32 %v9302_v31, %v14110_v33  ;;  %v3280_v17 = vadd.f32 %v9638_v58, %v2384_v48  ;;  %v1956_v62 = vmul.f32 %v13684_v9, %v8543_v46  ;;  %v3279_v35 = vadd.f32 %v9638_v58, %v2383_v4 }
 0x2a8   : > { %14108 = vst [vmem:[#allocation22_spill] sm:$0xff] %v9669_v63  ;;  %v3288_v29 = vadd.f32 %v9669_v63, %v2392_v28  ;;  %v3287_v43 = vadd.f32 %v9669_v63, %v2391_v25  ;;  %v9687_v36 = vadd.f32 %v9559_v20, %v2130_v38  ;;  %v1021_v7 = vmul.f32 %v9278_v50, %v14113_v15  ;;  %v14115_v25 = vld [vmem:[#allocation382_spill] sm:$0xff]  ;;  %v14116_v38 = vld [vmem:[#allocation383_spill] sm:$0xff] }
 0x2a9   : > { %v748_v14 = vmul.f32 %v9352_v51, %v14095_v10  ;;  %v3272_v48 = vadd.f32 %v9683_v42, %v2376_v53  ;;  %v9695_v34 = vadd.f32 %v9559_v20, %v2129_v44  ;;  %v3271_v28 = vadd.f32 %v9683_v42, %v2375_v13 }
 0x2aa   : > { %14112 = vst [vmem:[#allocation262_spill] sm:$0xff] %v9687_v36  ;;  %v3800_v56 = vmax.f32 %v3288_v29, 0.0  ;;  %v3799_v52 = vmax.f32 %v3287_v43, 0.0  ;;  %v9699_v4 = vadd.f32 %v1882_v6, %v14115_v25  ;;  %v9702_v57 = vadd.f32 %v1881_v49, %v14116_v38  ;;  %v14246_v36 = vld [vmem:[#allocation59_spill] sm:$0xff] }
 0x2ab   : > { %14114 = vst [vmem:[#allocation263_spill] sm:$0xff] %v9695_v34  ;;  %v1557_v23 = vmul.f32 %v9402_v11, %v14096_v19  ;;  %v3792_v10 = vmax.f32 %v3280_v17, 0.0  ;;  %v2468_v53 = vadd.f32 %v1956_v62, %v8990_v27  ;;  %v9709_v29 = vadd.f32 %v1830_v16, %v1021_v7  ;;  %v14120_v16 = vld [vmem:[#allocation356_spill] sm:$0xff] }
 0x2ac   : > { %v9706_v59 = vpop.permute.xlu1 %1363  ;;  %4030 = vmatprep.subr.mxu1 %v3800_v56  ;;  %v1020_v44 = vmul.f32 %v9352_v51, %v14113_v15  ;;  %v3791_v13 = vmax.f32 %v3279_v35, 0.0  ;;  %v9719_v19 = vadd.f32 %v9487_v0, %v9535_v39  ;;  %v3784_v43 = vmax.f32 %v3272_v48, 0.0  ;;  %v14123_v15 = vld [vmem:[#allocation254_spill] sm:$0xff]  ;;  %v14124_v39 = vld [vmem:[#allocation255_spill] sm:$0xff]  ;;  %v9737_v48 = vpop.permute.xlu0 %2798 }
 0x2ad   : > { %14117 = vst [vmem:[#allocation120_spill] sm:$0xff] %v9706_v59  ;;  %4031 = vmatpush2.msra.mxu1 %v3799_v52  ;;  %v1856_v6 = vmul.f32 %v5178_v54, %v9706_v59  ;;  %v1855_v49 = vmul.f32 %v5180_v55, %v9706_v59  ;;  %v9723_v27 = vadd.f32 %v9487_v0, %v9538_v32  ;;  %v3783_v35 = vmax.f32 %v3271_v28, 0.0 }
 0x2ae   : > { %14118 = vst [vmem:[#allocation6_spill] sm:$0xff] %v9719_v19  ;;  %4032 = vmatprep.subr.mxu1 %v3792_v10  ;;  %v9727_v17 = vmul.f32 %v13725_v40, %v14120_v16  ;;  %v9731_v62 = vmul.f32 %v13738_v21, %v14120_v16  ;;  %v9735_v52 = vadd.f32 %v1557_v23, %v748_v14  ;;  %14126 = vst [vmem:[#allocation281_spill] sm:$0xff] %v9737_v48 }
 0x2af   : > { %14119 = vst [vmem:[#allocation240_spill] sm:$0xff] %v9723_v27  ;;  %4033 = vmatpush2.msra.mxu1 %v3791_v13  ;;  %v2368_v7 = vadd.f32 %v1856_v6, %v14123_v15  ;;  %v2367_v56 = vadd.f32 %v1855_v49, %v14124_v39  ;;  %v1874_v32 = vmul.f32 %v13274_v24, %v9524_v30  ;;  %v14129_v13 = vld [vmem:[#allocation19_spill] sm:$0xff]  ;;  %v14131_v15 = vld [vmem:[#allocation280_spill] sm:$0xff] }
 0x2b0   : > { %14121 = vst [vmem:[#allocation381_spill] sm:$0xff] %v9727_v17  ;;  %14122 = vst [vmem:[#allocation373_spill] sm:$0xff] %v9731_v62  ;;  %4034 = vmatprep.subr.mxu1 %v3784_v43  ;;  %v1873_v25 = vmul.f32 %v13275_v26, %v9524_v30  ;;  %v9744_v38 = vadd.f32 %v8686_v45, %v2468_v53  ;;  %v1829_v28 = vmul.f32 %v9402_v11, %v14110_v33  ;;  %v14130_v49 = vld [vmem:[#allocation15_spill] sm:$0xff]  ;;  %v14133_v33 = vld [vmem:[#allocation302_spill] sm:$0xff] }
 0x2b1   : > { %14125 = vst [vmem:[#allocation376_spill] sm:$0xff] %v9735_v52  ;;  %v9748_v10 = vpop.permute.xlu1 %2643  ;;  %4035 = vmatpush2.msra.mxu1 %v3783_v35  ;;  %v3264_v14 = vadd.f32 %v9737_v48, %v2368_v7  ;;  %v3263_v23 = vadd.f32 %v9737_v48, %v2367_v56  ;;  %v733_v6 = vmul.f32 %v9278_v50, %v14129_v13  ;;  %v14132_v39 = vld [vmem:[#allocation283_spill] sm:$0xff]  ;;  %v14134_v62 = vld [vmem:[#allocation265_spill] sm:$0xff] }
 0x2b2   : > { %14127 = vst [vmem:[#allocation116_spill] sm:$0xff] %v9744_v38  ;;  %14128 = vst [vmem:[#allocation382_spill] sm:$0xff] %v9748_v10  ;;  %v1542_v43 = vmul.f32 %v9302_v31, %v14130_v49  ;;  %v3016_v53 = vadd.f32 %v9748_v10, %v14131_v15  ;;  %v3015_v16 = vadd.f32 %v9748_v10, %v14132_v39  ;;  %v14135_v39 = vld [vmem:[#allocation266_spill] sm:$0xff] }
 0x2b3   : > { %v1822_v52 = vmul.f32 %v9302_v31, %v14133_v33  ;;  %v9764_v35 = vmul.f32 %v9402_v11, %v14133_v33  ;;  %v3776_v7 = vmax.f32 %v3264_v14, 0.0  ;;  %v3775_v56 = vmax.f32 %v3263_v23, 0.0  ;;  %v14136_v38 = vld [vmem:[#allocation370_spill] sm:$0xff]  ;;  %v14139_v23 = vld [vmem:[#allocation111_spill] sm:$0xff] }
 0x2b4   : > { %v732_v20 = vmul.f32 %v9352_v51, %v14129_v13  ;;  %v1541_v30 = vmul.f32 %v9402_v11, %v14130_v49  ;;  %v3528_v0 = vmax.f32 %v3016_v53, 0.0  ;;  %v3527_v15 = vmax.f32 %v3015_v16, 0.0  ;;  %v14146_v53 = vld [vmem:[#allocation184_spill] sm:$0xff] }
 0x2b5   : > { %v2386_v17 = vadd.f32 %v1874_v32, %v14134_v62  ;;  %v2385_v12 = vadd.f32 %v1873_v25, %v14135_v39  ;;  %4036 = vmatprep.subr.mxu1 %v3776_v7  ;;  %v9774_v45 = vadd.f32 %v14136_v38, %v9426_v41  ;;  %v2341_v33 = vadd.f32 %v1829_v28, %v1020_v44  ;;  %v14142_v32 = vld [vmem:[#allocation313_spill] sm:$0xff] }
 0x2b6   : > { %v9776_v14 = vadd.f32 %v1542_v43, %v733_v6  ;;  %v9780_v13 = vmul.f32 %v9278_v50, %v14139_v23  ;;  %v9782_v27 = vpop.permute.xlu1 %1359  ;;  %3963 = vmatprep.subr.mxu0 %v3528_v0  ;;  %4037 = vmatpush2.msra.mxu1 %v3775_v56  ;;  %v1600_v16 = vmul.f32 %v5178_v54, %v9591_v3  ;;  %v14143_v25 = vld [vmem:[#allocation117_spill] sm:$0xff]  ;;  %v14144_v6 = vld [vmem:[#allocation314_spill] sm:$0xff] }
 0x2b7   : > { %14137 = vst [vmem:[#allocation383_spill] sm:$0xff] %v9774_v45  ;;  %14141 = vst [vmem:[#allocation19_spill] sm:$0xff] %v9782_v27  ;;  %v1599_v62 = vmul.f32 %v5180_v55, %v9591_v3  ;;  %v1013_v44 = vmul.f32 %v9278_v50, %v14142_v32  ;;  %3964 = vmatpush2.msra.mxu0 %v3527_v15  ;;  %v741_v28 = vmul.f32 %v9278_v50, %v14143_v25  ;;  %v14150_v41 = vld [vmem:[#allocation185_spill] sm:$0xff] }
 0x2b8   : > { %14138 = vst [vmem:[#allocation254_spill] sm:$0xff] %v9776_v14  ;;  %14140 = vst [vmem:[#allocation255_spill] sm:$0xff] %v9780_v13  ;;  %v1550_v49 = vmul.f32 %v9302_v31, %v14144_v6  ;;  %v1012_v0 = vmul.f32 %v9352_v51, %v14142_v32  ;;  %v9797_v43 = vadd.f32 %v1541_v30, %v732_v20  ;;  %v14152_v20 = vld [vmem:[#allocation243_spill] sm:$0xff]  ;;  %v14156_v14 = vld [vmem:[#allocation114_spill] sm:$0xff] }
 0x2b9   : > { %v9801_v7 = vadd.f32 %v9561_v2, %v14146_v53  ;;  %v1602_v56 = vmul.f32 %v13274_v24, %v9591_v3  ;;  %v9806_v15 = vadd.f32 %v9638_v58, %v2386_v17  ;;  %v9809_v39 = vadd.f32 %v9638_v58, %v2385_v12  ;;  %v14155_v17 = vld [vmem:[#allocation113_spill] sm:$0xff] }
 0x2ba   : > { %14145 = vst [vmem:[#allocation15_spill] sm:$0xff] %v9797_v43  ;;  %v9813_v60 = vadd.f32 %v9561_v2, %v14150_v41  ;;  %v1601_v30 = vmul.f32 %v13275_v26, %v9591_v3  ;;  %v9819_v32 = vmul.f32 %v13725_v40, %v14152_v20  ;;  %v9823_v53 = vmul.f32 %v13738_v21, %v14152_v20  ;;  %v14158_v41 = vld [vmem:[#allocation335_spill] sm:$0xff] }
 0x2bb   : > { %14147 = vst [vmem:[#allocation280_spill] sm:$0xff] %v9801_v7  ;;  %14148 = vst [vmem:[#allocation283_spill] sm:$0xff] %v9806_v15  ;;  %v2112_v43 = vadd.f32 %v1600_v16, %v14155_v17  ;;  %v2111_v12 = vadd.f32 %v1599_v62, %v14156_v14  ;;  %v9829_v13 = vadd.f32 %v14136_v38, %v9479_v8  ;;  %v9835_v3 = vpop.permute.xlu1 %2638  ;;  %v14163_v38 = vld [vmem:[#allocation8_spill] sm:$0xff]  ;;  %v14164_v17 = vld [vmem:[#allocation115_spill] sm:$0xff] }
 0x2bc   : > { %14149 = vst [vmem:[#allocation302_spill] sm:$0xff] %v9809_v39  ;;  %14151 = vst [vmem:[#allocation265_spill] sm:$0xff] %v9813_v60  ;;  %v9833_v58 = vadd.f32 %v14158_v41, %v9709_v29  ;;  %v1866_v2 = vmul.f32 %v13274_v24, %v9628_v47  ;;  %v1865_v20 = vmul.f32 %v13275_v26, %v9628_v47  ;;  %v14300_v39 = vld [vmem:[#allocation242_spill] sm:$0xff]  ;;  %v14328_v7 = vld [vmem:[#allocation188_spill] sm:$0xff] }
 0x2bd   : > { %14153 = vst [vmem:[#allocation266_spill] sm:$0xff] %v9819_v32  ;;  %14154 = vst [vmem:[#allocation370_spill] sm:$0xff] %v9823_v53  ;;  %v9841_v53 = vadd.f32 %v1550_v49, %v741_v28  ;;  %v9843_v16 = vadd.f32 %v1822_v52, %v1013_v44  ;;  %v3008_v14 = vadd.f32 %v9835_v3, %v2112_v43  ;;  %v14301_v15 = vmax.f32 %v14300_v39, 0.0  ;;  %v14310_v39 = vld [vmem:[#allocation418_spill] sm:$0xff] }
 0x2be   : > { %14157 = vst [vmem:[#allocation111_spill] sm:$0xff] %v9829_v13  ;;  %14159 = vst [vmem:[#allocation313_spill] sm:$0xff] %v9833_v58  ;;  %v3007_v8 = vadd.f32 %v9835_v3, %v2111_v12  ;;  %v9848_v62 = vadd.f32 %v1602_v56, %v14163_v38  ;;  %v740_v29 = vmul.f32 %v9352_v51, %v14143_v25  ;;  %v14165_v58 = vld [vmem:[#allocation340_spill] sm:$0xff]  ;;  %v14168_v38 = vld [vmem:[#allocation377_spill] sm:$0xff] }
 0x2bf   : > { %14160 = vst [vmem:[#allocation117_spill] sm:$0xff] %v9835_v3  ;;  %14161 = vst [vmem:[#allocation314_spill] sm:$0xff] %v9841_v53  ;;  %v9853_v32 = vadd.f32 %v1601_v30, %v14164_v17  ;;  %v9857_v47 = vmul.f32 %v13725_v40, %v14165_v58  ;;  %v9861_v52 = vmul.f32 %v13738_v21, %v14165_v58  ;;  %v3520_v28 = vmax.f32 %v3008_v14, 0.0  ;;  %v9869_v56 = vpop.permute.xlu1 %2633  ;;  %v14167_v30 = vld [vmem:[#allocation226_spill] sm:$0xff]  ;;  %v14169_v58 = vld [vmem:[#allocation239_spill] sm:$0xff] }
 0x2c0   : > { %14162 = vst [vmem:[#allocation184_spill] sm:$0xff] %v9843_v16  ;;  %v1549_v44 = vmul.f32 %v9402_v11, %v14144_v6  ;;  %v3519_v49 = vmax.f32 %v3007_v8, 0.0  ;;  %v1848_v43 = vmul.f32 %v5178_v54, %v9782_v27  ;;  %v1847_v25 = vmul.f32 %v5180_v55, %v9782_v27  ;;  %14166 = vst [vmem:[#allocation185_spill] sm:$0xff] %v9869_v56  ;;  %v14172_v14 = vld [vmem:[#allocation270_spill] sm:$0xff]  ;;  %v14173_v8 = vld [vmem:[#allocation271_spill] sm:$0xff] }
 0x2c1   : > { %v2378_v12 = vadd.f32 %v1866_v2, %v14167_v30  ;;  %v2377_v17 = vadd.f32 %v1865_v20, %v14168_v38  ;;  %v9875_v16 = vadd.f32 %v14169_v58, %v9518_v18  ;;  %v9879_v6 = vadd.f32 %v14169_v58, %v9555_v61  ;;  %3965 = vmatprep.subr.mxu0 %v3520_v28  ;;  %v14179_v38 = vld [vmem:[#allocation371_spill] sm:$0xff]  ;;  %v14312_v60 = vld [vmem:[#allocation50_spill] sm:$0xff] }
 0x2c2   : > { %v3000_v54 = vadd.f32 %v9869_v56, %v14172_v14  ;;  %v2999_v55 = vadd.f32 %v9869_v56, %v14173_v8  ;;  %v9886_v53 = vadd.f32 %v14158_v41, %v2341_v33  ;;  %v9889_v2 = vadd.f32 %v9764_v35, %v1012_v0  ;;  %3966 = vmatpush2.msra.mxu0 %v3519_v49  ;;  %v14178_v33 = vld [vmem:[#allocation238_spill] sm:$0xff]  ;;  %v9908_v49 = vld [vmem:[%s12028_s3] sm:$0xff] }
 0x2c3   : > { %14170 = vst [vmem:[#allocation113_spill] sm:$0xff] %v9875_v16  ;;  %14171 = vst [vmem:[#allocation114_spill] sm:$0xff] %v9879_v6  ;;  %v1858_v18 = vmul.f32 %v13274_v24, %v9706_v59  ;;  %v1857_v61 = vmul.f32 %v13275_v26, %v9706_v59  ;;  %v9895_v58 = vadd.f32 %v1549_v44, %v740_v29  ;;  %v9903_v0 = vpop.permute.xlu1 %2793  ;;  %v14259_v59 = vld [vmem:[#allocation219_spill] sm:$0xff] }
 0x2c4   : > { %14174 = vst [vmem:[#allocation335_spill] sm:$0xff] %v9886_v53  ;;  %14175 = vst [vmem:[#allocation8_spill] sm:$0xff] %v9889_v2  ;;  %v9899_v20 = vmul.f32 %v9352_v51, %v14139_v23  ;;  %v3512_v28 = vmax.f32 %v3000_v54, 0.0  ;;  %v3511_v30 = vmax.f32 %v2999_v55, 0.0  ;;  %v2360_v41 = vadd.f32 %v1848_v43, %v14178_v33  ;;  %v14185_v43 = vld [vmem:[#allocation16_spill] sm:$0xff]  ;;  %v14190_v33 = vld [vmem:[#allocation259_spill] sm:$0xff] }
 0x2c5   : > { %14176 = vst [vmem:[#allocation115_spill] sm:$0xff] %v9895_v58  ;;  %v2359_v35 = vadd.f32 %v1847_v25, %v14179_v38  ;;  %14180 = vst [vmem:[#allocation377_spill] sm:$0xff] %v9903_v0  ;;  %v9912_v29 = vadd.f32 %v9669_v63, %v9699_v4  ;;  %v9915_v23 = vadd.f32 %v9683_v42, %v2378_v12  ;;  %v14188_v4 = vld [vmem:[#allocation253_spill] sm:$0xff]  ;;  %v14197_v51 = vld [vmem:[#allocation52_spill] sm:$0xff] }
 0x2c6   : > { %14177 = vst [vmem:[#allocation226_spill] sm:$0xff] %v9899_v20  ;;  %14181 = vst [vmem:[#allocation239_spill] sm:$0xff] %v9908_v49  ;;  %v9918_v44 = vadd.f32 %v9683_v42, %v2377_v17  ;;  %v9922_v25 = vmul.f32 %v9278_v50, %v14185_v43  ;;  %3967 = vmatprep.subr.mxu0 %v3512_v28  ;;  %v3256_v14 = vadd.f32 %v9903_v0, %v2360_v41  ;;  %v14189_v17 = vld [vmem:[#allocation258_spill] sm:$0xff]  ;;  %v14192_v41 = vld [vmem:[#allocation375_spill] sm:$0xff] }
 0x2c7   : > { %14182 = vst [vmem:[#allocation270_spill] sm:$0xff] %v9912_v29  ;;  %14183 = vst [vmem:[#allocation271_spill] sm:$0xff] %v9915_v23  ;;  %v3255_v54 = vadd.f32 %v9903_v0, %v2359_v35  ;;  %v9928_v8 = vadd.f32 %v9669_v63, %v9702_v57  ;;  %v9932_v12 = vmul.f32 %v13725_v40, %v14188_v4  ;;  %3968 = vmatpush2.msra.mxu0 %v3511_v30  ;;  %v14194_v57 = vld [vmem:[#allocation55_spill] sm:$0xff]  ;;  %v14196_v30 = vld [vmem:[#allocation361_spill] sm:$0xff] }
 0x2c8   : > { %14184 = vst [vmem:[#allocation238_spill] sm:$0xff] %v9918_v44  ;;  %14186 = vst [vmem:[#allocation371_spill] sm:$0xff] %v9922_v25  ;;  %v2370_v55 = vadd.f32 %v1858_v18, %v14189_v17  ;;  %v2369_v38 = vadd.f32 %v1857_v61, %v14190_v33  ;;  %v9938_v28 = vmul.f32 %v13738_v21, %v14188_v4  ;;  %3970 = vmatmul.mubr.f32.vlgmr.msra.gmra.mxu0 %v9908_v49  ;;  %v14199_v17 = vld [vmem:[#allocation56_spill] sm:$0xff]  ;;  %v14210_v4 = vld [vmem:[#allocation290_spill] sm:$0xff] }
 0x2c9   : > { %14187 = vst [vmem:[#allocation443_spill] sm:$0xff] %v9928_v8  ;;  %v9942_v35 = vadd.f32 %v14192_v41, %v9655_v37  ;;  %v14195_v43 = vmax.f32 %v14194_v57, 0.0  ;;  %v3768_v25 = vmax.f32 %v3256_v14, 0.0  ;;  %v3767_v20 = vmax.f32 %v3255_v54, 0.0  ;;  %v9958_v37 = vld [vmem:[%s12028_s3 + $0x10] sm:$0xff]  ;;  %v14211_v50 = vld [vmem:[#allocation380_spill] sm:$0xff] }
 0x2ca   : > { %14191 = vst [vmem:[#allocation258_spill] sm:$0xff] %v9938_v28  ;;  %v1683_v18 = vmul.f32 %v14197_v51, %v14196_v30  ;;  %v9951_v61 = vadd.f32 %v14192_v41, %v9662_v22  ;;  %v14200_v33 = vmax.f32 %v14199_v17, 0.0  ;;  %14201 = vst [vmem:[#allocation55_spill] sm:$0xff] %v9958_v37  ;;  %v1955_v14 = vmul.f32 %v14197_v51, %v8543_v46  ;;  %v14203_v22 = vld [vmem:[#allocation349_spill] sm:$0xff]  ;;  %v14205_v41 = vld [vmem:[#allocation320_spill] sm:$0xff] }
 0x2cb   : > { %14193 = vst [vmem:[#allocation259_spill] sm:$0xff] %v9942_v35  ;;  %4047 = vmatprep.subr.mxu0 %v14195_v43  ;;  %v4704_v43 = vld [vmem:[%s12028_s3 + $0x8] sm:$0xff]  ;;  %v9968_v54 = vadd.f32 %v14203_v22, %v9667_v1  ;;  %v9972_v17 = vmul.f32 %v9302_v31, %v14205_v41  ;;  %4038 = vmatprep.subr.mxu1 %v3768_v25  ;;  %v14218_v31 = vld [vmem:[#allocation284_spill] sm:$0xff]  ;;  %v14247_v42 = vmax.f32 %v14246_v36, 0.0  ;;  %v14256_v40 = vld [vmem:[#allocation223_spill] sm:$0xff] }
 0x2cc   : > { %14198 = vst [vmem:[#allocation375_spill] sm:$0xff] %v9951_v61  ;;  %4048 = vmatpush1.msra.mxu0 %v14200_v33  ;;  %4111 = vmatprep.mubr.f32.mxu0 %v4704_v43  ;;  %v14207_v33 = vld [vmem:[#allocation317_spill] sm:$0xff]  ;;  %v9979_v43 = vadd.f32 %v14211_v50, %v14210_v4  ;;  %v9983_v46 = vadd.f32 %v14211_v50, %v9657_v5  ;;  %v14219_v5 = vld [vmem:[#allocation102_spill] sm:$0xff]  ;;  %v14361_v6 = vld [vmem:[#allocation295_spill] sm:$0xff] }
 0x2cd   : > { %14204 = vst [vmem:[#allocation52_spill] sm:$0xff] %v9968_v54  ;;  %14206 = vst [vmem:[#allocation56_spill] sm:$0xff] %v9972_v17  ;;  %v14208_v30 = vmax.f32 %v14207_v33, 0.0  ;;  %v9987_v1 = vmul.f32 %v9402_v11, %v14205_v41  ;;  %4039 = vmatpush2.msra.mxu1 %v3767_v20  ;;  %v14215_v17 = vld [vmem:[#allocation358_spill] sm:$0xff]  ;;  %v9994_v49 = vadd.f32 %v9748_v10, %v14218_v31  ;;  %v14220_v41 = vmax.f32 %v14219_v5, 0.0  ;;  %v14224_v31 = vld [vmem:[#allocation149_spill] sm:$0xff] }
 0x2ce   : > { %14212 = vst [vmem:[#allocation320_spill] sm:$0xff] %v9979_v43  ;;  %14213 = vst [vmem:[#allocation317_spill] sm:$0xff] %v9983_v46  ;;  %v14216_v25 = vmax.f32 %v14215_v17, 0.0  ;;  %v9997_v4 = vadd.f32 %v9737_v48, %v2370_v55  ;;  %v10000_v50 = vadd.f32 %v9737_v48, %v2369_v38  ;;  %4041 = vmatmul.mubr.f32.vlgmr.msra.gmra.mxu1 %v9958_v37  ;;  %v14225_v55 = vld [vmem:[#allocation232_spill] sm:$0xff]  ;;  %v14227_v38 = vld [vmem:[#allocation110_spill] sm:$0xff] }
 0x2cf   : > { %4049 = vmatprep.subr.mxu0 %v14208_v30  ;;  %14214 = vst [vmem:[#allocation290_spill] sm:$0xff] %v9987_v1  ;;  %v14223_v30 = vld [vmem:[#allocation75_spill] sm:$0xff]  ;;  %v1668_v11 = vmul.f32 %v13684_v9, %v14224_v31  ;;  %v14226_v2 = vmax.f32 %v14225_v55, 0.0  ;;  %v14228_v58 = vmax.f32 %v14227_v38, 0.0  ;;  %v1850_v5 = vmul.f32 %v13274_v24, %v9782_v27  ;;  %v14229_v17 = vld [vmem:[#allocation264_spill] sm:$0xff]  ;;  %v14233_v33 = vld [vmem:[#allocation342_spill] sm:$0xff] }
 0x2d0   : > { %4050 = vmatpush1.msra.mxu0 %v14216_v25  ;;  %v14222_v25 = vld [vmem:[#allocation408_spill] sm:$0xff]  ;;  %v1948_v1 = vmul.f32 %v13684_v9, %v14223_v30  ;;  %v14231_v20 = vld [vmem:[#allocation339_spill] sm:$0xff]  ;;  %v14234_v48 = vmax.f32 %v14233_v33, 0.0  ;;  %v14235_v55 = vld [vmem:[#allocation285_spill] sm:$0xff]  ;;  %v1947_v24 = vmul.f32 %v14197_v51, %v14223_v30  ;;  %v1667_v30 = vmul.f32 %v14197_v51, %v14224_v31 }
 0x2d1   : > { %4051 = vmatprep.subr.mxu0 %v14220_v41  ;;  %v2195_v57 = vadd.f32 %v1683_v18, %v14222_v25  ;;  %4118 = vmatprep.subr.mxu1 %v14226_v2  ;;  %v1849_v41 = vmul.f32 %v13275_v26, %v9782_v27  ;;  %v2467_v18 = vadd.f32 %v1955_v14, %v14229_v17  ;;  %v14232_v22 = vmax.f32 %v14231_v20, 0.0  ;;  %v14236_v26 = vld [vmem:[#allocation292_spill] sm:$0xff]  ;;  %v14237_v17 = vld [vmem:[#allocation341_spill] sm:$0xff]  ;;  %v14241_v33 = vld [vmem:[#allocation410_spill] sm:$0xff] }
 0x2d2   : > { %4052 = vmatpush1.msra.mxu0 %v14228_v58  ;;  %v10028_v58 = vadd.f32 %v9748_v10, %v14235_v55  ;;  %v1940_v14 = vmul.f32 %v13684_v9, %v14236_v26  ;;  %v14238_v38 = vmax.f32 %v14237_v17, 0.0  ;;  %v14239_v20 = vld [vmem:[#allocation60_spill] sm:$0xff]  ;;  %v14242_v37 = vld [vmem:[#allocation134_spill] sm:$0xff]  ;;  %v14248_v17 = vld [vmem:[#allocation211_spill] sm:$0xff]  ;;  %v14257_v31 = vmax.f32 %v14256_v40, 0.0 }
 0x2d3   : > { %4119 = vmatpush1.msra.mxu1 %v14232_v22  ;;  %4053 = vmatprep.subr.mxu0 %v14234_v48  ;;  %v14240_v22 = vmax.f32 %v14239_v20, 0.0  ;;  %v10041_v2 = vadd.f32 %v14242_v37, %v14241_v33  ;;  %v14244_v55 = vld [vmem:[#allocation412_spill] sm:$0xff]  ;;  %v14252_v33 = vld [vmem:[#allocation183_spill] sm:$0xff]  ;;  %v14261_v20 = vld [vmem:[#allocation194_spill] sm:$0xff] }
 0x2d4   : > { %4120 = vmatprep.subr.mxu1 %v14238_v38  ;;  %v10045_v25 = vadd.f32 %v14242_v37, %v14244_v55  ;;  %v14249_v38 = vmax.f32 %v14248_v17, 0.0  ;;  %v2460_v34 = vadd.f32 %v1948_v1, %v14252_v33  ;;  %v14253_v27 = vld [vmem:[#allocation136_spill] sm:$0xff]  ;;  %v2362_v17 = vadd.f32 %v1850_v5, %v14259_v59  ;;  %v14265_v1 = vld [vmem:[#allocation278_spill] sm:$0xff]  ;;  %v14268_v33 = vld [vmem:[#allocation315_spill] sm:$0xff] }
 0x2d5   : > { %4054 = vmatpush1.msra.mxu0 %v14240_v22  ;;  %14243 = vst [vmem:[#allocation380_spill] sm:$0xff] %v10041_v2  ;;  %4121 = vmatpush1.msra.mxu1 %v14247_v42  ;;  %v14250_v22 = vld [vmem:[#allocation139_spill] sm:$0xff]  ;;  %v2180_v21 = vadd.f32 %v1668_v11, %v14253_v27  ;;  %v14254_v55 = vld [vmem:[#allocation372_spill] sm:$0xff]  ;;  %v10067_v19 = vadd.f32 %v14261_v20, %v2467_v18  ;;  %v14266_v11 = vmax.f32 %v14265_v1, 0.0  ;;  %v14298_v20 = vld [vmem:[#allocation330_spill] sm:$0xff] }
 0x2d6   : > { %14245 = vst [vmem:[#allocation358_spill] sm:$0xff] %v10045_v25  ;;  %4055 = vmatprep.subr.mxu0 %v14249_v38  ;;  %v10055_v48 = vadd.f32 %v14250_v22, %v2195_v57  ;;  %v14255_v37 = vmax.f32 %v14254_v55, 0.0  ;;  %v14260_v38 = vld [vmem:[#allocation220_spill] sm:$0xff]  ;;  %v14263_v57 = vld [vmem:[#allocation374_spill] sm:$0xff]  ;;  %v2459_v40 = vadd.f32 %v1947_v24, %v14268_v33  ;;  %v1939_v59 = vmul.f32 %v14197_v51, %v14236_v26  ;;  %v14272_v18 = vld [vmem:[#allocation279_spill] sm:$0xff] }
 0x2d7   : > { %4056 = vmatpush1.msra.mxu0 %v14257_v31  ;;  %v2361_v28 = vadd.f32 %v1849_v41, %v14260_v38  ;;  %14262 = vst [vmem:[#allocation102_spill] sm:$0xff] %v10067_v19  ;;  %v14264_v22 = vmax.f32 %v14263_v57, 0.0  ;;  %v14269_v31 = vld [vmem:[#allocation411_spill] sm:$0xff]  ;;  %v14270_v5 = vld [vmem:[#allocation252_spill] sm:$0xff]  ;;  %v14273_v38 = vmax.f32 %v14272_v18, 0.0  ;;  %v14276_v24 = vld [vmem:[#allocation413_spill] sm:$0xff] }
 0x2d8   : > { %14251 = vst [vmem:[#allocation284_spill] sm:$0xff] %v10055_v48  ;;  %4122 = vmatprep.subr.mxu1 %v14255_v37  ;;  %4057 = vmatprep.subr.mxu0 %v14266_v11  ;;  %v2452_v55 = vadd.f32 %v1940_v14, %v14269_v31  ;;  %v14271_v41 = vmax.f32 %v14270_v5, 0.0  ;;  %v14274_v1 = vld [vmem:[#allocation304_spill] sm:$0xff]  ;;  %v2179_v14 = vadd.f32 %v1667_v30, %v14276_v24  ;;  %v14284_v57 = vld [vmem:[#allocation387_spill] sm:$0xff]  ;;  %v14299_v27 = vmax.f32 %v14298_v20, 0.0  ;;  %v14320_v36 = vld [vmem:[#allocation337_spill] sm:$0xff] }
 0x2d9   : > { %4123 = vmatpush1.msra.mxu1 %v14264_v22  ;;  %4058 = vmatpush1.msra.mxu0 %v14273_v38  ;;  %v10084_v22 = vadd.f32 %v9835_v3, %v9848_v62  ;;  %v10088_v11 = vadd.f32 %v14274_v1, %v2460_v34  ;;  %v14277_v33 = vld [vmem:[#allocation88_spill] sm:$0xff]  ;;  %v10101_v18 = vadd.f32 %v14274_v1, %v2459_v40  ;;  %v14282_v38 = vld [vmem:[#allocation389_spill] sm:$0xff]  ;;  %v14285_v30 = vmax.f32 %v14284_v57, 0.0  ;;  %v14286_v24 = vld [vmem:[#allocation251_spill] sm:$0xff] }
 0x2da   : > { %4124 = vmatprep.subr.mxu1 %v14271_v41  ;;  %v14278_v31 = vmax.f32 %v14277_v33, 0.0  ;;  %v14279_v37 = vld [vmem:[#allocation236_spill] sm:$0xff]  ;;  %v10097_v41 = vadd.f32 %v9835_v3, %v9853_v32  ;;  %v10104_v34 = vadd.f32 %v14282_v38, %v2180_v21  ;;  %v14287_v33 = vmax.f32 %v14286_v24, 0.0  ;;  %v14290_v40 = vld [vmem:[#allocation402_spill] sm:$0xff]  ;;  %v14293_v57 = vld [vmem:[#allocation241_spill] sm:$0xff] }
 0x2db   : > { %14275 = vst [vmem:[#allocation408_spill] sm:$0xff] %v10088_v11  ;;  %v14280_v5 = vmax.f32 %v14279_v37, 0.0  ;;  %14281 = vst [vmem:[#allocation232_spill] sm:$0xff] %v10101_v18  ;;  %v1932_v21 = vmul.f32 %v13684_v9, %v14290_v40  ;;  %v14291_v42 = vld [vmem:[#allocation388_spill] sm:$0xff]  ;;  %v14321_v13 = vmax.f32 %v14320_v36, 0.0  ;;  %v14363_v23 = vld [vmem:[#allocation297_spill] sm:$0xff] }
 0x2dc   : > { %4125 = vmatpush1.msra.mxu1 %v14278_v31  ;;  %14283 = vst [vmem:[#allocation110_spill] sm:$0xff] %v10104_v34  ;;  %v14288_v31 = vld [vmem:[#allocation272_spill] sm:$0xff]  ;;  %v14292_v1 = vmax.f32 %v14291_v42, 0.0  ;;  %v10137_v42 = vadd.f32 %v14282_v38, %v2179_v14  ;;  %v14364_v29 = vmax.f32 %v14363_v23, 0.0  ;;  %v14381_v53 = vld [vmem:[#allocation419_spill] sm:$0xff]  ;;  %v14401_v61 = vld [vmem:[#allocation325_spill] sm:$0xff] }
 0x2dd   : > { %4059 = vmatprep.subr.mxu0 %v14280_v5  ;;  %4126 = vmatprep.subr.mxu1 %v14285_v30  ;;  %v10113_v32 = vadd.f32 %v9869_v56, %v14288_v31  ;;  %v14289_v5 = vld [vmem:[#allocation273_spill] sm:$0xff]  ;;  %v14294_v30 = vmax.f32 %v14293_v57, 0.0  ;;  %v14402_v35 = vmax.f32 %v14401_v61, 0.0  ;;  %v14409_v46 = vld [vmem:[#allocation83_spill] sm:$0xff]  ;;  %v14413_v61 = vld [vmem:[#allocation316_spill] sm:$0xff] }
 0x2de   : > { %4060 = vmatpush1.msra.mxu0 %v14287_v33  ;;  %v10117_v62 = vadd.f32 %v9869_v56, %v14289_v5  ;;  %4127 = vmatpush1.msra.mxu1 %v14292_v1  ;;  %v14295_v33 = vld [vmem:[#allocation303_spill] sm:$0xff]  ;;  %v14297_v31 = vld [vmem:[#allocation17_spill] sm:$0xff]  ;;  %v1931_v5 = vmul.f32 %v14197_v51, %v14290_v40  ;;  %14302 = vst [vmem:[#allocation339_spill] sm:$0xff] %v10137_v42  ;;  %v14307_v40 = vld [vmem:[#allocation256_spill] sm:$0xff] }
 0x2df   : > { %4061 = vmatprep.subr.mxu0 %v14294_v30  ;;  %v10127_v37 = vadd.f32 %v14295_v33, %v2452_v55  ;;  %v2451_v26 = vadd.f32 %v1939_v59, %v14297_v31  ;;  %4128 = vmatprep.subr.mxu1 %v14299_v27  ;;  %v14303_v1 = vld [vmem:[#allocation153_spill] sm:$0xff]  ;;  %v14304_v30 = vld [vmem:[#allocation146_spill] sm:$0xff]  ;;  %v14308_v20 = vmax.f32 %v14307_v40, 0.0  ;;  %v14313_v59 = vmax.f32 %v14312_v60, 0.0  ;;  %v14506_v34 = vld [vmem:[#allocation131_spill] sm:$0xff] }
 0x2e0   : > { %4062 = vmatpush1.msra.mxu0 %v14301_v15  ;;  %v1652_v57 = vmul.f32 %v13684_v9, %v14303_v1  ;;  %v1924_v55 = vmul.f32 %v13684_v9, %v14304_v30  ;;  %v14305_v31 = vld [vmem:[#allocation334_spill] sm:$0xff]  ;;  %v14309_v27 = vld [vmem:[#allocation421_spill] sm:$0xff]  ;;  %v1651_v14 = vmul.f32 %v14197_v51, %v14303_v1  ;;  %v1923_v38 = vmul.f32 %v14197_v51, %v14304_v30  ;;  %v14333_v1 = vld [vmem:[#allocation415_spill] sm:$0xff] }
 0x2e1   : > { %14296 = vst [vmem:[#allocation264_spill] sm:$0xff] %v10127_v37  ;;  %v14306_v24 = vmax.f32 %v14305_v31, 0.0  ;;  %4063 = vmatprep.subr.mxu0 %v14308_v20  ;;  %v10150_v15 = vadd.f32 %v14310_v39, %v14309_v27  ;;  %v14314_v31 = vld [vmem:[#allocation336_spill] sm:$0xff]  ;;  %v10162_v40 = vadd.f32 %v9903_v0, %v2362_v17  ;;  %v10165_v20 = vadd.f32 %v9903_v0, %v2361_v28  ;;  %v14316_v27 = vld [vmem:[#allocation381_spill] sm:$0xff]  ;;  %v14582_v42 = vld [vmem:[#allocation230_spill] sm:$0xff] }
 0x2e2   : > { %v2444_v45 = vadd.f32 %v1932_v21, %v14316_v27  ;;  %v10174_v60 = vadd.f32 %v14295_v33, %v2451_v26  ;;  %v14326_v21 = vld [vmem:[#allocation91_spill] sm:$0xff]  ;;  %v2436_v33 = vadd.f32 %v1924_v55, %v14333_v1  ;;  %v14343_v1 = vld [vmem:[#allocation100_spill] sm:$0xff]  ;;  %v14454_v2 = vld [vmem:[#allocation201_spill] sm:$0xff]  ;;  %v14583_v37 = vmax.f32 %v14582_v42, 0.0 }
 0x2e3   : > { %4129 = vmatpush1.msra.mxu1 %v14306_v24  ;;  %14311 = vst [vmem:[#allocation342_spill] sm:$0xff] %v10150_v15  ;;  %v14315_v24 = vmax.f32 %v14314_v31, 0.0  ;;  %v14318_v15 = vld [vmem:[#allocation94_spill] sm:$0xff]  ;;  %v14325_v31 = vld [vmem:[#allocation373_spill] sm:$0xff]  ;;  %v14327_v27 = vmax.f32 %v14326_v21, 0.0  ;;  %v14344_v55 = vmax.f32 %v14343_v1, 0.0 }
 0x2e4   : > { %4130 = vmatprep.subr.mxu1 %v14313_v59  ;;  %v14319_v30 = vmax.f32 %v14318_v15, 0.0  ;;  %14322 = vst [vmem:[#allocation285_spill] sm:$0xff] %v10174_v60  ;;  %v14323_v59 = vld [vmem:[#allocation422_spill] sm:$0xff]  ;;  %v2443_v28 = vadd.f32 %v1931_v5, %v14325_v31  ;;  %v14329_v15 = vmax.f32 %v14328_v7, 0.0  ;;  %v14455_v48 = vmax.f32 %v14454_v2, 0.0 }
 0x2e5   : > { %4064 = vmatpush1.msra.mxu0 %v14315_v24  ;;  %v10178_v17 = vadd.f32 %v14310_v39, %v14323_v59  ;;  %v14334_v39 = vld [vmem:[#allocation92_spill] sm:$0xff]  ;;  %v14336_v5 = vld [vmem:[#allocation338_spill] sm:$0xff] }
 0x2e6   : > { %4131 = vmatpush1.msra.mxu1 %v14319_v30  ;;  %4065 = vmatprep.subr.mxu0 %v14321_v13  ;;  %v14330_v30 = vld [vmem:[#allocation296_spill] sm:$0xff]  ;;  %v14337_v31 = vmax.f32 %v14336_v5, 0.0  ;;  %v14351_v1 = vld [vmem:[#allocation130_spill] sm:$0xff] }
 0x2e7   : > { %14324 = vst [vmem:[#allocation341_spill] sm:$0xff] %v10178_v17  ;;  %4132 = vmatprep.subr.mxu1 %v14327_v27  ;;  %4066 = vmatpush1.msra.mxu0 %v14329_v15  ;;  %v10187_v36 = vadd.f32 %v14330_v30, %v2444_v45  ;;  %v14332_v13 = vld [vmem:[#allocation128_spill] sm:$0xff]  ;;  %v14335_v17 = vmax.f32 %v14334_v39, 0.0  ;;  %v14338_v27 = vld [vmem:[#allocation299_spill] sm:$0xff]  ;;  %v14340_v45 = vld [vmem:[#allocation409_spill] sm:$0xff] }
 0x2e8   : > { %v2164_v26 = vadd.f32 %v1652_v57, %v14332_v13  ;;  %4067 = vmatprep.subr.mxu0 %v14337_v31  ;;  %v2163_v7 = vadd.f32 %v1651_v14, %v14338_v27  ;;  %v14339_v15 = vld [vmem:[#allocation416_spill] sm:$0xff]  ;;  %v1916_v16 = vmul.f32 %v13684_v9, %v14340_v45  ;;  %v14341_v57 = vld [vmem:[#allocation53_spill] sm:$0xff]  ;;  %v1915_v5 = vmul.f32 %v14197_v51, %v14340_v45 }
 0x2e9   : > { %14331 = vst [vmem:[#allocation60_spill] sm:$0xff] %v10187_v36  ;;  %4133 = vmatpush1.msra.mxu1 %v14335_v17  ;;  %v2435_v24 = vadd.f32 %v1923_v38, %v14339_v15  ;;  %v14342_v13 = vmax.f32 %v14341_v57, 0.0  ;;  %4068 = vmatpush1.msra.mxu0 %v14344_v55  ;;  %v10207_v17 = vadd.f32 %v14330_v30, %v2443_v28  ;;  %v14346_v14 = vld [vmem:[#allocation424_spill] sm:$0xff]  ;;  %v14347_v31 = vld [vmem:[#allocation397_spill] sm:$0xff]  ;;  %v14354_v28 = vld [vmem:[#allocation414_spill] sm:$0xff] }
 0x2ea   : > { %v1636_v38 = vmul.f32 %v13684_v9, %v14346_v14  ;;  %v14348_v27 = vmax.f32 %v14347_v31, 0.0  ;;  %v14349_v15 = vld [vmem:[#allocation393_spill] sm:$0xff]  ;;  %v1908_v39 = vmul.f32 %v13684_v9, %v14354_v28  ;;  %v1635_v21 = vmul.f32 %v14197_v51, %v14346_v14  ;;  %v14357_v31 = vld [vmem:[#allocation394_spill] sm:$0xff] }
 0x2eb   : > { %4134 = vmatprep.subr.mxu1 %v14342_v13  ;;  %14345 = vst [vmem:[#allocation410_spill] sm:$0xff] %v10207_v17  ;;  %v14350_v57 = vmax.f32 %v14349_v15, 0.0  ;;  %v14352_v55 = vld [vmem:[#allocation125_spill] sm:$0xff]  ;;  %v1907_v44 = vmul.f32 %v14197_v51, %v14354_v28  ;;  %v14370_v28 = vld [vmem:[#allocation196_spill] sm:$0xff] }
 0x2ec   : > { %4135 = vmatpush1.msra.mxu1 %v14348_v27  ;;  %v10220_v59 = vadd.f32 %v14352_v55, %v14351_v1  ;;  %v14355_v45 = vld [vmem:[#allocation5_spill] sm:$0xff]  ;;  %v14358_v27 = vmax.f32 %v14357_v31, 0.0  ;;  %v10235_v1 = vadd.f32 %v14361_v6, %v2436_v33  ;;  %v10247_v31 = vadd.f32 %v14361_v6, %v2435_v24  ;;  %v14387_v24 = vld [vmem:[#allocation431_spill] sm:$0xff] }
 0x2ed   : > { %4069 = vmatprep.subr.mxu0 %v14350_v57  ;;  %v14356_v30 = vmax.f32 %v14355_v45, 0.0  ;;  %v14359_v57 = vld [vmem:[#allocation417_spill] sm:$0xff] }
 0x2ee   : > { %14353 = vst [vmem:[#allocation412_spill] sm:$0xff] %v10220_v59  ;;  %4070 = vmatpush1.msra.mxu0 %v14358_v27  ;;  %v10232_v13 = vadd.f32 %v14359_v57, %v2164_v26  ;;  %14362 = vst [vmem:[#allocation211_spill] sm:$0xff] %v10235_v1  ;;  %v14365_v14 = vld [vmem:[#allocation217_spill] sm:$0xff]  ;;  %v14367_v26 = vld [vmem:[#allocation266_spill] sm:$0xff]  ;;  %v14371_v1 = vmax.f32 %v14370_v28, 0.0 }
 0x2ef   : > { %4136 = vmatprep.subr.mxu1 %v14356_v30  ;;  %v14366_v45 = vmax.f32 %v14365_v14, 0.0  ;;  %v10244_v30 = vadd.f32 %v14359_v57, %v2163_v7  ;;  %v2428_v27 = vadd.f32 %v1916_v16, %v14367_v26  ;;  %v14368_v15 = vld [vmem:[#allocation165_spill] sm:$0xff]  ;;  %v14373_v14 = vld [vmem:[#allocation370_spill] sm:$0xff]  ;;  %v14595_v59 = vld [vmem:[#allocation15_spill] sm:$0xff] }
 0x2f0   : > { %14360 = vst [vmem:[#allocation59_spill] sm:$0xff] %v10232_v13  ;;  %4137 = vmatpush1.msra.mxu1 %v14364_v29  ;;  %v14369_v8 = vmax.f32 %v14368_v15, 0.0  ;;  %v14372_v29 = vld [vmem:[#allocation354_spill] sm:$0xff]  ;;  %v2427_v7 = vadd.f32 %v1915_v5, %v14373_v14  ;;  %v14375_v6 = vld [vmem:[#allocation81_spill] sm:$0xff]  ;;  %v14382_v5 = vld [vmem:[#allocation103_spill] sm:$0xff] }
 0x2f1   : > { %4071 = vmatprep.subr.mxu0 %v14366_v45  ;;  %v10257_v23 = vadd.f32 %v14352_v55, %v14372_v29  ;;  %v14374_v45 = vld [vmem:[#allocation300_spill] sm:$0xff]  ;;  %v14376_v16 = vmax.f32 %v14375_v6, 0.0  ;;  %v14377_v26 = vld [vmem:[#allocation57_spill] sm:$0xff]  ;;  %v14380_v28 = vld [vmem:[#allocation154_spill] sm:$0xff]  ;;  %v2147_v29 = vadd.f32 %v1635_v21, %v14381_v53  ;;  %v14383_v14 = vmax.f32 %v14382_v5, 0.0 }
 0x2f2   : > { %4138 = vmatprep.subr.mxu1 %v14369_v8  ;;  %4072 = vmatpush1.msra.mxu0 %v14371_v1  ;;  %v2148_v57 = vadd.f32 %v1636_v38, %v14374_v45  ;;  %v14378_v33 = vmax.f32 %v14377_v26, 0.0  ;;  %v14379_v8 = vld [vmem:[#allocation97_spill] sm:$0xff]  ;;  %v2420_v1 = vadd.f32 %v1908_v39, %v14380_v28  ;;  %v14384_v38 = vld [vmem:[#allocation42_spill] sm:$0xff]  ;;  %v14386_v6 = vld [vmem:[#allocation423_spill] sm:$0xff] }
 0x2f3   : > { %4139 = vmatpush1.msra.mxu1 %v14376_v16  ;;  %v10267_v15 = vadd.f32 %v14379_v8, %v2428_v27  ;;  %v14385_v45 = vmax.f32 %v14384_v38, 0.0  ;;  %v2419_v16 = vadd.f32 %v1907_v44, %v14386_v6  ;;  %v1899_v27 = vmul.f32 %v14197_v51, %v14387_v24  ;;  %v14388_v26 = vld [vmem:[#allocation41_spill] sm:$0xff]  ;;  %v14390_v21 = vld [vmem:[#allocation147_spill] sm:$0xff]  ;;  %v14395_v55 = vld [vmem:[#allocation180_spill] sm:$0xff] }
 0x2f4   : > { %4073 = vmatprep.subr.mxu0 %v14378_v33  ;;  %4140 = vmatprep.subr.mxu1 %v14383_v14  ;;  %v1900_v33 = vmul.f32 %v13684_v9, %v14387_v24  ;;  %v14389_v53 = vmax.f32 %v14388_v26, 0.0  ;;  %v14391_v28 = vmax.f32 %v14390_v21, 0.0  ;;  %v10287_v5 = vadd.f32 %v14379_v8, %v2427_v7  ;;  %v14393_v14 = vld [vmem:[#allocation9_spill] sm:$0xff]  ;;  %v14397_v39 = vld [vmem:[#allocation148_spill] sm:$0xff]  ;;  %v14403_v6 = vld [vmem:[#allocation143_spill] sm:$0xff] }
 0x2f5   : > { %4074 = vmatpush1.msra.mxu0 %v14385_v45  ;;  %v1620_v44 = vmul.f32 %v13684_v9, %v14393_v14  ;;  %v14394_v38 = vld [vmem:[#allocation437_spill] sm:$0xff]  ;;  %v14396_v24 = vmax.f32 %v14395_v55, 0.0  ;;  %v14398_v26 = vmax.f32 %v14397_v39, 0.0  ;;  %v1619_v7 = vmul.f32 %v14197_v51, %v14393_v14  ;;  %v14405_v39 = vld [vmem:[#allocation35_spill] sm:$0xff]  ;;  %v14408_v14 = vld [vmem:[#allocation98_spill] sm:$0xff] }
 0x2f6   : > { %4141 = vmatpush1.msra.mxu1 %v14389_v53  ;;  %4075 = vmatprep.subr.mxu0 %v14391_v28  ;;  %14392 = vst [vmem:[#allocation183_spill] sm:$0xff] %v10287_v5  ;;  %v1892_v45 = vmul.f32 %v13684_v9, %v14394_v38  ;;  %v14399_v53 = vld [vmem:[#allocation346_spill] sm:$0xff]  ;;  %v1891_v28 = vmul.f32 %v14197_v51, %v14394_v38  ;;  %v14404_v55 = vmax.f32 %v14403_v6, 0.0  ;;  %v14411_v38 = vld [vmem:[#allocation197_spill] sm:$0xff] }
 0x2f7   : > { %4142 = vmatprep.subr.mxu1 %v14396_v24  ;;  %4076 = vmatpush1.msra.mxu0 %v14398_v26  ;;  %v10299_v21 = vadd.f32 %v14399_v53, %v2148_v57  ;;  %v10312_v26 = vadd.f32 %v14405_v39, %v2420_v1  ;;  %v10315_v57 = vadd.f32 %v14399_v53, %v2147_v29  ;;  %v14412_v8 = vmax.f32 %v14411_v38, 0.0  ;;  %v14416_v24 = vld [vmem:[#allocation222_spill] sm:$0xff]  ;;  %v14420_v38 = vld [vmem:[#allocation425_spill] sm:$0xff] }
 0x2f8   : > { %4143 = vmatpush1.msra.mxu1 %v14402_v35  ;;  %4077 = vmatprep.subr.mxu0 %v14404_v55  ;;  %v10319_v43 = vadd.f32 %v14409_v46, %v14408_v14  ;;  %v14414_v35 = vmax.f32 %v14413_v61, 0.0  ;;  %v10327_v55 = vadd.f32 %v14405_v39, %v2419_v16  ;;  %v2412_v1 = vadd.f32 %v1900_v33, %v9857_v47  ;;  %v14418_v14 = vld [vmem:[#allocation58_spill] sm:$0xff]  ;;  %v14422_v6 = vld [vmem:[#allocation441_spill] sm:$0xff]  ;;  %v14423_v39 = vld [vmem:[#allocation76_spill] sm:$0xff] }
 0x2f9   : > { %14400 = vst [vmem:[#allocation136_spill] sm:$0xff] %v10299_v21  ;;  %14406 = vst [vmem:[#allocation372_spill] sm:$0xff] %v10312_v26  ;;  %4144 = vmatprep.subr.mxu1 %v14412_v8  ;;  %v2411_v29 = vadd.f32 %v1899_v27, %v9861_v52  ;;  %v14417_v53 = vmax.f32 %v14416_v24, 0.0  ;;  %v14419_v54 = vmax.f32 %v14418_v14, 0.0  ;;  %v2132_v61 = vadd.f32 %v1620_v44, %v14420_v38  ;;  %v14425_v47 = vld [vmem:[#allocation159_spill] sm:$0xff]  ;;  %v14427_v27 = vld [vmem:[#allocation157_spill] sm:$0xff] }
 0x2fa   : > { %14407 = vst [vmem:[#allocation223_spill] sm:$0xff] %v10315_v57  ;;  %14410 = vst [vmem:[#allocation219_spill] sm:$0xff] %v10319_v43  ;;  %4078 = vmatpush1.msra.mxu0 %v14414_v35  ;;  %v14421_v35 = vld [vmem:[#allocation426_spill] sm:$0xff]  ;;  %v1884_v16 = vmul.f32 %v13684_v9, %v14422_v6  ;;  %v14426_v52 = vmax.f32 %v14425_v47, 0.0  ;;  %v14430_v44 = vld [vmem:[#allocation428_spill] sm:$0xff] }
 0x2fb   : > { %14415 = vst [vmem:[#allocation220_spill] sm:$0xff] %v10327_v55  ;;  %4145 = vmatpush1.msra.mxu1 %v14417_v53  ;;  %4079 = vmatprep.subr.mxu0 %v14419_v54  ;;  %v2404_v57 = vadd.f32 %v1892_v45, %v14421_v35  ;;  %v14424_v55 = vmax.f32 %v14423_v39, 0.0  ;;  %v10347_v54 = vadd.f32 %v14409_v46, %v14427_v27  ;;  %v14429_v53 = vld [vmem:[#allocation427_spill] sm:$0xff]  ;;  %v14431_v45 = vld [vmem:[#allocation326_spill] sm:$0xff]  ;;  %v14438_v27 = vld [vmem:[#allocation289_spill] sm:$0xff] }
 0x2fc   : > { %4080 = vmatpush2.msra.mxu0 %v14426_v52  ;;  %v2131_v24 = vadd.f32 %v1619_v7, %v14429_v53  ;;  %v2403_v14 = vadd.f32 %v1891_v28, %v14430_v44  ;;  %v14432_v38 = vmax.f32 %v14431_v45, 0.0  ;;  %v14433_v35 = vld [vmem:[#allocation151_spill] sm:$0xff]  ;;  %v10364_v33 = vadd.f32 %v9748_v10, %v14438_v27  ;;  %v14440_v7 = vld [vmem:[#allocation138_spill] sm:$0xff]  ;;  %v14446_v39 = vld [vmem:[#allocation333_spill] sm:$0xff] }
 0x2fd   : > { %4146 = vmatprep.subr.mxu1 %v14424_v55  ;;  %14428 = vst [vmem:[#allocation374_spill] sm:$0xff] %v10347_v54  ;;  %v14434_v8 = vmax.f32 %v14433_v35, 0.0  ;;  %v14435_v55 = vld [vmem:[#allocation127_spill] sm:$0xff]  ;;  %v14441_v28 = vmax.f32 %v14440_v7, 0.0  ;;  %v1883_v45 = vmul.f32 %v14197_v51, %v14422_v6  ;;  %v14447_v27 = vmax.f32 %v14446_v39, 0.0  ;;  %v14472_v39 = vld [vmem:[#allocation429_spill] sm:$0xff] }
 0x2fe   : > { %4147 = vmatpush1.msra.mxu1 %v14432_v38  ;;  %v10357_v47 = vadd.f32 %v14435_v55, %v2412_v1  ;;  %v10360_v52 = vadd.f32 %v14435_v55, %v2411_v29  ;;  %14439 = vst [vmem:[#allocation411_spill] sm:$0xff] %v10364_v33  ;;  %v14442_v53 = vld [vmem:[#allocation311_spill] sm:$0xff]  ;;  %v14444_v1 = vld [vmem:[#allocation294_spill] sm:$0xff]  ;;  %v14448_v55 = vld [vmem:[#allocation144_spill] sm:$0xff]  ;;  %v2396_v6 = vadd.f32 %v1884_v16, %v9932_v12 }
 0x2ff   : > { %4081 = vmatprep.subr.mxu0 %v14434_v8  ;;  %4148 = vmatprep.subr.mxu1 %v14441_v28  ;;  %v14443_v44 = vmax.f32 %v14442_v53, 0.0  ;;  %v1604_v38 = vmul.f32 %v13684_v9, %v14444_v1  ;;  %v14445_v29 = vld [vmem:[#allocation11_spill] sm:$0xff]  ;;  %v14449_v7 = vmax.f32 %v14448_v55, 0.0  ;;  %v14450_v53 = vld [vmem:[#allocation352_spill] sm:$0xff]  ;;  %v14452_v8 = vld [vmem:[#allocation274_spill] sm:$0xff] }
 0x300   : > { %14436 = vst [vmem:[#allocation278_spill] sm:$0xff] %v10357_v47  ;;  %14437 = vst [vmem:[#allocation315_spill] sm:$0xff] %v10360_v52  ;;  %v1876_v35 = vmul.f32 %v13684_v9, %v14445_v29  ;;  %4149 = vmatpush1.msra.mxu1 %v14447_v27  ;;  %v10386_v46 = vadd.f32 %v14452_v8, %v2404_v57  ;;  %v14456_v33 = vld [vmem:[#allocation145_spill] sm:$0xff]  ;;  %v10395_v55 = vadd.f32 %v14450_v53, %v2131_v24  ;;  %v14710_v54 = vld [vmem:[#allocation54_spill] sm:$0xff] }
 0x301   : > { %4082 = vmatpush2.msra.mxu0 %v14443_v44  ;;  %v10383_v44 = vadd.f32 %v14450_v53, %v2132_v61  ;;  %4150 = vmatprep.subr.mxu1 %v14455_v48  ;;  %v14457_v52 = vmax.f32 %v14456_v33, 0.0  ;;  %v10398_v27 = vadd.f32 %v14452_v8, %v2403_v14  ;;  %v1603_v57 = vmul.f32 %v14197_v51, %v14444_v1  ;;  %v14460_v61 = vld [vmem:[#allocation142_spill] sm:$0xff]  ;;  %v14462_v12 = vld [vmem:[#allocation305_spill] sm:$0xff] }
 0x302   : > { %4083 = vmatprep.subr.mxu0 %v14449_v7  ;;  %14453 = vst [vmem:[#allocation279_spill] sm:$0xff] %v10386_v46  ;;  %14458 = vst [vmem:[#allocation413_spill] sm:$0xff] %v10395_v55  ;;  %v14461_v7 = vmax.f32 %v14460_v61, 0.0  ;;  %v14463_v2 = vmax.f32 %v14462_v12, 0.0  ;;  %v10408_v16 = vadd.f32 %v9669_v63, %v2396_v6  ;;  %v14465_v33 = vld [vmem:[#allocation126_spill] sm:$0xff]  ;;  %v1875_v14 = vmul.f32 %v14197_v51, %v14445_v29  ;;  %v14474_v53 = vld [vmem:[#allocation133_spill] sm:$0xff] }
 0x303   : > { %14451 = vst [vmem:[#allocation252_spill] sm:$0xff] %v10383_v44  ;;  %4084 = vmatpush2.msra.mxu0 %v14457_v52  ;;  %14459 = vst [vmem:[#allocation88_spill] sm:$0xff] %v10398_v27  ;;  %v10412_v24 = vadd.f32 %v9748_v10, %v14465_v33  ;;  %v14467_v52 = vld [vmem:[#allocation407_spill] sm:$0xff]  ;;  %v14469_v61 = vld [vmem:[#allocation306_spill] sm:$0xff]  ;;  %v2116_v6 = vadd.f32 %v1604_v38, %v14472_v39  ;;  %v14475_v33 = vmax.f32 %v14474_v53, 0.0  ;;  %v14711_v47 = vmax.f32 %v14710_v54, 0.0 }
 0x304   : > { %4151 = vmatpush2.msra.mxu1 %v14461_v7  ;;  %4085 = vmatprep.subr.mxu0 %v14463_v2  ;;  %14464 = vst [vmem:[#allocation236_spill] sm:$0xff] %v10408_v16  ;;  %v14468_v28 = vmax.f32 %v14467_v52, 0.0  ;;  %v14470_v7 = vmax.f32 %v14469_v61, 0.0  ;;  %v14471_v2 = vld [vmem:[#allocation258_spill] sm:$0xff]  ;;  %v14476_v10 = vld [vmem:[#allocation227_spill] sm:$0xff]  ;;  %v14479_v12 = vld [vmem:[#allocation120_spill] sm:$0xff] }
 0x305   : > { %14466 = vst [vmem:[#allocation387_spill] sm:$0xff] %v10412_v24  ;;  %v2395_v48 = vadd.f32 %v1883_v45, %v14471_v2  ;;  %v14473_v1 = vld [vmem:[#allocation430_spill] sm:$0xff]  ;;  %v14477_v25 = vmax.f32 %v14476_v10, 0.0  ;;  %v1860_v45 = vmul.f32 %v13684_v9, %v14479_v12  ;;  %v14486_v52 = vld [vmem:[#allocation403_spill] sm:$0xff]  ;;  %v14488_v29 = vld [vmem:[#allocation44_spill] sm:$0xff] }
 0x306   : > { %4152 = vmatprep.subr.mxu1 %v14468_v28  ;;  %4086 = vmatpush2.msra.mxu0 %v14470_v7  ;;  %v2388_v8 = vadd.f32 %v1876_v35, %v14473_v1  ;;  %v14478_v28 = vld [vmem:[#allocation260_spill] sm:$0xff]  ;;  %v14480_v38 = vld [vmem:[#allocation310_spill] sm:$0xff]  ;;  %v14482_v1 = vld [vmem:[#allocation357_spill] sm:$0xff]  ;;  %v14489_v11 = vmax.f32 %v14488_v29, 0.0 }
 0x307   : > { %4153 = vmatpush2.msra.mxu1 %v14475_v33  ;;  %4087 = vmatprep.subr.mxu0 %v14477_v25  ;;  %v1868_v61 = vmul.f32 %v13684_v9, %v14478_v28  ;;  %v1867_v7 = vmul.f32 %v14197_v51, %v14478_v28  ;;  %v14481_v39 = vmax.f32 %v14480_v38, 0.0  ;;  %v14483_v35 = vmax.f32 %v14482_v1, 0.0  ;;  %v14485_v53 = vld [vmem:[#allocation286_spill] sm:$0xff]  ;;  %v14499_v29 = vld [vmem:[#allocation353_spill] sm:$0xff]  ;;  %v14694_v44 = vld [vmem:[#allocation396_spill] sm:$0xff] }
 0x308   : > { %v10441_v25 = vadd.f32 %v9669_v63, %v2395_v48  ;;  %v2115_v2 = vadd.f32 %v1603_v57, %v14485_v53  ;;  %v1859_v33 = vmul.f32 %v14197_v51, %v14479_v12  ;;  %v14487_v28 = vmax.f32 %v14486_v52, 0.0  ;;  %v14492_v10 = vld [vmem:[#allocation46_spill] sm:$0xff]  ;;  %v14493_v48 = vld [vmem:[#allocation47_spill] sm:$0xff]  ;;  %v14494_v57 = vld [vmem:[#allocation385_spill] sm:$0xff] }
 0x309   : > { %4154 = vmatprep.subr.mxu1 %v14481_v39  ;;  %4088 = vmatpush2.msra.mxu0 %v14483_v35  ;;  %v14490_v39 = vld [vmem:[#allocation432_spill] sm:$0xff]  ;;  %v14491_v35 = vld [vmem:[#allocation331_spill] sm:$0xff]  ;;  %v14495_v53 = vmax.f32 %v14494_v57, 0.0  ;;  %v14496_v12 = vld [vmem:[#allocation45_spill] sm:$0xff] }
 0x30a   : > { %14484 = vst [vmem:[#allocation251_spill] sm:$0xff] %v10441_v25  ;;  %4155 = vmatpush2.msra.mxu1 %v14487_v28  ;;  %4089 = vmatprep.subr.mxu0 %v14489_v11  ;;  %v2387_v1 = vadd.f32 %v1875_v14, %v14490_v39  ;;  %v1059_v18 = vmul.f32 %v14492_v10, %v14491_v35  ;;  %v14497_v19 = vmax.f32 %v14496_v12, 0.0  ;;  %v14501_v28 = vld [vmem:[#allocation19_spill] sm:$0xff]  ;;  %v14502_v38 = vld [vmem:[#allocation129_spill] sm:$0xff]  ;;  %v14504_v57 = vld [vmem:[#allocation86_spill] sm:$0xff] }
 0x30b   : > { %v1058_v63 = vmul.f32 %v14493_v48, %v14491_v35  ;;  %4156 = vmatprep.subr.mxu1 %v14495_v53  ;;  %v10462_v11 = vadd.f32 %v9835_v3, %v2116_v6  ;;  %v10466_v14 = vadd.f32 %v9869_v56, %v14499_v29  ;;  %v1852_v39 = vmul.f32 %v13684_v9, %v14501_v28  ;;  %v14509_v29 = vld [vmem:[#allocation384_spill] sm:$0xff]  ;;  %v14511_v16 = vld [vmem:[#allocation25_spill] sm:$0xff] }
 0x30c   : > { %4090 = vmatpush2.msra.mxu0 %v14497_v19  ;;  %v14503_v35 = vmax.f32 %v14502_v38, 0.0  ;;  %v14505_v53 = vmax.f32 %v14504_v57, 0.0  ;;  %v2380_v12 = vadd.f32 %v1868_v61, %v1059_v18  ;;  %v2372_v6 = vadd.f32 %v1860_v45, %v14506_v34  ;;  %v14513_v18 = vld [vmem:[#allocation174_spill] sm:$0xff]  ;;  %v14515_v34 = vld [vmem:[#allocation137_spill] sm:$0xff] }
 0x30d   : > { %14498 = vst [vmem:[#allocation272_spill] sm:$0xff] %v10462_v11  ;;  %14500 = vst [vmem:[#allocation273_spill] sm:$0xff] %v10466_v14  ;;  %v2379_v52 = vadd.f32 %v1867_v7, %v1058_v63  ;;  %v14507_v11 = vld [vmem:[#allocation173_spill] sm:$0xff]  ;;  %v14510_v14 = vmax.f32 %v14509_v29, 0.0  ;;  %v2371_v38 = vadd.f32 %v1859_v33, %v14511_v16  ;;  %v14514_v63 = vmax.f32 %v14513_v18, 0.0  ;;  %v14517_v45 = vld [vmem:[#allocation182_spill] sm:$0xff] }
 0x30e   : > { %4157 = vmatpush2.msra.mxu1 %v14503_v35  ;;  %4091 = vmatprep.subr.mxu0 %v14505_v53  ;;  %v14508_v25 = vmax.f32 %v14507_v11, 0.0  ;;  %v14512_v35 = vld [vmem:[#allocation321_spill] sm:$0xff]  ;;  %v1851_v53 = vmul.f32 %v14197_v51, %v14501_v28  ;;  %v14516_v61 = vmax.f32 %v14515_v34, 0.0  ;;  %v10495_v11 = vadd.f32 %v9835_v3, %v2115_v2  ;;  %v14523_v51 = vld [vmem:[#allocation7_spill] sm:$0xff]  ;;  %v14581_v29 = vld [vmem:[#allocation288_spill] sm:$0xff] }
 0x30f   : > { %4092 = vmatpush2.msra.mxu0 %v14510_v14  ;;  %v1043_v57 = vmul.f32 %v14492_v10, %v14512_v35  ;;  %v10498_v16 = vadd.f32 %v14517_v45, %v2387_v1  ;;  %v14521_v10 = vld [vmem:[#allocation438_spill] sm:$0xff]  ;;  %v14524_v14 = vmax.f32 %v14523_v51, 0.0  ;;  %v1042_v2 = vmul.f32 %v14493_v48, %v14512_v35  ;;  %v14530_v1 = vld [vmem:[#allocation433_spill] sm:$0xff]  ;;  %v14551_v35 = vld [vmem:[#allocation351_spill] sm:$0xff] }
 0x310   : > { %4158 = vmatprep.subr.mxu1 %v14508_v25  ;;  %4093 = vmatprep.subr.mxu0 %v14516_v61  ;;  %v10492_v25 = vadd.f32 %v14517_v45, %v2388_v8  ;;  %14519 = vst [vmem:[#allocation241_spill] sm:$0xff] %v10495_v11  ;;  %v14522_v33 = vmax.f32 %v14521_v10, 0.0  ;;  %v14528_v61 = vld [vmem:[#allocation439_spill] sm:$0xff]  ;;  %v14531_v9 = vmax.f32 %v14530_v1, 0.0  ;;  %v14539_v48 = vld [vmem:[#allocation434_spill] sm:$0xff]  ;;  %v14704_v55 = vld [vmem:[#allocation73_spill] sm:$0xff] }
 0x311   : > { %4159 = vmatpush2.msra.mxu1 %v14514_v63  ;;  %14520 = vst [vmem:[#allocation17_spill] sm:$0xff] %v10498_v16  ;;  %4094 = vmatpush2.msra.mxu0 %v14524_v14  ;;  %v14526_v63 = vld [vmem:[#allocation363_spill] sm:$0xff]  ;;  %v2364_v8 = vadd.f32 %v1852_v39, %v1043_v57  ;;  %v14529_v7 = vmax.f32 %v14528_v61, 0.0  ;;  %v14540_v61 = vmax.f32 %v14539_v48, 0.0  ;;  %v2363_v1 = vadd.f32 %v1851_v53, %v1042_v2  ;;  %v14548_v48 = vld [vmem:[#allocation349_spill] sm:$0xff]  ;;  %v14772_v11 = vld [vmem:[#allocation324_spill] sm:$0xff] }
 0x312   : > { %14518 = vst [vmem:[#allocation388_spill] sm:$0xff] %v10492_v25  ;;  %4160 = vmatprep.subr.mxu1 %v14522_v33  ;;  %v10507_v34 = vadd.f32 %v9869_v56, %v14526_v63  ;;  %4095 = vmatprep.subr.mxu0 %v14531_v9  ;;  %v14532_v33 = vld [vmem:[#allocation13_spill] sm:$0xff]  ;;  %v14537_v39 = vld [vmem:[#allocation155_spill] sm:$0xff]  ;;  %v14705_v46 = vmax.f32 %v14704_v55, 0.0  ;;  %v14780_v25 = vld [vmem:[#allocation168_spill] sm:$0xff] }
 0x313   : > { %4161 = vmatpush2.msra.mxu1 %v14529_v7  ;;  %v10517_v51 = vadd.f32 %v14532_v33, %v2380_v12  ;;  %v10520_v14 = vadd.f32 %v14532_v33, %v2379_v52  ;;  %v14535_v63 = vld [vmem:[#allocation281_spill] sm:$0xff]  ;;  %v14538_v57 = vmax.f32 %v14537_v39, 0.0  ;;  %4096 = vmatpush2.msra.mxu0 %v14540_v61  ;;  %v10534_v12 = vadd.f32 %v9903_v0, %v2364_v8  ;;  %v14543_v52 = vld [vmem:[#allocation420_spill] sm:$0xff]  ;;  %v14550_v7 = vld [vmem:[#allocation314_spill] sm:$0xff] }
 0x314   : > { %14527 = vst [vmem:[#allocation330_spill] sm:$0xff] %v10507_v34  ;;  %v10523_v18 = vadd.f32 %v14535_v63, %v2372_v6  ;;  %v10531_v9 = vadd.f32 %v14535_v63, %v2371_v38  ;;  %v14544_v10 = vmax.f32 %v14543_v52, 0.0  ;;  %v14545_v6 = vld [vmem:[#allocation161_spill] sm:$0xff]  ;;  %v10547_v38 = vadd.f32 %v14551_v35, %v14550_v7  ;;  %v14553_v63 = vld [vmem:[#allocation184_spill] sm:$0xff]  ;;  %v14556_v53 = vld [vmem:[#allocation247_spill] sm:$0xff] }
 0x315   : > { %14533 = vst [vmem:[#allocation242_spill] sm:$0xff] %v10517_v51  ;;  %14534 = vst [vmem:[#allocation334_spill] sm:$0xff] %v10520_v14  ;;  %4162 = vmatprep.subr.mxu1 %v14538_v57  ;;  %v14546_v19 = vmax.f32 %v14545_v6, 0.0  ;;  %v14547_v57 = vld [vmem:[#allocation376_spill] sm:$0xff]  ;;  %v14557_v2 = vmax.f32 %v14556_v53, 0.0  ;;  %v10559_v39 = vadd.f32 %v9903_v0, %v2363_v1  ;;  %v14568_v53 = vld [vmem:[#allocation275_spill] sm:$0xff] }
 0x316   : > { %14536 = vst [vmem:[#allocation256_spill] sm:$0xff] %v10523_v18  ;;  %14541 = vst [vmem:[#allocation421_spill] sm:$0xff] %v10531_v9  ;;  %4163 = vmatpush2.msra.mxu1 %v14544_v10  ;;  %v10543_v61 = vadd.f32 %v14548_v48, %v14547_v57  ;;  %v14554_v8 = vld [vmem:[#allocation244_spill] sm:$0xff]  ;;  %v14558_v10 = vld [vmem:[#allocation277_spill] sm:$0xff] }
 0x317   : > { %14542 = vst [vmem:[#allocation50_spill] sm:$0xff] %v10534_v12  ;;  %4097 = vmatprep.subr.mxu0 %v14546_v19  ;;  %14552 = vst [vmem:[#allocation381_spill] sm:$0xff] %v10547_v38  ;;  %v10551_v33 = vadd.f32 %v14554_v8, %v14553_v63  ;;  %4164 = vmatprep.subr.mxu1 %v14557_v2  ;;  %v14559_v52 = vmax.f32 %v14558_v10, 0.0  ;;  %v14562_v57 = vld [vmem:[#allocation115_spill] sm:$0xff]  ;;  %v14564_v7 = vld [vmem:[#allocation8_spill] sm:$0xff]  ;;  %v14569_v2 = vmax.f32 %v14568_v53, 0.0 }
 0x318   : > { %14549 = vst [vmem:[#allocation336_spill] sm:$0xff] %v10543_v61  ;;  %14561 = vst [vmem:[#allocation337_spill] sm:$0xff] %v10559_v39  ;;  %v10563_v48 = vadd.f32 %v14551_v35, %v14562_v57  ;;  %v10567_v28 = vadd.f32 %v14554_v8, %v14564_v7  ;;  %v14566_v63 = vld [vmem:[#allocation121_spill] sm:$0xff]  ;;  %v14571_v6 = vld [vmem:[#allocation287_spill] sm:$0xff] }
 0x319   : > { %14555 = vst [vmem:[#allocation94_spill] sm:$0xff] %v10551_v33  ;;  %4098 = vmatpush2.msra.mxu0 %v14559_v52  ;;  %v14567_v56 = vmax.f32 %v14566_v63, 0.0  ;;  %v14570_v52 = vld [vmem:[#allocation112_spill] sm:$0xff]  ;;  %v14572_v0 = vld [vmem:[#allocation355_spill] sm:$0xff]  ;;  %v14579_v53 = vld [vmem:[#allocation233_spill] sm:$0xff] }
 0x31a   : > { %14563 = vst [vmem:[#allocation422_spill] sm:$0xff] %v10563_v48  ;;  %14565 = vst [vmem:[#allocation373_spill] sm:$0xff] %v10567_v28  ;;  %4099 = vmatprep.subr.mxu0 %v14569_v2  ;;  %v725_v1 = vmul.f32 %v14571_v6, %v14570_v52  ;;  %v14573_v45 = vld [vmem:[#allocation267_spill] sm:$0xff]  ;;  %v14575_v19 = vld [vmem:[#allocation156_spill] sm:$0xff]  ;;  %v1533_v60 = vmul.f32 %v14581_v29, %v14572_v0 }
 0x31b   : > { %4165 = vmatpush2.msra.mxu1 %v14567_v56  ;;  %v1534_v3 = vmul.f32 %v14573_v45, %v14572_v0  ;;  %v14574_v35 = vld [vmem:[#allocation307_spill] sm:$0xff]  ;;  %v14576_v8 = vmax.f32 %v14575_v19, 0.0  ;;  %v14577_v7 = vld [vmem:[#allocation24_spill] sm:$0xff]  ;;  %v1806_v2 = vmul.f32 %v14573_v45, %v14579_v53  ;;  %v14588_v39 = vld [vmem:[#allocation6_spill] sm:$0xff] }
 0x31c   : > { %v997_v57 = vmul.f32 %v14571_v6, %v14574_v35  ;;  %v14578_v63 = vmax.f32 %v14577_v7, 0.0  ;;  %v14580_v10 = vld [vmem:[#allocation440_spill] sm:$0xff]  ;;  %v14586_v7 = vld [vmem:[#allocation255_spill] sm:$0xff]  ;;  %v14589_v48 = vmax.f32 %v14588_v39, 0.0  ;;  %v14590_v0 = vld [vmem:[#allocation265_spill] sm:$0xff] }
 0x31d   : > { %4166 = vmatprep.subr.mxu1 %v14576_v8  ;;  %v724_v36 = vmul.f32 %v14580_v10, %v14570_v52  ;;  %v14584_v28 = vld [vmem:[#allocation280_spill] sm:$0xff]  ;;  %v996_v17 = vmul.f32 %v14580_v10, %v14574_v35  ;;  %v1805_v52 = vmul.f32 %v14581_v29, %v14579_v53  ;;  %v14591_v42 = vmax.f32 %v14590_v0, 0.0  ;;  %v14597_v35 = vld [vmem:[#allocation226_spill] sm:$0xff]  ;;  %v14603_v0 = vld [vmem:[#allocation211_spill] sm:$0xff] }
 0x31e   : > { %4100 = vmatpush2.msra.mxu0 %v14578_v63  ;;  %4167 = vmatpush2.msra.mxu1 %v14583_v37  ;;  %v14585_v19 = vmax.f32 %v14584_v28, 0.0  ;;  %v14587_v63 = vld [vmem:[#allocation56_spill] sm:$0xff]  ;;  %v14592_v28 = vld [vmem:[#allocation254_spill] sm:$0xff]  ;;  %v14604_v37 = vld [vmem:[#allocation237_spill] sm:$0xff] }
 0x31f   : > { %v2326_v56 = vadd.f32 %v14587_v63, %v14586_v7  ;;  %4168 = vmatprep.subr.mxu1 %v14589_v48  ;;  %v14598_v63 = vld [vmem:[#allocation290_spill] sm:$0xff]  ;;  %v14599_v53 = vld [vmem:[#allocation240_spill] sm:$0xff]  ;;  %v14708_v27 = vld [vmem:[#allocation245_spill] sm:$0xff] }
 0x320   : > { %4101 = vmatprep.subr.mxu0 %v14585_v19  ;;  %v14593_v19 = vld [vmem:[#allocation379_spill] sm:$0xff]  ;;  %v2325_v33 = vadd.f32 %v14598_v63, %v14597_v35  ;;  %v14600_v38 = vmax.f32 %v14599_v53, 0.0  ;;  %v14601_v39 = vld [vmem:[#allocation262_spill] sm:$0xff]  ;;  %v2318_v63 = vadd.f32 %v1806_v2, %v997_v57  ;;  %v2045_v53 = vadd.f32 %v1533_v60, %v724_v36  ;;  %v14739_v26 = vld [vmem:[#allocation177_spill] sm:$0xff] }
 0x321   : > { %4102 = vmatpush2.msra.mxu0 %v14591_v42  ;;  %v10609_v8 = vadd.f32 %v14593_v19, %v14592_v28  ;;  %v10613_v7 = vadd.f32 %v14593_v19, %v14595_v59  ;;  %v14602_v48 = vmax.f32 %v14601_v39, 0.0  ;;  %v10623_v13 = vadd.f32 %v14604_v37, %v2326_v56  ;;  %v14606_v59 = vld [vmem:[#allocation268_spill] sm:$0xff]  ;;  %v14610_v39 = vld [vmem:[#allocation366_spill] sm:$0xff]  ;;  %v14762_v34 = vld [vmem:[#allocation359_spill] sm:$0xff] }
 0x322   : > { %4169 = vmatpush2.msra.mxu1 %v14600_v38  ;;  %v2046_v28 = vadd.f32 %v1534_v3, %v725_v1  ;;  %v14607_v19 = vmax.f32 %v14606_v59, 0.0  ;;  %v14611_v42 = vld [vmem:[#allocation276_spill] sm:$0xff]  ;;  %v14613_v3 = vmax.f32 %v9994_v49, 0.0  ;;  %v10640_v59 = vadd.f32 %v14604_v37, %v2325_v33  ;;  %v14616_v57 = vld [vmem:[#allocation270_spill] sm:$0xff]  ;;  %v14621_v33 = vld [vmem:[#allocation101_spill] sm:$0xff] }
 0x323   : > { %14594 = vst [vmem:[#allocation91_spill] sm:$0xff] %v10609_v8  ;;  %14596 = vst [vmem:[#allocation188_spill] sm:$0xff] %v10613_v7  ;;  %4103 = vmatprep.subr.mxu0 %v14602_v48  ;;  %v14605_v8 = vld [vmem:[#allocation18_spill] sm:$0xff]  ;;  %v14608_v7 = vld [vmem:[#allocation263_spill] sm:$0xff]  ;;  %v1798_v48 = vmul.f32 %v14573_v45, %v14610_v39  ;;  %v14612_v56 = vmax.f32 %v14611_v42, 0.0  ;;  %v14617_v60 = vmax.f32 %v14616_v57, 0.0  ;;  %v989_v37 = vmul.f32 %v14571_v6, %v14621_v33 }
 0x324   : > { %v1526_v61 = vmul.f32 %v14573_v45, %v14605_v8  ;;  %4170 = vmatprep.subr.mxu1 %v14607_v19  ;;  %v14609_v35 = vmax.f32 %v14608_v7, 0.0  ;;  %v14614_v7 = vld [vmem:[#allocation210_spill] sm:$0xff]  ;;  %v14618_v36 = vmax.f32 %v10028_v58, 0.0  ;;  %v14619_v42 = vld [vmem:[#allocation105_spill] sm:$0xff]  ;;  %v14626_v57 = vld [vmem:[#allocation371_spill] sm:$0xff]  ;;  %v14646_v38 = vmax.f32 %v9997_v4, 0.0 }
 0x325   : > { %4171 = vmatpush2.msra.mxu1 %v14612_v56  ;;  %v10643_v19 = vadd.f32 %v14614_v7, %v2046_v28  ;;  %v10651_v49 = vadd.f32 %v14619_v42, %v2318_v63  ;;  %v10654_v56 = vadd.f32 %v14614_v7, %v2045_v53  ;;  %v14622_v28 = vld [vmem:[#allocation443_spill] sm:$0xff]  ;;  %v1525_v53 = vmul.f32 %v14581_v29, %v14605_v8  ;;  %v14641_v2 = vld [vmem:[#allocation238_spill] sm:$0xff] }
 0x326   : > { %4104 = vmatpush2.msra.mxu0 %v14609_v35  ;;  %v2317_v35 = vadd.f32 %v1805_v52, %v996_v17  ;;  %4172 = vmatprep.subr.mxu1 %v14617_v60  ;;  %v14624_v17 = vmax.f32 %v10084_v22, 0.0  ;;  %v2038_v63 = vadd.f32 %v1526_v61, %v14626_v57  ;;  %v14627_v7 = vld [vmem:[#allocation283_spill] sm:$0xff]  ;;  %v2310_v22 = vadd.f32 %v1798_v48, %v989_v37  ;;  %v14636_v37 = vld [vmem:[#allocation301_spill] sm:$0xff]  ;;  %v14764_v51 = vld [vmem:[#allocation66_spill] sm:$0xff] }
 0x327   : > { %4105 = vmatprep.subr.mxu0 %v14613_v3  ;;  %14615 = vst [vmem:[#allocation128_spill] sm:$0xff] %v10643_v19  ;;  %14620 = vst [vmem:[#allocation415_spill] sm:$0xff] %v10654_v56  ;;  %v14623_v3 = vmax.f32 %v14622_v28, 0.0  ;;  %v14628_v60 = vmax.f32 %v14627_v7, 0.0  ;;  %v14633_v8 = vmax.f32 %v10113_v32, 0.0  ;;  %v14634_v7 = vld [vmem:[#allocation104_spill] sm:$0xff]  ;;  %v988_v32 = vmul.f32 %v14580_v10, %v14621_v33 }
 0x328   : > { %4106 = vmatpush2.msra.mxu0 %v14618_v36  ;;  %v10664_v52 = vadd.f32 %v14619_v42, %v2317_v35  ;;  %v14629_v36 = vmax.f32 %v10097_v41, 0.0  ;;  %v1797_v35 = vmul.f32 %v14581_v29, %v14610_v39  ;;  %v14631_v42 = vld [vmem:[#allocation302_spill] sm:$0xff]  ;;  %v709_v41 = vmul.f32 %v14571_v6, %v14634_v7  ;;  %v14643_v1 = vld [vmem:[#allocation239_spill] sm:$0xff] }
 0x329   : > { %4173 = vmatpush2.msra.mxu1 %v14623_v3  ;;  %4107 = vmatprep.subr.mxu0 %v14624_v17  ;;  %v14630_v3 = vld [vmem:[#allocation16_spill] sm:$0xff]  ;;  %v14632_v61 = vmax.f32 %v14631_v42, 0.0  ;;  %v14639_v39 = vmax.f32 %v10117_v62, 0.0  ;;  %v14640_v42 = vld [vmem:[#allocation225_spill] sm:$0xff]  ;;  %v14642_v58 = vmax.f32 %v14641_v2, 0.0  ;;  %v14653_v33 = vld [vmem:[#allocation202_spill] sm:$0xff] }
 0x32a   : > { %14625 = vst [vmem:[#allocation92_spill] sm:$0xff] %v10664_v52  ;;  %4174 = vmatprep.subr.mxu1 %v14628_v60  ;;  %4108 = vmatpush2.msra.mxu0 %v14629_v36  ;;  %v716_v17 = vmul.f32 %v14580_v10, %v14630_v3  ;;  %v14635_v60 = vld [vmem:[#allocation93_spill] sm:$0xff]  ;;  %v981_v36 = vmul.f32 %v14571_v6, %v14636_v37  ;;  %v14637_v3 = vld [vmem:[#allocation271_spill] sm:$0xff]  ;;  %v14654_v4 = vmax.f32 %v14653_v33, 0.0  ;;  %v14765_v16 = vmax.f32 %v14764_v51, 0.0  ;;  %v14776_v18 = vld [vmem:[#allocation206_spill] sm:$0xff] }
 0x32b   : > { %4175 = vmatpush2.msra.mxu1 %v14632_v61  ;;  %4109 = vmatprep.subr.mxu0 %v14633_v8  ;;  %v1518_v48 = vmul.f32 %v14573_v45, %v14635_v60  ;;  %v14638_v28 = vmax.f32 %v14637_v3, 0.0  ;;  %v1790_v61 = vmul.f32 %v14573_v45, %v14640_v42  ;;  %v708_v8 = vmul.f32 %v14580_v10, %v14634_v7  ;;  %v14644_v62 = vld [vmem:[#allocation229_spill] sm:$0xff]  ;;  %v14647_v7 = vld [vmem:[#allocation318_spill] sm:$0xff]  ;;  %v14770_v14 = vld [vmem:[#allocation87_spill] sm:$0xff] }
 0x32c   : > { %4110 = vmatpush2.msra.mxu0 %v14639_v39  ;;  %v1517_v57 = vmul.f32 %v14581_v29, %v14635_v60  ;;  %v10705_v3 = vadd.f32 %v14644_v62, %v2038_v63  ;;  %v2037_v39 = vadd.f32 %v1525_v53, %v716_v17  ;;  %v14648_v43 = vmax.f32 %v14647_v7, 0.0  ;;  %v14656_v2 = vld [vmem:[#allocation21_spill] sm:$0xff]  ;;  %v14679_v17 = vld [vmem:[#allocation96_spill] sm:$0xff]  ;;  %v14837_v12 = vld [vmem:[#allocation291_spill] sm:$0xff] }
 0x32d   : > { %4176 = vmatprep.subr.mxu1 %v14638_v28  ;;  %4112 = vmatmul.mubr.f32.vlgmr.msra.gmra.mxu0 %v14643_v1  ;;  %v980_v1 = vmul.f32 %v14580_v10, %v14636_v37  ;;  %v1789_v63 = vmul.f32 %v14581_v29, %v14640_v42  ;;  %v14652_v53 = vmax.f32 %v10000_v50, 0.0  ;;  %v2030_v7 = vadd.f32 %v1518_v48, %v709_v41  ;;  %v14658_v37 = vld [vmem:[#allocation90_spill] sm:$0xff]  ;;  %v14664_v48 = vld [vmem:[#allocation221_spill] sm:$0xff]  ;;  %v14880_v56 = vld [vmem:[#allocation435_spill] sm:$0xff] }
 0x32e   : > { %4177 = vmatpush2.msra.mxu1 %v14642_v58  ;;  %14645 = vst [vmem:[#allocation338_spill] sm:$0xff] %v10705_v3  ;;  %4189 = vmatprep.subr.mxu0 %v14648_v43  ;;  %v14650_v58 = vld [vmem:[#allocation108_spill] sm:$0xff]  ;;  %v2309_v43 = vadd.f32 %v1797_v35, %v988_v32  ;;  %v14657_v28 = vmax.f32 %v10162_v40, 0.0  ;;  %v14659_v60 = vmax.f32 %v14658_v37, 0.0  ;;  %v10734_v50 = vadd.f32 %v14644_v62, %v2037_v39  ;;  %v14671_v39 = vld [vmem:[#allocation369_spill] sm:$0xff] }
 0x32f   : > { %4178 = vmatprep.subr.mxu1 %v14646_v38  ;;  %v10715_v21 = vadd.f32 %v14650_v58, %v2310_v22  ;;  %4190 = vmatpush1.msra.mxu0 %v14654_v4  ;;  %v1510_v22 = vmul.f32 %v14573_v45, %v14656_v2  ;;  %v2029_v33 = vadd.f32 %v1517_v57, %v708_v8  ;;  %v14661_v4 = vmax.f32 %v10165_v20, 0.0  ;;  %v10741_v35 = vld [vmem:[%s12028_s3 + $0x18] sm:$0xff]  ;;  %v14667_v20 = vld [vmem:[#allocation350_spill] sm:$0xff]  ;;  %v14669_v8 = vld [vmem:[#allocation55_spill] sm:$0xff] }
 0x330   : > { %4179 = vmatpush2.msra.mxu1 %v14652_v53  ;;  %4191 = vmatprep.subr.mxu0 %v14659_v60  ;;  %14660 = vst [vmem:[#allocation416_spill] sm:$0xff] %v10734_v50  ;;  %v2302_v53 = vadd.f32 %v1790_v61, %v981_v36  ;;  %14662 = vst [vmem:[#allocation53_spill] sm:$0xff] %v10741_v35  ;;  %v10746_v41 = vadd.f32 %v14650_v58, %v2309_v43  ;;  %v14666_v36 = vld [vmem:[#allocation14_spill] sm:$0xff]  ;;  %v14668_v61 = vmax.f32 %v14667_v20, 0.0  ;;  %v14674_v43 = vld [vmem:[#allocation67_spill] sm:$0xff] }
 0x331   : > { %14651 = vst [vmem:[#allocation299_spill] sm:$0xff] %v10715_v21  ;;  %4180 = vmatprep.subr.mxu1 %v14657_v28  ;;  %4182 = vmatprep.mubr.f32.mxu1 %v10741_v35  ;;  %v10749_v32 = vadd.f32 %v14664_v48, %v2030_v7  ;;  %v701_v57 = vmul.f32 %v14571_v6, %v14666_v36  ;;  %v14675_v7 = vmax.f32 %v14674_v43, 0.0  ;;  %v14680_v62 = vld [vmem:[#allocation364_spill] sm:$0xff]  ;;  %v14689_v20 = vld [vmem:[#allocation343_spill] sm:$0xff] }
 0x332   : > { %4181 = vmatpush2.msra.mxu1 %v14661_v4  ;;  %14663 = vst [vmem:[#allocation100_spill] sm:$0xff] %v10746_v41  ;;  %4192 = vmatpush1.msra.mxu0 %v14668_v61  ;;  %v10758_v60 = vadd.f32 %v14671_v39, %v2302_v53  ;;  %v10761_v37 = vadd.f32 %v14664_v48, %v2029_v33  ;;  %v14676_v4 = vld [vmem:[#allocation235_spill] sm:$0xff]  ;;  %v14681_v35 = vld [vmem:[#allocation68_spill] sm:$0xff]  ;;  %v14683_v33 = vld [vmem:[#allocation345_spill] sm:$0xff] }
 0x333   : > { %14665 = vst [vmem:[#allocation397_spill] sm:$0xff] %v10749_v32  ;;  %4183 = vmatmul.mubr.f32.vlgmr.msra.gmra.mxu1 %v14669_v8  ;;  %v2301_v58 = vadd.f32 %v1789_v63, %v980_v1  ;;  %4193 = vmatprep.subr.mxu0 %v14675_v7  ;;  %v14677_v42 = vmax.f32 %v14676_v4, 0.0  ;;  %v2022_v61 = vadd.f32 %v1510_v22, %v701_v57  ;;  %v14682_v28 = vmax.f32 %v14681_v35, 0.0  ;;  %v14685_v48 = vld [vmem:[#allocation99_spill] sm:$0xff]  ;;  %v14686_v57 = vld [vmem:[#allocation386_spill] sm:$0xff]  ;;  %v14687_v7 = vld [vmem:[#allocation204_spill] sm:$0xff] }
 0x334   : > { %14672 = vst [vmem:[#allocation393_spill] sm:$0xff] %v10758_v60  ;;  %14673 = vst [vmem:[#allocation130_spill] sm:$0xff] %v10761_v37  ;;  %v973_v8 = vmul.f32 %v14571_v6, %v14679_v17  ;;  %v1782_v53 = vmul.f32 %v14573_v45, %v14680_v62  ;;  %v14684_v1 = vmax.f32 %v14683_v33, 0.0  ;;  %v693_v22 = vmul.f32 %v14571_v6, %v14685_v48  ;;  %v14692_v63 = vld [vmem:[#allocation257_spill] sm:$0xff]  ;;  %v14785_v38 = vld [vmem:[#allocation344_spill] sm:$0xff] }
 0x335   : > { %4260 = vmatprep.subr.mxu1 %v14677_v42  ;;  %4194 = vmatpush1.msra.mxu0 %v14682_v28  ;;  %v1509_v42 = vmul.f32 %v14581_v29, %v14656_v2  ;;  %v1502_v43 = vmul.f32 %v14573_v45, %v14686_v57  ;;  %v14688_v4 = vmax.f32 %v14687_v7, 0.0  ;;  %v14690_v35 = vmax.f32 %v14689_v20, 0.0  ;;  %v14702_v20 = vld [vmem:[#allocation293_spill] sm:$0xff]  ;;  %v14703_v28 = vld [vmem:[#allocation224_spill] sm:$0xff] }
 0x336   : > { %4261 = vmatpush1.msra.mxu1 %v14684_v1  ;;  %v10789_v33 = vadd.f32 %v14671_v39, %v2301_v58  ;;  %v700_v2 = vmul.f32 %v14580_v10, %v14666_v36  ;;  %v1781_v1 = vmul.f32 %v14581_v29, %v14680_v62  ;;  %v14693_v40 = vmax.f32 %v14692_v63, 0.0  ;;  %v14696_v58 = vld [vmem:[#allocation347_spill] sm:$0xff]  ;;  %v14698_v62 = vld [vmem:[#allocation378_spill] sm:$0xff]  ;;  %v14907_v41 = vld [vmem:[#allocation232_spill] sm:$0xff] }
 0x337   : > { %4195 = vmatprep.subr.mxu0 %v14688_v4  ;;  %4262 = vmatprep.subr.mxu1 %v14690_v35  ;;  %v14695_v7 = vmax.f32 %v14694_v44, 0.0  ;;  %v972_v4 = vmul.f32 %v14580_v10, %v14679_v17  ;;  %v692_v39 = vmul.f32 %v14580_v10, %v14685_v48  ;;  %v1501_v36 = vmul.f32 %v14581_v29, %v14686_v57  ;;  %v14706_v57 = vld [vmem:[#allocation89_spill] sm:$0xff]  ;;  %v14922_v60 = vld [vmem:[#allocation60_spill] sm:$0xff] }
 0x338   : > { %14691 = vst [vmem:[#allocation5_spill] sm:$0xff] %v10789_v33  ;;  %4196 = vmatpush1.msra.mxu0 %v14693_v40  ;;  %v14697_v35 = vmax.f32 %v14696_v58, 0.0  ;;  %v14699_v63 = vmax.f32 %v14698_v62, 0.0  ;;  %v14700_v40 = vld [vmem:[#allocation365_spill] sm:$0xff]  ;;  %v965_v17 = vmul.f32 %v14571_v6, %v14702_v20  ;;  %v1774_v48 = vmul.f32 %v14573_v45, %v14703_v28  ;;  %v14920_v33 = vld [vmem:[#allocation342_spill] sm:$0xff] }
 0x339   : > { %4263 = vmatpush1.msra.mxu1 %v14695_v7  ;;  %v10812_v7 = vadd.f32 %v14700_v40, %v2022_v61  ;;  %v14707_v58 = vmax.f32 %v14706_v57, 0.0  ;;  %v2294_v62 = vadd.f32 %v1782_v53, %v973_v8  ;;  %v2014_v44 = vadd.f32 %v1502_v43, %v693_v22  ;;  %v14713_v57 = vld [vmem:[#allocation190_spill] sm:$0xff]  ;;  %v14718_v22 = vld [vmem:[#allocation200_spill] sm:$0xff]  ;;  %v14719_v43 = vld [vmem:[#allocation23_spill] sm:$0xff] }
 0x33a   : > { %4197 = vmatprep.subr.mxu0 %v14697_v35  ;;  %4264 = vmatprep.subr.mxu1 %v14699_v63  ;;  %v2021_v63 = vadd.f32 %v1509_v42, %v700_v2  ;;  %v14709_v61 = vmax.f32 %v14708_v27, 0.0  ;;  %v2293_v5 = vadd.f32 %v1781_v1, %v972_v4  ;;  %v1773_v55 = vmul.f32 %v14581_v29, %v14703_v28  ;;  %v14715_v8 = vld [vmem:[#allocation106_spill] sm:$0xff]  ;;  %v14720_v1 = vld [vmem:[#allocation107_spill] sm:$0xff]  ;;  %v14722_v4 = vld [vmem:[#allocation85_spill] sm:$0xff] }
 0x33b   : > { %14701 = vst [vmem:[#allocation394_spill] sm:$0xff] %v10812_v7  ;;  %4198 = vmatpush1.msra.mxu0 %v14705_v46  ;;  %4265 = vmatpush1.msra.mxu1 %v14707_v58  ;;  %v964_v46 = vmul.f32 %v14580_v10, %v14702_v20  ;;  %v14714_v58 = vmax.f32 %v14713_v57, 0.0  ;;  %v14716_v53 = vmax.f32 %v14715_v8, 0.0  ;;  %v10838_v54 = vadd.f32 %v14718_v22, %v2294_v62  ;;  %v14730_v35 = vld [vmem:[#allocation348_spill] sm:$0xff] }
 0x33c   : > { %4199 = vmatprep.subr.mxu0 %v14709_v61  ;;  %4266 = vmatprep.subr.mxu1 %v14711_v47  ;;  %v2013_v47 = vadd.f32 %v1501_v36, %v692_v39  ;;  %v1494_v2 = vmul.f32 %v14573_v45, %v14719_v43  ;;  %v14721_v20 = vmax.f32 %v14720_v1, 0.0  ;;  %v14723_v28 = vmax.f32 %v14722_v4, 0.0  ;;  %v14727_v36 = vld [vmem:[#allocation78_spill] sm:$0xff]  ;;  %v14741_v61 = vld [vmem:[#allocation332_spill] sm:$0xff] }
 0x33d   : > { %4200 = vmatpush1.msra.mxu0 %v14714_v58  ;;  %4267 = vmatpush1.msra.mxu1 %v14716_v53  ;;  %v10848_v58 = vadd.f32 %v14700_v40, %v2021_v63  ;;  %v10851_v8 = vadd.f32 %v14718_v22, %v2293_v5  ;;  %v2286_v62 = vadd.f32 %v1774_v48, %v965_v17  ;;  %v14725_v53 = vld [vmem:[#allocation246_spill] sm:$0xff]  ;;  %v14728_v42 = vmax.f32 %v14727_v36, 0.0  ;;  %v14733_v5 = vld [vmem:[#allocation79_spill] sm:$0xff] }
 0x33e   : > { %4201 = vmatprep.subr.mxu0 %v14721_v20  ;;  %4268 = vmatprep.subr.mxu1 %v14723_v28  ;;  %v14726_v39 = vmax.f32 %v14725_v53, 0.0  ;;  %v10859_v4 = vadd.f32 %v14730_v35, %v2014_v44  ;;  %v14731_v28 = vld [vmem:[#allocation12_spill] sm:$0xff]  ;;  %v14732_v40 = vld [vmem:[#allocation390_spill] sm:$0xff]  ;;  %v14734_v22 = vmax.f32 %v14733_v5, 0.0  ;;  %v2285_v36 = vadd.f32 %v1773_v55, %v964_v46  ;;  %v14745_v55 = vld [vmem:[#allocation51_spill] sm:$0xff] }
 0x33f   : > { %4269 = vmatpush1.msra.mxu1 %v14728_v42  ;;  %v685_v57 = vmul.f32 %v14571_v6, %v14731_v28  ;;  %v1766_v63 = vmul.f32 %v14573_v45, %v14732_v40  ;;  %v14735_v17 = vld [vmem:[#allocation234_spill] sm:$0xff]  ;;  %v14737_v42 = vld [vmem:[#allocation215_spill] sm:$0xff]  ;;  %v14740_v1 = vmax.f32 %v14739_v26, 0.0  ;;  %v14742_v27 = vmax.f32 %v14741_v61, 0.0 }
 0x340   : > { %4202 = vmatpush1.msra.mxu0 %v14726_v39  ;;  %v14736_v48 = vmax.f32 %v14735_v17, 0.0  ;;  %v10871_v39 = vadd.f32 %v14737_v42, %v2286_v62  ;;  %v14738_v44 = vld [vmem:[#allocation82_spill] sm:$0xff]  ;;  %v684_v62 = vmul.f32 %v14580_v10, %v14731_v28  ;;  %v14746_v53 = vmax.f32 %v14745_v55, 0.0  ;;  %v14754_v55 = vld [vmem:[#allocation249_spill] sm:$0xff] }
 0x341   : > { %4203 = vmatprep.subr.mxu0 %v14734_v22  ;;  %v957_v20 = vmul.f32 %v14571_v6, %v14738_v44  ;;  %v10881_v22 = vadd.f32 %v14730_v35, %v2013_v47  ;;  %v2006_v17 = vadd.f32 %v1494_v2, %v685_v57  ;;  %v10891_v61 = vadd.f32 %v14737_v42, %v2285_v36  ;;  %v14748_v35 = vld [vmem:[#allocation95_spill] sm:$0xff]  ;;  %v14749_v2 = vld [vmem:[#allocation178_spill] sm:$0xff] }
 0x342   : > { %4270 = vmatprep.subr.mxu1 %v14736_v48  ;;  %4204 = vmatpush1.msra.mxu0 %v14740_v1  ;;  %v14743_v48 = vld [vmem:[#allocation43_spill] sm:$0xff]  ;;  %v1486_v47 = vmul.f32 %v14573_v45, %v14748_v35  ;;  %v14750_v57 = vmax.f32 %v14749_v2, 0.0  ;;  %v14753_v42 = vld [vmem:[#allocation10_spill] sm:$0xff]  ;;  %v14908_v50 = vmax.f32 %v14907_v41, 0.0  ;;  %v14923_v21 = vmax.f32 %v14922_v60, 0.0 }
 0x343   : > { %4271 = vmatpush1.msra.mxu1 %v14742_v27  ;;  %v14744_v46 = vmax.f32 %v14743_v48, 0.0  ;;  %14747 = vst [vmem:[#allocation297_spill] sm:$0xff] %v10891_v61  ;;  %v1493_v27 = vmul.f32 %v14581_v29, %v14719_v43  ;;  %v14751_v1 = vld [vmem:[#allocation179_spill] sm:$0xff]  ;;  %v677_v36 = vmul.f32 %v14571_v6, %v14753_v42  ;;  %v14755_v43 = vmax.f32 %v14754_v55, 0.0  ;;  %v14756_v26 = vld [vmem:[#allocation250_spill] sm:$0xff] }
 0x344   : > { %4272 = vmatprep.subr.mxu1 %v14746_v53  ;;  %v14752_v28 = vmax.f32 %v14751_v1, 0.0  ;;  %v2278_v53 = vadd.f32 %v1766_v63, %v957_v20  ;;  %v14757_v5 = vmax.f32 %v14756_v26, 0.0  ;;  %v14760_v63 = vld [vmem:[#allocation123_spill] sm:$0xff]  ;;  %v14763_v55 = vmax.f32 %v14762_v34, 0.0  ;;  %v14775_v34 = vld [vmem:[#allocation26_spill] sm:$0xff] }
 0x345   : > { %4205 = vmatprep.subr.mxu0 %v14744_v46  ;;  %v1765_v46 = vmul.f32 %v14581_v29, %v14732_v40  ;;  %v1485_v40 = vmul.f32 %v14581_v29, %v14748_v35  ;;  %v14761_v48 = vmax.f32 %v14760_v63, 0.0  ;;  %v14766_v35 = vld [vmem:[#allocation205_spill] sm:$0xff]  ;;  %v1998_v26 = vadd.f32 %v1486_v47, %v677_v36  ;;  %v14778_v36 = vld [vmem:[#allocation166_spill] sm:$0xff]  ;;  %v14928_v60 = vld [vmem:[#allocation59_spill] sm:$0xff] }
 0x346   : > { %4206 = vmatpush1.msra.mxu0 %v14750_v57  ;;  %4273 = vmatpush1.msra.mxu1 %v14752_v28  ;;  %v14758_v57 = vld [vmem:[#allocation282_spill] sm:$0xff]  ;;  %v14759_v28 = vld [vmem:[#allocation109_spill] sm:$0xff]  ;;  %v14767_v63 = vmax.f32 %v14766_v35, 0.0  ;;  %v2005_v51 = vadd.f32 %v1493_v27, %v684_v62  ;;  %v14774_v35 = vld [vmem:[#allocation84_spill] sm:$0xff]  ;;  %v14777_v47 = vmax.f32 %v14776_v18, 0.0 }
 0x347   : > { %4207 = vmatprep.subr.mxu0 %v14755_v43  ;;  %4274 = vmatprep.subr.mxu1 %v14757_v5  ;;  %v949_v1 = vmul.f32 %v14571_v6, %v14758_v57  ;;  %v1758_v20 = vmul.f32 %v14573_v45, %v14759_v28  ;;  %v956_v5 = vmul.f32 %v14580_v10, %v14738_v44  ;;  %v14782_v62 = vld [vmem:[#allocation399_spill] sm:$0xff] }
 0x348   : > { %4208 = vmatpush1.msra.mxu0 %v14761_v48  ;;  %4275 = vmatpush1.msra.mxu1 %v14763_v55  ;;  %v948_v43 = vmul.f32 %v14580_v10, %v14758_v57  ;;  %v1757_v2 = vmul.f32 %v14581_v29, %v14759_v28  ;;  %v14768_v48 = vld [vmem:[#allocation368_spill] sm:$0xff]  ;;  %v676_v44 = vmul.f32 %v14580_v10, %v14753_v42  ;;  %v14771_v57 = vmax.f32 %v14770_v14, 0.0  ;;  %v14821_v14 = vld [vmem:[#allocation362_spill] sm:$0xff]  ;;  %v14973_v61 = vld [vmem:[#allocation279_spill] sm:$0xff] }
 0x349   : > { %4209 = vmatprep.subr.mxu0 %v14765_v16  ;;  %4276 = vmatprep.subr.mxu1 %v14767_v63  ;;  %v10934_v55 = vadd.f32 %v14768_v48, %v2006_v17  ;;  %v14773_v28 = vmax.f32 %v14772_v11, 0.0  ;;  %v669_v63 = vmul.f32 %v14571_v6, %v14774_v35  ;;  %v1478_v17 = vmul.f32 %v14573_v45, %v14775_v34 }
 0x34a   : > { %4210 = vmatpush1.msra.mxu0 %v14771_v57  ;;  %v14779_v42 = vmax.f32 %v14778_v36, 0.0  ;;  %v2277_v57 = vadd.f32 %v1765_v46, %v956_v5  ;;  %v2270_v11 = vadd.f32 %v1758_v20, %v949_v1  ;;  %v14781_v16 = vmax.f32 %v14780_v25, 0.0  ;;  %v14788_v36 = vld [vmem:[#allocation163_spill] sm:$0xff]  ;;  %v14794_v5 = vld [vmem:[#allocation298_spill] sm:$0xff]  ;;  %v14807_v20 = vld [vmem:[#allocation392_spill] sm:$0xff] }
 0x34b   : > { %14769 = vst [vmem:[#allocation217_spill] sm:$0xff] %v10934_v55  ;;  %4277 = vmatpush1.msra.mxu1 %v14773_v28  ;;  %4211 = vmatprep.subr.mxu0 %v14777_v47  ;;  %v1997_v28 = vadd.f32 %v1485_v40, %v676_v44  ;;  %v14783_v27 = vmax.f32 %v14782_v62, 0.0  ;;  %v10958_v55 = vadd.f32 %v14785_v38, %v2278_v53  ;;  %v14790_v46 = vld [vmem:[#allocation191_spill] sm:$0xff]  ;;  %v14828_v25 = vld [vmem:[#allocation328_spill] sm:$0xff] }
 0x34c   : > { %4278 = vmatprep.subr.mxu1 %v14779_v42  ;;  %4212 = vmatpush1.msra.mxu0 %v14781_v16  ;;  %v10961_v18 = vadd.f32 %v14768_v48, %v2005_v51  ;;  %v2269_v47 = vadd.f32 %v1757_v2, %v948_v43  ;;  %v14789_v42 = vmax.f32 %v14788_v36, 0.0  ;;  %v14791_v1 = vmax.f32 %v14790_v46, 0.0  ;;  %v14796_v53 = vld [vmem:[#allocation203_spill] sm:$0xff]  ;;  %v14797_v48 = vld [vmem:[#allocation69_spill] sm:$0xff] }
 0x34d   : > { %4279 = vmatpush1.msra.mxu1 %v14783_v27  ;;  %14786 = vst [vmem:[#allocation266_spill] sm:$0xff] %v10958_v55  ;;  %v10969_v40 = vadd.f32 %v14785_v38, %v2277_v57  ;;  %v10972_v44 = vadd.f32 %v14794_v5, %v1998_v26  ;;  %v1750_v16 = vmul.f32 %v14573_v45, %v14796_v53  ;;  %v14798_v51 = vmax.f32 %v14797_v48, 0.0  ;;  %v14799_v2 = vld [vmem:[#allocation327_spill] sm:$0xff]  ;;  %v14802_v26 = vld [vmem:[#allocation61_spill] sm:$0xff]  ;;  %v14824_v48 = vld [vmem:[#allocation74_spill] sm:$0xff] }
 0x34e   : > { %14787 = vst [vmem:[#allocation165_spill] sm:$0xff] %v10961_v18  ;;  %4213 = vmatprep.subr.mxu0 %v14789_v42  ;;  %4280 = vmatprep.subr.mxu1 %v14791_v1  ;;  %v14800_v43 = vmax.f32 %v14799_v2, 0.0  ;;  %v1990_v36 = vadd.f32 %v1478_v17, %v669_v63  ;;  %v668_v42 = vmul.f32 %v14580_v10, %v14774_v35  ;;  %v14803_v57 = vmax.f32 %v14802_v26, 0.0  ;;  %v14804_v46 = vld [vmem:[#allocation329_spill] sm:$0xff]  ;;  %v14811_v17 = vld [vmem:[#allocation192_spill] sm:$0xff] }
 0x34f   : > { %14793 = vst [vmem:[#allocation196_spill] sm:$0xff] %v10969_v40  ;;  %14795 = vst [vmem:[#allocation354_spill] sm:$0xff] %v10972_v44  ;;  %4214 = vmatpush1.msra.mxu0 %v14798_v51  ;;  %v1477_v38 = vmul.f32 %v14581_v29, %v14775_v34  ;;  %v14805_v1 = vmax.f32 %v14804_v46, 0.0  ;;  %v10991_v2 = vadd.f32 %v14807_v20, %v2270_v11  ;;  %v14810_v63 = vld [vmem:[#allocation77_spill] sm:$0xff]  ;;  %v14812_v27 = vmax.f32 %v14811_v17, 0.0  ;;  %v14813_v34 = vld [vmem:[#allocation319_spill] sm:$0xff] }
 0x350   : > { %4281 = vmatpush1.msra.mxu1 %v14800_v43  ;;  %4215 = vmatprep.subr.mxu0 %v14803_v57  ;;  %v10994_v43 = vadd.f32 %v14794_v5, %v1997_v28  ;;  %v941_v35 = vmul.f32 %v14571_v6, %v14810_v63  ;;  %v14814_v26 = vmax.f32 %v14813_v34, 0.0  ;;  %v14817_v51 = vld [vmem:[#allocation167_spill] sm:$0xff]  ;;  %v1749_v28 = vmul.f32 %v14581_v29, %v14796_v53  ;;  %v14819_v5 = vld [vmem:[#allocation170_spill] sm:$0xff]  ;;  %v14971_v55 = vld [vmem:[#allocation252_spill] sm:$0xff] }
 0x351   : > { %4282 = vmatprep.subr.mxu1 %v14805_v1  ;;  %14808 = vst [vmem:[#allocation370_spill] sm:$0xff] %v10991_v2  ;;  %4216 = vmatpush1.msra.mxu0 %v14812_v27  ;;  %v11004_v1 = vadd.f32 %v14807_v20, %v2269_v47  ;;  %v11007_v11 = vadd.f32 %v14817_v51, %v1990_v36  ;;  %v14820_v24 = vmax.f32 %v14819_v5, 0.0  ;;  %v14822_v17 = vmax.f32 %v14821_v14, 0.0  ;;  %v14825_v47 = vld [vmem:[#allocation395_spill] sm:$0xff]  ;;  %v14826_v36 = vld [vmem:[#allocation193_spill] sm:$0xff]  ;;  %v14834_v27 = vld [vmem:[#allocation212_spill] sm:$0xff] }
 0x352   : > { %14809 = vst [vmem:[#allocation300_spill] sm:$0xff] %v10994_v43  ;;  %4283 = vmatpush1.msra.mxu1 %v14814_v26  ;;  %v2262_v26 = vadd.f32 %v1750_v16, %v941_v35  ;;  %v1470_v46 = vmul.f32 %v14573_v45, %v14824_v48  ;;  %v1742_v20 = vmul.f32 %v14573_v45, %v14825_v47  ;;  %v14827_v62 = vmax.f32 %v14826_v36, 0.0  ;;  %v14832_v35 = vld [vmem:[#allocation309_spill] sm:$0xff]  ;;  %v14978_v18 = vld [vmem:[#allocation88_spill] sm:$0xff]  ;;  %v15061_v2 = vld [vmem:[#allocation375_spill] sm:$0xff] }
 0x353   : > { %14816 = vst [vmem:[#allocation81_spill] sm:$0xff] %v11004_v1  ;;  %14818 = vst [vmem:[#allocation57_spill] sm:$0xff] %v11007_v11  ;;  %4217 = vmatprep.subr.mxu0 %v14820_v24  ;;  %4284 = vmatprep.subr.mxu1 %v14822_v17  ;;  %v14829_v53 = vmax.f32 %v14828_v25, 0.0  ;;  %v1989_v9 = vadd.f32 %v1477_v38, %v668_v42  ;;  %v940_v14 = vmul.f32 %v14580_v10, %v14810_v63  ;;  %v14831_v17 = vld [vmem:[#allocation80_spill] sm:$0xff]  ;;  %v14842_v5 = vld [vmem:[#allocation401_spill] sm:$0xff] }
 0x354   : > { %4218 = vmatpush1.msra.mxu0 %v14827_v62  ;;  %v661_v16 = vmul.f32 %v14571_v6, %v14831_v17  ;;  %v14833_v34 = vmax.f32 %v14832_v35, 0.0  ;;  %v14835_v57 = vmax.f32 %v14834_v27, 0.0  ;;  %v11035_v25 = vadd.f32 %v14837_v12, %v2262_v26  ;;  %v14840_v63 = vld [vmem:[#allocation400_spill] sm:$0xff]  ;;  %v14845_v62 = vld [vmem:[#allocation213_spill] sm:$0xff]  ;;  %v14849_v27 = vld [vmem:[#allocation207_spill] sm:$0xff] }
 0x355   : > { %4285 = vmatpush1.msra.mxu1 %v14829_v53  ;;  %v14839_v53 = vld [vmem:[#allocation269_spill] sm:$0xff]  ;;  %v1469_v38 = vmul.f32 %v14581_v29, %v14824_v48  ;;  %v14841_v24 = vmax.f32 %v14840_v63, 0.0  ;;  %v14843_v35 = vmax.f32 %v14842_v5, 0.0  ;;  %v1741_v26 = vmul.f32 %v14581_v29, %v14825_v47  ;;  %v15024_v1 = vld [vmem:[#allocation111_spill] sm:$0xff] }
 0x356   : > { %4219 = vmatprep.subr.mxu0 %v14833_v34  ;;  %4286 = vmatprep.subr.mxu1 %v14835_v57  ;;  %14838 = vst [vmem:[#allocation154_spill] sm:$0xff] %v11035_v25  ;;  %v933_v42 = vmul.f32 %v14571_v6, %v14839_v53  ;;  %v11047_v57 = vadd.f32 %v14817_v51, %v1989_v9  ;;  %v14846_v36 = vmax.f32 %v14845_v62, 0.0  ;;  %v14847_v25 = vld [vmem:[#allocation218_spill] sm:$0xff]  ;;  %v14850_v9 = vmax.f32 %v14849_v27, 0.0  ;;  %v14851_v51 = vld [vmem:[#allocation208_spill] sm:$0xff]  ;;  %v14878_v27 = vld [vmem:[#allocation181_spill] sm:$0xff] }
 0x357   : > { %4220 = vmatpush1.msra.mxu0 %v14841_v24  ;;  %4287 = vmatpush1.msra.mxu1 %v14843_v35  ;;  %v2261_v34 = vadd.f32 %v1749_v28, %v940_v14  ;;  %v14848_v48 = vmax.f32 %v14847_v25, 0.0  ;;  %v1982_v63 = vadd.f32 %v1470_v46, %v661_v16  ;;  %v660_v35 = vmul.f32 %v14580_v10, %v14831_v17  ;;  %v14854_v25 = vld [vmem:[#allocation28_spill] sm:$0xff]  ;;  %v14863_v24 = vld [vmem:[#allocation405_spill] sm:$0xff] }
 0x358   : > { %14844 = vst [vmem:[#allocation419_spill] sm:$0xff] %v11047_v57  ;;  %4221 = vmatprep.subr.mxu0 %v14846_v36  ;;  %v2254_v5 = vadd.f32 %v1742_v20, %v933_v42  ;;  %v14852_v28 = vmax.f32 %v14851_v51, 0.0  ;;  %v932_v14 = vmul.f32 %v14580_v10, %v14839_v53  ;;  %v14853_v36 = vld [vmem:[#allocation63_spill] sm:$0xff]  ;;  %v1718_v46 = vmul.f32 %v14573_v45, %v14854_v25  ;;  %v14855_v20 = vld [vmem:[#allocation404_spill] sm:$0xff]  ;;  %v14860_v51 = vld [vmem:[#allocation398_spill] sm:$0xff] }
 0x359   : > { %4288 = vmatprep.subr.mxu1 %v14848_v48  ;;  %4222 = vmatpush2.msra.mxu0 %v14850_v9  ;;  %v909_v62 = vmul.f32 %v14571_v6, %v14853_v36  ;;  %v14856_v16 = vmax.f32 %v14855_v20, 0.0  ;;  %v14857_v17 = vld [vmem:[#allocation140_spill] sm:$0xff]  ;;  %v11075_v48 = vadd.f32 %v14837_v12, %v2261_v34  ;;  %v1981_v9 = vadd.f32 %v1469_v38, %v660_v35  ;;  %v14865_v34 = vld [vmem:[#allocation406_spill] sm:$0xff]  ;;  %v14867_v35 = vld [vmem:[#allocation391_spill] sm:$0xff] }
 0x35a   : > { %4289 = vmatpush1.msra.mxu1 %v14852_v28  ;;  %v14858_v42 = vmax.f32 %v14857_v17, 0.0  ;;  %v1734_v53 = vmul.f32 %v14573_v45, %v14860_v51  ;;  %v14861_v28 = vld [vmem:[#allocation141_spill] sm:$0xff]  ;;  %v14864_v19 = vmax.f32 %v14863_v24, 0.0  ;;  %v908_v17 = vmul.f32 %v14580_v10, %v14853_v36  ;;  %v14872_v36 = vld [vmem:[#allocation135_spill] sm:$0xff] }
 0x35b   : > { %4223 = vmatprep.subr.mxu0 %v14856_v16  ;;  %14859 = vst [vmem:[#allocation103_spill] sm:$0xff] %v11075_v48  ;;  %v14862_v47 = vmax.f32 %v14861_v28, 0.0  ;;  %v2253_v16 = vadd.f32 %v1741_v26, %v932_v14  ;;  %v1717_v12 = vmul.f32 %v14581_v29, %v14854_v25  ;;  %v14866_v38 = vmax.f32 %v14865_v34, 0.0  ;;  %v14869_v28 = vld [vmem:[#allocation360_spill] sm:$0xff]  ;;  %v15020_v57 = vld [vmem:[#allocation383_spill] sm:$0xff] }
 0x35c   : > { %4290 = vmatprep.subr.mxu1 %v14858_v42  ;;  %v14868_v42 = vmax.f32 %v14867_v35, 0.0  ;;  %v11094_v24 = vadd.f32 %v14869_v28, %v1982_v63  ;;  %v1733_v14 = vmul.f32 %v14581_v29, %v14860_v51  ;;  %v14873_v20 = vmax.f32 %v14872_v36, 0.0  ;;  %v14874_v25 = vld [vmem:[#allocation152_spill] sm:$0xff]  ;;  %v14876_v35 = vld [vmem:[#allocation189_spill] sm:$0xff] }
 0x35d   : > { %4224 = vmatpush2.msra.mxu0 %v14862_v47  ;;  %4291 = vmatpush1.msra.mxu1 %v14864_v19  ;;  %v14871_v19 = vld [vmem:[#allocation71_spill] sm:$0xff]  ;;  %v14875_v34 = vmax.f32 %v14874_v25, 0.0  ;;  %v11109_v63 = vadd.f32 %v14869_v28, %v1981_v9  ;;  %v2230_v47 = vadd.f32 %v1718_v46, %v909_v62  ;;  %v14879_v52 = vmax.f32 %v14878_v27, 0.0  ;;  %v14885_v9 = vld [vmem:[#allocation122_spill] sm:$0xff]  ;;  %v14887_v46 = vld [vmem:[#allocation40_spill] sm:$0xff] }
 0x35e   : > { %4225 = vmatprep.subr.mxu0 %v14866_v38  ;;  %4292 = vmatprep.subr.mxu1 %v14868_v42  ;;  %14870 = vst [vmem:[#allocation42_spill] sm:$0xff] %v11094_v24  ;;  %v925_v26 = vmul.f32 %v14571_v6, %v14871_v19  ;;  %v11106_v42 = vadd.f32 %v14876_v35, %v2254_v5  ;;  %v14881_v51 = vmax.f32 %v14880_v56, 0.0  ;;  %v14883_v38 = vld [vmem:[#allocation442_spill] sm:$0xff]  ;;  %v14886_v62 = vmax.f32 %v14885_v9, 0.0  ;;  %v14888_v28 = vld [vmem:[#allocation436_spill] sm:$0xff]  ;;  %v15034_v24 = vld [vmem:[#allocation53_spill] sm:$0xff] }
 0x35f   : > { %4226 = vmatpush2.msra.mxu0 %v14873_v20  ;;  %4293 = vmatpush2.msra.mxu1 %v14875_v34  ;;  %v924_v25 = vmul.f32 %v14580_v10, %v14871_v19  ;;  %v14882_v34 = vld [vmem:[#allocation65_spill] sm:$0xff]  ;;  %v14884_v3 = vmax.f32 %v14883_v38, 0.0  ;;  %v11126_v56 = vadd.f32 %v14876_v35, %v2253_v16  ;;  %v11129_v27 = vadd.f32 %v14887_v46, %v2230_v47  ;;  %v14892_v38 = vld [vmem:[#allocation175_spill] sm:$0xff]  ;;  %v14894_v35 = vld [vmem:[#allocation284_spill] sm:$0xff] }
 0x360   : > { %14877 = vst [vmem:[#allocation423_spill] sm:$0xff] %v11106_v42  ;;  %4227 = vmatprep.subr.mxu0 %v14879_v52  ;;  %4294 = vmatprep.subr.mxu1 %v14881_v51  ;;  %v2246_v36 = vadd.f32 %v1734_v53, %v925_v26  ;;  %v1710_v5 = vmul.f32 %v14573_v45, %v14882_v34  ;;  %v14889_v19 = vmax.f32 %v14888_v28, 0.0  ;;  %v14890_v26 = vld [vmem:[#allocation116_spill] sm:$0xff]  ;;  %v14895_v20 = vmax.f32 %v14894_v35, 0.0  ;;  %v14896_v47 = vld [vmem:[#allocation102_spill] sm:$0xff] }
 0x361   : > { %4228 = vmatpush2.msra.mxu0 %v14884_v3  ;;  %4295 = vmatpush2.msra.mxu1 %v14886_v62  ;;  %v2229_v53 = vadd.f32 %v1717_v12, %v908_v17  ;;  %v14891_v51 = vmax.f32 %v14890_v26, 0.0  ;;  %v2245_v62 = vadd.f32 %v1733_v14, %v924_v25  ;;  %v14893_v52 = vld [vmem:[#allocation248_spill] sm:$0xff]  ;;  %v14897_v17 = vmax.f32 %v14896_v47, 0.0  ;;  %v14905_v12 = vld [vmem:[#allocation358_spill] sm:$0xff] }
 0x362   : > { %4229 = vmatprep.subr.mxu0 %v14889_v19  ;;  %v11137_v9 = vadd.f32 %v14892_v38, %v2246_v36  ;;  %v901_v16 = vmul.f32 %v14571_v6, %v14893_v52  ;;  %v14898_v19 = vld [vmem:[#allocation261_spill] sm:$0xff]  ;;  %v14899_v36 = vld [vmem:[#allocation158_spill] sm:$0xff]  ;;  %v14900_v25 = vld [vmem:[#allocation380_spill] sm:$0xff]  ;;  %v14906_v32 = vmax.f32 %v14905_v12, 0.0  ;;  %v15025_v43 = vmax.f32 %v15024_v1, 0.0  ;;  %4324 = vmatprep.mubr.f32.mxu1 %v15034_v24 }
 0x363   : > { %4296 = vmatprep.subr.mxu1 %v14891_v51  ;;  %4230 = vmatpush2.msra.mxu0 %v14895_v20  ;;  %v11147_v28 = vadd.f32 %v14887_v46, %v2229_v53  ;;  %v917_v26 = vmul.f32 %v14571_v6, %v14898_v19  ;;  %v1726_v14 = vmul.f32 %v14573_v45, %v14899_v36  ;;  %v14901_v51 = vmax.f32 %v14900_v25, 0.0  ;;  %v14902_v3 = vld [vmem:[#allocation408_spill] sm:$0xff]  ;;  %v14915_v25 = vld [vmem:[#allocation339_spill] sm:$0xff]  ;;  %v15038_v24 = vld [vmem:[#allocation134_spill] sm:$0xff] }
 0x364   : > { %4297 = vmatpush2.msra.mxu1 %v14897_v17  ;;  %v14903_v35 = vmax.f32 %v14902_v3, 0.0  ;;  %v2222_v47 = vadd.f32 %v1710_v5, %v901_v16  ;;  %v1709_v17 = vmul.f32 %v14581_v29, %v14882_v34  ;;  %v14904_v46 = vld [vmem:[#allocation164_spill] sm:$0xff]  ;;  %v11168_v3 = vadd.f32 %v14892_v38, %v2245_v62  ;;  %v14910_v16 = vld [vmem:[#allocation110_spill] sm:$0xff]  ;;  %v15065_v1 = vld [vmem:[#allocation313_spill] sm:$0xff] }
 0x365   : > { %4231 = vmatprep.subr.mxu0 %v14901_v51  ;;  %v1702_v53 = vmul.f32 %v14573_v45, %v14904_v46  ;;  %v14909_v51 = vld [vmem:[#allocation216_spill] sm:$0xff]  ;;  %v1701_v34 = vmul.f32 %v14581_v29, %v14904_v46  ;;  %v14916_v37 = vmax.f32 %v14915_v25, 0.0  ;;  %v14917_v46 = vld [vmem:[#allocation285_spill] sm:$0xff] }
 0x366   : > { %4298 = vmatprep.subr.mxu1 %v14903_v35  ;;  %4232 = vmatpush2.msra.mxu0 %v14906_v32  ;;  %v1165_v5 = vmul.f32 %v14571_v6, %v14909_v51  ;;  %v14911_v35 = vmax.f32 %v14910_v16, 0.0  ;;  %v14912_v20 = vld [vmem:[#allocation264_spill] sm:$0xff]  ;;  %v1725_v32 = vmul.f32 %v14581_v29, %v14899_v36  ;;  %v14918_v16 = vmax.f32 %v14917_v46, 0.0 }
 0x367   : > { %4299 = vmatpush2.msra.mxu1 %v14908_v50  ;;  %v14913_v12 = vmax.f32 %v14912_v20, 0.0  ;;  %v900_v50 = vmul.f32 %v14580_v10, %v14893_v52  ;;  %v14914_v38 = vld [vmem:[#allocation48_spill] sm:$0xff]  ;;  %v14921_v36 = vmax.f32 %v14920_v33, 0.0  ;;  %v916_v46 = vmul.f32 %v14580_v10, %v14898_v19  ;;  %v14926_v20 = vld [vmem:[#allocation410_spill] sm:$0xff] }
 0x368   : > { %4233 = vmatprep.subr.mxu0 %v14911_v35  ;;  %v893_v62 = vmul.f32 %v14571_v6, %v14914_v38  ;;  %v2238_v35 = vadd.f32 %v1726_v14, %v917_v26  ;;  %v892_v52 = vmul.f32 %v14580_v10, %v14914_v38  ;;  %v14924_v26 = vld [vmem:[#allocation341_spill] sm:$0xff]  ;;  %v14927_v7 = vmax.f32 %v14926_v20, 0.0  ;;  %v14966_v19 = vld [vmem:[#allocation374_spill] sm:$0xff] }
 0x369   : > { %4300 = vmatprep.subr.mxu1 %v14913_v12  ;;  %4234 = vmatpush2.msra.mxu0 %v14916_v37  ;;  %v14919_v12 = vld [vmem:[#allocation30_spill] sm:$0xff]  ;;  %v2221_v25 = vadd.f32 %v1709_v17, %v900_v50  ;;  %v14925_v14 = vmax.f32 %v14924_v26, 0.0  ;;  %v14929_v37 = vmax.f32 %v14928_v60, 0.0  ;;  %v14930_v17 = vmax.f32 %v14603_v0, 0.0  ;;  %v14931_v50 = vld [vmem:[#allocation231_spill] sm:$0xff] }
 0x36a   : > { %4301 = vmatpush2.msra.mxu1 %v14918_v16  ;;  %v1974_v41 = vmul.f32 %v14573_v45, %v14919_v12  ;;  %4235 = vmatprep.subr.mxu0 %v14921_v36  ;;  %v2214_v16 = vadd.f32 %v1702_v53, %v893_v62  ;;  %v2213_v36 = vadd.f32 %v1701_v34, %v892_v52  ;;  %v14937_v52 = vld [vmem:[#allocation323_spill] sm:$0xff]  ;;  %v14943_v60 = vld [vmem:[#allocation62_spill] sm:$0xff]  ;;  %v14967_v38 = vmax.f32 %v14966_v19, 0.0 }
 0x36b   : > { %4302 = vmatprep.subr.mxu1 %v14923_v21  ;;  %4236 = vmatpush2.msra.mxu0 %v14925_v14  ;;  %v1164_v21 = vmul.f32 %v14580_v10, %v14909_v51  ;;  %v2237_v53 = vadd.f32 %v1725_v32, %v916_v46  ;;  %v885_v62 = vmul.f32 %v14571_v6, %v14931_v50  ;;  %v14934_v51 = vmax.f32 %v10247_v31, 0.0  ;;  %v14939_v46 = vld [vmem:[#allocation412_spill] sm:$0xff]  ;;  %v14965_v34 = vld [vmem:[#allocation198_spill] sm:$0xff] }
 0x36c   : > { %4303 = vmatpush2.msra.mxu1 %v14927_v7  ;;  %v2486_v33 = vadd.f32 %v1974_v41, %v1165_v5  ;;  %4237 = vmatprep.subr.mxu0 %v14929_v37  ;;  %v14932_v7 = vld [vmem:[#allocation32_spill] sm:$0xff]  ;;  %v14933_v5 = vmax.f32 %v10244_v30, 0.0  ;;  %v14935_v41 = vld [vmem:[#allocation169_spill] sm:$0xff]  ;;  %v11226_v37 = vadd.f32 %v14937_v52, %v2238_v35  ;;  %v1973_v32 = vmul.f32 %v14581_v29, %v14919_v12  ;;  %v14945_v12 = vld [vmem:[#allocation183_spill] sm:$0xff] }
 0x36d   : > { %4304 = vmatprep.subr.mxu1 %v14930_v17  ;;  %v1694_v20 = vmul.f32 %v14573_v45, %v14932_v7  ;;  %v11223_v0 = vadd.f32 %v14935_v41, %v2222_v47  ;;  %v14940_v26 = vmax.f32 %v14939_v46, 0.0  ;;  %v14941_v30 = vmax.f32 %v10267_v15, 0.0  ;;  %v14954_v15 = vld [vmem:[#allocation223_spill] sm:$0xff] }
 0x36e   : > { %4238 = vmatpush2.msra.mxu0 %v14933_v5  ;;  %4305 = vmatpush2.msra.mxu1 %v14934_v51  ;;  %14938 = vst [vmem:[#allocation147_spill] sm:$0xff] %v11226_v37  ;;  %v11236_v14 = vadd.f32 %v14935_v41, %v2221_v25  ;;  %v11239_v47 = vadd.f32 %v14937_v52, %v2237_v53  ;;  %v14944_v17 = vmax.f32 %v10257_v23, 0.0  ;;  %v14946_v5 = vmax.f32 %v14945_v12, 0.0  ;;  %v14947_v51 = vld [vmem:[#allocation322_spill] sm:$0xff]  ;;  %v14948_v53 = vld [vmem:[#allocation136_spill] sm:$0xff] }
 0x36f   : > { %14936 = vst [vmem:[#allocation41_spill] sm:$0xff] %v11223_v0  ;;  %4239 = vmatprep.subr.mxu0 %v14940_v26  ;;  %4306 = vmatprep.subr.mxu1 %v14941_v30  ;;  %v11242_v35 = vadd.f32 %v14943_v60, %v2214_v16  ;;  %v11250_v46 = vadd.f32 %v14947_v51, %v2486_v33  ;;  %v14949_v52 = vmax.f32 %v14948_v53, 0.0  ;;  %v14950_v16 = vld [vmem:[#allocation372_spill] sm:$0xff]  ;;  %v14955_v31 = vmax.f32 %v14954_v15, 0.0  ;;  %v14959_v53 = vld [vmem:[#allocation70_spill] sm:$0xff] }
 0x370   : > { %14942 = vst [vmem:[#allocation180_spill] sm:$0xff] %v11236_v14  ;;  %4240 = vmatpush2.msra.mxu0 %v14944_v17  ;;  %4307 = vmatpush2.msra.mxu1 %v14946_v5  ;;  %v11253_v25 = vadd.f32 %v14943_v60, %v2213_v36  ;;  %v2485_v41 = vadd.f32 %v1973_v32, %v1164_v21  ;;  %v14951_v26 = vmax.f32 %v14950_v16, 0.0  ;;  %v14952_v17 = vld [vmem:[#allocation228_spill] sm:$0xff]  ;;  %v14953_v5 = vld [vmem:[#allocation361_spill] sm:$0xff]  ;;  %v14960_v16 = vld [vmem:[#allocation219_spill] sm:$0xff]  ;;  %v14972_v32 = vmax.f32 %v14971_v55, 0.0 }
 0x371   : > { %4241 = vmatprep.subr.mxu0 %v14949_v52  ;;  %v2206_v30 = vadd.f32 %v1694_v20, %v885_v62  ;;  %v1157_v12 = vmul.f32 %v14571_v6, %v14952_v17  ;;  %v1686_v33 = vmul.f32 %v14573_v45, %v14953_v5  ;;  %v14956_v36 = vld [vmem:[#allocation220_spill] sm:$0xff]  ;;  %v1966_v52 = vmul.f32 %v14573_v45, %v14959_v53  ;;  %v14962_v23 = vld [vmem:[#allocation278_spill] sm:$0xff] }
 0x372   : > { %4308 = vmatprep.subr.mxu1 %v14951_v26  ;;  %4242 = vmatpush2.msra.mxu0 %v14955_v31  ;;  %v14957_v21 = vmax.f32 %v14956_v36, 0.0  ;;  %v884_v62 = vmul.f32 %v14580_v10, %v14931_v50  ;;  %v1693_v20 = vmul.f32 %v14581_v29, %v14932_v7  ;;  %v14961_v26 = vmax.f32 %v14960_v16, 0.0  ;;  %v14968_v7 = vld [vmem:[#allocation315_spill] sm:$0xff]  ;;  %v15076_v0 = vld [vmem:[#allocation94_spill] sm:$0xff] }
 0x373   : > { %v14963_v15 = vmax.f32 %v14962_v23, 0.0  ;;  %v1965_v36 = vmul.f32 %v14581_v29, %v14959_v53  ;;  %v1958_v50 = vmul.f32 %v14573_v45, %v14965_v34  ;;  %v14969_v16 = vmax.f32 %v14968_v7, 0.0 }
 0x374   : > { %4309 = vmatpush2.msra.mxu1 %v14957_v21  ;;  %4243 = vmatprep.subr.mxu0 %v14961_v26  ;;  %v14964_v21 = vld [vmem:[#allocation38_spill] sm:$0xff]  ;;  %v11292_v26 = vadd.f32 %v14947_v51, %v2485_v41  ;;  %v1156_v53 = vmul.f32 %v14580_v10, %v14952_v17  ;;  %v14974_v19 = vmax.f32 %v14973_v61, 0.0  ;;  %v1685_v51 = vmul.f32 %v14581_v29, %v14953_v5  ;;  %v14976_v41 = vld [vmem:[#allocation413_spill] sm:$0xff] }
 0x375   : > { %4310 = vmatprep.subr.mxu1 %v14963_v15  ;;  %v877_v60 = vmul.f32 %v14571_v6, %v14964_v21  ;;  %4244 = vmatpush2.msra.mxu0 %v14967_v38  ;;  %v14970_v15 = vld [vmem:[#allocation172_spill] sm:$0xff]  ;;  %v14979_v17 = vmax.f32 %v14978_v18, 0.0  ;;  %v2205_v61 = vadd.f32 %v1693_v20, %v884_v62  ;;  %v876_v18 = vmul.f32 %v14580_v10, %v14964_v21  ;;  %v15016_v5 = vld [vmem:[#allocation149_spill] sm:$0xff] }
 0x376   : > { %4311 = vmatpush2.msra.mxu1 %v14969_v16  ;;  %v11295_v31 = vadd.f32 %v14970_v15, %v2206_v30  ;;  %4245 = vmatprep.subr.mxu0 %v14972_v32  ;;  %v14975_v16 = vld [vmem:[#allocation209_spill] sm:$0xff]  ;;  %v14977_v30 = vmax.f32 %v14976_v41, 0.0  ;;  %v2478_v32 = vadd.f32 %v1966_v52, %v1157_v12  ;;  %v14982_v38 = vld [vmem:[#allocation236_spill] sm:$0xff]  ;;  %v2477_v41 = vadd.f32 %v1965_v36, %v1156_v53  ;;  %v14986_v12 = vld [vmem:[#allocation251_spill] sm:$0xff] }
 0x377   : > { %4312 = vmatprep.subr.mxu1 %v14974_v19  ;;  %v2198_v7 = vadd.f32 %v1686_v33, %v877_v60  ;;  %v1149_v23 = vmul.f32 %v14571_v6, %v14975_v16  ;;  %v1957_v19 = vmul.f32 %v14581_v29, %v14965_v34  ;;  %v14980_v33 = vld [vmem:[#allocation411_spill] sm:$0xff]  ;;  %v14983_v40 = vmax.f32 %v14982_v38, 0.0  ;;  %v14988_v62 = vld [vmem:[#allocation308_spill] sm:$0xff]  ;;  %v15010_v38 = vld [vmem:[#allocation330_spill] sm:$0xff] }
 0x378   : > { %4246 = vmatpush2.msra.mxu0 %v14977_v30  ;;  %4313 = vmatpush2.msra.mxu1 %v14979_v17  ;;  %v14981_v60 = vmax.f32 %v14980_v33, 0.0  ;;  %v14984_v17 = vld [vmem:[#allocation387_spill] sm:$0xff]  ;;  %v14987_v52 = vmax.f32 %v14986_v12, 0.0  ;;  %v11328_v20 = vadd.f32 %v14988_v62, %v2478_v32  ;;  %v1148_v36 = vmul.f32 %v14580_v10, %v14975_v16  ;;  %v14993_v21 = vld [vmem:[#allocation388_spill] sm:$0xff] }
 0x379   : > { %4314 = vmatprep.subr.mxu1 %v14983_v40  ;;  %v2470_v30 = vadd.f32 %v1958_v50, %v1149_v23  ;;  %v14985_v55 = vmax.f32 %v14984_v17, 0.0  ;;  %v11331_v40 = vadd.f32 %v14970_v15, %v2205_v61  ;;  %v14991_v50 = vld [vmem:[#allocation272_spill] sm:$0xff]  ;;  %v14994_v53 = vmax.f32 %v14993_v21, 0.0  ;;  %v14995_v33 = vld [vmem:[#allocation139_spill] sm:$0xff]  ;;  %v14996_v15 = vld [vmem:[#allocation241_spill] sm:$0xff] }
 0x37a   : > { %4247 = vmatprep.subr.mxu0 %v14981_v60  ;;  %4315 = vmatpush2.msra.mxu1 %v14987_v52  ;;  %14989 = vst [vmem:[#allocation148_spill] sm:$0xff] %v11328_v20  ;;  %v14992_v23 = vmax.f32 %v14991_v50, 0.0  ;;  %v11344_v32 = vadd.f32 %v14995_v33, %v2198_v7  ;;  %v2197_v60 = vadd.f32 %v1685_v51, %v876_v18  ;;  %v14997_v61 = vmax.f32 %v14996_v15, 0.0  ;;  %v14998_v17 = vld [vmem:[#allocation17_spill] sm:$0xff]  ;;  %v15000_v50 = vld [vmem:[#allocation214_spill] sm:$0xff] }
 0x37b   : > { %4248 = vmatpush2.msra.mxu0 %v14985_v55  ;;  %14990 = vst [vmem:[#allocation325_spill] sm:$0xff] %v11331_v40  ;;  %4316 = vmatprep.subr.mxu1 %v14994_v53  ;;  %v11341_v55 = vadd.f32 %v14988_v62, %v2477_v41  ;;  %v14999_v16 = vmax.f32 %v14998_v17, 0.0  ;;  %v2469_v52 = vadd.f32 %v1957_v19, %v1148_v36  ;;  %v15001_v21 = vld [vmem:[#allocation34_spill] sm:$0xff]  ;;  %v15002_v62 = vld [vmem:[#allocation273_spill] sm:$0xff]  ;;  %v15009_v36 = vld [vmem:[#allocation75_spill] sm:$0xff]  ;;  %v15011_v34 = vmax.f32 %v15010_v38, 0.0 }
 0x37c   : > { %4249 = vmatprep.subr.mxu0 %v14992_v23  ;;  %v869_v23 = vmul.f32 %v14571_v6, %v15000_v50  ;;  %v1678_v41 = vmul.f32 %v14573_v45, %v15001_v21  ;;  %v15003_v53 = vmax.f32 %v15002_v62, 0.0  ;;  %v15004_v7 = vld [vmem:[#allocation242_spill] sm:$0xff]  ;;  %v1950_v12 = vmul.f32 %v14573_v45, %v15009_v36  ;;  %v11387_v15 = vld [vmem:[%s12028_s3] sm:$0xff] }
 0x37d   : > { %4250 = vmatpush2.msra.mxu0 %v14997_v61  ;;  %4317 = vmatpush2.msra.mxu1 %v14999_v16  ;;  %v15005_v51 = vmax.f32 %v15004_v7, 0.0  ;;  %v15007_v61 = vld [vmem:[#allocation194_spill] sm:$0xff]  ;;  %v15008_v16 = vld [vmem:[#allocation367_spill] sm:$0xff]  ;;  %v1677_v7 = vmul.f32 %v14581_v29, %v15001_v21  ;;  %15015 = vst [vmem:[#allocation98_spill] sm:$0xff] %v11387_v15  ;;  %v1670_v21 = vmul.f32 %v14573_v45, %v15016_v5  ;;  %v15021_v18 = vmax.f32 %v15020_v57, 0.0  ;;  %v15119_v40 = vld [vmem:[#allocation5_spill] sm:$0xff] }
 0x37e   : > { %4251 = vmatprep.subr.mxu0 %v15003_v53  ;;  %v11361_v17 = vadd.f32 %v15007_v61, %v2470_v30  ;;  %v1141_v19 = vmul.f32 %v14571_v6, %v15008_v16  ;;  %v11372_v62 = vld [vmem:[%s12028_s3 + $0x8] sm:$0xff]  ;;  %v868_v30 = vmul.f32 %v14580_v10, %v15000_v50  ;;  %v11392_v50 = vadd.f32 %v14995_v33, %v2197_v60  ;;  %v15022_v60 = vld [vmem:[#allocation421_spill] sm:$0xff] }
 0x37f   : > { %4318 = vmatprep.subr.mxu1 %v15005_v51  ;;  %4252 = vmatpush2.msra.mxu0 %v15011_v34  ;;  %15012 = vst [vmem:[#allocation143_spill] sm:$0xff] %v11372_v62  ;;  %v1949_v51 = vmul.f32 %v14581_v29, %v15009_v36  ;;  %v15013_v38 = vld [vmem:[#allocation334_spill] sm:$0xff]  ;;  %v2190_v53 = vadd.f32 %v1678_v41, %v869_v23  ;;  %v15023_v48 = vmax.f32 %v15022_v60, 0.0  ;;  %v15120_v20 = vmax.f32 %v15119_v40, 0.0 }
 0x380   : > { %4253 = vmatprep.mubr.f32.mxu0 %v11372_v62  ;;  %v15014_v34 = vmax.f32 %v15013_v38, 0.0  ;;  %v15017_v62 = vld [vmem:[#allocation292_spill] sm:$0xff]  ;;  %4331 = vmatprep.subr.mxu0 %v15021_v18  ;;  %v1140_v33 = vmul.f32 %v14580_v10, %v15008_v16  ;;  %v15027_v18 = vld [vmem:[#allocation195_spill] sm:$0xff]  ;;  %v15028_v23 = vld [vmem:[#allocation50_spill] sm:$0xff] }
 0x381   : > { %4254 = vmatmul.mubr.f32.vlgmr.msra.gmra.mxu0 %v11387_v15  ;;  %v1942_v36 = vmul.f32 %v14573_v45, %v15017_v62  ;;  %v15018_v38 = vld [vmem:[#allocation256_spill] sm:$0xff]  ;;  %v11404_v15 = vadd.f32 %v15007_v61, %v2469_v52  ;;  %v1133_v11 = vmul.f32 %v14571_v6, %v15027_v18  ;;  %v1669_v52 = vmul.f32 %v14581_v29, %v15016_v5  ;;  %v15030_v61 = vld [vmem:[#allocation113_spill] sm:$0xff] }
 0x382   : > { %4319 = vmatpush2.msra.mxu1 %v15014_v34  ;;  %v15019_v34 = vmax.f32 %v15018_v38, 0.0  ;;  %4332 = vmatpush1.msra.mxu0 %v15025_v43  ;;  %v15029_v41 = vmax.f32 %v15028_v23, 0.0  ;;  %v15031_v16 = vmax.f32 %v15030_v61, 0.0  ;;  %v2462_v43 = vadd.f32 %v1950_v12, %v1141_v19  ;;  %v15032_v38 = vld [vmem:[#allocation337_spill] sm:$0xff]  ;;  %v11435_v12 = vld [vmem:[%s12028_s3 + $0x10] sm:$0xff] }
 0x383   : > { %v2461_v60 = vadd.f32 %v1949_v51, %v1140_v33  ;;  %v15033_v42 = vmax.f32 %v15032_v38, 0.0  ;;  %v2454_v5 = vadd.f32 %v1942_v36, %v1133_v11  ;;  %15037 = vst [vmem:[#allocation197_spill] sm:$0xff] %v11435_v12  ;;  %v11440_v19 = vadd.f32 %v15038_v24, %v2190_v53  ;;  %v15040_v51 = vld [vmem:[#allocation118_spill] sm:$0xff]  ;;  %v15042_v36 = vld [vmem:[#allocation119_spill] sm:$0xff]  ;;  %v15059_v38 = vld [vmem:[#allocation317_spill] sm:$0xff] }
 0x384   : > { %4320 = vmatprep.subr.mxu1 %v15019_v34  ;;  %v15026_v34 = vld [vmem:[#allocation36_spill] sm:$0xff]  ;;  %4333 = vmatprep.subr.mxu0 %v15031_v16  ;;  %v15043_v33 = vmax.f32 %v15042_v36, 0.0 }
 0x385   : > { %4321 = vmatpush2.msra.mxu1 %v15023_v48  ;;  %v861_v57 = vmul.f32 %v14571_v6, %v15026_v34  ;;  %v2189_v48 = vadd.f32 %v1677_v7, %v868_v30  ;;  %v860_v23 = vmul.f32 %v14580_v10, %v15026_v34  ;;  %v15039_v30 = vld [vmem:[#allocation304_spill] sm:$0xff]  ;;  %v1941_v7 = vmul.f32 %v14581_v29, %v15017_v62 }
 0x386   : > { %4322 = vmatprep.subr.mxu1 %v15029_v41  ;;  %v15035_v41 = vld [vmem:[#allocation114_spill] sm:$0xff]  ;;  %v11443_v11 = vadd.f32 %v15039_v30, %v2462_v43  ;;  %v11456_v53 = vadd.f32 %v15039_v30, %v2461_v60  ;;  %v15044_v16 = vld [vmem:[#allocation312_spill] sm:$0xff] }
 0x387   : > { %4323 = vmatpush2.msra.mxu1 %v15033_v42  ;;  %v2182_v44 = vadd.f32 %v1670_v21, %v861_v57  ;;  %v15036_v61 = vmax.f32 %v15035_v41, 0.0  ;;  %v15041_v21 = vmax.f32 %v15040_v51, 0.0  ;;  %v11453_v34 = vadd.f32 %v15038_v24, %v2189_v48  ;;  %v15046_v41 = vld [vmem:[#allocation124_spill] sm:$0xff]  ;;  %v15049_v48 = vld [vmem:[#allocation37_spill] sm:$0xff] }
 0x388   : > { %4325 = vmatmul.mubr.f32.vlgmr.msra.gmra.mxu1 %v11435_v12  ;;  %4402 = vmatprep.subr.mxu1 %v15043_v33  ;;  %v2181_v57 = vadd.f32 %v1669_v52, %v860_v23  ;;  %v15045_v43 = vmax.f32 %v15044_v16, 0.0  ;;  %v15047_v62 = vmax.f32 %v15046_v41, 0.0  ;;  %v1132_v51 = vmul.f32 %v14580_v10, %v15027_v18  ;;  %v15050_v60 = vld [vmem:[#allocation320_spill] sm:$0xff]  ;;  %v15052_v52 = vld [vmem:[#allocation259_spill] sm:$0xff]  ;;  %v15054_v16 = vld [vmem:[#allocation389_spill] sm:$0xff] }
 0x389   : > { %4334 = vmatpush1.msra.mxu0 %v15036_v61  ;;  %v1662_v24 = vmul.f32 %v14573_v45, %v15049_v48  ;;  %v15051_v30 = vmax.f32 %v15050_v60, 0.0  ;;  %v15053_v23 = vmax.f32 %v15052_v52, 0.0  ;;  %v15056_v41 = vld [vmem:[#allocation303_spill] sm:$0xff]  ;;  %v15058_v18 = vld [vmem:[#allocation402_spill] sm:$0xff]  ;;  %v15060_v42 = vmax.f32 %v15059_v38, 0.0  ;;  %v15067_v38 = vld [vmem:[#allocation356_spill] sm:$0xff] }
 0x38a   : > { %4335 = vmatprep.subr.mxu0 %v15041_v21  ;;  %4403 = vmatpush1.msra.mxu1 %v15047_v62  ;;  %v15048_v21 = vld [vmem:[#allocation199_spill] sm:$0xff]  ;;  %v11478_v62 = vadd.f32 %v15056_v41, %v2454_v5  ;;  %v1934_v61 = vmul.f32 %v14573_v45, %v15058_v18  ;;  %v15062_v60 = vmax.f32 %v15061_v2, 0.0  ;;  %v2453_v52 = vadd.f32 %v1941_v7, %v1132_v51  ;;  %v15063_v5 = vld [vmem:[#allocation52_spill] sm:$0xff] }
 0x38b   : > { %4336 = vmatpush1.msra.mxu0 %v15045_v43  ;;  %v853_v36 = vmul.f32 %v14571_v6, %v15048_v21  ;;  %4404 = vmatprep.subr.mxu1 %v15053_v23  ;;  %v11475_v43 = vadd.f32 %v15054_v16, %v2182_v44  ;;  %v852_v23 = vmul.f32 %v14580_v10, %v15048_v21  ;;  %v15064_v33 = vmax.f32 %v15063_v5, 0.0  ;;  %v15068_v21 = vld [vmem:[#allocation336_spill] sm:$0xff] }
 0x38c   : > { %4337 = vmatprep.subr.mxu0 %v15051_v30  ;;  %15057 = vst [vmem:[#allocation222_spill] sm:$0xff] %v11478_v62  ;;  %4405 = vmatpush1.msra.mxu1 %v15062_v60  ;;  %v1661_v44 = vmul.f32 %v14581_v29, %v15049_v48  ;;  %v15066_v12 = vmax.f32 %v15065_v1, 0.0  ;;  %v11497_v2 = vadd.f32 %v15054_v16, %v2181_v57  ;;  %v15069_v60 = vmax.f32 %v15068_v21, 0.0  ;;  %v15070_v48 = vld [vmem:[#allocation335_spill] sm:$0xff]  ;;  %v15073_v57 = vld [vmem:[#allocation146_spill] sm:$0xff]  ;;  %v15074_v30 = vld [vmem:[#allocation381_spill] sm:$0xff] }
 0x38d   : > { %15055 = vst [vmem:[#allocation316_spill] sm:$0xff] %v11475_v43  ;;  %4338 = vmatpush1.msra.mxu0 %v15060_v42  ;;  %v1125_v7 = vmul.f32 %v14571_v6, %v15067_v38  ;;  %v1933_v51 = vmul.f32 %v14581_v29, %v15058_v18  ;;  %v15071_v5 = vmax.f32 %v15070_v48, 0.0  ;;  %v1926_v16 = vmul.f32 %v14573_v45, %v15073_v57  ;;  %v15080_v1 = vld [vmem:[#allocation373_spill] sm:$0xff]  ;;  %v15083_v21 = vld [vmem:[#allocation186_spill] sm:$0xff]  ;;  %v15166_v43 = vld [vmem:[#allocation103_spill] sm:$0xff] }
 0x38e   : > { %4339 = vmatprep.subr.mxu0 %v15064_v33  ;;  %4406 = vmatprep.subr.mxu1 %v15066_v12  ;;  %v2174_v12 = vadd.f32 %v1662_v24, %v853_v36  ;;  %v15072_v33 = vld [vmem:[#allocation153_spill] sm:$0xff]  ;;  %v15075_v37 = vmax.f32 %v15074_v30, 0.0  ;;  %v15077_v18 = vmax.f32 %v15076_v0, 0.0  ;;  %v1124_v48 = vmul.f32 %v14580_v10, %v15067_v38  ;;  %v15078_v24 = vld [vmem:[#allocation422_spill] sm:$0xff] }
 0x38f   : > { %4340 = vmatpush1.msra.mxu0 %v15069_v60  ;;  %4407 = vmatpush1.msra.mxu1 %v15071_v5  ;;  %v1654_v42 = vmul.f32 %v14573_v45, %v15072_v33  ;;  %v2446_v60 = vadd.f32 %v1934_v61, %v1125_v7  ;;  %v1653_v36 = vmul.f32 %v14581_v29, %v15072_v33  ;;  %v15079_v5 = vmax.f32 %v15078_v24, 0.0  ;;  %v15082_v0 = vld [vmem:[#allocation33_spill] sm:$0xff]  ;;  %v15084_v7 = vld [vmem:[#allocation91_spill] sm:$0xff] }
 0x390   : > { %4341 = vmatprep.subr.mxu0 %v15075_v37  ;;  %4408 = vmatprep.subr.mxu1 %v15077_v18  ;;  %v15081_v14 = vmax.f32 %v15080_v1, 0.0  ;;  %v2173_v30 = vadd.f32 %v1661_v44, %v852_v23  ;;  %v845_v18 = vmul.f32 %v14571_v6, %v15082_v0  ;;  %v1117_v61 = vmul.f32 %v14571_v6, %v15083_v21  ;;  %v15087_v44 = vld [vmem:[#allocation188_spill] sm:$0xff]  ;;  %v15103_v24 = vld [vmem:[#allocation299_spill] sm:$0xff] }
 0x391   : > { %4342 = vmatpush1.msra.mxu0 %v15079_v5  ;;  %v15085_v38 = vmax.f32 %v15084_v7, 0.0  ;;  %v15086_v33 = vmax.f32 %v10623_v13, 0.0  ;;  %v2445_v5 = vadd.f32 %v1933_v51, %v1124_v48  ;;  %v1925_v23 = vmul.f32 %v14581_v29, %v15073_v57  ;;  %v15090_v51 = vld [vmem:[#allocation128_spill] sm:$0xff] }
 0x392   : > { %4409 = vmatpush1.msra.mxu1 %v15081_v14  ;;  %v844_v14 = vmul.f32 %v14580_v10, %v15082_v0  ;;  %v15088_v1 = vmax.f32 %v15087_v44, 0.0  ;;  %v15089_v37 = vmax.f32 %v10640_v59, 0.0  ;;  %v2438_v13 = vadd.f32 %v1926_v16, %v1117_v61 }
 0x393   : > { %4343 = vmatprep.subr.mxu0 %v15085_v38  ;;  %4410 = vmatprep.subr.mxu1 %v15086_v33  ;;  %v2166_v38 = vadd.f32 %v1654_v42, %v845_v18  ;;  %v1116_v33 = vmul.f32 %v14580_v10, %v15083_v21  ;;  %v15091_v48 = vmax.f32 %v15090_v51, 0.0  ;;  %v15092_v0 = vmax.f32 %v10651_v49, 0.0  ;;  %v15095_v42 = vld [vmem:[#allocation415_spill] sm:$0xff]  ;;  %v15097_v18 = vld [vmem:[#allocation92_spill] sm:$0xff]  ;;  %v15099_v51 = vld [vmem:[#allocation418_spill] sm:$0xff] }
 0x394   : > { %4344 = vmatpush1.msra.mxu0 %v15088_v1  ;;  %4411 = vmatpush1.msra.mxu1 %v15089_v37  ;;  %v2165_v44 = vadd.f32 %v1653_v36, %v844_v14  ;;  %v15093_v1 = vld [vmem:[#allocation187_spill] sm:$0xff]  ;;  %v15096_v16 = vmax.f32 %v15095_v42, 0.0  ;;  %v15098_v21 = vmax.f32 %v15097_v18, 0.0  ;;  %v11561_v49 = vadd.f32 %v15056_v41, %v2453_v52  ;;  %v15100_v36 = vld [vmem:[#allocation296_spill] sm:$0xff] }
 0x395   : > { %4345 = vmatprep.subr.mxu0 %v15091_v48  ;;  %4412 = vmatprep.subr.mxu1 %v15092_v0  ;;  %v837_v59 = vmul.f32 %v14571_v6, %v15093_v1  ;;  %v15094_v37 = vld [vmem:[#allocation39_spill] sm:$0xff]  ;;  %v11564_v48 = vadd.f32 %v15099_v51, %v2174_v12  ;;  %v11567_v14 = vadd.f32 %v15100_v36, %v2446_v60  ;;  %v15101_v0 = vld [vmem:[#allocation338_spill] sm:$0xff]  ;;  %v15104_v42 = vmax.f32 %v15103_v24, 0.0  ;;  %v15105_v12 = vld [vmem:[#allocation416_spill] sm:$0xff] }
 0x396   : > { %v1646_v7 = vmul.f32 %v14573_v45, %v15094_v37  ;;  %4346 = vmatpush1.msra.mxu0 %v15096_v16  ;;  %4413 = vmatpush1.msra.mxu1 %v15098_v21  ;;  %v15102_v57 = vmax.f32 %v15101_v0, 0.0  ;;  %v11575_v18 = vadd.f32 %v15099_v51, %v2173_v30  ;;  %v11578_v41 = vadd.f32 %v15100_v36, %v2445_v5  ;;  %v15107_v60 = vld [vmem:[#allocation100_spill] sm:$0xff]  ;;  %v15109_v0 = vld [vmem:[#allocation417_spill] sm:$0xff] }
 0x397   : > { %4414 = vmatprep.subr.mxu1 %v15104_v42  ;;  %v2437_v52 = vadd.f32 %v1925_v23, %v1116_v33  ;;  %v15106_v21 = vmax.f32 %v15105_v12, 0.0  ;;  %v15108_v61 = vmax.f32 %v15107_v60, 0.0  ;;  %v11586_v24 = vadd.f32 %v15109_v0, %v2166_v38  ;;  %v15110_v42 = vld [vmem:[#allocation295_spill] sm:$0xff]  ;;  %v15111_v30 = vld [vmem:[#allocation409_spill] sm:$0xff] }
 0x398   : > { %4347 = vmatprep.subr.mxu0 %v15102_v57  ;;  %v11589_v16 = vadd.f32 %v15110_v42, %v2438_v13  ;;  %v1918_v51 = vmul.f32 %v14573_v45, %v15111_v30  ;;  %v15112_v5 = vld [vmem:[#allocation397_spill] sm:$0xff]  ;;  %v15116_v38 = vld [vmem:[#allocation243_spill] sm:$0xff]  ;;  %v15117_v13 = vld [vmem:[#allocation130_spill] sm:$0xff] }
 0x399   : > { %4348 = vmatpush1.msra.mxu0 %v15106_v21  ;;  %4415 = vmatpush1.msra.mxu1 %v15108_v61  ;;  %v15113_v36 = vmax.f32 %v15112_v5, 0.0  ;;  %v15114_v23 = vld [vmem:[#allocation393_spill] sm:$0xff]  ;;  %v11599_v61 = vadd.f32 %v15109_v0, %v2165_v44  ;;  %v2158_v21 = vadd.f32 %v1646_v7, %v837_v59  ;;  %v1109_v60 = vmul.f32 %v14571_v6, %v15116_v38  ;;  %v15121_v44 = vld [vmem:[#allocation394_spill] sm:$0xff] }
 0x39a   : > { %v15115_v33 = vmax.f32 %v15114_v23, 0.0  ;;  %v15118_v57 = vmax.f32 %v15117_v13, 0.0  ;;  %v1645_v23 = vmul.f32 %v14581_v29, %v15094_v37  ;;  %v1917_v7 = vmul.f32 %v14581_v29, %v15111_v30  ;;  %v15137_v5 = vld [vmem:[#allocation266_spill] sm:$0xff] }
 0x39b   : > { %4349 = vmatprep.subr.mxu0 %v15113_v36  ;;  %v836_v36 = vmul.f32 %v14580_v10, %v15093_v1  ;;  %v15122_v59 = vmax.f32 %v15121_v44, 0.0  ;;  %v15123_v0 = vmax.f32 %v10838_v54, 0.0  ;;  %v15126_v13 = vmax.f32 %v10848_v58, 0.0  ;;  %v15135_v54 = vld [vmem:[#allocation217_spill] sm:$0xff] }
 0x39c   : > { %4416 = vmatprep.subr.mxu1 %v15115_v33  ;;  %4350 = vmatpush1.msra.mxu0 %v15118_v57  ;;  %v15124_v57 = vld [vmem:[#allocation424_spill] sm:$0xff]  ;;  %v15125_v33 = vld [vmem:[#allocation414_spill] sm:$0xff]  ;;  %v15127_v30 = vmax.f32 %v10851_v8, 0.0  ;;  %v2430_v44 = vadd.f32 %v1918_v51, %v1109_v60  ;;  %v15132_v60 = vmax.f32 %v10881_v22, 0.0  ;;  %v15136_v40 = vmax.f32 %v15135_v54, 0.0 }
 0x39d   : > { %4417 = vmatpush1.msra.mxu1 %v15120_v20  ;;  %4351 = vmatprep.subr.mxu0 %v15122_v59  ;;  %v11620_v20 = vadd.f32 %v15110_v42, %v2437_v52  ;;  %v1638_v1 = vmul.f32 %v14573_v45, %v15124_v57  ;;  %v1910_v37 = vmul.f32 %v14573_v45, %v15125_v33  ;;  %v15128_v42 = vmax.f32 %v10859_v4, 0.0 }
 0x39e   : > { %4418 = vmatprep.subr.mxu1 %v15123_v0  ;;  %4352 = vmatpush1.msra.mxu0 %v15126_v13  ;;  %v1108_v59 = vmul.f32 %v14580_v10, %v15116_v38  ;;  %v1637_v52 = vmul.f32 %v14581_v29, %v15124_v57  ;;  %v15129_v0 = vmax.f32 %v10871_v39, 0.0  ;;  %v15130_v13 = vld [vmem:[#allocation31_spill] sm:$0xff]  ;;  %v1909_v38 = vmul.f32 %v14581_v29, %v15125_v33  ;;  %v15133_v57 = vld [vmem:[#allocation297_spill] sm:$0xff] }
 0x39f   : > { %4419 = vmatpush1.msra.mxu1 %v15127_v30  ;;  %4353 = vmatprep.subr.mxu0 %v15128_v42  ;;  %v829_v8 = vmul.f32 %v14571_v6, %v15130_v13  ;;  %v15131_v30 = vld [vmem:[#allocation171_spill] sm:$0xff]  ;;  %v15134_v4 = vmax.f32 %v15133_v57, 0.0  ;;  %v2157_v42 = vadd.f32 %v1645_v23, %v836_v36  ;;  %v828_v58 = vmul.f32 %v14580_v10, %v15130_v13  ;;  %v15141_v36 = vld [vmem:[#allocation196_spill] sm:$0xff]  ;;  %v15147_v13 = vld [vmem:[#allocation370_spill] sm:$0xff] }
 0x3a0   : > { %4420 = vmatprep.subr.mxu1 %v15129_v0  ;;  %v1101_v51 = vmul.f32 %v14571_v6, %v15131_v30  ;;  %4354 = vmatpush1.msra.mxu0 %v15132_v60  ;;  %v2429_v0 = vadd.f32 %v1917_v7, %v1108_v59  ;;  %v15138_v12 = vmax.f32 %v15137_v5, 0.0  ;;  %v1100_v57 = vmul.f32 %v14580_v10, %v15131_v30  ;;  %v15153_v7 = vld [vmem:[#allocation81_spill] sm:$0xff] }
 0x3a1   : > { %4421 = vmatpush1.msra.mxu1 %v15134_v4  ;;  %4355 = vmatprep.subr.mxu0 %v15136_v40  ;;  %v2150_v22 = vadd.f32 %v1638_v1, %v829_v8  ;;  %v15139_v4 = vld [vmem:[#allocation165_spill] sm:$0xff]  ;;  %v15142_v23 = vmax.f32 %v15141_v36, 0.0  ;;  %v2149_v54 = vadd.f32 %v1637_v52, %v828_v58  ;;  %v15143_v40 = vld [vmem:[#allocation176_spill] sm:$0xff]  ;;  %v15145_v1 = vld [vmem:[#allocation354_spill] sm:$0xff]  ;;  %v15148_v8 = vmax.f32 %v15147_v13, 0.0 }
 0x3a2   : > { %4422 = vmatprep.subr.mxu1 %v15138_v12  ;;  %v2422_v60 = vadd.f32 %v1910_v37, %v1101_v51  ;;  %v15140_v39 = vmax.f32 %v15139_v4, 0.0  ;;  %v821_v5 = vmul.f32 %v14571_v6, %v15143_v40  ;;  %v15144_v12 = vld [vmem:[#allocation49_spill] sm:$0xff]  ;;  %v15146_v37 = vmax.f32 %v15145_v1, 0.0  ;;  %v15151_v58 = vld [vmem:[#allocation300_spill] sm:$0xff] }
 0x3a3   : > { %4423 = vmatpush1.msra.mxu1 %v15142_v23  ;;  %v1630_v59 = vmul.f32 %v14573_v45, %v15144_v12  ;;  %v15149_v51 = vld [vmem:[#allocation125_spill] sm:$0xff]  ;;  %v2421_v52 = vadd.f32 %v1909_v38, %v1100_v57  ;;  %v15152_v23 = vmax.f32 %v15151_v58, 0.0  ;;  %v15154_v33 = vmax.f32 %v15153_v7, 0.0  ;;  %v15158_v38 = vld [vmem:[#allocation154_spill] sm:$0xff] }
 0x3a4   : > { %4356 = vmatpush1.msra.mxu0 %v15140_v39  ;;  %4424 = vmatprep.subr.mxu1 %v15148_v8  ;;  %v11675_v39 = vadd.f32 %v15149_v51, %v2158_v21  ;;  %v15150_v4 = vld [vmem:[#allocation97_spill] sm:$0xff]  ;;  %v15155_v21 = vld [vmem:[#allocation431_spill] sm:$0xff]  ;;  %v15159_v57 = vmax.f32 %v15158_v38, 0.0 }
 0x3a5   : > { %4357 = vmatprep.subr.mxu0 %v15146_v37  ;;  %v11678_v36 = vadd.f32 %v15150_v4, %v2430_v44  ;;  %4425 = vmatpush1.msra.mxu1 %v15154_v33  ;;  %v11686_v37 = vadd.f32 %v15149_v51, %v2157_v42  ;;  %v11689_v13 = vadd.f32 %v15150_v4, %v2429_v0  ;;  %v15156_v44 = vld [vmem:[#allocation57_spill] sm:$0xff]  ;;  %v15160_v33 = vld [vmem:[#allocation346_spill] sm:$0xff]  ;;  %v15163_v51 = vld [vmem:[#allocation340_spill] sm:$0xff] }
 0x3a6   : > { %4358 = vmatpush1.msra.mxu0 %v15152_v23  ;;  %v1902_v8 = vmul.f32 %v14573_v45, %v15155_v21  ;;  %v15157_v30 = vmax.f32 %v15156_v44, 0.0  ;;  %4426 = vmatprep.subr.mxu1 %v15159_v57  ;;  %v11699_v58 = vadd.f32 %v15160_v33, %v2150_v22  ;;  %v15161_v23 = vld [vmem:[#allocation35_spill] sm:$0xff]  ;;  %v1093_v0 = vmul.f32 %v14571_v6, %v15163_v51 }
 0x3a7   : > { %v11702_v42 = vadd.f32 %v15161_v23, %v2422_v60  ;;  %v15164_v4 = vld [vmem:[#allocation419_spill] sm:$0xff]  ;;  %v15167_v44 = vmax.f32 %v15166_v43, 0.0  ;;  %v11712_v38 = vadd.f32 %v15160_v33, %v2149_v54  ;;  %v2142_v57 = vadd.f32 %v1630_v59, %v821_v5  ;;  %v15168_v60 = vld [vmem:[#allocation42_spill] sm:$0xff]  ;;  %v15172_v54 = vld [vmem:[#allocation9_spill] sm:$0xff] }
 0x3a8   : > { %4359 = vmatprep.subr.mxu0 %v15157_v30  ;;  %v15165_v1 = vmax.f32 %v15164_v4, 0.0  ;;  %v3589_v30 = vmax.f32 %v11497_v2, 0.0  ;;  %v820_v22 = vmul.f32 %v14580_v10, %v15143_v40  ;;  %v15169_v7 = vmax.f32 %v15168_v60, 0.0  ;;  %v15181_v60 = vld [vmem:[#allocation83_spill] sm:$0xff] }
 0x3a9   : > { %15162 = vst [vmem:[#allocation58_spill] sm:$0xff] %v11702_v42  ;;  %4427 = vmatpush1.msra.mxu1 %v15167_v44  ;;  %v15170_v42 = vld [vmem:[#allocation423_spill] sm:$0xff]  ;;  %v11722_v43 = vadd.f32 %v15161_v23, %v2421_v52  ;;  %v1629_v4 = vmul.f32 %v14581_v29, %v15144_v12  ;;  %v1622_v5 = vmul.f32 %v14573_v45, %v15172_v54  ;;  %v15173_v59 = vmax.f32 %v11109_v63, 0.0  ;;  %v15175_v52 = vld [vmem:[#allocation437_spill] sm:$0xff] }
 0x3aa   : > { %4360 = vmatpush1.msra.mxu0 %v15165_v1  ;;  %v15171_v62 = vmax.f32 %v15170_v42, 0.0  ;;  %v15174_v40 = vmax.f32 %v11126_v56, 0.0  ;;  %v1092_v33 = vmul.f32 %v14580_v10, %v15163_v51  ;;  %v1894_v23 = vmul.f32 %v14573_v45, %v15175_v52  ;;  %v15178_v44 = vld [vmem:[#allocation29_spill] sm:$0xff] }
 0x3ab   : > { %4361 = vmatprep.subr.mxu0 %v15169_v7  ;;  %v15176_v12 = vmax.f32 %v11129_v27, 0.0  ;;  %v15177_v42 = vmax.f32 %v11137_v9, 0.0  ;;  %v1901_v56 = vmul.f32 %v14581_v29, %v15155_v21  ;;  %v1621_v51 = vmul.f32 %v14581_v29, %v15172_v54  ;;  %v15185_v54 = vld [vmem:[#allocation147_spill] sm:$0xff]  ;;  %v15187_v9 = vld [vmem:[#allocation180_spill] sm:$0xff] }
 0x3ac   : > { %4428 = vmatprep.subr.mxu1 %v15171_v62  ;;  %4362 = vmatpush1.msra.mxu0 %v15173_v59  ;;  %v2414_v62 = vadd.f32 %v1902_v8, %v1093_v0  ;;  %v813_v8 = vmul.f32 %v14571_v6, %v15178_v44  ;;  %v15179_v0 = vmax.f32 %v11147_v28, 0.0  ;;  %v15180_v27 = vmax.f32 %v11168_v3, 0.0 }
 0x3ad   : > { %4429 = vmatpush1.msra.mxu1 %v15174_v40  ;;  %4363 = vmatprep.subr.mxu0 %v15176_v12  ;;  %v11754_v59 = vadd.f32 %v15181_v60, %v2142_v57  ;;  %v15182_v40 = vld [vmem:[#allocation160_spill] sm:$0xff]  ;;  %v1893_v12 = vmul.f32 %v14581_v29, %v15175_v52  ;;  %v15186_v28 = vmax.f32 %v15185_v54, 0.0  ;;  %v3853_v3 = vmax.f32 %v11578_v41, 0.0 }
 0x3ae   : > { %4430 = vmatprep.subr.mxu1 %v15177_v42  ;;  %4364 = vmatpush2.msra.mxu0 %v15179_v0  ;;  %v1085_v21 = vmul.f32 %v14571_v6, %v15182_v40  ;;  %v15183_v42 = vld [vmem:[#allocation41_spill] sm:$0xff]  ;;  %v2141_v0 = vadd.f32 %v1629_v4, %v820_v22  ;;  %v812_v57 = vmul.f32 %v14580_v10, %v15178_v44  ;;  %v15188_v7 = vmax.f32 %v15187_v9, 0.0  ;;  %v15196_v9 = vld [vmem:[#allocation64_spill] sm:$0xff] }
 0x3af   : > { %4431 = vmatpush1.msra.mxu1 %v15180_v27  ;;  %v15184_v63 = vmax.f32 %v15183_v42, 0.0  ;;  %v2134_v27 = vadd.f32 %v1622_v5, %v813_v8  ;;  %v15189_v1 = vmax.f32 %v11239_v47, 0.0  ;;  %v3574_v52 = vmax.f32 %v11586_v24, 0.0  ;;  %v15190_v42 = vld [vmem:[#allocation127_spill] sm:$0xff]  ;;  %v15195_v8 = vld [vmem:[#allocation162_spill] sm:$0xff] }
 0x3b0   : > { %4432 = vmatprep.subr.mxu1 %v15186_v28  ;;  %v2406_v54 = vadd.f32 %v1894_v23, %v1085_v21  ;;  %v1084_v28 = vmul.f32 %v14580_v10, %v15182_v40  ;;  %v15191_v22 = vmax.f32 %v11242_v35, 0.0  ;;  %v15192_v4 = vmax.f32 %v11250_v46, 0.0  ;;  %v15234_v24 = vld [vmem:[#allocation182_spill] sm:$0xff] }
 0x3b1   : > { %4365 = vmatprep.subr.mxu0 %v15184_v63  ;;  %4433 = vmatpush1.msra.mxu1 %v15189_v1  ;;  %v11773_v63 = vadd.f32 %v15190_v42, %v2414_v62  ;;  %v3846_v5 = vmax.f32 %v11589_v16, 0.0  ;;  %v11783_v47 = vadd.f32 %v15181_v60, %v2141_v0  ;;  %v2413_v1 = vadd.f32 %v1901_v56, %v1092_v33  ;;  %v15198_v33 = vld [vmem:[#allocation148_spill] sm:$0xff] }
 0x3b2   : > { %4366 = vmatpush2.msra.mxu0 %v15188_v7  ;;  %4434 = vmatprep.subr.mxu1 %v15192_v4  ;;  %v2133_v7 = vadd.f32 %v1621_v51, %v812_v57  ;;  %v15193_v62 = vmax.f32 %v11253_v25, 0.0  ;;  %v15194_v23 = vmax.f32 %v11292_v26, 0.0  ;;  %v3573_v44 = vmax.f32 %v11599_v61, 0.0  ;;  %v15200_v51 = vld [vmem:[#allocation352_spill] sm:$0xff]  ;;  %v15202_v57 = vld [vmem:[#allocation325_spill] sm:$0xff]  ;;  %v15205_v4 = vld [vmem:[#allocation274_spill] sm:$0xff] }
 0x3b3   : > { %4367 = vmatprep.subr.mxu0 %v15191_v22  ;;  %v2405_v35 = vadd.f32 %v1893_v12, %v1084_v28  ;;  %v805_v46 = vmul.f32 %v14571_v6, %v15195_v8  ;;  %v1614_v40 = vmul.f32 %v14573_v45, %v15196_v9  ;;  %v15197_v60 = vmax.f32 %v11295_v31, 0.0  ;;  %v15201_v12 = vld [vmem:[#allocation441_spill] sm:$0xff] }
 0x3b4   : > { %4368 = vmatpush2.msra.mxu0 %v15193_v62  ;;  %4435 = vmatpush2.msra.mxu1 %v15194_v23  ;;  %v15199_v56 = vmax.f32 %v15198_v33, 0.0  ;;  %v3845_v25 = vmax.f32 %v11620_v20, 0.0  ;;  %v11800_v26 = vadd.f32 %v15190_v42, %v2413_v1  ;;  %v11803_v21 = vadd.f32 %v15200_v51, %v2134_v27  ;;  %v15208_v33 = vld [vmem:[#allocation253_spill] sm:$0xff] }
 0x3b5   : > { %4369 = vmatprep.subr.mxu0 %v15197_v60  ;;  %v1886_v0 = vmul.f32 %v14573_v45, %v15201_v12  ;;  %v15203_v28 = vmax.f32 %v15202_v57, 0.0  ;;  %v15204_v31 = vmax.f32 %v11341_v55, 0.0  ;;  %v3566_v22 = vmax.f32 %v11675_v39, 0.0 }
 0x3b6   : > { %4436 = vmatprep.subr.mxu1 %v15199_v56  ;;  %v11813_v62 = vadd.f32 %v15205_v4, %v2406_v54  ;;  %v804_v42 = vmul.f32 %v14580_v10, %v15195_v8  ;;  %v1613_v27 = vmul.f32 %v14581_v29, %v15196_v9  ;;  %v15206_v1 = vmax.f32 %v11344_v32, 0.0 }
 0x3b7   : > { %4370 = vmatpush2.msra.mxu0 %v15203_v28  ;;  %4437 = vmatpush2.msra.mxu1 %v15204_v31  ;;  %v15207_v23 = vmax.f32 %v11361_v17, 0.0  ;;  %v3838_v55 = vmax.f32 %v11678_v36, 0.0  ;;  %v11825_v60 = vadd.f32 %v15200_v51, %v2133_v7  ;;  %v1077_v54 = vmul.f32 %v14571_v6, %v15208_v33  ;;  %v15211_v7 = vld [vmem:[#allocation11_spill] sm:$0xff]  ;;  %v15217_v31 = vld [vmem:[#allocation382_spill] sm:$0xff] }
 0x3b8   : > { %4371 = vmatprep.subr.mxu0 %v15206_v1  ;;  %v1885_v8 = vmul.f32 %v14581_v29, %v15201_v12  ;;  %v15209_v56 = vmax.f32 %v11392_v50, 0.0  ;;  %v15210_v32 = vmax.f32 %v11404_v15, 0.0  ;;  %v3565_v17 = vmax.f32 %v11686_v37, 0.0  ;;  %v15214_v37 = vld [vmem:[#allocation294_spill] sm:$0xff]  ;;  %v15219_v1 = vld [vmem:[#allocation316_spill] sm:$0xff] }
 0x3b9   : > { %4438 = vmatprep.subr.mxu1 %v15207_v23  ;;  %v11837_v9 = vadd.f32 %v15205_v4, %v2405_v35  ;;  %v2126_v36 = vadd.f32 %v1614_v40, %v805_v46  ;;  %v1878_v51 = vmul.f32 %v14573_v45, %v15211_v7  ;;  %v15212_v57 = vmax.f32 %v11440_v19, 0.0 }
 0x3ba   : > { %4372 = vmatpush2.msra.mxu0 %v15209_v56  ;;  %4439 = vmatpush2.msra.mxu1 %v15210_v32  ;;  %v15213_v12 = vmax.f32 %v11443_v11, 0.0  ;;  %v3837_v50 = vmax.f32 %v11689_v13, 0.0  ;;  %v2398_v28 = vadd.f32 %v1886_v0, %v1077_v54  ;;  %v1076_v15 = vmul.f32 %v14580_v10, %v15208_v33  ;;  %v15218_v13 = vld [vmem:[#allocation20_spill] sm:$0xff]  ;;  %v15221_v33 = vld [vmem:[#allocation222_spill] sm:$0xff] }
 0x3bb   : > { %4373 = vmatprep.subr.mxu0 %v15212_v57  ;;  %v1606_v35 = vmul.f32 %v14573_v45, %v15214_v37  ;;  %v15215_v46 = vmax.f32 %v11453_v34, 0.0  ;;  %v15216_v40 = vmax.f32 %v11456_v53, 0.0  ;;  %v3558_v19 = vmax.f32 %v11699_v58, 0.0  ;;  %v15223_v34 = vld [vmem:[#allocation58_spill] sm:$0xff]  ;;  %v15225_v58 = vld [vmem:[#allocation27_spill] sm:$0xff] }
 0x3bc   : > { %4440 = vmatprep.subr.mxu1 %v15213_v12  ;;  %v11856_v11 = vadd.f32 %v15217_v31, %v2126_v36  ;;  %v2125_v4 = vadd.f32 %v1613_v27, %v804_v42  ;;  %v1069_v0 = vmul.f32 %v14571_v6, %v15218_v13  ;;  %v15220_v23 = vmax.f32 %v15219_v1, 0.0  ;;  %v15224_v32 = vld [vmem:[#allocation22_spill] sm:$0xff] }
 0x3bd   : > { %4374 = vmatpush2.msra.mxu0 %v15215_v46  ;;  %4441 = vmatpush2.msra.mxu1 %v15216_v40  ;;  %v15222_v54 = vmax.f32 %v15221_v33, 0.0  ;;  %v3830_v56 = vmax.f32 %v15223_v34, 0.0  ;;  %v11866_v53 = vadd.f32 %v15224_v32, %v2398_v28  ;;  %v2397_v57 = vadd.f32 %v1885_v8, %v1076_v15  ;;  %v15237_v33 = vld [vmem:[#allocation132_spill] sm:$0xff] }
 0x3be   : > { %4375 = vmatprep.subr.mxu0 %v15220_v23  ;;  %v797_v36 = vmul.f32 %v14571_v6, %v15225_v58  ;;  %v15226_v42 = vmax.f32 %v11561_v49, 0.0  ;;  %v3557_v27 = vmax.f32 %v11712_v38, 0.0  ;;  %v2390_v12 = vadd.f32 %v1878_v51, %v1069_v0  ;;  %v15229_v49 = vld [vmem:[#allocation150_spill] sm:$0xff]  ;;  %v15230_v38 = vld [vmem:[#allocation72_spill] sm:$0xff]  ;;  %v15235_v0 = vld [vmem:[#allocation331_spill] sm:$0xff] }
 0x3bf   : > { %4442 = vmatprep.subr.mxu1 %v15222_v54  ;;  %4376 = vmatpush2.msra.mxu0 %v3589_v30  ;;  %v1605_v46 = vmul.f32 %v14581_v29, %v15214_v37  ;;  %v1877_v28 = vmul.f32 %v14581_v29, %v15211_v7  ;;  %v15227_v8 = vmax.f32 %v11564_v48, 0.0  ;;  %v15228_v15 = vmax.f32 %v11567_v14, 0.0  ;;  %v15238_v54 = vld [vmem:[#allocation185_spill] sm:$0xff] }
 0x3c0   : > { %4443 = vmatpush2.msra.mxu1 %v15226_v42  ;;  %v3829_v2 = vmax.f32 %v11722_v43, 0.0  ;;  %v2118_v30 = vadd.f32 %v1606_v35, %v797_v36  ;;  %v789_v40 = vmul.f32 %v14571_v6, %v15229_v49  ;;  %v1598_v51 = vmul.f32 %v14573_v45, %v15230_v38  ;;  %v15233_v35 = vld [vmem:[#allocation260_spill] sm:$0xff]  ;;  %v15239_v36 = vld [vmem:[#allocation19_spill] sm:$0xff] }
 0x3c1   : > { %4377 = vmatprep.subr.mxu0 %v15227_v8  ;;  %4444 = vmatprep.subr.mxu1 %v15228_v15  ;;  %v15231_v37 = vmax.f32 %v11575_v18, 0.0  ;;  %v3550_v48 = vmax.f32 %v11754_v59, 0.0  ;;  %v11894_v14 = vadd.f32 %v15217_v31, %v2125_v4  ;;  %v796_v43 = vmul.f32 %v14580_v10, %v15225_v58  ;;  %v15232_v59 = vld [vmem:[#allocation117_spill] sm:$0xff] }
 0x3c2   : > { %4445 = vmatpush2.msra.mxu1 %v3853_v3  ;;  %v1068_v7 = vmul.f32 %v14580_v10, %v15218_v13  ;;  %v3822_v18 = vmax.f32 %v11773_v63, 0.0  ;;  %v11906_v41 = vadd.f32 %v15224_v32, %v2397_v57  ;;  %v11909_v3 = vadd.f32 %v15232_v59, %v2118_v30 }
 0x3c3   : > { %4378 = vmatpush2.msra.mxu0 %v15231_v37  ;;  %4446 = vmatprep.subr.mxu1 %v3846_v5  ;;  %v1870_v31 = vmul.f32 %v14573_v45, %v15233_v35  ;;  %v3549_v16 = vmax.f32 %v11783_v47, 0.0  ;;  %v2117_v63 = vadd.f32 %v1605_v46, %v796_v43  ;;  %v3821_v4 = vmax.f32 %v11800_v26, 0.0  ;;  %v3971_v43 = vpop.f32.mrf.mxu0 }
 0x3c4   : > { %4379 = vmatprep.subr.mxu0 %v3574_v52  ;;  %4447 = vmatpush2.msra.mxu1 %v3845_v25  ;;  %v11919_v52 = vadd.f32 %v15234_v24, %v2390_v12  ;;  %v2389_v5 = vadd.f32 %v1877_v28, %v1068_v7  ;;  %v2110_v13 = vadd.f32 %v1598_v51, %v789_v40  ;;  %v3542_v47 = vmax.f32 %v11803_v21, 0.0  ;;  %v15236_v25 = vld [vmem:[#allocation120_spill] sm:$0xff]  ;;  %v15242_v51 = vld [vmem:[#allocation281_spill] sm:$0xff] }
 0x3c5   : > { %4380 = vmatpush2.msra.mxu0 %v3573_v44  ;;  %4448 = vmatprep.subr.mxu1 %v3838_v55  ;;  %v1061_v61 = vmul.f32 %v14571_v6, %v15235_v0  ;;  %v1869_v20 = vmul.f32 %v14581_v29, %v15233_v35  ;;  %v788_v44 = vmul.f32 %v14580_v10, %v15229_v49  ;;  %v3805_v8 = vmax.f32 %v11906_v41, 0.0  ;;  %v15243_v41 = vld [vmem:[#allocation377_spill] sm:$0xff] }
 0x3c6   : > { %4381 = vmatprep.subr.mxu0 %v3566_v22  ;;  %4449 = vmatpush2.msra.mxu1 %v3837_v50  ;;  %v1597_v39 = vmul.f32 %v14581_v29, %v15230_v38  ;;  %v1862_v26 = vmul.f32 %v14573_v45, %v15236_v25  ;;  %v3814_v22 = vmax.f32 %v11813_v62, 0.0  ;;  %v1861_v21 = vmul.f32 %v14581_v29, %v15236_v25 }
 0x3c7   : > { %4382 = vmatpush2.msra.mxu0 %v3565_v17  ;;  %4450 = vmatprep.subr.mxu1 %v3830_v56  ;;  %v2382_v55 = vadd.f32 %v1870_v31, %v1061_v61  ;;  %v1060_v17 = vmul.f32 %v14580_v10, %v15235_v0  ;;  %v3541_v50 = vmax.f32 %v11825_v60, 0.0  ;;  %v3013_v1 = vadd.f32 %v15232_v59, %v2117_v63  ;;  %v3973_v31 = vpop.f32.mrf.mxu0 }
 0x3c8   : > { %4383 = vmatprep.subr.mxu0 %v3558_v19  ;;  %4451 = vmatpush2.msra.mxu1 %v3829_v2  ;;  %v3285_v23 = vadd.f32 %v15234_v24, %v2389_v5  ;;  %v1053_v19 = vmul.f32 %v14571_v6, %v15237_v33  ;;  %v3813_v62 = vmax.f32 %v11837_v9, 0.0  ;;  %v3006_v34 = vadd.f32 %v15238_v54, %v2110_v13  ;;  %v15240_v9 = vld [vmem:[#allocation13_spill] sm:$0xff]  ;;  %v15244_v24 = vld [vmem:[#allocation143_spill] sm:$0xff]  ;;  %v15245_v5 = vld [vmem:[#allocation98_spill] sm:$0xff]  ;;  %v4042_v13 = vpop.f32.mrf.mxu1 }
 0x3c9   : > { %4384 = vmatpush2.msra.mxu0 %v3557_v27  ;;  %4452 = vmatprep.subr.mxu1 %v3822_v18  ;;  %v2381_v56 = vadd.f32 %v1869_v20, %v1060_v17  ;;  %v1052_v32 = vmul.f32 %v14580_v10, %v15237_v33  ;;  %v3534_v60 = vmax.f32 %v11856_v11, 0.0  ;;  %v2109_v57 = vadd.f32 %v1597_v39, %v788_v44  ;;  %v4709_v20 = vld [vmem:[%s12028_s3 + $0x18] sm:$0xff] }
 0x3ca   : > { %4385 = vmatprep.subr.mxu0 %v3550_v48  ;;  %4453 = vmatpush2.msra.mxu1 %v3821_v4  ;;  %v2374_v58 = vadd.f32 %v1862_v26, %v1053_v19  ;;  %v1854_v42 = vmul.f32 %v14573_v45, %v15239_v36  ;;  %v3806_v27 = vmax.f32 %v11866_v53, 0.0  ;;  %v3278_v12 = vadd.f32 %v15240_v9, %v2382_v55  ;;  %v15241_v45 = vld [vmem:[#allocation321_spill] sm:$0xff]  ;;  %v4044_v39 = vpop.f32.mrf.mxu1 }
 0x3cb   : > { %4386 = vmatpush2.msra.mxu0 %v3549_v16  ;;  %4454 = vmatprep.subr.mxu1 %v3814_v22  ;;  %v2373_v46 = vadd.f32 %v1861_v21, %v1052_v32  ;;  %v1853_v28 = vmul.f32 %v14581_v29, %v15239_v36  ;;  %v3533_v11 = vmax.f32 %v11894_v14, 0.0  ;;  %v3005_v15 = vadd.f32 %v15238_v54, %v2109_v57  ;;  %v15246_v26 = vld [vmem:[#allocation197_spill] sm:$0xff] }
 0x3cc   : > { %4387 = vmatprep.subr.mxu0 %v3542_v47  ;;  %4455 = vmatpush2.msra.mxu1 %v3813_v62  ;;  %v1045_v2 = vmul.f32 %v14571_v6, %v15241_v45  ;;  %v3526_v53 = vmax.f32 %v11909_v3, 0.0  ;;  %v3798_v30 = vmax.f32 %v11919_v52, 0.0  ;;  %v3277_v49 = vadd.f32 %v15240_v9, %v2381_v56  ;;  %v3903_v3 = vpop.permute.xlu0 %3902 }
 0x3cd   : > { %4388 = vmatpush2.msra.mxu0 %v3541_v50  ;;  %4456 = vmatprep.subr.mxu1 %v3806_v27  ;;  %v1044_v29 = vmul.f32 %v14580_v10, %v15241_v45  ;;  %v3525_v40 = vmax.f32 %v3013_v1, 0.0  ;;  %v3797_v38 = vmax.f32 %v3285_v23, 0.0  ;;  %v3270_v37 = vadd.f32 %v15242_v51, %v2374_v58 }
 0x3ce   : > { %4389 = vmatprep.subr.mxu0 %v3534_v60  ;;  %4457 = vmatpush2.msra.mxu1 %v3805_v8  ;;  %v2366_v6 = vadd.f32 %v1854_v42, %v1045_v2  ;;  %v3518_v48 = vmax.f32 %v3006_v34, 0.0  ;;  %v3790_v14 = vmax.f32 %v3278_v12, 0.0  ;;  %v3269_v7 = vadd.f32 %v15242_v51, %v2373_v46 }
 0x3cf   : > { %4390 = vmatpush2.msra.mxu0 %v3533_v11  ;;  %4458 = vmatprep.subr.mxu1 %v3798_v30  ;;  %v2365_v18 = vadd.f32 %v1853_v28, %v1044_v29  ;;  %v3517_v10 = vmax.f32 %v3005_v15, 0.0  ;;  %v3789_v35 = vmax.f32 %v3277_v49, 0.0  ;;  %v3972_v52 = vadd.f32 %v3971_v43, %v3903_v3 }
 0x3d0   : > { %4391 = vmatprep.subr.mxu0 %v3526_v53  ;;  %4459 = vmatpush2.msra.mxu1 %v3797_v38  ;;  %v3262_v59 = vadd.f32 %v15243_v41, %v2366_v6  ;;  %v3782_v63 = vmax.f32 %v3270_v37, 0.0  ;;  %v3781_v4 = vmax.f32 %v3269_v7, 0.0  ;;  %v3974_v0 = vadd.f32 %v3973_v31, %v3903_v3 }
 0x3d1   : > { %4392 = vmatpush2.msra.mxu0 %v3525_v40  ;;  %4460 = vmatprep.subr.mxu1 %v3790_v14  ;;  %v3261_v16 = vadd.f32 %v15243_v41, %v2365_v18  ;;  %v4043_v47 = vadd.f32 %v4042_v13, %v3972_v52 }
 0x3d2   : > { %4393 = vmatprep.subr.mxu0 %v3518_v48  ;;  %4395 = vmatprep.mubr.f32.mxu0 %v15244_v24  ;;  %v3774_v61 = vmax.f32 %v3262_v59, 0.0  ;;  %v4045_v25 = vadd.f32 %v4044_v39, %v3974_v0 }
 0x3d3   : > { %4394 = vmatpush2.msra.mxu0 %v3517_v10  ;;  %4461 = vmatpush2.msra.mxu1 %v3789_v35  ;;  %v3773_v44 = vmax.f32 %v3261_v16, 0.0  ;;  %4473 = vst [vmem:[%s11978_s8] sm:$0xff] %v4043_v47 }
 0x3d4   : > { %4396 = vmatmul.mubr.f32.vlgmr.msra.gmra.mxu0 %v15245_v5  ;;  %4462 = vmatprep.subr.mxu1 %v3782_v63  ;;  %4474 = vst [vmem:[%s11978_s8 + $0x8] sm:$0xff] %v4045_v25 }
 0x3d5   : > { %4466 = vmatprep.mubr.f32.mxu1 %v4709_v20  ;;  %4463 = vmatpush2.msra.mxu1 %v3781_v4 }
 0x3d6   : > { %4464 = vmatprep.subr.mxu1 %v3774_v61 }
 0x3d7   : > { %4465 = vmatpush2.msra.mxu1 %v3773_v44 }
 0x3d8   : > { %4467 = vmatmul.mubr.f32.vlgmr.msra.gmra.mxu1 %v15246_v26 }
 0x3ed   : > { %v4113_v22 = vpop.f32.mrf.mxu0 }
 0x3ee   : > { %v4114_v17 = vadd.f32 %v4113_v22, %v3903_v3 }
 0x3ef   : > { %v4115_v55 = vpop.f32.mrf.mxu0 }
 0x3f0   : > { %v4116_v50 = vadd.f32 %v4115_v55, %v3903_v3 }
 0x3f3   : > { %v4184_v21 = vpop.f32.mrf.mxu1 }
 0x3f4   : > { %v4185_v1 = vadd.f32 %v4184_v21, %v4114_v17 }
 0x3f5   : > { %v4186_v23 = vpop.f32.mrf.mxu1 }
 0x3f6   : > { %4475 = vst [vmem:[%s11978_s8 + $0x10] sm:$0xff] %v4185_v1  ;;  %v4187_v33 = vadd.f32 %v4186_v23, %v4116_v50 }
 0x3f8   : > { %4476 = vst [vmem:[%s11978_s8 + $0x18] sm:$0xff] %v4187_v33 }
 0x441   : > { %v4255_v19 = vpop.f32.mrf.mxu0 }
 0x442   : > { %v4256_v54 = vadd.f32 %v4255_v19, %v3903_v3 }
 0x443   : > { %v4257_v62 = vpop.f32.mrf.mxu0 }
 0x444   : > { %v4258_v56 = vadd.f32 %v4257_v62, %v3903_v3 }
 0x448   : > { %v4326_v34 = vpop.f32.mrf.mxu1 }
 0x449   : > { %v4327_v32 = vadd.f32 %v4326_v34, %v4256_v54 }
 0x44a   : > { %v4328_v60 = vpop.f32.mrf.mxu1 }
 0x44b   : > { %4477 = vst [vmem:[%s11978_s8 + $0x20] sm:$0xff] %v4327_v32  ;;  %v4329_v57 = vadd.f32 %v4328_v60, %v4258_v56 }
 0x44d   : > { %4478 = vst [vmem:[%s11978_s8 + $0x28] sm:$0xff] %v4329_v57 }
 0x494   : > { %v4397_v58 = vpop.f32.mrf.mxu0 }
 0x495   : > { %v4398_v42 = vadd.f32 %v4397_v58, %v3903_v3 }
 0x496   : > { %v4399_v36 = vpop.f32.mrf.mxu0 }
 0x497   : > { %v4400_v9 = vadd.f32 %v4399_v36, %v3903_v3 }
 0x498   : > { %v4468_v27 = vpop.f32.mrf.mxu1 }
 0x499   : > { %v4469_v12 = vadd.f32 %v4468_v27, %v4398_v42 }
 0x49a   : > { %v4470_v46 = vpop.f32.mrf.mxu1 }
 0x49b   : > { %4479 = vst [vmem:[%s11978_s8 + $0x30] sm:$0xff] %v4469_v12  ;;  %v4471_v28 = vadd.f32 %v4470_v46, %v4400_v9 }
 0x49d   : > { %4480 = vst [vmem:[%s11978_s8 + $0x38] sm:$0xff] %v4471_v28 }
 0x49e   : > { %4723 = shalt.err (!%p4720_p3)
}
 0x49f   : > { %s4724_s23 = scalar_lea.hbm %s4494_s13, 1024  ;;  %s4728_s6 = scalar_lea.hbm %s12030_s5, 4096 }
 0x4a0   : > { %p4725_p4 = scmp.ne.s32.totalorder %s4494_s13, %s4724_s23  ;;  %p4729_p9 = scmp.lt.s32.totalorder %s4494_s13, %s12030_s5 }
 0x4a1   : > { %p4730_p10 = scmp.lt.s32.totalorder %s4728_s6, %s4724_s23 }
 0x4a2   : > { %p4726_p7 = pnand %p4725_p4, %p4843_p5 }
 0x4a3   : > { %p4731_p11 = por %p4730_p10, %p4729_p9 }
 0x4a4   : > { %p4727_p8 = pneg %p4726_p7 }
 0x4a6   : > { %p4732_p12 = pnand %p4731_p11, %p4727_p8 }
 0x4a8   : > { %4735 = shalt.err (!%p4732_p12)
}
 0x4a9   : > { %4569 = dma.vmem_to_hbm [thread:$0]  (%p4843_p5), %s4497_s10, 1024, %s4494_s13, %s4482_s14  }
 0x4aa PF: > { %p4575_p13 = scmp.ge.s32.totalorder %s4770_s21, 2  ;;  %s4508_s8 = sand.u32 1, %s4758_s18  }
 0x4ab   : > { %s4509_s9 = scalar_lea.sflag [#allocation3], %s4508_s8 }
 0x4ac   : > { %p4572_p0 = pnand %p4575_p13, %p4847_p6 }
 0x4ae   : > { %p4573_p1 = pneg %p4572_p0 }
 0x4b0   : > { %4753 = dma.done.wait (%p4573_p1), %s4509_s9, 1024  }
 0x4b1   : > { %4755 = vsyncadd (%p4573_p1), %s4509_s9, 4294966272  ;;  %p15_p2 = scmp.ge.s32.totalorder %s4830_s24, 6   ;;  %s15247_s18 = smov %s4762_s19 }
 0x4b2   : > { %s15248_s19 = smov %s4766_s20  ;;  %s15249_s20 = smov %s4841_s27 }
 0x4b3   : > { %s15250_s21 = smov %s4830_s24  ;;  %17 = sbr.rel (!%p15_p2) target bundleno = 3 (0x3), region = 76 }
 0x4b8   :  { %4514 = vsyncpa [#allocation3], 1 }
 0x4b9   :  { %4516 = vsyncpa [#allocation3 + $0x1], 1 }

</bundles_post_ra>
